<compile_context>
chip_gen: v5e
topology: v5e:2x2
jax: 0.10.0
libtpu: 0.0.40
codegen_flags: <defaults>
</compile_context>

<pallas_src>
import jax
import jax.numpy as jnp
from jax.experimental import pallas as pl
from jax.experimental.pallas import tpu as pltpu

DIMS = [392, 470, 564, 677, 812, 2]


def _pad128(n: int) -> int:
    return ((n + 127) // 128) * 128


def _pad8(n: int) -> int:
    return ((n + 7) // 8) * 8


def mlp_deep_kernel(x_ref,
                    w1_ref, b1_ref,
                    w2_ref, b2_ref,
                    w3_ref, b3_ref,
                    w4_ref, b4_ref,
                    w5_ref, b5_ref,
                    o_ref):
    def linear(h, w_ref, b_ref):
        # bf16 x bf16 MXU matmul, fp32 accumulation, fp32 bias add.
        # (astype is a no-op for the already-bf16 layer-1 input.)
        return jnp.dot(h.astype(jnp.bfloat16), w_ref[...],
                       preferred_element_type=jnp.float32) + b_ref[...]

    h = x_ref[...]                                      # (TB, 512) bf16
    h = jnp.maximum(linear(h, w1_ref, b1_ref), 0.0)     # l1 + relu
    h = jnp.maximum(linear(h, w2_ref, b2_ref), 0.0)     # l2 + relu
    h = jnp.maximum(linear(h, w3_ref, b3_ref), 0.0)     # l3 + relu
    h = jnp.maximum(linear(h, w4_ref, b4_ref), 0.0)     # l4 + relu
    o_ref[...] = linear(h, w5_ref, b5_ref)              # l5 (no activation)


def mlp_deep_pallas(x, padded_params, *, tb: int = 256):
    """x: (B, 392) f32; padded_params: list of (W_pad bf16 (Kp, Np), b_pad f32 (1, Np))."""
    batch, d_in = x.shape
    d_in_pad = padded_params[0][0].shape[0]
    d_out_pad = padded_params[-1][0].shape[1]

    # Feature pad (contraction dim must be zero-filled) fused with the bf16
    # cast; the batch axis is NOT padded -> no extra full rewrite of x in HBM.
    x_p = jnp.pad(x, ((0, 0), (0, d_in_pad - d_in))).astype(jnp.bfloat16)

    # Small batches get a tight 8-aligned tile (exact blocks for the demo);
    # large batches use TB=256 (use 512 on v6e/v7x if batches are huge).
    tb_eff = min(tb, _pad8(batch))
    n_tiles = pl.cdiv(batch, tb_eff)

    flat_args = [x_p]
    in_specs = [pl.BlockSpec((tb_eff, d_in_pad), lambda i: (i, 0))]
    for w, b in padded_params:
        flat_args.extend([w, b])
        # Weights/biases: full-array blocks, constant index_map -> fetched once,
        # stay VMEM-resident across all batch-grid steps.
        in_specs.append(pl.BlockSpec(w.shape, lambda i: (0, 0)))
        in_specs.append(pl.BlockSpec(b.shape, lambda i: (0, 0)))
    out_spec = pl.BlockSpec((tb_eff, d_out_pad), lambda i: (i, 0))

    flops = 2 * batch * sum(w.shape[0] * w.shape[1] for w, _ in padded_params)
    bytes_accessed = (x_p.size * 2
                      + sum(w.size * 2 + b.size * 4 for w, b in padded_params)
                      + batch * d_out_pad * 4)

    out = pl.pallas_call(
        mlp_deep_kernel,
        out_shape=jax.ShapeDtypeStruct((batch, d_out_pad), jnp.float32),
        grid=(n_tiles,),
        in_specs=in_specs,
        out_specs=out_spec,
        compiler_params=pltpu.CompilerParams(
            dimension_semantics=("parallel",),
            vmem_limit_bytes=24 << 20,
        ),
        cost_estimate=pl.CostEstimate(
            flops=flops, transcendentals=0, bytes_accessed=bytes_accessed),
    )(*flat_args)

    return out[:, :DIMS[-1]]


def init_params(key):
    """Deterministic init mimicking PyTorch Linear default (uniform +/- 1/sqrt(fan_in)).

    W stored as (in_features, out_features); b as (1, out_features)."""
    params = []
    for i in range(5):
        fan_in, fan_out = DIMS[i], DIMS[i + 1]
        key, kw, kb = jax.random.split(key, 3)
        bound = 1.0 / (fan_in ** 0.5)
        w = jax.random.uniform(kw, (fan_in, fan_out), jnp.float32, -bound, bound)
        b = jax.random.uniform(kb, (1, fan_out), jnp.float32, -bound, bound)
        params.append((w, b))
    return params


def pad_params(params):
    """Zero-pad every layer to 128-aligned (in, out); weights -> bf16, biases f32."""
    padded = []
    for w, b in params:
        k_in, k_out = w.shape
        k_in_p, k_out_p = _pad128(k_in), _pad128(k_out)
        w_p = jnp.zeros((k_in_p, k_out_p), jnp.bfloat16)
        w_p = w_p.at[:k_in, :k_out].set(w.astype(jnp.bfloat16))
        b_p = jnp.zeros((1, k_out_p), jnp.float32)
        b_p = b_p.at[:, :k_out].set(b)
        padded.append((w_p, b_p))
    return padded


def mlp_deep_ref_f32(x, params):
    h = x
    for i, (w, b) in enumerate(params):
        h = h @ w + b
        if i < 4:
            h = jnp.maximum(h, 0.0)
    return h


def mlp_deep_ref_bf16(x, params):
    """Reference matching the kernel's numerics (bf16 operands, f32 accumulation)."""
    h = x
    for i, (w, b) in enumerate(params):
        h = jnp.dot(h.astype(jnp.bfloat16), w.astype(jnp.bfloat16),
                    preferred_element_type=jnp.float32) + b
        if i < 4:
            h = jnp.maximum(h, 0.0)
    return h


if __name__ == "__main__":
    key = jax.random.PRNGKey(0)
    key, kx = jax.random.split(key)

    batch = 8
    x = jax.random.normal(kx, (batch, 392), dtype=jnp.float32)
    params = init_params(key)
    padded_params = pad_params(params)

    out = mlp_deep_pallas(x, padded_params)
    out = jax.block_until_ready(out)
    assert out.shape == (batch, 2)

    # Tight check against a reference with identical (bf16-weight) numerics.
    ref_bf16 = mlp_deep_ref_bf16(x, params)
    assert jnp.allclose(out, ref_bf16, atol=2e-3, rtol=2e-3), \
        float(jnp.max(jnp.abs(out - ref_bf16)))

    # Loose sanity check against the exact fp32 PyTorch-equivalent forward.
    ref_f32 = mlp_deep_ref_f32(x, params)
    assert float(jnp.max(jnp.abs(out - ref_f32))) < 0.15

    print("KERNEL_OK")
</pallas_src>

<mosaic_0001>
module attributes {stable_mosaic.version = 11 : i64} {
  func.func @mlp_deep_kernel(%arg0: i32, %arg1: memref<8x512xbf16, #tpu.memory_space<vmem>>, %arg2: memref<512x512xbf16, #tpu.memory_space<vmem>>, %arg3: memref<1x512xf32, #tpu.memory_space<vmem>>, %arg4: memref<512x640xbf16, #tpu.memory_space<vmem>>, %arg5: memref<1x640xf32, #tpu.memory_space<vmem>>, %arg6: memref<640x768xbf16, #tpu.memory_space<vmem>>, %arg7: memref<1x768xf32, #tpu.memory_space<vmem>>, %arg8: memref<768x896xbf16, #tpu.memory_space<vmem>>, %arg9: memref<1x896xf32, #tpu.memory_space<vmem>>, %arg10: memref<896x128xbf16, #tpu.memory_space<vmem>>, %arg11: memref<1x128xf32, #tpu.memory_space<vmem>>, %arg12: memref<8x128xf32, #tpu.memory_space<vmem>>) attributes {dimension_semantics = [#tpu.dimension_semantics<parallel>], iteration_bounds = array<i64: 1>, scalar_prefetch = 0 : i64, scratch_operands = 0 : i64, tpu.core_type = #tpu.core_type<tc>, window_params = [{transform_indices = @transform_0, window_bounds = array<i64: 8, 512>}, {pipeline_mode = #tpu.pipeline_mode<synchronous>, transform_indices = @transform_1, window_bounds = array<i64: 512, 512>}, {pipeline_mode = #tpu.pipeline_mode<synchronous>, transform_indices = @transform_2, window_bounds = array<i64: 1, 512>}, {pipeline_mode = #tpu.pipeline_mode<synchronous>, transform_indices = @transform_3, window_bounds = array<i64: 512, 640>}, {pipeline_mode = #tpu.pipeline_mode<synchronous>, transform_indices = @transform_4, window_bounds = array<i64: 1, 640>}, {pipeline_mode = #tpu.pipeline_mode<synchronous>, transform_indices = @transform_5, window_bounds = array<i64: 640, 768>}, {pipeline_mode = #tpu.pipeline_mode<synchronous>, transform_indices = @transform_6, window_bounds = array<i64: 1, 768>}, {pipeline_mode = #tpu.pipeline_mode<synchronous>, transform_indices = @transform_7, window_bounds = array<i64: 768, 896>}, {pipeline_mode = #tpu.pipeline_mode<synchronous>, transform_indices = @transform_8, window_bounds = array<i64: 1, 896>}, {pipeline_mode = #tpu.pipeline_mode<synchronous>, transform_indices = @transform_9, window_bounds = array<i64: 896, 128>}, {pipeline_mode = #tpu.pipeline_mode<synchronous>, transform_indices = @transform_10, window_bounds = array<i64: 1, 128>}, {transform_indices = @transform_11, window_bounds = array<i64: 8, 128>}]} {
    %c0 = arith.constant 0 : index
    %c0_0 = arith.constant 0 : index
    %0 = vector.load %arg1[%c0, %c0_0] : memref<8x512xbf16, #tpu.memory_space<vmem>>, vector<8x512xbf16>
    %c0_1 = arith.constant 0 : index
    %c0_2 = arith.constant 0 : index
    %1 = vector.load %arg2[%c0_1, %c0_2] : memref<512x512xbf16, #tpu.memory_space<vmem>>, vector<512x512xbf16>
    %cst = arith.constant dense<0.000000e+00> : vector<8x512xf32>
    %2 = tpu.matmul %0, %1, %cst {dimension_numbers = #tpu.dot_dimension_numbers<[1], [0], [0], [1], [0, 0, 1, 1], [], []>} : vector<8x512xbf16>, vector<512x512xbf16>, vector<8x512xf32> -> vector<8x512xf32>
    %c0_3 = arith.constant 0 : index
    %c0_4 = arith.constant 0 : index
    %3 = vector.load %arg3[%c0_3, %c0_4] : memref<1x512xf32, #tpu.memory_space<vmem>>, vector<1x512xf32>
    %4 = vector.broadcast %3 : vector<1x512xf32> to vector<8x512xf32>
    %5 = arith.addf %2, %4 : vector<8x512xf32>
    %cst_5 = arith.constant 0.000000e+00 : f32
    %6 = vector.broadcast %cst_5 : f32 to vector<8x512xf32>
    %7 = arith.maximumf %5, %6 : vector<8x512xf32>
    %8 = arith.truncf %7 : vector<8x512xf32> to vector<8x512xbf16>
    %c0_6 = arith.constant 0 : index
    %c0_7 = arith.constant 0 : index
    %9 = vector.load %arg4[%c0_6, %c0_7] : memref<512x640xbf16, #tpu.memory_space<vmem>>, vector<512x640xbf16>
    %cst_8 = arith.constant dense<0.000000e+00> : vector<8x640xf32>
    %10 = tpu.matmul %8, %9, %cst_8 {dimension_numbers = #tpu.dot_dimension_numbers<[1], [0], [0], [1], [0, 0, 1, 1], [], []>} : vector<8x512xbf16>, vector<512x640xbf16>, vector<8x640xf32> -> vector<8x640xf32>
    %c0_9 = arith.constant 0 : index
    %c0_10 = arith.constant 0 : index
    %11 = vector.load %arg5[%c0_9, %c0_10] : memref<1x640xf32, #tpu.memory_space<vmem>>, vector<1x640xf32>
    %12 = vector.broadcast %11 : vector<1x640xf32> to vector<8x640xf32>
    %13 = arith.addf %10, %12 : vector<8x640xf32>
    %cst_11 = arith.constant 0.000000e+00 : f32
    %14 = vector.broadcast %cst_11 : f32 to vector<8x640xf32>
    %15 = arith.maximumf %13, %14 : vector<8x640xf32>
    %16 = arith.truncf %15 : vector<8x640xf32> to vector<8x640xbf16>
    %c0_12 = arith.constant 0 : index
    %c0_13 = arith.constant 0 : index
    %17 = vector.load %arg6[%c0_12, %c0_13] : memref<640x768xbf16, #tpu.memory_space<vmem>>, vector<640x768xbf16>
    %cst_14 = arith.constant dense<0.000000e+00> : vector<8x768xf32>
    %18 = tpu.matmul %16, %17, %cst_14 {dimension_numbers = #tpu.dot_dimension_numbers<[1], [0], [0], [1], [0, 0, 1, 1], [], []>} : vector<8x640xbf16>, vector<640x768xbf16>, vector<8x768xf32> -> vector<8x768xf32>
    %c0_15 = arith.constant 0 : index
    %c0_16 = arith.constant 0 : index
    %19 = vector.load %arg7[%c0_15, %c0_16] : memref<1x768xf32, #tpu.memory_space<vmem>>, vector<1x768xf32>
    %20 = vector.broadcast %19 : vector<1x768xf32> to vector<8x768xf32>
    %21 = arith.addf %18, %20 : vector<8x768xf32>
    %cst_17 = arith.constant 0.000000e+00 : f32
    %22 = vector.broadcast %cst_17 : f32 to vector<8x768xf32>
    %23 = arith.maximumf %21, %22 : vector<8x768xf32>
    %24 = arith.truncf %23 : vector<8x768xf32> to vector<8x768xbf16>
    %c0_18 = arith.constant 0 : index
    %c0_19 = arith.constant 0 : index
    %25 = vector.load %arg8[%c0_18, %c0_19] : memref<768x896xbf16, #tpu.memory_space<vmem>>, vector<768x896xbf16>
    %cst_20 = arith.constant dense<0.000000e+00> : vector<8x896xf32>
    %26 = tpu.matmul %24, %25, %cst_20 {dimension_numbers = #tpu.dot_dimension_numbers<[1], [0], [0], [1], [0, 0, 1, 1], [], []>} : vector<8x768xbf16>, vector<768x896xbf16>, vector<8x896xf32> -> vector<8x896xf32>
    %c0_21 = arith.constant 0 : index
    %c0_22 = arith.constant 0 : index
    %27 = vector.load %arg9[%c0_21, %c0_22] : memref<1x896xf32, #tpu.memory_space<vmem>>, vector<1x896xf32>
    %28 = vector.broadcast %27 : vector<1x896xf32> to vector<8x896xf32>
    %29 = arith.addf %26, %28 : vector<8x896xf32>
    %cst_23 = arith.constant 0.000000e+00 : f32
    %30 = vector.broadcast %cst_23 : f32 to vector<8x896xf32>
    %31 = arith.maximumf %29, %30 : vector<8x896xf32>
    %32 = arith.truncf %31 : vector<8x896xf32> to vector<8x896xbf16>
    %c0_24 = arith.constant 0 : index
    %c0_25 = arith.constant 0 : index
    %33 = vector.load %arg10[%c0_24, %c0_25] : memref<896x128xbf16, #tpu.memory_space<vmem>>, vector<896x128xbf16>
    %cst_26 = arith.constant dense<0.000000e+00> : vector<8x128xf32>
    %34 = tpu.matmul %32, %33, %cst_26 {dimension_numbers = #tpu.dot_dimension_numbers<[1], [0], [0], [1], [0, 0, 1, 1], [], []>} : vector<8x896xbf16>, vector<896x128xbf16>, vector<8x128xf32> -> vector<8x128xf32>
    %c0_27 = arith.constant 0 : index
    %c0_28 = arith.constant 0 : index
    %35 = vector.load %arg11[%c0_27, %c0_28] : memref<1x128xf32, #tpu.memory_space<vmem>>, vector<1x128xf32>
    %36 = vector.broadcast %35 : vector<1x128xf32> to vector<8x128xf32>
    %37 = arith.addf %34, %36 : vector<8x128xf32>
    %c0_29 = arith.constant 0 : index
    %c0_30 = arith.constant 0 : index
    %38 = vector.load %arg12[%c0_29, %c0_30] : memref<8x128xf32, #tpu.memory_space<vmem>>, vector<8x128xf32>
    tpu.vector_store %arg12[%c0_29, %c0_30], %37 {strides = array<i32>} : memref<8x128xf32, #tpu.memory_space<vmem>>, vector<8x128xf32>,
    return
  }
  func.func @transform_0(%arg0: i32) -> (i32, i32) {
    %c0_i32 = arith.constant 0 : i32
    %c0_i32_0 = arith.constant 0 : i32
    return %arg0, %c0_i32 : i32, i32
  }
  func.func @transform_1(%arg0: i32) -> (i32, i32) {
    %c0_i32 = arith.constant 0 : i32
    %c0_i32_0 = arith.constant 0 : i32
    %c0_i32_1 = arith.constant 0 : i32
    return %c0_i32, %c0_i32_0 : i32, i32
  }
  func.func @transform_2(%arg0: i32) -> (i32, i32) {
    %c0_i32 = arith.constant 0 : i32
    %c0_i32_0 = arith.constant 0 : i32
    %c0_i32_1 = arith.constant 0 : i32
    return %c0_i32, %c0_i32_0 : i32, i32
  }
  func.func @transform_3(%arg0: i32) -> (i32, i32) {
    %c0_i32 = arith.constant 0 : i32
    %c0_i32_0 = arith.constant 0 : i32
    %c0_i32_1 = arith.constant 0 : i32
    return %c0_i32, %c0_i32_0 : i32, i32
  }
  func.func @transform_4(%arg0: i32) -> (i32, i32) {
    %c0_i32 = arith.constant 0 : i32
    %c0_i32_0 = arith.constant 0 : i32
    %c0_i32_1 = arith.constant 0 : i32
    return %c0_i32, %c0_i32_0 : i32, i32
  }
  func.func @transform_5(%arg0: i32) -> (i32, i32) {
    %c0_i32 = arith.constant 0 : i32
    %c0_i32_0 = arith.constant 0 : i32
    %c0_i32_1 = arith.constant 0 : i32
    return %c0_i32, %c0_i32_0 : i32, i32
  }
  func.func @transform_6(%arg0: i32) -> (i32, i32) {
    %c0_i32 = arith.constant 0 : i32
    %c0_i32_0 = arith.constant 0 : i32
    %c0_i32_1 = arith.constant 0 : i32
    return %c0_i32, %c0_i32_0 : i32, i32
  }
  func.func @transform_7(%arg0: i32) -> (i32, i32) {
    %c0_i32 = arith.constant 0 : i32
    %c0_i32_0 = arith.constant 0 : i32
    %c0_i32_1 = arith.constant 0 : i32
    return %c0_i32, %c0_i32_0 : i32, i32
  }
  func.func @transform_8(%arg0: i32) -> (i32, i32) {
    %c0_i32 = arith.constant 0 : i32
    %c0_i32_0 = arith.constant 0 : i32
    %c0_i32_1 = arith.constant 0 : i32
    return %c0_i32, %c0_i32_0 : i32, i32
  }
  func.func @transform_9(%arg0: i32) -> (i32, i32) {
    %c0_i32 = arith.constant 0 : i32
    %c0_i32_0 = arith.constant 0 : i32
    %c0_i32_1 = arith.constant 0 : i32
    return %c0_i32, %c0_i32_0 : i32, i32
  }
  func.func @transform_10(%arg0: i32) -> (i32, i32) {
    %c0_i32 = arith.constant 0 : i32
    %c0_i32_0 = arith.constant 0 : i32
    %c0_i32_1 = arith.constant 0 : i32
    return %c0_i32, %c0_i32_0 : i32, i32
  }
  func.func @transform_11(%arg0: i32) -> (i32, i32) {
    %c0_i32 = arith.constant 0 : i32
    %c0_i32_0 = arith.constant 0 : i32
    return %arg0, %c0_i32 : i32, i32
  }
}

</mosaic_0001>

<bundles_post_ra>
// kernel: tpu_custom_call.1
= control target key start
LH: loop header
LB: loop body
LE: loop exit
PB: predicated region body
PF: predicated region fallthrough
CT: control target
= control target key end

     0   :  { %16 = vsyncpa [#allocation3], 0  ;;  %s13041_s0 = inlined_call_operand.hbm [shape: bf16[8,512], index: 0, kind: input, shape index: {}]   ;;  %s13042_s1 = inlined_call_operand.hbm [shape: bf16[512,512], index: 1, kind: input, shape index: {}]   ;;  %s13043_s2 = inlined_call_operand.hbm [shape: f32[1,512], index: 2, kind: input, shape index: {}]   ;;  %s13044_s3 = inlined_call_operand.hbm [shape: bf16[512,640], index: 3, kind: input, shape index: {}]   ;;  %s13045_s4 = inlined_call_operand.hbm [shape: f32[1,640], index: 4, kind: input, shape index: {}]   ;;  %s13046_s5 = inlined_call_operand.hbm [shape: bf16[640,768], index: 5, kind: input, shape index: {}]   ;;  %s13047_s6 = inlined_call_operand.hbm [shape: f32[1,768], index: 6, kind: input, shape index: {}]   ;;  %s13048_s7 = inlined_call_operand.hbm [shape: bf16[768,896], index: 7, kind: input, shape index: {}]   ;;  %s13049_s8 = inlined_call_operand.hbm [shape: f32[1,896], index: 8, kind: input, shape index: {}]   ;;  %s13050_s9 = inlined_call_operand.hbm [shape: bf16[896,128], index: 9, kind: input, shape index: {}]   ;;  %s13051_s10 = inlined_call_operand.hbm [shape: f32[1,128], index: 10, kind: input, shape index: {}]   ;;  %s13052_s11 = inlined_call_operand.hbm [shape: f32[8,128], index: 11, kind: output, shape index: {}]  }
   0x1   :  { %17 = vsyncpa [#allocation6], 0 }
   0x2   :  { %18 = vsyncpa [#allocation9], 0 }
   0x3   :  { %19 = vsyncpa [#allocation12], 0 }
   0x4   :  { %20 = vsyncpa [#allocation15], 0 }
   0x5   :  { %21 = vsyncpa [#allocation18], 0  ;;  %s38_s19 = sshll.u32 %s13042_s1, 4  ;;  %s39_s19 = int_to_ptr.hbm [resolvable:$true] %s38_s19 }
   0x6   :  { %22 = vsyncpa [#allocation4], 0  ;;  %s12551_s20 = smov [#allocation5]   ;;  %s62_s24 = sshll.u32 %s13044_s3, 4  ;;  %s63_s24 = int_to_ptr.hbm [resolvable:$true] %s62_s24 }
   0x7   :  { %s40_s21 = sshll.u32 %s12551_s20, 4  ;;  %s12552_s25 = smov 256   ;;  %s41_s21 = int_to_ptr.vmem [resolvable:$true] %s40_s21 }
   0x8   :  { %s12553_s26 = smov 16   ;;  %s12554_s27 = smov [#allocation8]  }
   0x9   :  { %46 = dma.hbm_to_vmem [thread:$0]  %s39_s19, 16384, %s41_s21, [#allocation6], %s12552_s25, %s12552_s25, %s12553_s26  }
   0xa   :  { %s64_s28 = sshll.u32 %s12554_s27, 4  ;;  %s12555_s29 = smov 320   ;;  %s65_s28 = int_to_ptr.vmem [resolvable:$true] %s64_s28 }
   0xb   :  { %s12556_s30 = smov 20   ;;  %s86_s13 = sshll.u32 %s13046_s5, 4  ;;  %s87_s13 = int_to_ptr.hbm [resolvable:$true] %s86_s13 }
   0xc   :  { %70 = dma.hbm_to_vmem [thread:$0]  %s63_s24, 20480, %s65_s28, [#allocation9], %s12555_s29, %s12555_s29, %s12556_s30  }
   0xd   :  { %s12557_s14 = smov [#allocation11]   ;;  %s110_s17 = sshll.u32 %s13048_s7, 4  ;;  %s111_s17 = int_to_ptr.hbm [resolvable:$true] %s110_s17 }
   0xe   :  { %s88_s15 = sshll.u32 %s12557_s14, 4  ;;  %s12558_s18 = smov 384   ;;  %s89_s15 = int_to_ptr.vmem [resolvable:$true] %s88_s15 }
   0xf   :  { %s12559_s19 = smov 24   ;;  %s12560_s20 = smov [#allocation14]  }
  0x10   :  { %94 = dma.hbm_to_vmem [thread:$0]  %s87_s13, 30720, %s89_s15, [#allocation12], %s12558_s18, %s12558_s18, %s12559_s19  }
  0x11   :  { %s112_s21 = sshll.u32 %s12560_s20, 4  ;;  %s12561_s22 = smov 448   ;;  %s113_s21 = int_to_ptr.vmem [resolvable:$true] %s112_s21 }
  0x12   :  { %s12562_s23 = smov 28   ;;  %s134_s25 = sshll.u32 %s13050_s9, 4  ;;  %s135_s25 = int_to_ptr.hbm [resolvable:$true] %s134_s25 }
  0x13   :  { %118 = dma.hbm_to_vmem [thread:$0]  %s111_s17, 43008, %s113_s21, [#allocation15], %s12561_s22, %s12561_s22, %s12562_s23  }
  0x14   :  { %s12563_s26 = smov [#allocation17]   ;;  %s28_s29 = sshll.u32 %s13041_s0, 4  ;;  %s29_s29 = int_to_ptr.hbm [resolvable:$true] %s28_s29 }
  0x15   :  { %s136_s27 = sshll.u32 %s12563_s26, 4  ;;  %s12564_s30 = smov 64   ;;  %s137_s27 = int_to_ptr.vmem [resolvable:$true] %s136_s27 }
  0x16   :  { %s12565_s1 = smov 4   ;;  %s12566_s12 = smov [#allocation2]  }
  0x17   :  { %142 = dma.hbm_to_vmem [thread:$0]  %s135_s25, 7168, %s137_s27, [#allocation18], %s12564_s30, %s12564_s30, %s12565_s1  }
  0x18   :  { %s30_s13 = sshll.u32 %s12566_s12, 4  ;;  %s52_s16 = sshll.u32 %s13043_s2, 4  ;;  %s31_s13 = int_to_ptr.vmem [resolvable:$true] %s30_s13  ;;  %s53_s16 = int_to_ptr.hbm [resolvable:$true] %s52_s16 }
  0x19   :  { %33 = dma.hbm_to_vmem [thread:$0]  %s29_s29, 256, %s31_s13, [#allocation3]  }
  0x1a   :  { %s76_s17 = sshll.u32 %s13045_s4, 4  ;;  %s12567_s18 = smov [#allocation7]   ;;  %s77_s17 = int_to_ptr.hbm [resolvable:$true] %s76_s17 }
  0x1b   :  { %s54_s19 = sshll.u32 %s12567_s18, 4  ;;  %s12568_s0 = smov [#allocation10]   ;;  %s55_s19 = int_to_ptr.vmem [resolvable:$true] %s54_s19 }
  0x1c   :  { %57 = dma.hbm_to_vmem [thread:$0]  %s53_s16, 64, %s55_s19, [#allocation6]  }
  0x1d   :  { %s78_s20 = sshll.u32 %s12568_s0, 4  ;;  %s100_s23 = sshll.u32 %s13047_s6, 4  ;;  %s79_s20 = int_to_ptr.vmem [resolvable:$true] %s78_s20  ;;  %s101_s23 = int_to_ptr.hbm [resolvable:$true] %s100_s23 }
  0x1e   :  { %81 = dma.hbm_to_vmem [thread:$0]  %s77_s17, 80, %s79_s20, [#allocation9]  }
  0x1f   :  { %s124_s5 = sshll.u32 %s13049_s8, 4  ;;  %s12569_s25 = smov [#allocation13]   ;;  %s125_s5 = int_to_ptr.hbm [resolvable:$true] %s124_s5 }
  0x20   :  { %s102_s4 = sshll.u32 %s12569_s25, 4  ;;  %s12570_s26 = smov [#allocation16]   ;;  %s103_s4 = int_to_ptr.vmem [resolvable:$true] %s102_s4 }
  0x21   :  { %105 = dma.hbm_to_vmem [thread:$0]  %s101_s23, 96, %s103_s4, [#allocation12]  }
  0x22   :  { %s126_s27 = sshll.u32 %s12570_s26, 4  ;;  %s148_s29 = sshll.u32 %s13051_s10, 4  ;;  %s127_s27 = int_to_ptr.vmem [resolvable:$true] %s126_s27  ;;  %s149_s29 = int_to_ptr.hbm [resolvable:$true] %s148_s29 }
  0x23   :  { %129 = dma.hbm_to_vmem [thread:$0]  %s125_s5, 112, %s127_s27, [#allocation15]  }
  0x24   :  { %s12571_s6 = smov [#allocation19]  }
  0x25   :  { %s150_s30 = sshll.u32 %s12571_s6, 4  ;;  %s151_s30 = int_to_ptr.vmem [resolvable:$true] %s150_s30 }
  0x26   :  { %153 = dma.hbm_to_vmem [thread:$0]  %s149_s29, 16, %s151_s30, [#allocation18]  }
  0x27   :  { %12537 = dma.done.wait [#allocation3], 256  }
  0x28   :  { %12538 = vsyncadd [#allocation3], 4294967040 }
  0x29   :  { %12539 = dma.done.wait [#allocation6], 16448  }
  0x2a   :  { %12540 = vsyncadd [#allocation6], 4294950848 }
  0x2b   :  { %12541 = dma.done.wait [#allocation9], 20560  }
  0x2c   :  { %12542 = vsyncadd [#allocation9], 4294946736 }
  0x2d   :  { %12543 = dma.done.wait [#allocation12], 30816  }
  0x2e   :  { %12544 = vsyncadd [#allocation12], 4294936480 }
  0x2f   :  { %12545 = dma.done.wait [#allocation15], 43120  }
  0x30   :  { %12546 = vsyncadd [#allocation15], 4294924176 }
  0x31   :  { %12547 = dma.done.wait [#allocation18], 7184  }
  0x32   :  { %12548 = vsyncadd [#allocation18], 4294960112  ;;  %v7738_v0 = vld [vmem:[#allocation5 + $0xe0] sm:$0xf]  ;;  %v11334_v1 = vld [vmem:[#allocation5 + $0xec] sm:$0xf0] }
  0x33   :  { %v7866_v2 = vld [vmem:[#allocation5 + $0x1e0] sm:$0xf]  ;;  %v7739_v3 = vor.u32 %v11334_v1, %v7738_v0  ;;  %v11366_v4 = vld [vmem:[#allocation5 + $0x1ec] sm:$0xf0]  ;;  %s12572_s8 = smov [#allocation20]   ;;  %s7609_s13 = sshll.u32 %s13052_s11, 4  ;;  %s7610_s13 = int_to_ptr.hbm [resolvable:$true] %s7609_s13 }
  0x34   :  { %v7994_v5 = vld [vmem:[#allocation5 + $0x2e0] sm:$0xf]  ;;  %v11398_v6 = vld [vmem:[#allocation5 + $0x2ec] sm:$0xf0]  ;;  %v7867_v7 = vor.u32 %v11366_v4, %v7866_v2  ;;  %s7607_s10 = sshll.u32 %s12572_s8, 4  ;;  %s7608_s10 = int_to_ptr.vmem [resolvable:$true] %s7607_s10 }
  0x35   :  { %v7995_v8 = vor.u32 %v11398_v6, %v7994_v5  ;;  %v8122_v9 = vld [vmem:[#allocation5 + $0x3e0] sm:$0xf]  ;;  %v11430_v10 = vld [vmem:[#allocation5 + $0x3ec] sm:$0xf0]  ;;  %992 = vmatpush.bf16.msra.mxu0 %v7739_v3 }
  0x36   :  { %v7722_v11 = vld [vmem:[#allocation5 + $0xc0] sm:$0xf]  ;;  %v8123_v12 = vor.u32 %v11430_v10, %v8122_v9  ;;  %v11330_v13 = vld [vmem:[#allocation5 + $0xcc] sm:$0xf0]  ;;  %1005 = vmatpush.bf16.msra.mxu1 %v7867_v7 }
  0x37   :  { %v7850_v14 = vld [vmem:[#allocation5 + $0x1c0] sm:$0xf]  ;;  %v11362_v15 = vld [vmem:[#allocation5 + $0x1cc] sm:$0xf0]  ;;  %1018 = vmatpush.bf16.msra.mxu2 %v7995_v8  ;;  %v7723_v16 = vor.u32 %v11330_v13, %v7722_v11 }
  0x38   :  { %v7851_v17 = vor.u32 %v11362_v15, %v7850_v14  ;;  %v7978_v18 = vld [vmem:[#allocation5 + $0x2c0] sm:$0xf]  ;;  %v11394_v19 = vld [vmem:[#allocation5 + $0x2cc] sm:$0xf0]  ;;  %1031 = vmatpush.bf16.msra.mxu3 %v8123_v12 }
  0x39   :  { %v8106_v20 = vld [vmem:[#allocation5 + $0x3c0] sm:$0xf]  ;;  %v7979_v21 = vor.u32 %v11394_v19, %v7978_v18  ;;  %v11426_v22 = vld [vmem:[#allocation5 + $0x3cc] sm:$0xf0]  ;;  %993 = vmatpush.bf16.msra.mxu0 %v7723_v16 }
  0x3a   :  { %v7706_v23 = vld [vmem:[#allocation5 + $0xa0] sm:$0xf]  ;;  %v11326_v24 = vld [vmem:[#allocation5 + $0xac] sm:$0xf0]  ;;  %v8107_v25 = vor.u32 %v11426_v22, %v8106_v20  ;;  %1006 = vmatpush.bf16.msra.mxu1 %v7851_v17 }
  0x3b   :  { %v7834_v26 = vld [vmem:[#allocation5 + $0x1a0] sm:$0xf]  ;;  %v11358_v27 = vld [vmem:[#allocation5 + $0x1ac] sm:$0xf0]  ;;  %v7707_v29 = vor.u32 %v11326_v24, %v7706_v23  ;;  %1019 = vmatpush.bf16.msra.mxu2 %v7979_v21 }
  0x3c   :  { %v7962_v28 = vld [vmem:[#allocation5 + $0x2a0] sm:$0xf]  ;;  %v11390_v30 = vld [vmem:[#allocation5 + $0x2ac] sm:$0xf0]  ;;  %v7835_v33 = vor.u32 %v11358_v27, %v7834_v26  ;;  %1032 = vmatpush.bf16.msra.mxu3 %v8107_v25  ;;  %v199_v25 = vld [vmem:[#allocation2 + $0x8] sm:$0xff] }
  0x3d   :  { %v8090_v31 = vld [vmem:[#allocation5 + $0x3a0] sm:$0xf]  ;;  %v11422_v32 = vld [vmem:[#allocation5 + $0x3ac] sm:$0xf0]  ;;  %v7963_v34 = vor.u32 %v11390_v30, %v7962_v28  ;;  %994 = vmatpush.bf16.msra.mxu0 %v7707_v29  ;;  %v11332_v29 = vld [vmem:[#allocation5 + $0xe4] sm:$0xf] }
  0x3e   :  { %v7690_v35 = vld [vmem:[#allocation5 + $0x80] sm:$0xf]  ;;  %v11322_v36 = vld [vmem:[#allocation5 + $0x8c] sm:$0xf0]  ;;  %v8091_v38 = vor.u32 %v11422_v32, %v8090_v31  ;;  %1007 = vmatpush.bf16.msra.mxu1 %v7835_v33  ;;  %v7740_v30 = vld [vmem:[#allocation5 + $0xf0] sm:$0xf0] }
  0x3f   :  { %v7818_v37 = vld [vmem:[#allocation5 + $0x180] sm:$0xf]  ;;  %v11354_v39 = vld [vmem:[#allocation5 + $0x18c] sm:$0xf0]  ;;  %v7691_v44 = vor.u32 %v11322_v36, %v7690_v35  ;;  %1020 = vmatpush.bf16.msra.mxu2 %v7963_v34  ;;  %v11364_v31 = vld [vmem:[#allocation5 + $0x1e4] sm:$0xf]  ;;  %v342_v36 = vunpack.c.l.b16 %v199_v25 }
  0x40   :  { %v7946_v40 = vld [vmem:[#allocation5 + $0x280] sm:$0xf]  ;;  %v11386_v41 = vld [vmem:[#allocation5 + $0x28c] sm:$0xf0]  ;;  %v7819_v45 = vor.u32 %v11354_v39, %v7818_v37  ;;  %1033 = vmatpush.bf16.msra.mxu3 %v8091_v38  ;;  %v7868_v32 = vld [vmem:[#allocation5 + $0x1f0] sm:$0xf0] }
  0x41   :  { %v8074_v42 = vld [vmem:[#allocation5 + $0x380] sm:$0xf]  ;;  %v11418_v43 = vld [vmem:[#allocation5 + $0x38c] sm:$0xf0]  ;;  %v7947_v46 = vor.u32 %v11386_v41, %v7946_v40  ;;  %995 = vmatpush.bf16.msra.mxu0 %v7691_v44  ;;  %v11396_v34 = vld [vmem:[#allocation5 + $0x2e4] sm:$0xf] }
  0x42   :  { %v7674_v47 = vld [vmem:[#allocation5 + $0x60] sm:$0xf]  ;;  %v11318_v48 = vld [vmem:[#allocation5 + $0x6c] sm:$0xf0]  ;;  %v8075_v50 = vor.u32 %v11418_v43, %v8074_v42  ;;  %1008 = vmatpush.bf16.msra.mxu1 %v7819_v45  ;;  %v7996_v35 = vld [vmem:[#allocation5 + $0x2f0] sm:$0xf0]  ;;  %v343_v43 = vunpack.c.h.b16 %v199_v25  ;;  %v7743_v45 = vor.u32 %v11332_v29, %v7740_v30 }
  0x43   :  { %v7802_v49 = vld [vmem:[#allocation5 + $0x160] sm:$0xf]  ;;  %v11350_v51 = vld [vmem:[#allocation5 + $0x16c] sm:$0xf0]  ;;  %v7675_v56 = vor.u32 %v11318_v48, %v7674_v47  ;;  %1021 = vmatpush.bf16.msra.mxu2 %v7947_v46  ;;  %v11428_v40 = vld [vmem:[#allocation5 + $0x3e4] sm:$0xf]  ;;  %v7871_v47 = vor.u32 %v11364_v31, %v7868_v32  ;;  %v7999_v48 = vor.u32 %v11396_v34, %v7996_v35 }
  0x44   :  { %v7930_v52 = vld [vmem:[#allocation5 + $0x260] sm:$0xf]  ;;  %v11382_v53 = vld [vmem:[#allocation5 + $0x26c] sm:$0xf0]  ;;  %v7803_v57 = vor.u32 %v11350_v51, %v7802_v49  ;;  %1034 = vmatpush.bf16.msra.mxu3 %v8075_v50  ;;  %v8124_v41 = vld [vmem:[#allocation5 + $0x3f0] sm:$0xf0] }
  0x45   :  { %v8058_v54 = vld [vmem:[#allocation5 + $0x360] sm:$0xf]  ;;  %v11414_v55 = vld [vmem:[#allocation5 + $0x36c] sm:$0xf0]  ;;  %v7931_v58 = vor.u32 %v11382_v53, %v7930_v52  ;;  %996 = vmatpush.bf16.msra.mxu0 %v7675_v56  ;;  %v11328_v49 = vld [vmem:[#allocation5 + $0xc4] sm:$0xf]  ;;  %v8127_v52 = vor.u32 %v11428_v40, %v8124_v41  ;;  %v12666_v53 = vpack.c.b16 %v342_v36, %v342_v36 }
  0x46   :  { %v7658_v59 = vld [vmem:[#allocation5 + $0x40] sm:$0xf]  ;;  %v11314_v60 = vld [vmem:[#allocation5 + $0x4c] sm:$0xf0]  ;;  %v8059_v62 = vor.u32 %v11414_v55, %v8058_v54  ;;  %1009 = vmatpush.bf16.msra.mxu1 %v7803_v57  ;;  %v7724_v50 = vld [vmem:[#allocation5 + $0xd0] sm:$0xf0] }
  0x47   :  { %v7786_v61 = vld [vmem:[#allocation5 + $0x140] sm:$0xf]  ;;  %v11346_v63 = vld [vmem:[#allocation5 + $0x14c] sm:$0xf0]  ;;  %v7659_v4 = vor.u32 %v11314_v60, %v7658_v59  ;;  %1022 = vmatpush.bf16.msra.mxu2 %v7931_v58  ;;  %v11360_v51 = vld [vmem:[#allocation5 + $0x1c4] sm:$0xf]  ;;  %v12670_v60 = vpack.c.b16 %v343_v43, %v343_v43 }
  0x48   :  { %v7914_v0 = vld [vmem:[#allocation5 + $0x240] sm:$0xf]  ;;  %v11378_v1 = vld [vmem:[#allocation5 + $0x24c] sm:$0xf0]  ;;  %v7787_v5 = vor.u32 %v11346_v63, %v7786_v61  ;;  %1035 = vmatpush.bf16.msra.mxu3 %v8059_v62  ;;  %v7852_v54 = vld [vmem:[#allocation5 + $0x1d0] sm:$0xf0]  ;;  %v7727_v61 = vor.u32 %v11328_v49, %v7724_v50 }
  0x49   :  { %v8042_v2 = vld [vmem:[#allocation5 + $0x340] sm:$0xf]  ;;  %v11410_v3 = vld [vmem:[#allocation5 + $0x34c] sm:$0xf0]  ;;  %v7915_v6 = vor.u32 %v11378_v1, %v7914_v0  ;;  %997 = vmatpush.bf16.msra.mxu0 %v7659_v4  ;;  %v11392_v55 = vld [vmem:[#allocation5 + $0x2c4] sm:$0xf]  ;;  %v7855_v63 = vor.u32 %v11360_v51, %v7852_v54 }
  0x4a   :  { %v7642_v7 = vld [vmem:[#allocation5 + $0x20] sm:$0xf]  ;;  %v11310_v8 = vld [vmem:[#allocation5 + $0x2c] sm:$0xf0]  ;;  %v8043_v10 = vor.u32 %v11410_v3, %v8042_v2  ;;  %1010 = vmatpush.bf16.msra.mxu1 %v7787_v5  ;;  %v7980_v56 = vld [vmem:[#allocation5 + $0x2d0] sm:$0xf0] }
  0x4b   :  { %v7770_v9 = vld [vmem:[#allocation5 + $0x120] sm:$0xf]  ;;  %v11342_v11 = vld [vmem:[#allocation5 + $0x12c] sm:$0xf0]  ;;  %v7643_v17 = vor.u32 %v11310_v8, %v7642_v7  ;;  %1023 = vmatpush.bf16.msra.mxu2 %v7915_v6  ;;  %v11424_v57 = vld [vmem:[#allocation5 + $0x3c4] sm:$0xf]  ;;  %v7983_v0 = vor.u32 %v11392_v55, %v7980_v56 }
  0x4c   :  { %v7898_v12 = vld [vmem:[#allocation5 + $0x220] sm:$0xf]  ;;  %v11374_v13 = vld [vmem:[#allocation5 + $0x22c] sm:$0xf0]  ;;  %v7771_v21 = vor.u32 %v11342_v11, %v7770_v9  ;;  %1036 = vmatpush.bf16.msra.mxu3 %v8043_v10  ;;  %v8108_v58 = vld [vmem:[#allocation5 + $0x3d0] sm:$0xf0] }
  0x4d   :  { %v8026_v14 = vld [vmem:[#allocation5 + $0x320] sm:$0xf]  ;;  %v11406_v15 = vld [vmem:[#allocation5 + $0x32c] sm:$0xf0]  ;;  %v7899_v22 = vor.u32 %v11374_v13, %v7898_v12  ;;  %998 = vmatpush.bf16.msra.mxu0 %v7643_v17  ;;  %v11324_v1 = vld [vmem:[#allocation5 + $0xa4] sm:$0xf]  ;;  %v8111_v4 = vor.u32 %v11424_v57, %v8108_v58 }
  0x4e   :  { %v7626_v16 = vld [vmem:[#allocation5] sm:$0xf]  ;;  %v11306_v18 = vld [vmem:[#allocation5 + $0xc] sm:$0xf0]  ;;  %v8027_v26 = vor.u32 %v11406_v15, %v8026_v14  ;;  %1011 = vmatpush.bf16.msra.mxu1 %v7771_v21  ;;  %v7708_v2 = vld [vmem:[#allocation5 + $0xb0] sm:$0xf0] }
  0x4f   :  { %v7754_v19 = vld [vmem:[#allocation5 + $0x100] sm:$0xf]  ;;  %v11338_v20 = vld [vmem:[#allocation5 + $0x10c] sm:$0xf0]  ;;  %v7627_v33 = vor.u32 %v11306_v18, %v7626_v16  ;;  %1024 = vmatpush.bf16.msra.mxu2 %v7899_v22  ;;  %v11356_v3 = vld [vmem:[#allocation5 + $0x1a4] sm:$0xf]  ;;  %v7711_v10 = vor.u32 %v11324_v1, %v7708_v2 }
  0x50   :  { %v7882_v23 = vld [vmem:[#allocation5 + $0x200] sm:$0xf]  ;;  %v11370_v24 = vld [vmem:[#allocation5 + $0x20c] sm:$0xf0]  ;;  %v7755_v38 = vor.u32 %v11338_v20, %v7754_v19  ;;  %1037 = vmatpush.bf16.msra.mxu3 %v8027_v26  ;;  %v7836_v5 = vld [vmem:[#allocation5 + $0x1b0] sm:$0xf0] }
  0x51   :  { %v8010_v27 = vld [vmem:[#allocation5 + $0x300] sm:$0xf]  ;;  %v11402_v28 = vld [vmem:[#allocation5 + $0x30c] sm:$0xf0]  ;;  %v7883_v39 = vor.u32 %v11370_v24, %v7882_v23  ;;  %999 = vmatpush.bf16.msra.mxu0 %v7627_v33  ;;  %v11388_v6 = vld [vmem:[#allocation5 + $0x2a4] sm:$0xf]  ;;  %v7839_v11 = vor.u32 %v11356_v3, %v7836_v5 }
  0x52   :  { %v198_v37 = vld [vmem:[#allocation2] sm:$0xff]  ;;  %v8011_v44 = vor.u32 %v11402_v28, %v8010_v27  ;;  %1012 = vmatpush.bf16.msra.mxu1 %v7755_v38  ;;  %v11420_v8 = vld [vmem:[#allocation5 + $0x3a4] sm:$0xf] }
  0x53   :  { %v340_v42 = vunpack.c.l.b16 %v198_v37  ;;  %v341_v46 = vunpack.c.h.b16 %v198_v37  ;;  %1025 = vmatpush.bf16.msra.mxu2 %v7883_v39  ;;  %v7964_v7 = vld [vmem:[#allocation5 + $0x2b0] sm:$0xf0]  ;;  %v11320_v13 = vld [vmem:[#allocation5 + $0x84] sm:$0xf] }
  0x54   :  { %1038 = vmatpush.bf16.msra.mxu3 %v8011_v44  ;;  %v8092_v9 = vld [vmem:[#allocation5 + $0x3b0] sm:$0xf0]  ;;  %v7967_v12 = vor.u32 %v11388_v6, %v7964_v7  ;;  %v11352_v15 = vld [vmem:[#allocation5 + $0x184] sm:$0xf] }
  0x55   :  { %v12668_v59 = vpack.c.b16 %v340_v42, %v340_v42  ;;  %1044 = vmatpush.bf16.msrb.mxu0 %v7743_v45  ;;  %v12672_v62 = vpack.c.b16 %v341_v46, %v341_v46  ;;  %v7692_v14 = vld [vmem:[#allocation5 + $0x90] sm:$0xf0]  ;;  %v8095_v16 = vor.u32 %v11420_v8, %v8092_v9  ;;  %v11384_v18 = vld [vmem:[#allocation5 + $0x284] sm:$0xf] }
  0x56   :  { %1057 = vmatpush.bf16.msrb.mxu1 %v7871_v47  ;;  %1026 = vmatmul.bf16.vlgmr.msra.gmra.mxu2 %v12666_v53  ;;  %v7820_v17 = vld [vmem:[#allocation5 + $0x190] sm:$0xf0]  ;;  %v11416_v20 = vld [vmem:[#allocation5 + $0x384] sm:$0xf]  ;;  %v7695_v22 = vor.u32 %v11320_v13, %v7692_v14  ;;  %v11367_v14 = vld [vmem:[#allocation5 + $0x1f4] sm:$0xf0] }
  0x57   :  { %1070 = vmatpush.bf16.msrb.mxu2 %v7999_v48  ;;  %1000 = vmatmul.bf16.vlgmr.msra.gmra.mxu0 %v12668_v59  ;;  %v7948_v19 = vld [vmem:[#allocation5 + $0x290] sm:$0xf0]  ;;  %v7823_v23 = vor.u32 %v11352_v15, %v7820_v17  ;;  %v11316_v25 = vld [vmem:[#allocation5 + $0x64] sm:$0xf]  ;;  %v8002_v15 = vld [vmem:[#allocation5 + $0x2e8] sm:$0xf] }
  0x58   :  { %1083 = vmatpush.bf16.msrb.mxu3 %v8127_v52  ;;  %1013 = vmatmul.bf16.vlgmr.msra.gmra.mxu1 %v12672_v62  ;;  %v8076_v21 = vld [vmem:[#allocation5 + $0x390] sm:$0xf0]  ;;  %v7951_v24 = vor.u32 %v11384_v18, %v7948_v19  ;;  %v11348_v27 = vld [vmem:[#allocation5 + $0x164] sm:$0xf]  ;;  %v8130_v19 = vld [vmem:[#allocation5 + $0x3e8] sm:$0xf] }
  0x59   :  { %1039 = vmatmul.bf16.vlgmr.msra.gmra.mxu3 %v12670_v60  ;;  %1045 = vmatpush.bf16.msrb.mxu0 %v7727_v61  ;;  %v7676_v26 = vld [vmem:[#allocation5 + $0x70] sm:$0xf0]  ;;  %v8079_v28 = vor.u32 %v11416_v20, %v8076_v21  ;;  %v11380_v30 = vld [vmem:[#allocation5 + $0x264] sm:$0xf]  ;;  %v11431_v20 = vld [vmem:[#allocation5 + $0x3f4] sm:$0xf0] }
  0x5a   :  { %1058 = vmatpush.bf16.msrb.mxu1 %v7855_v63  ;;  %v7804_v29 = vld [vmem:[#allocation5 + $0x170] sm:$0xf0]  ;;  %v11412_v32 = vld [vmem:[#allocation5 + $0x364] sm:$0xf]  ;;  %v7679_v34 = vor.u32 %v11316_v25, %v7676_v26  ;;  %v7730_v25 = vld [vmem:[#allocation5 + $0xc8] sm:$0xf] }
  0x5b   :  { %1071 = vmatpush.bf16.msrb.mxu2 %v7983_v0  ;;  %v7932_v31 = vld [vmem:[#allocation5 + $0x270] sm:$0xf0]  ;;  %v7807_v35 = vor.u32 %v11348_v27, %v7804_v29  ;;  %v11312_v37 = vld [vmem:[#allocation5 + $0x44] sm:$0xf]  ;;  %v11331_v26 = vld [vmem:[#allocation5 + $0xd4] sm:$0xf0] }
  0x5c   :  { %1084 = vmatpush.bf16.msrb.mxu3 %v8111_v4  ;;  %v8060_v33 = vld [vmem:[#allocation5 + $0x370] sm:$0xf0]  ;;  %v7935_v36 = vor.u32 %v11380_v30, %v7932_v31  ;;  %v11344_v39 = vld [vmem:[#allocation5 + $0x144] sm:$0xf]  ;;  %v7858_v27 = vld [vmem:[#allocation5 + $0x1c8] sm:$0xf] }
  0x5d   :  { %1046 = vmatpush.bf16.msrb.mxu0 %v7711_v10  ;;  %v7660_v38 = vld [vmem:[#allocation5 + $0x50] sm:$0xf0]  ;;  %v8063_v40 = vor.u32 %v11412_v32, %v8060_v33  ;;  %v11376_v42 = vld [vmem:[#allocation5 + $0x244] sm:$0xf]  ;;  %v7746_v10 = vld [vmem:[#allocation5 + $0xe8] sm:$0xf] }
  0x5e   :  { %1059 = vmatpush.bf16.msrb.mxu1 %v7839_v11  ;;  %v7788_v41 = vld [vmem:[#allocation5 + $0x150] sm:$0xf0]  ;;  %v11408_v44 = vld [vmem:[#allocation5 + $0x344] sm:$0xf]  ;;  %v7663_v46 = vor.u32 %v11312_v37, %v7660_v38  ;;  %v11335_v11 = vld [vmem:[#allocation5 + $0xf4] sm:$0xf0] }
  0x5f   :  { %1072 = vmatpush.bf16.msrb.mxu2 %v7967_v12  ;;  %v7916_v43 = vld [vmem:[#allocation5 + $0x250] sm:$0xf0]  ;;  %v7791_v47 = vor.u32 %v11344_v39, %v7788_v41  ;;  %v11308_v49 = vld [vmem:[#allocation5 + $0x24] sm:$0xf]  ;;  %v7874_v12 = vld [vmem:[#allocation5 + $0x1e8] sm:$0xf] }
  0x60   :  { %1085 = vmatpush.bf16.msrb.mxu3 %v8095_v16  ;;  %v8044_v45 = vld [vmem:[#allocation5 + $0x350] sm:$0xf0]  ;;  %v7919_v48 = vor.u32 %v11376_v42, %v7916_v43  ;;  %v11340_v51 = vld [vmem:[#allocation5 + $0x124] sm:$0xf]  ;;  %v11399_v16 = vld [vmem:[#allocation5 + $0x2f4] sm:$0xf0] }
  0x61   :  { %1047 = vmatpush.bf16.msrb.mxu0 %v7695_v22  ;;  %v7644_v50 = vld [vmem:[#allocation5 + $0x30] sm:$0xf0]  ;;  %v8047_v52 = vor.u32 %v11408_v44, %v8044_v45  ;;  %v11372_v55 = vld [vmem:[#allocation5 + $0x224] sm:$0xf]  ;;  %v7747_v22 = vor.u32 %v11335_v11, %v7746_v10  ;;  %v11363_v29 = vld [vmem:[#allocation5 + $0x1d4] sm:$0xf0] }
  0x62   :  { %1060 = vmatpush.bf16.msrb.mxu1 %v7823_v23  ;;  %v7772_v54 = vld [vmem:[#allocation5 + $0x130] sm:$0xf0]  ;;  %v11404_v57 = vld [vmem:[#allocation5 + $0x324] sm:$0xf]  ;;  %v7647_v61 = vor.u32 %v11308_v49, %v7644_v50  ;;  %v7875_v23 = vor.u32 %v11367_v14, %v7874_v12  ;;  %v7986_v30 = vld [vmem:[#allocation5 + $0x2c8] sm:$0xf] }
  0x63   :  { %1073 = vmatpush.bf16.msrb.mxu2 %v7951_v24  ;;  %v7900_v56 = vld [vmem:[#allocation5 + $0x230] sm:$0xf0]  ;;  %v11304_v63 = vld [vmem:[#allocation5 + $0x4] sm:$0xf]  ;;  %v7775_v1 = vor.u32 %v11340_v51, %v7772_v54  ;;  %v8003_v24 = vor.u32 %v11399_v16, %v8002_v15  ;;  %v11395_v31 = vld [vmem:[#allocation5 + $0x2d4] sm:$0xf0] }
  0x64   :  { %1086 = vmatpush.bf16.msrb.mxu3 %v8079_v28  ;;  %v8028_v58 = vld [vmem:[#allocation5 + $0x330] sm:$0xf0]  ;;  %v7903_v2 = vor.u32 %v11372_v55, %v7900_v56  ;;  %v11336_v3 = vld [vmem:[#allocation5 + $0x104] sm:$0xf]  ;;  %v8131_v28 = vor.u32 %v11431_v20, %v8130_v19  ;;  %v8114_v32 = vld [vmem:[#allocation5 + $0x3c8] sm:$0xf] }
  0x65   :  { %1048 = vmatpush.bf16.msrb.mxu0 %v7679_v34  ;;  %v7628_v0 = vld [vmem:[#allocation5 + $0x10] sm:$0xf0]  ;;  %v11368_v5 = vld [vmem:[#allocation5 + $0x204] sm:$0xf]  ;;  %v8031_v6 = vor.u32 %v11404_v57, %v8028_v58  ;;  %v11427_v33 = vld [vmem:[#allocation5 + $0x3d4] sm:$0xf0]  ;;  %v7731_v34 = vor.u32 %v11331_v26, %v7730_v25 }
  0x66   :  { %1061 = vmatpush.bf16.msrb.mxu1 %v7807_v35  ;;  %v7756_v4 = vld [vmem:[#allocation5 + $0x110] sm:$0xf0]  ;;  %v11400_v8 = vld [vmem:[#allocation5 + $0x304] sm:$0xf]  ;;  %v7631_v13 = vor.u32 %v11304_v63, %v7628_v0  ;;  %v7859_v35 = vor.u32 %v11363_v29, %v7858_v27  ;;  %v7714_v37 = vld [vmem:[#allocation5 + $0xa8] sm:$0xf] }
  0x67   :  { %1074 = vmatpush.bf16.msrb.mxu2 %v7935_v36  ;;  %v7884_v7 = vld [vmem:[#allocation5 + $0x210] sm:$0xf0]  ;;  %v7759_v17 = vor.u32 %v11336_v3, %v7756_v4  ;;  %v7987_v36 = vor.u32 %v11395_v31, %v7986_v30  ;;  %v11327_v38 = vld [vmem:[#allocation5 + $0xb4] sm:$0xf0]  ;;  %v7842_v39 = vld [vmem:[#allocation5 + $0x1a8] sm:$0xf] }
  0x68   :  { %1087 = vmatpush.bf16.msrb.mxu3 %v8063_v40  ;;  %v8012_v9 = vld [vmem:[#allocation5 + $0x310] sm:$0xf0]  ;;  %v7887_v18 = vor.u32 %v11368_v5, %v7884_v7  ;;  %v8115_v40 = vor.u32 %v11427_v33, %v8114_v32  ;;  %v11359_v41 = vld [vmem:[#allocation5 + $0x1b4] sm:$0xf0]  ;;  %v7970_v42 = vld [vmem:[#allocation5 + $0x2a8] sm:$0xf] }
  0x69   :  { %1049 = vmatpush.bf16.msrb.mxu0 %v7663_v46  ;;  %v8015_v21 = vor.u32 %v11400_v8, %v8012_v9  ;;  %v11391_v43 = vld [vmem:[#allocation5 + $0x2b4] sm:$0xf0]  ;;  %v8098_v44 = vld [vmem:[#allocation5 + $0x3a8] sm:$0xf]  ;;  %v7715_v46 = vor.u32 %v11327_v38, %v7714_v37 }
  0x6a   :  { %1062 = vmatpush.bf16.msrb.mxu1 %v7791_v47  ;;  %v11423_v45 = vld [vmem:[#allocation5 + $0x3b4] sm:$0xf0]  ;;  %v7843_v47 = vor.u32 %v11359_v41, %v7842_v39  ;;  %v7698_v49 = vld [vmem:[#allocation5 + $0x88] sm:$0xf] }
  0x6b   :  { %1075 = vmatpush.bf16.msrb.mxu2 %v7919_v48  ;;  %v7971_v48 = vor.u32 %v11391_v43, %v7970_v42  ;;  %v11323_v50 = vld [vmem:[#allocation5 + $0x94] sm:$0xf0]  ;;  %v7826_v51 = vld [vmem:[#allocation5 + $0x188] sm:$0xf] }
  0x6c   :  { %1088 = vmatpush.bf16.msrb.mxu3 %v8047_v52  ;;  %v8099_v52 = vor.u32 %v11423_v45, %v8098_v44  ;;  %v11355_v54 = vld [vmem:[#allocation5 + $0x194] sm:$0xf0]  ;;  %v7954_v55 = vld [vmem:[#allocation5 + $0x288] sm:$0xf] }
  0x6d   :  { %1050 = vmatpush.bf16.msrb.mxu0 %v7647_v61  ;;  %v11387_v56 = vld [vmem:[#allocation5 + $0x294] sm:$0xf0]  ;;  %v8082_v57 = vld [vmem:[#allocation5 + $0x388] sm:$0xf]  ;;  %v7699_v61 = vor.u32 %v11323_v50, %v7698_v49  ;;  %v7827_v63 = vor.u32 %v11355_v54, %v7826_v51  ;;  %v7876_v50 = vld [vmem:[#allocation5 + $0x1f8] sm:$0xf0] }
  0x6e   :  { %1063 = vmatpush.bf16.msrb.mxu1 %v7775_v1  ;;  %v11419_v58 = vld [vmem:[#allocation5 + $0x394] sm:$0xf0]  ;;  %v7955_v0 = vor.u32 %v11387_v56, %v7954_v55  ;;  %v7682_v1 = vld [vmem:[#allocation5 + $0x68] sm:$0xf]  ;;  %v11397_v51 = vld [vmem:[#allocation5 + $0x2ec] sm:$0xf] }
  0x6f   :  { %1076 = vmatpush.bf16.msrb.mxu2 %v7903_v2  ;;  %v11319_v2 = vld [vmem:[#allocation5 + $0x74] sm:$0xf0]  ;;  %v7810_v3 = vld [vmem:[#allocation5 + $0x168] sm:$0xf]  ;;  %v8083_v4 = vor.u32 %v11419_v58, %v8082_v57  ;;  %v11429_v56 = vld [vmem:[#allocation5 + $0x3ec] sm:$0xf] }
  0x70   :  { %1089 = vmatpush.bf16.msrb.mxu3 %v8031_v6  ;;  %v11351_v5 = vld [vmem:[#allocation5 + $0x174] sm:$0xf0]  ;;  %v7938_v6 = vld [vmem:[#allocation5 + $0x268] sm:$0xf]  ;;  %v7683_v10 = vor.u32 %v11319_v2, %v7682_v1  ;;  %v8132_v57 = vld [vmem:[#allocation5 + $0x3f8] sm:$0xf0] }
  0x71   :  { %1051 = vmatpush.bf16.msrb.mxu0 %v7631_v13  ;;  %v11383_v7 = vld [vmem:[#allocation5 + $0x274] sm:$0xf0]  ;;  %v8066_v8 = vld [vmem:[#allocation5 + $0x368] sm:$0xf]  ;;  %v7811_v11 = vor.u32 %v11351_v5, %v7810_v3  ;;  %v11329_v1 = vld [vmem:[#allocation5 + $0xcc] sm:$0xf] }
  0x72   :  { %1064 = vmatpush.bf16.msrb.mxu1 %v7759_v17  ;;  %v11415_v9 = vld [vmem:[#allocation5 + $0x374] sm:$0xf0]  ;;  %v7939_v12 = vor.u32 %v11383_v7, %v7938_v6  ;;  %v7666_v13 = vld [vmem:[#allocation5 + $0x48] sm:$0xf]  ;;  %v7732_v2 = vld [vmem:[#allocation5 + $0xd8] sm:$0xf0] }
  0x73   :  { %1077 = vmatpush.bf16.msrb.mxu2 %v7887_v18  ;;  %v11315_v14 = vld [vmem:[#allocation5 + $0x54] sm:$0xf0]  ;;  %v7794_v15 = vld [vmem:[#allocation5 + $0x148] sm:$0xf]  ;;  %v8067_v16 = vor.u32 %v11415_v9, %v8066_v8  ;;  %v11361_v3 = vld [vmem:[#allocation5 + $0x1cc] sm:$0xf] }
  0x74   :  { %1090 = vmatpush.bf16.msrb.mxu3 %v8015_v21  ;;  %1052 = vmatmul.bf16.vlgmr.msrb.gmra.mxu0 %v12668_v59  ;;  %v11347_v17 = vld [vmem:[#allocation5 + $0x154] sm:$0xf0]  ;;  %v7922_v18 = vld [vmem:[#allocation5 + $0x248] sm:$0xf]  ;;  %v7860_v5 = vld [vmem:[#allocation5 + $0x1d8] sm:$0xf0] }
  0x75   :  { %1096 = vmatpush.bf16.msra.mxu0 %v7747_v22  ;;  %1065 = vmatmul.bf16.vlgmr.msrb.gmra.mxu1 %v12672_v62  ;;  %v11379_v19 = vld [vmem:[#allocation5 + $0x254] sm:$0xf0]  ;;  %v8050_v20 = vld [vmem:[#allocation5 + $0x348] sm:$0xf]  ;;  %v7667_v22 = vor.u32 %v11315_v14, %v7666_v13  ;;  %v11393_v6 = vld [vmem:[#allocation5 + $0x2cc] sm:$0xf] }
  0x76   :  { %1109 = vmatpush.bf16.msra.mxu1 %v7875_v23  ;;  %1078 = vmatmul.bf16.vlgmr.msrb.gmra.mxu2 %v12666_v53  ;;  %v11411_v21 = vld [vmem:[#allocation5 + $0x354] sm:$0xf0]  ;;  %v7795_v23 = vor.u32 %v11347_v17, %v7794_v15  ;;  %v7650_v25 = vld [vmem:[#allocation5 + $0x28] sm:$0xf]  ;;  %v7988_v7 = vld [vmem:[#allocation5 + $0x2d8] sm:$0xf0] }
  0x77   :  { %1122 = vmatpush.bf16.msra.mxu2 %v8003_v24  ;;  %1091 = vmatmul.bf16.vlgmr.msrb.gmra.mxu3 %v12670_v60  ;;  %v7923_v24 = vor.u32 %v11379_v19, %v7922_v18  ;;  %v11311_v26 = vld [vmem:[#allocation5 + $0x34] sm:$0xf0]  ;;  %v7778_v27 = vld [vmem:[#allocation5 + $0x128] sm:$0xf]  ;;  %v11425_v8 = vld [vmem:[#allocation5 + $0x3cc] sm:$0xf] }
  0x78   :  { %1135 = vmatpush.bf16.msra.mxu3 %v8131_v28  ;;  %v8051_v28 = vor.u32 %v11411_v21, %v8050_v20  ;;  %v11343_v29 = vld [vmem:[#allocation5 + $0x134] sm:$0xf0]  ;;  %v7906_v30 = vld [vmem:[#allocation5 + $0x228] sm:$0xf]  ;;  %v8116_v9 = vld [vmem:[#allocation5 + $0x3d8] sm:$0xf0] }
  0x79   :  { %1097 = vmatpush.bf16.msra.mxu0 %v7731_v34  ;;  %v11375_v31 = vld [vmem:[#allocation5 + $0x234] sm:$0xf0]  ;;  %v8034_v32 = vld [vmem:[#allocation5 + $0x328] sm:$0xf]  ;;  %v7651_v34 = vor.u32 %v11311_v26, %v7650_v25  ;;  %v7779_v37 = vor.u32 %v11343_v29, %v7778_v27  ;;  %v11325_v13 = vld [vmem:[#allocation5 + $0xac] sm:$0xf] }
  0x7a   :  { %1110 = vmatpush.bf16.msra.mxu1 %v7859_v35  ;;  %v11407_v33 = vld [vmem:[#allocation5 + $0x334] sm:$0xf0]  ;;  %v7634_v35 = vld [vmem:[#allocation5 + $0x8] sm:$0xf]  ;;  %v7907_v38 = vor.u32 %v11375_v31, %v7906_v30  ;;  %v7716_v14 = vld [vmem:[#allocation5 + $0xb8] sm:$0xf0] }
  0x7b   :  { %1123 = vmatpush.bf16.msra.mxu2 %v7987_v36  ;;  %v11307_v36 = vld [vmem:[#allocation5 + $0x14] sm:$0xf0]  ;;  %v7762_v39 = vld [vmem:[#allocation5 + $0x108] sm:$0xf]  ;;  %v8035_v42 = vor.u32 %v11407_v33, %v8034_v32  ;;  %v11357_v15 = vld [vmem:[#allocation5 + $0x1ac] sm:$0xf] }
  0x7c   :  { %1136 = vmatpush.bf16.msra.mxu3 %v8115_v40  ;;  %v11339_v40 = vld [vmem:[#allocation5 + $0x114] sm:$0xf0]  ;;  %v7890_v41 = vld [vmem:[#allocation5 + $0x208] sm:$0xf]  ;;  %v7635_v49 = vor.u32 %v11307_v36, %v7634_v35  ;;  %v7844_v17 = vld [vmem:[#allocation5 + $0x1b8] sm:$0xf0] }
  0x7d   :  { %1098 = vmatpush.bf16.msra.mxu0 %v7715_v46  ;;  %v11371_v43 = vld [vmem:[#allocation5 + $0x214] sm:$0xf0]  ;;  %v8018_v44 = vld [vmem:[#allocation5 + $0x308] sm:$0xf]  ;;  %v11333_v46 = vld [vmem:[#allocation5 + $0xec] sm:$0xf]  ;;  %v7763_v54 = vor.u32 %v11339_v40, %v7762_v39 }
  0x7e   :  { %1111 = vmatpush.bf16.msra.mxu1 %v7843_v47  ;;  %v11403_v45 = vld [vmem:[#allocation5 + $0x314] sm:$0xf0]  ;;  %v7748_v47 = vld [vmem:[#allocation5 + $0xf8] sm:$0xf0]  ;;  %v7891_v55 = vor.u32 %v11371_v43, %v7890_v41  ;;  %v11389_v18 = vld [vmem:[#allocation5 + $0x2ac] sm:$0xf] }
  0x7f   :  { %1124 = vmatpush.bf16.msra.mxu2 %v7971_v48  ;;  %v11365_v48 = vld [vmem:[#allocation5 + $0x1ec] sm:$0xf]  ;;  %v8019_v58 = vor.u32 %v11403_v45, %v8018_v44  ;;  %v7972_v19 = vld [vmem:[#allocation5 + $0x2b8] sm:$0xf0] }
  0x80   :  { %1137 = vmatpush.bf16.msra.mxu3 %v8099_v52  ;;  %v8004_v52 = vld [vmem:[#allocation5 + $0x2f8] sm:$0xf0]  ;;  %v11421_v20 = vld [vmem:[#allocation5 + $0x3ac] sm:$0xf] }
  0x81   :  { %1099 = vmatpush.bf16.msra.mxu0 %v7699_v61  ;;  %v7751_v61 = vor.u32 %v11333_v46, %v7748_v47  ;;  %v8100_v21 = vld [vmem:[#allocation5 + $0x3b8] sm:$0xf0]  ;;  %v11321_v25 = vld [vmem:[#allocation5 + $0x8c] sm:$0xf] }
  0x82   :  { %1112 = vmatpush.bf16.msra.mxu1 %v7827_v63  ;;  %v7879_v63 = vor.u32 %v11365_v48, %v7876_v50  ;;  %v7700_v26 = vld [vmem:[#allocation5 + $0x98] sm:$0xf0]  ;;  %v11353_v27 = vld [vmem:[#allocation5 + $0x18c] sm:$0xf] }
  0x83   :  { %1125 = vmatpush.bf16.msra.mxu2 %v7955_v0  ;;  %v8007_v0 = vor.u32 %v11397_v51, %v8004_v52  ;;  %v7828_v29 = vld [vmem:[#allocation5 + $0x198] sm:$0xf0]  ;;  %v11385_v30 = vld [vmem:[#allocation5 + $0x28c] sm:$0xf] }
  0x84   :  { %1138 = vmatpush.bf16.msra.mxu3 %v8083_v4  ;;  %v8135_v4 = vor.u32 %v11429_v56, %v8132_v57  ;;  %v7956_v31 = vld [vmem:[#allocation5 + $0x298] sm:$0xf0]  ;;  %v11417_v32 = vld [vmem:[#allocation5 + $0x38c] sm:$0xf]  ;;  %v7831_v35 = vor.u32 %v11353_v27, %v7828_v29 }
  0x85   :  { %1100 = vmatpush.bf16.msra.mxu0 %v7683_v10  ;;  %v7735_v10 = vor.u32 %v11329_v1, %v7732_v2  ;;  %v8084_v33 = vld [vmem:[#allocation5 + $0x398] sm:$0xf0]  ;;  %v7959_v36 = vor.u32 %v11385_v30, %v7956_v31  ;;  %v11349_v39 = vld [vmem:[#allocation5 + $0x16c] sm:$0xf]  ;;  %v8258_v31 = vld [vmem:[#allocation8 + $0xf0] sm:$0xf] }
  0x86   :  { %1113 = vmatpush.bf16.msra.mxu1 %v7811_v11  ;;  %v7863_v11 = vor.u32 %v11361_v3, %v7860_v5  ;;  %v8087_v40 = vor.u32 %v11417_v32, %v8084_v33  ;;  %v7812_v41 = vld [vmem:[#allocation5 + $0x178] sm:$0xf0]  ;;  %v11413_v44 = vld [vmem:[#allocation5 + $0x36c] sm:$0xf]  ;;  %v11464_v32 = vld [vmem:[#allocation8 + $0x100] sm:$0xf0] }
  0x87   :  { %1126 = vmatpush.bf16.msra.mxu2 %v7939_v12  ;;  %v7991_v12 = vor.u32 %v11393_v6, %v7988_v7  ;;  %v7940_v43 = vld [vmem:[#allocation5 + $0x278] sm:$0xf0]  ;;  %v7815_v47 = vor.u32 %v11349_v39, %v7812_v41  ;;  %v11345_v51 = vld [vmem:[#allocation5 + $0x14c] sm:$0xf]  ;;  %v11499_v41 = vld [vmem:[#allocation8 + $0x218] sm:$0xf0] }
  0x88   :  { %1139 = vmatpush.bf16.msra.mxu3 %v8067_v16  ;;  %v8119_v16 = vor.u32 %v11425_v8, %v8116_v9  ;;  %v8068_v45 = vld [vmem:[#allocation5 + $0x378] sm:$0xf0]  ;;  %v11409_v57 = vld [vmem:[#allocation5 + $0x34c] sm:$0xf] }
  0x89   :  { %1101 = vmatpush.bf16.msra.mxu0 %v7667_v22  ;;  %v7719_v22 = vor.u32 %v11325_v13, %v7716_v14  ;;  %v7668_v50 = vld [vmem:[#allocation5 + $0x58] sm:$0xf0]  ;;  %v8071_v52 = vor.u32 %v11413_v44, %v8068_v45  ;;  %v11309_v1 = vld [vmem:[#allocation5 + $0x2c] sm:$0xf]  ;;  %v11454_v44 = vld [vmem:[#allocation8 + $0xb0] sm:$0xf0] }
  0x8a   :  { %1114 = vmatpush.bf16.msra.mxu1 %v7795_v23  ;;  %v7847_v23 = vor.u32 %v11357_v15, %v7844_v17  ;;  %v7924_v56 = vld [vmem:[#allocation5 + $0x258] sm:$0xf0]  ;;  %v11341_v3 = vld [vmem:[#allocation5 + $0x12c] sm:$0xf] }
  0x8b   :  { %1127 = vmatpush.bf16.msra.mxu2 %v7923_v24  ;;  %v7975_v24 = vor.u32 %v11389_v18, %v7972_v19  ;;  %v7652_v2 = vld [vmem:[#allocation5 + $0x38] sm:$0xf0]  ;;  %v11373_v6 = vld [vmem:[#allocation5 + $0x22c] sm:$0xf] }
  0x8c   :  { %1140 = vmatpush.bf16.msra.mxu3 %v8051_v28  ;;  %v8103_v28 = vor.u32 %v11421_v20, %v8100_v21  ;;  %v7780_v5 = vld [vmem:[#allocation5 + $0x138] sm:$0xf0]  ;;  %v11405_v8 = vld [vmem:[#allocation5 + $0x32c] sm:$0xf] }
  0x8d   :  { %1102 = vmatpush.bf16.msra.mxu0 %v7651_v34  ;;  %v7703_v34 = vor.u32 %v11321_v25, %v7700_v26  ;;  %v7908_v7 = vld [vmem:[#allocation5 + $0x238] sm:$0xf0]  ;;  %v11337_v15 = vld [vmem:[#allocation5 + $0x10c] sm:$0xf]  ;;  %v11509_v26 = vld [vmem:[#allocation8 + $0x268] sm:$0xf0] }
  0x8e   :  { %1115 = vmatpush.bf16.msra.mxu1 %v7779_v37  ;;  %v11317_v37 = vld [vmem:[#allocation5 + $0x6c] sm:$0xf]  ;;  %v8036_v9 = vld [vmem:[#allocation5 + $0x338] sm:$0xf0]  ;;  %v7911_v13 = vor.u32 %v11373_v6, %v7908_v7 }
  0x8f   :  { %1128 = vmatpush.bf16.msra.mxu2 %v7907_v38  ;;  %v7684_v38 = vld [vmem:[#allocation5 + $0x78] sm:$0xf0]  ;;  %v8039_v17 = vor.u32 %v11405_v8, %v8036_v9  ;;  %v11369_v18 = vld [vmem:[#allocation5 + $0x20c] sm:$0xf]  ;;  %v11549_v8 = vld [vmem:[#allocation8 + $0x3a8] sm:$0xf0] }
  0x90   :  { %1141 = vmatpush.bf16.msra.mxu3 %v8035_v42  ;;  %v11381_v42 = vld [vmem:[#allocation5 + $0x26c] sm:$0xf]  ;;  %v7687_v46 = vor.u32 %v11317_v37, %v7684_v38  ;;  %v7636_v14 = vld [vmem:[#allocation5 + $0x18] sm:$0xf0]  ;;  %v11459_v38 = vld [vmem:[#allocation8 + $0xd8] sm:$0xf0] }
  0x91   :  { %1103 = vmatpush.bf16.msra.mxu0 %v7635_v49  ;;  %v7943_v48 = vor.u32 %v11381_v42, %v7940_v43  ;;  %v11313_v49 = vld [vmem:[#allocation5 + $0x4c] sm:$0xf]  ;;  %v7892_v19 = vld [vmem:[#allocation5 + $0x218] sm:$0xf0]  ;;  %v8218_v43 = vld [vmem:[#allocation8 + $0xa0] sm:$0xf] }
  0x92   :  { %1116 = vmatpush.bf16.msra.mxu1 %v7763_v54  ;;  %v7796_v54 = vld [vmem:[#allocation5 + $0x158] sm:$0xf0]  ;;  %v11401_v20 = vld [vmem:[#allocation5 + $0x30c] sm:$0xf]  ;;  %v8280_v9 = vld [vmem:[#allocation8 + $0x12c] sm:$0xf0] }
  0x93   :  { %1129 = vmatpush.bf16.msra.mxu2 %v7891_v55  ;;  %v11377_v55 = vld [vmem:[#allocation5 + $0x24c] sm:$0xf]  ;;  %v8020_v21 = vld [vmem:[#allocation5 + $0x318] sm:$0xf0] }
  0x94   :  { %1142 = vmatpush.bf16.msra.mxu3 %v8019_v58  ;;  %1104 = vmatmul.bf16.vlgmr.msra.gmra.mxu0 %v12668_v59  ;;  %v8052_v58 = vld [vmem:[#allocation5 + $0x358] sm:$0xf0]  ;;  %v8023_v29 = vor.u32 %v11401_v20, %v8020_v21  ;;  %v8238_v37 = vld [vmem:[#allocation8 + $0xc8] sm:$0xf]  ;;  %v11462_v20 = vld [vmem:[#allocation8 + $0xf4] sm:$0xf] }
  0x95   :  { %1148 = vmatpush.bf16.msrb.mxu0 %v7751_v61  ;;  %1117 = vmatmul.bf16.vlgmr.msra.gmra.mxu1 %v12672_v62  ;;  %v7671_v61 = vor.u32 %v11313_v49, %v7668_v50  ;;  %v8438_v25 = vld [vmem:[#allocation8 + $0x258] sm:$0xf]  ;;  %v8239_v42 = vor.u32 %v11459_v38, %v8238_v37  ;;  %v11449_v49 = vld [vmem:[#allocation8 + $0x88] sm:$0xf0]  ;;  %v8260_v21 = vld [vmem:[#allocation8 + $0x104] sm:$0xf0] }
  0x96   :  { %1161 = vmatpush.bf16.msrb.mxu1 %v7879_v63  ;;  %1130 = vmatmul.bf16.vlgmr.msra.gmra.mxu2 %v12666_v53  ;;  %v7799_v63 = vor.u32 %v11345_v51, %v7796_v54  ;;  %v8439_v33 = vor.u32 %v11509_v26, %v8438_v25  ;;  %v8358_v50 = vld [vmem:[#allocation8 + $0x1b8] sm:$0xf]  ;;  %v8420_v25 = vld [vmem:[#allocation8 + $0x244] sm:$0xf0]  ;;  %v8263_v26 = vor.u32 %v11462_v20, %v8260_v21  ;;  %v8538_v37 = vld [vmem:[#allocation8 + $0x320] sm:$0xf] }
  0x97   :  { %1174 = vmatpush.bf16.msrb.mxu2 %v8007_v0  ;;  %1143 = vmatmul.bf16.vlgmr.msra.gmra.mxu3 %v12670_v60  ;;  %v7927_v0 = vor.u32 %v11377_v55, %v7924_v56  ;;  %v8338_v55 = vld [vmem:[#allocation8 + $0x190] sm:$0xf]  ;;  %v11484_v56 = vld [vmem:[#allocation8 + $0x1a0] sm:$0xf0]  ;;  %v8598_v7 = vld [vmem:[#allocation8 + $0x398] sm:$0xf] }
  0x98   :  { %1187 = vmatpush.bf16.msrb.mxu3 %v8135_v4  ;;  %v8055_v4 = vor.u32 %v11409_v57, %v8052_v58  ;;  %v8158_v58 = vld [vmem:[#allocation8 + $0x28] sm:$0xf]  ;;  %v11534_v38 = vld [vmem:[#allocation8 + $0x330] sm:$0xf0]  ;;  %v11432_v20 = vld [vmem:[#allocation8 + $0x4] sm:$0xf] }
  0x99   :  { %1149 = vmatpush.bf16.msrb.mxu0 %v7735_v10  ;;  %v7655_v10 = vor.u32 %v11309_v1, %v7652_v2  ;;  %v11479_v1 = vld [vmem:[#allocation8 + $0x178] sm:$0xf0]  ;;  %v8140_v21 = vld [vmem:[#allocation8 + $0x14] sm:$0xf0] }
  0x9a   :  { %1162 = vmatpush.bf16.msrb.mxu1 %v7863_v11  ;;  %v11305_v11 = vld [vmem:[#allocation5 + $0xc] sm:$0xf] }
  0x9b   :  { %1175 = vmatpush.bf16.msrb.mxu2 %v7991_v12  ;;  %v7783_v12 = vor.u32 %v11341_v3, %v7780_v5  ;;  %v8138_v3 = vld [vmem:[#allocation8] sm:$0xf]  ;;  %v11467_v5 = vld [vmem:[#allocation8 + $0x11c] sm:$0xf] }
  0x9c   :  { %1188 = vmatpush.bf16.msrb.mxu3 %v8119_v16  ;;  %v7764_v16 = vld [vmem:[#allocation5 + $0x118] sm:$0xf0] }
  0x9d   :  { %1150 = vmatpush.bf16.msrb.mxu0 %v7719_v22  ;;  %v8278_v22 = vld [vmem:[#allocation8 + $0x118] sm:$0xf]  ;;  %v7767_v27 = vor.u32 %v11337_v15, %v7764_v16  ;;  %v8283_v16 = vor.u32 %v11467_v5, %v8280_v9  ;;  %v11519_v9 = vld [vmem:[#allocation8 + $0x2b8] sm:$0xf0] }
  0x9e   :  { %1163 = vmatpush.bf16.msrb.mxu1 %v7847_v23  ;;  %v11469_v23 = vld [vmem:[#allocation8 + $0x128] sm:$0xf0] }
  0x9f   :  { %1176 = vmatpush.bf16.msrb.mxu2 %v7975_v24  ;;  %v7639_v24 = vor.u32 %v11305_v11, %v7636_v14  ;;  %v8279_v30 = vor.u32 %v11469_v23, %v8278_v22  ;;  %v11474_v11 = vld [vmem:[#allocation8 + $0x150] sm:$0xf0]  ;;  %v8440_v14 = vld [vmem:[#allocation8 + $0x26c] sm:$0xf0] }
  0xa0   :  { %1189 = vmatpush.bf16.msrb.mxu3 %v8103_v28  ;;  %v7895_v28 = vor.u32 %v11369_v18, %v7892_v19  ;;  %v8578_v18 = vld [vmem:[#allocation8 + $0x370] sm:$0xf]  ;;  %v11544_v19 = vld [vmem:[#allocation8 + $0x380] sm:$0xf0] }
  0xa1   :  { %1151 = vmatpush.bf16.msrb.mxu0 %v7703_v34  ;;  %v8418_v34 = vld [vmem:[#allocation8 + $0x230] sm:$0xf]  ;;  %v8579_v23 = vor.u32 %v11544_v19, %v8578_v18  ;;  %v8320_v18 = vld [vmem:[#allocation8 + $0x17c] sm:$0xf0] }
  0xa2   :  { %1164 = vmatpush.bf16.msrb.mxu1 %v7831_v35  ;;  %v11504_v35 = vld [vmem:[#allocation8 + $0x240] sm:$0xf0] }
  0xa3   :  { %1177 = vmatpush.bf16.msrb.mxu2 %v7959_v36  ;;  %v8259_v36 = vor.u32 %v11464_v32, %v8258_v31  ;;  %v8419_v39 = vor.u32 %v11504_v35, %v8418_v34  ;;  %v8400_v34 = vld [vmem:[#allocation8 + $0x21c] sm:$0xf0]  ;;  %v12690_v35 = vld [vmem:[#allocation7] sm:$0xf] }
  0xa4   :  { %1190 = vmatpush.bf16.msrb.mxu3 %v8087_v40  ;;  %v8398_v40 = vld [vmem:[#allocation8 + $0x208] sm:$0xf] }
  0xa5   :  { %1152 = vmatpush.bf16.msrb.mxu0 %v7687_v46  ;;  %v8399_v45 = vor.u32 %v11499_v41, %v8398_v40  ;;  %v8378_v46 = vld [vmem:[#allocation8 + $0x1e0] sm:$0xf]  ;;  %v8220_v40 = vld [vmem:[#allocation8 + $0xb4] sm:$0xf0] }
  0xa6   :  { %1165 = vmatpush.bf16.msrb.mxu1 %v7815_v47  ;;  %v8219_v47 = vor.u32 %v11454_v44, %v8218_v43  ;;  %v330_v43 = vperm.slane %v12690_v35, 0  ;;  %v11492_v44 = vld [vmem:[#allocation8 + $0x1e4] sm:$0xf] }
  0xa7   :  { %1178 = vmatpush.bf16.msrb.mxu2 %v7943_v48  ;;  %v8198_v48 = vld [vmem:[#allocation8 + $0x78] sm:$0xf] }
  0xa8   :  { %1191 = vmatpush.bf16.msrb.mxu3 %v8071_v52  ;;  %v8199_v51 = vor.u32 %v11449_v49, %v8198_v48  ;;  %v8178_v52 = vld [vmem:[#allocation8 + $0x50] sm:$0xf]  ;;  %v11447_v49 = vld [vmem:[#allocation8 + $0x7c] sm:$0xf] }
  0xa9   :  { %1153 = vmatpush.bf16.msrb.mxu0 %v7671_v61  ;;  %v11439_v61 = vld [vmem:[#allocation8 + $0x38] sm:$0xf0] }
  0xaa   :  { %1166 = vmatpush.bf16.msrb.mxu1 %v7799_v63  ;;  %v8339_v63 = vor.u32 %v11484_v56, %v8338_v55  ;;  %v8159_v2 = vor.u32 %v11439_v61, %v8158_v58  ;;  %v11524_v58 = vld [vmem:[#allocation8 + $0x2e0] sm:$0xf0]  ;;  %v11442_v61 = vld [vmem:[#allocation8 + $0x54] sm:$0xf] }
  0xab   :  { %1179 = vmatpush.bf16.msrb.mxu2 %v7927_v0  ;;  %v8318_v0 = vld [vmem:[#allocation8 + $0x168] sm:$0xf] }
  0xac   :  { %1192 = vmatpush.bf16.msrb.mxu3 %v8055_v4  ;;  %v11434_v4 = vld [vmem:[#allocation8 + $0x10] sm:$0xf0]  ;;  %v8319_v6 = vor.u32 %v11479_v1, %v8318_v0 }
  0xad   :  { %1154 = vmatpush.bf16.msrb.mxu0 %v7655_v10  ;;  %v8298_v10 = vld [vmem:[#allocation8 + $0x140] sm:$0xf]  ;;  %v8139_v15 = vor.u32 %v11434_v4, %v8138_v3  ;;  %v11482_v3 = vld [vmem:[#allocation8 + $0x194] sm:$0xf]  ;;  %v8340_v4 = vld [vmem:[#allocation8 + $0x1a4] sm:$0xf0] }
  0xae   :  { %1167 = vmatpush.bf16.msrb.mxu1 %v7783_v12  ;;  %v8599_v12 = vor.u32 %v11549_v8, %v8598_v7  ;;  %v8478_v8 = vld [vmem:[#allocation8 + $0x2a8] sm:$0xf] }
  0xaf   :  { %1180 = vmatpush.bf16.msrb.mxu2 %v7911_v13  ;;  %v11507_v13 = vld [vmem:[#allocation8 + $0x25c] sm:$0xf] }
  0xb0   :  { %1193 = vmatpush.bf16.msrb.mxu3 %v8039_v17  ;;  %v8299_v17 = vor.u32 %v11474_v11, %v8298_v10  ;;  %v8443_v22 = vor.u32 %v11507_v13, %v8440_v14  ;;  %v11437_v11 = vld [vmem:[#allocation8 + $0x2c] sm:$0xf]  ;;  %v8343_v14 = vor.u32 %v11482_v3, %v8340_v4  ;;  %v8540_v4 = vld [vmem:[#allocation8 + $0x334] sm:$0xf0] }
  0xb1   :  { %1155 = vmatpush.bf16.msrb.mxu0 %v7639_v24  ;;  %v11502_v24 = vld [vmem:[#allocation8 + $0x234] sm:$0xf] }
  0xb2   :  { %1168 = vmatpush.bf16.msrb.mxu1 %v7767_v27  ;;  %v8558_v27 = vld [vmem:[#allocation8 + $0x348] sm:$0xf]  ;;  %v8423_v31 = vor.u32 %v11502_v24, %v8420_v25  ;;  %v11470_v24 = vld [vmem:[#allocation8 + $0x130] sm:$0xf0]  ;;  %v8458_v25 = vld [vmem:[#allocation8 + $0x280] sm:$0xf] }
  0xb3   :  { %1181 = vmatpush.bf16.msrb.mxu2 %v7895_v28  ;;  %v11539_v28 = vld [vmem:[#allocation8 + $0x358] sm:$0xf0] }
  0xb4   :  { %1194 = vmatpush.bf16.msrb.mxu3 %v8023_v29  ;;  %1156 = vmatmul.bf16.vlgmr.msrb.gmra.mxu0 %v12668_v59  ;;  %v11494_v59 = vld [vmem:[#allocation8 + $0x1f0] sm:$0xf0]  ;;  %v11457_v29 = vld [vmem:[#allocation8 + $0xcc] sm:$0xf]  ;;  %v8559_v32 = vor.u32 %v11539_v28, %v8558_v27 }
  0xb5   :  { %2244 = vmatpush.bf16.msra.mxu0 %v8279_v30  ;;  %1169 = vmatmul.bf16.vlgmr.msrb.gmra.mxu1 %v12672_v62  ;;  %v8379_v62 = vor.u32 %v11494_v59, %v8378_v46  ;;  %v8240_v30 = vld [vmem:[#allocation8 + $0xdc] sm:$0xf0]  ;;  %v8518_v59 = vld [vmem:[#allocation8 + $0x2f8] sm:$0xf] }
  0xb6   :  { %2257 = vmatpush.bf16.msra.mxu1 %v8439_v33  ;;  %1182 = vmatmul.bf16.vlgmr.msrb.gmra.mxu2 %v12666_v53  ;;  %v11489_v53 = vld [vmem:[#allocation8 + $0x1c8] sm:$0xf0] }
  0xb7   :  { %1195 = vmatmul.bf16.vlgmr.msrb.gmra.mxu3 %v12670_v60  ;;  %v11444_v60 = vld [vmem:[#allocation8 + $0x60] sm:$0xf0]  ;;  %v8359_v54 = vor.u32 %v11489_v53, %v8358_v50  ;;  %2270 = vmatpush.bf16.msra.mxu2 %v8599_v12  ;;  %v11497_v33 = vld [vmem:[#allocation8 + $0x20c] sm:$0xf]  ;;  %v8160_v12 = vld [vmem:[#allocation8 + $0x3c] sm:$0xf0] }
  0xb8   :  { %v8179_v57 = vor.u32 %v11444_v60, %v8178_v52  ;;  %v8403_v41 = vor.u32 %v11497_v33, %v8400_v34  ;;  %v11487_v60 = vld [vmem:[#allocation8 + $0x1bc] sm:$0xf]  ;;  %v8300_v34 = vld [vmem:[#allocation8 + $0x154] sm:$0xf0] }
  0xb9   :  { %2245 = vmatpush.bf16.msra.mxu0 %v8259_v36  ;;  %v8243_v36 = vor.u32 %v11457_v29, %v8240_v30  ;;  %v11472_v30 = vld [vmem:[#allocation8 + $0x144] sm:$0xf] }
  0xba   :  { %2258 = vmatpush.bf16.msra.mxu1 %v8419_v39  ;;  %v11452_v39 = vld [vmem:[#allocation8 + $0xa4] sm:$0xf] }
  0xbb   :  { %2271 = vmatpush.bf16.msra.mxu2 %v8579_v23  ;;  %v8223_v46 = vor.u32 %v11452_v39, %v8220_v40  ;;  %v8286_v23 = vld [vmem:[#allocation8 + $0x120] sm:$0xf] }
  0xbd   :  { %2246 = vmatpush.bf16.msra.mxu0 %v8239_v42  ;;  %v8539_v42 = vor.u32 %v11534_v38, %v8538_v37  ;;  %v11547_v37 = vld [vmem:[#allocation8 + $0x39c] sm:$0xf]  ;;  %v8600_v38 = vld [vmem:[#allocation8 + $0x3ac] sm:$0xf0] }
  0xbe   :  { %2259 = vmatpush.bf16.msra.mxu1 %v8399_v45  ;;  %v8380_v45 = vld [vmem:[#allocation8 + $0x1f4] sm:$0xf0]  ;;  %v8603_v40 = vor.u32 %v11547_v37, %v8600_v38  ;;  %v11517_v37 = vld [vmem:[#allocation8 + $0x2ac] sm:$0xf]  ;;  %v8166_v38 = vld [vmem:[#allocation8 + $0x30] sm:$0xf] }
  0xbf   :  { %2272 = vmatpush.bf16.msra.mxu2 %v8559_v32  ;;  %v8383_v50 = vor.u32 %v11492_v44, %v8380_v45  ;;  %v11589_v32 = vld [vmem:[#allocation8 + $0x4e8] sm:$0xf0]  ;;  %v8738_v44 = vld [vmem:[#allocation8 + $0x4b0] sm:$0xf]  ;;  %v11584_v45 = vld [vmem:[#allocation8 + $0x4c0] sm:$0xf0] }
  0xc1   :  { %2247 = vmatpush.bf16.msra.mxu0 %v8219_v47  ;;  %v11529_v47 = vld [vmem:[#allocation8 + $0x308] sm:$0xf0] }
  0xc2   :  { %2260 = vmatpush.bf16.msra.mxu1 %v8379_v62  ;;  %v8200_v62 = vld [vmem:[#allocation8 + $0x8c] sm:$0xf0]  ;;  %v8519_v53 = vor.u32 %v11529_v47, %v8518_v59  ;;  %v8266_v59 = vld [vmem:[#allocation8 + $0xf8] sm:$0xf]  ;;  %v11465_v47 = vld [vmem:[#allocation8 + $0x108] sm:$0xf0] }
  0xc3   :  { %2273 = vmatpush.bf16.msra.mxu2 %v8539_v42  ;;  %v8203_v55 = vor.u32 %v11447_v49, %v8200_v62  ;;  %v8287_v42 = vor.u32 %v11470_v24, %v8286_v23  ;;  %v8580_v49 = vld [vmem:[#allocation8 + $0x384] sm:$0xf0]  ;;  %v8186_v24 = vld [vmem:[#allocation8 + $0x58] sm:$0xf] }
  0xc5   :  { %2248 = vmatpush.bf16.msra.mxu0 %v8199_v51 }
  0xc6   :  { %2261 = vmatpush.bf16.msra.mxu1 %v8359_v54  ;;  %v8360_v54 = vld [vmem:[#allocation8 + $0x1cc] sm:$0xf0] }
  0xc7   :  { %2274 = vmatpush.bf16.msra.mxu2 %v8519_v53  ;;  %v8363_v0 = vor.u32 %v11487_v60, %v8360_v54  ;;  %v8718_v53 = vld [vmem:[#allocation8 + $0x488] sm:$0xf]  ;;  %v8246_v60 = vld [vmem:[#allocation8 + $0xd0] sm:$0xf]  ;;  %v11460_v54 = vld [vmem:[#allocation8 + $0xe0] sm:$0xf0] }
  0xc9   :  { %2249 = vmatpush.bf16.msra.mxu0 %v8179_v57  ;;  %v8498_v57 = vld [vmem:[#allocation8 + $0x2d0] sm:$0xf] }
  0xca   :  { %2262 = vmatpush.bf16.msra.mxu1 %v8339_v63  ;;  %v8180_v63 = vld [vmem:[#allocation8 + $0x64] sm:$0xf0]  ;;  %v8499_v1 = vor.u32 %v11524_v58, %v8498_v57  ;;  %v8247_v58 = vor.u32 %v11460_v54, %v8246_v60  ;;  %v8426_v54 = vld [vmem:[#allocation8 + $0x238] sm:$0xf] }
  0xcb   :  { %v8183_v7 = vor.u32 %v11442_v61, %v8180_v63  ;;  %v8698_v61 = vld [vmem:[#allocation8 + $0x460] sm:$0xf]  ;;  %v11574_v63 = vld [vmem:[#allocation8 + $0x470] sm:$0xf0] }
  0xcc   :  { %2275 = vmatpush.bf16.msra.mxu2 %v8499_v1  ;;  %v8226_v1 = vld [vmem:[#allocation8 + $0xa8] sm:$0xf]  ;;  %v8699_v3 = vor.u32 %v11574_v63, %v8698_v61  ;;  %v11505_v61 = vld [vmem:[#allocation8 + $0x248] sm:$0xf0] }
  0xcd   :  { %2250 = vmatpush.bf16.msra.mxu0 %v8159_v2 }
  0xce   :  { %2263 = vmatpush.bf16.msra.mxu1 %v8319_v6 }
  0xd1   :  { %2251 = vmatpush.bf16.msra.mxu0 %v8139_v15  ;;  %v8479_v15 = vor.u32 %v11519_v9, %v8478_v8  ;;  %v8678_v8 = vld [vmem:[#allocation8 + $0x438] sm:$0xf]  ;;  %v11569_v9 = vld [vmem:[#allocation8 + $0x448] sm:$0xf0] }
  0xd2   :  { %2264 = vmatpush.bf16.msra.mxu1 %v8299_v17  ;;  %v11477_v17 = vld [vmem:[#allocation8 + $0x16c] sm:$0xf] }
  0xd3   :  { %2276 = vmatpush.bf16.msra.mxu2 %v8479_v15  ;;  %v8323_v28 = vor.u32 %v11477_v17, %v8320_v18 }
  0xd4   :  { %v1001_v48 = vpop.f32.mrf.mxu0 }
  0xd5   :  { %2296 = vmatpush.bf16.msrb.mxu0 %v8283_v16  ;;  %v1002_v51 = vadd.f32 %v1001_v48, %v330_v43  ;;  %v1014_v52 = vpop.f32.mrf.mxu1  ;;  %v8303_v43 = vor.u32 %v11472_v30, %v8300_v34  ;;  %v8739_v48 = vor.u32 %v11584_v45, %v8738_v44  ;;  %v8638_v34 = vld [vmem:[#allocation8 + $0x3e8] sm:$0xf]  ;;  %v11510_v44 = vld [vmem:[#allocation8 + $0x270] sm:$0xf0] }
  0xd6   :  { %2309 = vmatpush.bf16.msrb.mxu1 %v8443_v22  ;;  %v8163_v22 = vor.u32 %v11437_v11, %v8160_v12  ;;  %v8206_v11 = vld [vmem:[#allocation8 + $0x80] sm:$0xf]  ;;  %v11450_v12 = vld [vmem:[#allocation8 + $0x90] sm:$0xf0] }
  0xd7   :  { %v1015_v56 = vadd.f32 %v1014_v52, %v1002_v51  ;;  %v11579_v51 = vld [vmem:[#allocation8 + $0x498] sm:$0xf0]  ;;  %v11537_v52 = vld [vmem:[#allocation8 + $0x34c] sm:$0xf] }
  0xd9   :  { %2297 = vmatpush.bf16.msrb.mxu0 %v8263_v26  ;;  %v1027_v2 = vpop.f32.mrf.mxu2  ;;  %v11514_v26 = vld [vmem:[#allocation8 + $0x290] sm:$0xf0] }
  0xda   :  { %2310 = vmatpush.bf16.msrb.mxu1 %v8423_v31  ;;  %v1028_v5 = vadd.f32 %v1027_v2, %v1015_v56  ;;  %v8459_v29 = vor.u32 %v11514_v26, %v8458_v25  ;;  %v8758_v31 = vld [vmem:[#allocation8 + $0x4d8] sm:$0xf]  ;;  %v8560_v56 = vld [vmem:[#allocation8 + $0x35c] sm:$0xf0]  ;;  %v11455_v2 = vld [vmem:[#allocation8 + $0xb8] sm:$0xf0] }
  0xdb   :  { %v8563_v57 = vor.u32 %v11537_v52, %v8560_v56  ;;  %v11445_v25 = vld [vmem:[#allocation8 + $0x68] sm:$0xf0]  ;;  %v11554_v52 = vld [vmem:[#allocation8 + $0x3d0] sm:$0xf0]  ;;  %v11512_v56 = vld [vmem:[#allocation8 + $0x284] sm:$0xf] }
  0xdc   :  { %v1040_v6 = vpop.f32.mrf.mxu3  ;;  %v1003_v13 = vpop.f32.mrf.mxu0  ;;  %2277 = vmatpush.bf16.msra.mxu2 %v8459_v29 }
  0xdd   :  { %2298 = vmatpush.bf16.msrb.mxu0 %v8243_v36  ;;  %v1041_v10 = vadd.f32 %v1040_v6, %v1028_v5  ;;  %v1016_v16 = vpop.f32.mrf.mxu1  ;;  %v8759_v36 = vor.u32 %v11589_v32, %v8758_v31  ;;  %v331_v6 = vperm.slane %v12690_v35, 1  ;;  %v8679_v13 = vor.u32 %v11569_v9, %v8678_v8  ;;  %v11463_v8 = vld [vmem:[#allocation8 + $0xfc] sm:$0xf]  ;;  %v8268_v9 = vld [vmem:[#allocation8 + $0x10c] sm:$0xf0] }
  0xde   :  { %2311 = vmatpush.bf16.msrb.mxu1 %v8403_v41  ;;  %v8143_v41 = vor.u32 %v11432_v20, %v8140_v21  ;;  %v8658_v20 = vld [vmem:[#allocation8 + $0x410] sm:$0xf]  ;;  %v11564_v21 = vld [vmem:[#allocation8 + $0x420] sm:$0xf0] }
  0xdf   :  { %v1200_v19 = vmax.f32 %v1041_v10, 0.0  ;;  %2283 = vmatpush.bf16.msra.mxu3 %v8759_v36  ;;  %v11527_v10 = vld [vmem:[#allocation8 + $0x2fc] sm:$0xf]  ;;  %v8659_v26 = vor.u32 %v11564_v21, %v8658_v20  ;;  %v8248_v20 = vld [vmem:[#allocation8 + $0xe4] sm:$0xf0] }
  0xe0   :  { %2322 = vmatpush.bf16.msrb.mxu2 %v8603_v40  ;;  %v11559_v36 = vld [vmem:[#allocation8 + $0x3f8] sm:$0xf0]  ;;  %v8386_v21 = vld [vmem:[#allocation8 + $0x1e8] sm:$0xf] }
  0xe1   :  { %2299 = vmatpush.bf16.msrb.mxu0 %v8223_v46  ;;  %v12693_v27 = vpack.c.bf16 %v1200_v19, %v1200_v19  ;;  %v1029_v33 = vpop.f32.mrf.mxu2  ;;  %v11542_v46 = vld [vmem:[#allocation8 + $0x374] sm:$0xf]  ;;  %v8207_v19 = vor.u32 %v11450_v12, %v8206_v11  ;;  %v8639_v40 = vor.u32 %v11559_v36, %v8638_v34  ;;  %v8406_v11 = vld [vmem:[#allocation8 + $0x210] sm:$0xf]  ;;  %v11500_v12 = vld [vmem:[#allocation8 + $0x220] sm:$0xf0] }
  0xe2   :  { %2312 = vmatpush.bf16.msrb.mxu1 %v8383_v50  ;;  %v8583_v62 = vor.u32 %v11542_v46, %v8580_v49  ;;  %v8267_v50 = vor.u32 %v11465_v47, %v8266_v59  ;;  %v8187_v33 = vor.u32 %v11445_v25, %v8186_v24  ;;  %v8146_v59 = vld [vmem:[#allocation8 + $0x8] sm:$0xf]  ;;  %v11435_v47 = vld [vmem:[#allocation8 + $0x18] sm:$0xf0]  ;;  %v332_v34 = vperm.slane %v12690_v35, 2 }
  0xe3   :  { %2252 = vmatmul.bf16.vlgmr.msra.gmra.mxu0 %v12693_v27  ;;  %2284 = vmatpush.bf16.msra.mxu3 %v8739_v48 }
  0xe4   :  { %v1042_v39 = vpop.f32.mrf.mxu3  ;;  %2323 = vmatpush.bf16.msrb.mxu2 %v8583_v62 }
  0xe5   :  { %2300 = vmatpush.bf16.msrb.mxu0 %v8203_v55  ;;  %v8719_v55 = vor.u32 %v11579_v51, %v8718_v53  ;;  %v11440_v39 = vld [vmem:[#allocation8 + $0x40] sm:$0xf0]  ;;  %v8288_v53 = vld [vmem:[#allocation8 + $0x134] sm:$0xf0]  ;;  %v8618_v51 = vld [vmem:[#allocation8 + $0x3c0] sm:$0xf] }
  0xe6   :  { %2313 = vmatpush.bf16.msrb.mxu1 %v8363_v0  ;;  %v11532_v0 = vld [vmem:[#allocation8 + $0x324] sm:$0xf]  ;;  %v8167_v62 = vor.u32 %v11440_v39, %v8166_v38  ;;  %v11567_v39 = vld [vmem:[#allocation8 + $0x43c] sm:$0xf] }
  0xe7   :  { %2285 = vmatpush.bf16.msra.mxu3 %v8719_v55  ;;  %v8543_v5 = vor.u32 %v11532_v0, %v8540_v4  ;;  %v8619_v55 = vor.u32 %v11554_v52, %v8618_v51  ;;  %v11587_v0 = vld [vmem:[#allocation8 + $0x4dc] sm:$0xf]  ;;  %v8147_v4 = vor.u32 %v11435_v47, %v8146_v59  ;;  %v11448_v38 = vld [vmem:[#allocation8 + $0x84] sm:$0xf]  ;;  %v8326_v51 = vld [vmem:[#allocation8 + $0x170] sm:$0xf] }
  0xe8   :  { %2324 = vmatpush.bf16.msrb.mxu2 %v8563_v57  ;;  %v8460_v57 = vld [vmem:[#allocation8 + $0x294] sm:$0xf0]  ;;  %v11480_v52 = vld [vmem:[#allocation8 + $0x180] sm:$0xf0] }
  0xe9   :  { %2301 = vmatpush.bf16.msrb.mxu0 %v8183_v7  ;;  %v8227_v7 = vor.u32 %v11455_v2, %v8226_v1  ;;  %v8463_v63 = vor.u32 %v11512_v56, %v8460_v57  ;;  %v8760_v1 = vld [vmem:[#allocation8 + $0x4ec] sm:$0xf0]  ;;  %v8327_v57 = vor.u32 %v11480_v52, %v8326_v51 }
  0xea   :  { %2314 = vmatpush.bf16.msrb.mxu1 %v8343_v14  ;;  %v8520_v14 = vld [vmem:[#allocation8 + $0x30c] sm:$0xf0] }
  0xeb   :  { %2286 = vmatpush.bf16.msra.mxu3 %v8699_v3  ;;  %v8523_v16 = vor.u32 %v11527_v10, %v8520_v14  ;;  %v8763_v3 = vor.u32 %v11587_v0, %v8760_v1  ;;  %v11582_v10 = vld [vmem:[#allocation8 + $0x4b4] sm:$0xf]  ;;  %v8640_v0 = vld [vmem:[#allocation8 + $0x3fc] sm:$0xf0] }
  0xec   :  { %2325 = vmatpush.bf16.msrb.mxu2 %v8543_v5 }
  0xed   :  { %2302 = vmatpush.bf16.msrb.mxu0 %v8163_v22  ;;  %v11522_v22 = vld [vmem:[#allocation8 + $0x2d4] sm:$0xf] }
  0xee   :  { %2315 = vmatpush.bf16.msrb.mxu1 %v8323_v28  ;;  %v8500_v28 = vld [vmem:[#allocation8 + $0x2e4] sm:$0xf0] }
  0xef   :  { %2287 = vmatpush.bf16.msra.mxu3 %v8679_v13  ;;  %v8503_v29 = vor.u32 %v11522_v22, %v8500_v28  ;;  %v8740_v13 = vld [vmem:[#allocation8 + $0x4c4] sm:$0xf0]  ;;  %v11495_v22 = vld [vmem:[#allocation8 + $0x1f8] sm:$0xf0]  ;;  %v11572_v28 = vld [vmem:[#allocation8 + $0x464] sm:$0xf] }
  0xf0   :  { %2326 = vmatpush.bf16.msrb.mxu2 %v8523_v16  ;;  %v8743_v14 = vor.u32 %v11582_v10, %v8740_v13  ;;  %v8407_v16 = vor.u32 %v11500_v12, %v8406_v11  ;;  %v8387_v25 = vor.u32 %v11495_v22, %v8386_v21  ;;  %v8606_v11 = vld [vmem:[#allocation8 + $0x3a0] sm:$0xf]  ;;  %v11550_v12 = vld [vmem:[#allocation8 + $0x3b0] sm:$0xf0]  ;;  %v8294_v22 = vld [vmem:[#allocation8 + $0x128] sm:$0xf] }
  0xf1   :  { %2303 = vmatpush.bf16.msrb.mxu0 %v8143_v41  ;;  %v1053_v15 = vpop.f32.mrf.mxu0  ;;  %v8480_v41 = vld [vmem:[#allocation8 + $0x2bc] sm:$0xf0] }
  0xf2   :  { %2316 = vmatpush.bf16.msrb.mxu1 %v8303_v43  ;;  %v1054_v17 = vadd.f32 %v1053_v15, %v331_v6  ;;  %v1066_v18 = vpop.f32.mrf.mxu1  ;;  %v8446_v43 = vld [vmem:[#allocation8 + $0x260] sm:$0xf]  ;;  %v8483_v46 = vor.u32 %v11517_v37, %v8480_v41  ;;  %v8271_v15 = vor.u32 %v11463_v8, %v8268_v9  ;;  %v8208_v41 = vld [vmem:[#allocation8 + $0x94] sm:$0xf0] }
  0xf3   :  { %2288 = vmatpush.bf16.msra.mxu3 %v8659_v26  ;;  %v8447_v60 = vor.u32 %v11510_v44, %v8446_v43  ;;  %v11453_v26 = vld [vmem:[#allocation8 + $0xac] sm:$0xf]  ;;  %v8211_v47 = vor.u32 %v11448_v38, %v8208_v41  ;;  %v8448_v8 = vld [vmem:[#allocation8 + $0x274] sm:$0xf0]  ;;  %v8148_v21 = vld [vmem:[#allocation8 + $0x1c] sm:$0xf0] }
  0xf4   :  { %2304 = vmatmul.bf16.vlgmr.msrb.gmra.mxu0 %v12693_v27  ;;  %v1067_v23 = vadd.f32 %v1066_v18, %v1054_v17  ;;  %2327 = vmatpush.bf16.msrb.mxu2 %v8503_v29  ;;  %v11458_v17 = vld [vmem:[#allocation8 + $0xd4] sm:$0xf]  ;;  %v11577_v18 = vld [vmem:[#allocation8 + $0x48c] sm:$0xf]  ;;  %v8700_v29 = vld [vmem:[#allocation8 + $0x474] sm:$0xf0] }
  0xf5   :  { %2348 = vmatpush.bf16.msra.mxu0 %v8287_v42  ;;  %v8251_v24 = vor.u32 %v11458_v17, %v8248_v20  ;;  %v11485_v43 = vld [vmem:[#allocation8 + $0x1a8] sm:$0xf0]  ;;  %v11552_v17 = vld [vmem:[#allocation8 + $0x3c4] sm:$0xf]  ;;  %v8274_v38 = vld [vmem:[#allocation8 + $0x100] sm:$0xf] }
  0xf6   :  { %v11498_v41 = vld [vmem:[#allocation8 + $0x214] sm:$0xf] }
  0xf7   :  { %2289 = vmatpush.bf16.msra.mxu3 %v8639_v40  ;;  %v8680_v40 = vld [vmem:[#allocation8 + $0x44c] sm:$0xf0] }
  0xf8   :  { %2328 = vmatpush.bf16.msrb.mxu2 %v8483_v46  ;;  %v8683_v44 = vor.u32 %v11567_v39, %v8680_v40  ;;  %v11466_v40 = vld [vmem:[#allocation8 + $0x110] sm:$0xf0] }
  0xf9   :  { %2349 = vmatpush.bf16.msra.mxu0 %v8267_v50  ;;  %v1079_v30 = vpop.f32.mrf.mxu2  ;;  %v1055_v45 = vpop.f32.mrf.mxu0  ;;  %v11468_v50 = vld [vmem:[#allocation8 + $0x124] sm:$0xf] }
  0xfa   :  { %v1080_v31 = vadd.f32 %v1079_v30, %v1067_v23  ;;  %v1092_v32 = vpop.f32.mrf.mxu3  ;;  %v1068_v48 = vpop.f32.mrf.mxu1  ;;  %v8291_v6 = vor.u32 %v11468_v50, %v8288_v53  ;;  %v8228_v30 = vld [vmem:[#allocation8 + $0xbc] sm:$0xf0]  ;;  %v8660_v50 = vld [vmem:[#allocation8 + $0x424] sm:$0xf0]  ;;  %v8188_v53 = vld [vmem:[#allocation8 + $0x6c] sm:$0xf0] }
  0xfb   :  { %2290 = vmatpush.bf16.msra.mxu3 %v8619_v55  ;;  %v8231_v36 = vor.u32 %v11453_v26, %v8228_v30  ;;  %v8428_v26 = vld [vmem:[#allocation8 + $0x24c] sm:$0xf0]  ;;  %v8586_v30 = vld [vmem:[#allocation8 + $0x378] sm:$0xf] }
  0xfc   :  { %v1093_v42 = vadd.f32 %v1092_v32, %v1080_v31  ;;  %2329 = vmatpush.bf16.msrb.mxu2 %v8463_v63  ;;  %v8366_v31 = vld [vmem:[#allocation8 + $0x1c0] sm:$0xf]  ;;  %v11490_v32 = vld [vmem:[#allocation8 + $0x1d0] sm:$0xf0]  ;;  %v11557_v63 = vld [vmem:[#allocation8 + $0x3ec] sm:$0xf] }
  0xfd   :  { %2350 = vmatpush.bf16.msra.mxu0 %v8247_v58  ;;  %v8367_v37 = vor.u32 %v11490_v32, %v8366_v31  ;;  %v11545_v31 = vld [vmem:[#allocation8 + $0x388] sm:$0xf0] }
  0xfe   :  { %v1201_v49 = vmax.f32 %v1093_v42, 0.0  ;;  %v8346_v42 = vld [vmem:[#allocation8 + $0x198] sm:$0xf]  ;;  %v8587_v39 = vor.u32 %v11545_v31, %v8586_v30  ;;  %v8466_v30 = vld [vmem:[#allocation8 + $0x288] sm:$0xf] }
  0xff   :  { %2335 = vmatpush.bf16.msrb.mxu3 %v8763_v3  ;;  %v8347_v48 = vor.u32 %v11485_v43, %v8346_v42  ;;  %v8168_v3 = vld [vmem:[#allocation8 + $0x44] sm:$0xf0]  ;;  %v8566_v43 = vld [vmem:[#allocation8 + $0x350] sm:$0xf] }
 0x100   :  { %v12698_v58 = vpack.c.bf16 %v1201_v49, %v1201_v49  ;;  %v11443_v49 = vld [vmem:[#allocation8 + $0x5c] sm:$0xf]  ;;  %v8408_v42 = vld [vmem:[#allocation8 + $0x224] sm:$0xf0] }
 0x101   :  { %2351 = vmatpush.bf16.msra.mxu0 %v8227_v7  ;;  %v1081_v2 = vpop.f32.mrf.mxu2  ;;  %v8427_v7 = vor.u32 %v11505_v61, %v8426_v54  ;;  %v8191_v56 = vor.u32 %v11443_v49, %v8188_v53  ;;  %v11438_v61 = vld [vmem:[#allocation8 + $0x34] sm:$0xf]  ;;  %v11493_v49 = vld [vmem:[#allocation8 + $0x1ec] sm:$0xf]  ;;  %v11535_v53 = vld [vmem:[#allocation8 + $0x338] sm:$0xf0] }
 0x102   :  { %2265 = vmatmul.bf16.vlgmr.msra.gmra.mxu1 %v12698_v58  ;;  %v1094_v5 = vpop.f32.mrf.mxu3  ;;  %v8171_v13 = vor.u32 %v11438_v61, %v8168_v3  ;;  %v11488_v61 = vld [vmem:[#allocation8 + $0x1c4] sm:$0xf] }
 0x103   :  { %2361 = vmatpush.bf16.msra.mxu1 %v8447_v60  ;;  %2336 = vmatpush.bf16.msrb.mxu3 %v8743_v14  ;;  %v11475_v5 = vld [vmem:[#allocation8 + $0x158] sm:$0xf0] }
 0x105   :  { %2352 = vmatpush.bf16.msra.mxu0 %v8207_v19  ;;  %v8720_v19 = vld [vmem:[#allocation8 + $0x49c] sm:$0xf0] }
 0x106   :  { %v8723_v23 = vor.u32 %v11577_v18, %v8720_v19  ;;  %v8620_v18 = vld [vmem:[#allocation8 + $0x3d4] sm:$0xf0] }
 0x107   :  { %2362 = vmatpush.bf16.msra.mxu1 %v8427_v7  ;;  %v11508_v7 = vld [vmem:[#allocation8 + $0x264] sm:$0xf] }
 0x108   :  { %2337 = vmatpush.bf16.msrb.mxu3 %v8723_v23  ;;  %v8451_v20 = vor.u32 %v11508_v7, %v8448_v8  ;;  %v8607_v23 = vor.u32 %v11550_v12, %v8606_v11  ;;  %v11525_v8 = vld [vmem:[#allocation8 + $0x2e8] sm:$0xf0] }
 0x109   :  { %2353 = vmatpush.bf16.msra.mxu0 %v8187_v33  ;;  %v8703_v33 = vor.u32 %v11572_v28, %v8700_v29  ;;  %v8623_v28 = vor.u32 %v11552_v17, %v8620_v18  ;;  %v8486_v17 = vld [vmem:[#allocation8 + $0x2b0] sm:$0xf] }
 0x10b   :  { %2363 = vmatpush.bf16.msra.mxu1 %v8407_v16  ;;  %v11433_v16 = vld [vmem:[#allocation8 + $0xc] sm:$0xf] }
 0x10c   :  { %2338 = vmatpush.bf16.msrb.mxu3 %v8703_v33  ;;  %v8151_v32 = vor.u32 %v11433_v16, %v8148_v21  ;;  %v11446_v16 = vld [vmem:[#allocation8 + $0x70] sm:$0xf0]  ;;  %v8328_v21 = vld [vmem:[#allocation8 + $0x184] sm:$0xf0] }
 0x10d   :  { %2354 = vmatpush.bf16.msra.mxu0 %v8167_v62  ;;  %v11562_v62 = vld [vmem:[#allocation8 + $0x414] sm:$0xf] }
 0x10e   :  { %v8663_v60 = vor.u32 %v11562_v62, %v8660_v50  ;;  %v8388_v62 = vld [vmem:[#allocation8 + $0x1fc] sm:$0xf0]  ;;  %v8546_v50 = vld [vmem:[#allocation8 + $0x328] sm:$0xf] }
 0x10f   :  { %2364 = vmatpush.bf16.msra.mxu1 %v8387_v25  ;;  %v11503_v25 = vld [vmem:[#allocation8 + $0x23c] sm:$0xf]  ;;  %v8391_v52 = vor.u32 %v11493_v49, %v8388_v62  ;;  %v11436_v49 = vld [vmem:[#allocation8 + $0x20] sm:$0xf0] }
 0x110   :  { %2339 = vmatpush.bf16.msrb.mxu3 %v8683_v44  ;;  %v11540_v44 = vld [vmem:[#allocation8 + $0x360] sm:$0xf0] }
 0x111   :  { %2355 = vmatpush.bf16.msra.mxu0 %v8147_v4  ;;  %v1105_v45 = vpop.f32.mrf.mxu0  ;;  %v8306_v4 = vld [vmem:[#allocation8 + $0x148] sm:$0xf] }
 0x112   :  { %2317 = vmatmul.bf16.vlgmr.msrb.gmra.mxu1 %v12698_v58  ;;  %v1106_v46 = vadd.f32 %v1105_v45, %v332_v34  ;;  %v1118_v59 = vpop.f32.mrf.mxu1  ;;  %v8307_v14 = vor.u32 %v11475_v5, %v8306_v4  ;;  %v8275_v45 = vor.u32 %v11466_v40, %v8274_v38  ;;  %v8214_v4 = vld [vmem:[#allocation8 + $0x88] sm:$0xf]  ;;  %v11451_v5 = vld [vmem:[#allocation8 + $0x98] sm:$0xf0]  ;;  %v11548_v40 = vld [vmem:[#allocation8 + $0x3a4] sm:$0xf] }
 0x113   :  { %2365 = vmatpush.bf16.msra.mxu1 %v8367_v37 }
 0x114   :  { %2356 = vmatmul.bf16.vlgmr.msra.gmra.mxu0 %v12693_v27  ;;  %v1119_v54 = vadd.f32 %v1118_v59, %v1106_v46  ;;  %2340 = vmatpush.bf16.msrb.mxu3 %v8663_v60  ;;  %v8411_v46 = vor.u32 %v11498_v41, %v8408_v42  ;;  %v8254_v59 = vld [vmem:[#allocation8 + $0xd8] sm:$0xf]  ;;  %v8547_v60 = vor.u32 %v11535_v53, %v8546_v50 }
 0x115   :  { %2400 = vmatpush.bf16.msrb.mxu0 %v8291_v6  ;;  %v8643_v6 = vor.u32 %v11557_v63, %v8640_v0  ;;  %v8368_v63 = vld [vmem:[#allocation8 + $0x1d4] sm:$0xf0]  ;;  %v333_v0 = vperm.slane %v12690_v35, 3 }
 0x116   :  { %v8371_v3 = vor.u32 %v11488_v61, %v8368_v63  ;;  %v8608_v41 = vld [vmem:[#allocation8 + $0x3b4] sm:$0xf0]  ;;  %v8434_v61 = vld [vmem:[#allocation8 + $0x240] sm:$0xf]  ;;  %v11506_v63 = vld [vmem:[#allocation8 + $0x250] sm:$0xf0] }
 0x117   :  { %2366 = vmatpush.bf16.msra.mxu1 %v8347_v48  ;;  %v11461_v48 = vld [vmem:[#allocation8 + $0xe8] sm:$0xf0]  ;;  %v8611_v50 = vor.u32 %v11548_v40, %v8608_v41 }
 0x118   :  { %2341 = vmatpush.bf16.msrb.mxu3 %v8643_v6  ;;  %v8255_v51 = vor.u32 %v11461_v48, %v8254_v59  ;;  %v8506_v6 = vld [vmem:[#allocation8 + $0x2d8] sm:$0xf]  ;;  %v8154_v48 = vld [vmem:[#allocation8 + $0x10] sm:$0xf] }
 0x119   :  { %2401 = vmatpush.bf16.msrb.mxu0 %v8271_v15  ;;  %v1131_v55 = vpop.f32.mrf.mxu2  ;;  %v1107_v10 = vpop.f32.mrf.mxu0  ;;  %v8507_v35 = vor.u32 %v11525_v8, %v8506_v6  ;;  %v11538_v6 = vld [vmem:[#allocation8 + $0x354] sm:$0xf]  ;;  %v11580_v8 = vld [vmem:[#allocation8 + $0x4a0] sm:$0xf0] }
 0x11a   :  { %v1132_v1 = vadd.f32 %v1131_v55, %v1119_v54  ;;  %v1144_v2 = vpop.f32.mrf.mxu3  ;;  %v1120_v15 = vpop.f32.mrf.mxu1  ;;  %v8234_v54 = vld [vmem:[#allocation8 + $0xb0] sm:$0xf]  ;;  %v11456_v55 = vld [vmem:[#allocation8 + $0xc0] sm:$0xf0] }
 0x11b   :  { %2367 = vmatpush.bf16.msra.mxu1 %v8327_v57  ;;  %v11530_v57 = vld [vmem:[#allocation8 + $0x310] sm:$0xf0]  ;;  %v8348_v10 = vld [vmem:[#allocation8 + $0x1ac] sm:$0xf0]  ;;  %v8194_v15 = vld [vmem:[#allocation8 + $0x60] sm:$0xf] }
 0x11c   :  { %v1145_v9 = vadd.f32 %v1144_v2, %v1132_v1  ;;  %2342 = vmatpush.bf16.msrb.mxu3 %v8623_v28  ;;  %v8235_v1 = vor.u32 %v11456_v55, %v8234_v54  ;;  %v11441_v28 = vld [vmem:[#allocation8 + $0x48] sm:$0xf0]  ;;  %v8588_v54 = vld [vmem:[#allocation8 + $0x38c] sm:$0xf0] }
 0x11d   :  { %2402 = vmatpush.bf16.msrb.mxu0 %v8251_v24  ;;  %v11471_v24 = vld [vmem:[#allocation8 + $0x138] sm:$0xf0] }
 0x11e   :  { %v1202_v19 = vmax.f32 %v1145_v9, 0.0  ;;  %v8295_v34 = vor.u32 %v11471_v24, %v8294_v22  ;;  %v11483_v9 = vld [vmem:[#allocation8 + $0x19c] sm:$0xf]  ;;  %v8195_v22 = vor.u32 %v11446_v16, %v8194_v15  ;;  %v8548_v15 = vld [vmem:[#allocation8 + $0x33c] sm:$0xf0] }
 0x11f   :  { %2368 = vmatpush.bf16.msra.mxu1 %v8307_v14  ;;  %v8351_v14 = vor.u32 %v11483_v9, %v8348_v10  ;;  %v8414_v9 = vld [vmem:[#allocation8 + $0x218] sm:$0xf]  ;;  %v11501_v10 = vld [vmem:[#allocation8 + $0x228] sm:$0xf0]  ;;  %v11575_v16 = vld [vmem:[#allocation8 + $0x478] sm:$0xf0] }
 0x120   :  { %v12704_v29 = vpack.c.bf16 %v1202_v19, %v1202_v19  ;;  %v11520_v19 = vld [vmem:[#allocation8 + $0x2c0] sm:$0xf0] }
 0x121   :  { %2403 = vmatpush.bf16.msrb.mxu0 %v8231_v36  ;;  %v1133_v33 = vpop.f32.mrf.mxu2  ;;  %v8431_v36 = vor.u32 %v11503_v25, %v8428_v26  ;;  %v8487_v24 = vor.u32 %v11520_v19, %v8486_v17  ;;  %v8174_v26 = vld [vmem:[#allocation8 + $0x38] sm:$0xf]  ;;  %v8394_v17 = vld [vmem:[#allocation8 + $0x1f0] sm:$0xf] }
 0x122   :  { %2278 = vmatmul.bf16.vlgmr.msra.gmra.mxu2 %v12704_v29  ;;  %v1146_v37 = vpop.f32.mrf.mxu3  ;;  %2369 = vmatmul.bf16.vlgmr.msra.gmra.mxu1 %v12698_v58 }
 0x123   :  { %2413 = vmatpush.bf16.msrb.mxu1 %v8451_v20  ;;  %2374 = vmatpush.bf16.msra.mxu2 %v8607_v23  ;;  %v11478_v20 = vld [vmem:[#allocation8 + $0x174] sm:$0xf]  ;;  %v8308_v37 = vld [vmem:[#allocation8 + $0x15c] sm:$0xf0] }
 0x124   :  { %v8331_v25 = vor.u32 %v11478_v20, %v8328_v21 }
 0x125   :  { %2404 = vmatpush.bf16.msrb.mxu0 %v8211_v47  ;;  %v8567_v47 = vor.u32 %v11540_v44, %v8566_v43  ;;  %v8175_v43 = vor.u32 %v11441_v28, %v8174_v26  ;;  %v11590_v44 = vld [vmem:[#allocation8 + $0x4f0] sm:$0xf0]  ;;  %v8374_v26 = vld [vmem:[#allocation8 + $0x1c8] sm:$0xf]  ;;  %v11491_v28 = vld [vmem:[#allocation8 + $0x1d8] sm:$0xf0] }
 0x127   :  { %2414 = vmatpush.bf16.msrb.mxu1 %v8431_v36  ;;  %2375 = vmatpush.bf16.msra.mxu2 %v8587_v39  ;;  %v11473_v36 = vld [vmem:[#allocation8 + $0x14c] sm:$0xf]  ;;  %v8766_v39 = vld [vmem:[#allocation8 + $0x4e0] sm:$0xf] }
 0x128   :  { %v8767_v53 = vor.u32 %v11590_v44, %v8766_v39  ;;  %v8488_v44 = vld [vmem:[#allocation8 + $0x2c4] sm:$0xf0] }
 0x129   :  { %2405 = vmatpush.bf16.msrb.mxu0 %v8191_v56  ;;  %v8526_v56 = vld [vmem:[#allocation8 + $0x300] sm:$0xf] }
 0x12a   :  { %v8527_v2 = vor.u32 %v11530_v57, %v8526_v56  ;;  %v8155_v56 = vor.u32 %v11436_v49, %v8154_v48  ;;  %v11585_v57 = vld [vmem:[#allocation8 + $0x4c8] sm:$0xf0]  ;;  %v8626_v48 = vld [vmem:[#allocation8 + $0x3c8] sm:$0xf] }
 0x12b   :  { %2415 = vmatpush.bf16.msrb.mxu1 %v8411_v46  ;;  %2376 = vmatpush.bf16.msra.mxu2 %v8567_v47  ;;  %v11511_v46 = vld [vmem:[#allocation8 + $0x278] sm:$0xf0]  ;;  %v8311_v47 = vor.u32 %v11473_v36, %v8308_v37  ;;  %v11565_v36 = vld [vmem:[#allocation8 + $0x428] sm:$0xf0]  ;;  %v8354_v37 = vld [vmem:[#allocation8 + $0x1a0] sm:$0xf] }
 0x12d   :  { %2406 = vmatpush.bf16.msrb.mxu0 %v8171_v13  ;;  %v8215_v13 = vor.u32 %v11451_v5, %v8214_v4  ;;  %v8435_v4 = vor.u32 %v11506_v63, %v8434_v61  ;;  %v8726_v5 = vld [vmem:[#allocation8 + $0x490] sm:$0xf]  ;;  %v11551_v61 = vld [vmem:[#allocation8 + $0x3b8] sm:$0xf0] }
 0x12f   :  { %2416 = vmatpush.bf16.msrb.mxu1 %v8391_v52  ;;  %2377 = vmatpush.bf16.msra.mxu2 %v8547_v60  ;;  %v8746_v52 = vld [vmem:[#allocation8 + $0x4b8] sm:$0xf]  ;;  %v11543_v60 = vld [vmem:[#allocation8 + $0x37c] sm:$0xf] }
 0x131   :  { %2407 = vmatpush.bf16.msrb.mxu0 %v8151_v32  ;;  %v1157_v7 = vpop.f32.mrf.mxu0 }
 0x132   :  { %v1158_v11 = vadd.f32 %v1157_v7, %v333_v0  ;;  %v1170_v12 = vpop.f32.mrf.mxu1  ;;  %2330 = vmatmul.bf16.vlgmr.msrb.gmra.mxu2 %v12704_v29  ;;  %v8568_v7 = vld [vmem:[#allocation8 + $0x364] sm:$0xf0] }
 0x133   :  { %2378 = vmatpush.bf16.msra.mxu2 %v8527_v2  ;;  %2417 = vmatpush.bf16.msrb.mxu1 %v8371_v3  ;;  %v8591_v2 = vor.u32 %v11543_v60, %v8588_v54  ;;  %v8747_v3 = vor.u32 %v11585_v57, %v8746_v52  ;;  %v8314_v52 = vld [vmem:[#allocation8 + $0x150] sm:$0xf]  ;;  %v11476_v60 = vld [vmem:[#allocation8 + $0x160] sm:$0xf0]  ;;  %v8614_v57 = vld [vmem:[#allocation8 + $0x3a8] sm:$0xf] }
 0x134   :  { %2408 = vmatmul.bf16.vlgmr.msrb.gmra.mxu0 %v12693_v27  ;;  %v1171_v18 = vadd.f32 %v1170_v12, %v1158_v11  ;;  %v8571_v11 = vor.u32 %v11538_v6, %v8568_v7  ;;  %v8727_v12 = vor.u32 %v11580_v8, %v8726_v5  ;;  %v11588_v54 = vld [vmem:[#allocation8 + $0x4e4] sm:$0xf]  ;;  %v8748_v5 = vld [vmem:[#allocation8 + $0x4cc] sm:$0xf0]  ;;  %v8594_v6 = vld [vmem:[#allocation8 + $0x380] sm:$0xf] }
 0x135   :  { %2452 = vmatpush.bf16.msra.mxu0 %v8295_v34  ;;  %v11515_v34 = vld [vmem:[#allocation8 + $0x298] sm:$0xf0]  ;;  %v11546_v7 = vld [vmem:[#allocation8 + $0x390] sm:$0xf0] }
 0x136   :  { %v8467_v59 = vor.u32 %v11515_v34, %v8466_v30  ;;  %v8508_v34 = vld [vmem:[#allocation8 + $0x2ec] sm:$0xf0] }
 0x137   :  { %2379 = vmatpush.bf16.msra.mxu2 %v8507_v35  ;;  %2418 = vmatpush.bf16.msrb.mxu1 %v8351_v14  ;;  %v8706_v35 = vld [vmem:[#allocation8 + $0x468] sm:$0xf]  ;;  %v11533_v14 = vld [vmem:[#allocation8 + $0x32c] sm:$0xf] }
 0x138   :  { %v8551_v19 = vor.u32 %v11533_v14, %v8548_v15  ;;  %v8707_v20 = vor.u32 %v11575_v16, %v8706_v35  ;;  %v11573_v15 = vld [vmem:[#allocation8 + $0x46c] sm:$0xf] }
 0x139   :  { %2453 = vmatpush.bf16.msra.mxu0 %v8275_v45  ;;  %v1183_v23 = vpop.f32.mrf.mxu2  ;;  %v1159_v33 = vpop.f32.mrf.mxu0  ;;  %v8454_v45 = vld [vmem:[#allocation8 + $0x268] sm:$0xf] }
 0x13a   :  { %v1184_v31 = vadd.f32 %v1183_v23, %v1171_v18  ;;  %v1196_v32 = vpop.f32.mrf.mxu3  ;;  %v1172_v38 = vpop.f32.mrf.mxu1  ;;  %v11496_v18 = vld [vmem:[#allocation8 + $0x200] sm:$0xf0]  ;;  %v11523_v33 = vld [vmem:[#allocation8 + $0x2dc] sm:$0xf] }
 0x13b   :  { %2380 = vmatpush.bf16.msra.mxu2 %v8487_v24  ;;  %2419 = vmatpush.bf16.msrb.mxu1 %v8331_v25  ;;  %v8395_v21 = vor.u32 %v11496_v18, %v8394_v17  ;;  %v11528_v23 = vld [vmem:[#allocation8 + $0x304] sm:$0xf]  ;;  %v8528_v24 = vld [vmem:[#allocation8 + $0x314] sm:$0xf0]  ;;  %v11570_v25 = vld [vmem:[#allocation8 + $0x450] sm:$0xf0]  ;;  %v8511_v39 = vor.u32 %v11523_v33, %v8508_v34 }
 0x13c   :  { %v1197_v42 = vadd.f32 %v1196_v32, %v1184_v31  ;;  %v8531_v30 = vor.u32 %v11528_v23, %v8528_v24  ;;  %v8375_v31 = vor.u32 %v11491_v28, %v8374_v26  ;;  %v8666_v32 = vld [vmem:[#allocation8 + $0x418] sm:$0xf]  ;;  %v11486_v38 = vld [vmem:[#allocation8 + $0x1b0] sm:$0xf0]  ;;  %v8708_v17 = vld [vmem:[#allocation8 + $0x47c] sm:$0xf0] }
 0x13d   :  { %2454 = vmatpush.bf16.msra.mxu0 %v8255_v51  ;;  %v8455_v51 = vor.u32 %v11511_v46, %v8454_v45  ;;  %v8667_v40 = vor.u32 %v11565_v36, %v8666_v32  ;;  %v8355_v41 = vor.u32 %v11486_v38, %v8354_v37  ;;  %v11560_v45 = vld [vmem:[#allocation8 + $0x400] sm:$0xf0]  ;;  %v8334_v46 = vld [vmem:[#allocation8 + $0x178] sm:$0xf]  ;;  %v8554_v18 = vld [vmem:[#allocation8 + $0x330] sm:$0xf] }
 0x13e   :  { %v1203_v62 = vmax.f32 %v1197_v42, 0.0  ;;  %v8646_v42 = vld [vmem:[#allocation8 + $0x3f0] sm:$0xf]  ;;  %v8688_v23 = vld [vmem:[#allocation8 + $0x454] sm:$0xf0] }
 0x13f   :  { %2381 = vmatpush.bf16.msra.mxu2 %v8467_v59  ;;  %2420 = vmatpush.bf16.msrb.mxu1 %v8311_v47  ;;  %v11481_v59 = vld [vmem:[#allocation8 + $0x188] sm:$0xf0]  ;;  %v8647_v49 = vor.u32 %v11560_v45, %v8646_v42  ;;  %v8534_v24 = vld [vmem:[#allocation8 + $0x308] sm:$0xf]  ;;  %v11563_v28 = vld [vmem:[#allocation8 + $0x41c] sm:$0xf] }
 0x140   :  { %v12711_v55 = vpack.c.bf16 %v1203_v62, %v1203_v62  ;;  %v8335_v62 = vor.u32 %v11481_v59, %v8334_v46  ;;  %v11526_v32 = vld [vmem:[#allocation8 + $0x2f0] sm:$0xf0]  ;;  %v8648_v37 = vld [vmem:[#allocation8 + $0x404] sm:$0xf0]  ;;  %v8494_v38 = vld [vmem:[#allocation8 + $0x2b8] sm:$0xf] }
 0x141   :  { %2455 = vmatpush.bf16.msra.mxu0 %v8235_v1  ;;  %v1185_v0 = vpop.f32.mrf.mxu2  ;;  %v11558_v36 = vld [vmem:[#allocation8 + $0x3f4] sm:$0xf]  ;;  %v11553_v42 = vld [vmem:[#allocation8 + $0x3cc] sm:$0xf]  ;;  %v8474_v45 = vld [vmem:[#allocation8 + $0x290] sm:$0xf] }
 0x142   :  { %v1198_v1 = vpop.f32.mrf.mxu3  ;;  %2291 = vmatmul.bf16.vlgmr.msra.gmra.mxu3 %v12711_v55  ;;  %2421 = vmatmul.bf16.vlgmr.msrb.gmra.mxu1 %v12698_v58  ;;  %v11516_v46 = vld [vmem:[#allocation8 + $0x2a0] sm:$0xf0]  ;;  %v8774_v59 = vld [vmem:[#allocation8 + $0x4e8] sm:$0xf] }
 0x143   :  { %2426 = vmatpush.bf16.msrb.mxu2 %v8611_v50  ;;  %2387 = vmatpush.bf16.msra.mxu3 %v8767_v53  ;;  %v11555_v50 = vld [vmem:[#allocation8 + $0x3d8] sm:$0xf0]  ;;  %v11513_v53 = vld [vmem:[#allocation8 + $0x28c] sm:$0xf]  ;;  %v8315_v1 = vor.u32 %v11476_v60, %v8314_v52  ;;  %v8734_v60 = vld [vmem:[#allocation8 + $0x498] sm:$0xf] }
 0x144   :  { %2465 = vmatpush.bf16.msra.mxu1 %v8455_v51  ;;  %2382 = vmatmul.bf16.vlgmr.msra.gmra.mxu2 %v12704_v29  ;;  %v8468_v51 = vld [vmem:[#allocation8 + $0x29c] sm:$0xf0]  ;;  %v8627_v0 = vor.u32 %v11555_v50, %v8626_v48 }
 0x145   :  { %2456 = vmatpush.bf16.msra.mxu0 %v8215_v13  ;;  %v8415_v13 = vor.u32 %v11501_v10, %v8414_v9  ;;  %v8471_v63 = vor.u32 %v11513_v53, %v8468_v51  ;;  %v8595_v9 = vor.u32 %v11546_v7, %v8594_v6  ;;  %v11578_v10 = vld [vmem:[#allocation8 + $0x494] sm:$0xf]  ;;  %v8754_v50 = vld [vmem:[#allocation8 + $0x4c0] sm:$0xf] }
 0x146   :  { %v11586_v53 = vld [vmem:[#allocation8 + $0x4d0] sm:$0xf0] }
 0x147   :  { %2427 = vmatpush.bf16.msrb.mxu2 %v8591_v2  ;;  %2388 = vmatpush.bf16.msra.mxu3 %v8747_v3  ;;  %v8615_v3 = vor.u32 %v11551_v61, %v8614_v57  ;;  %v8755_v51 = vor.u32 %v11586_v53, %v8754_v50  ;;  %v8714_v57 = vld [vmem:[#allocation8 + $0x470] sm:$0xf]  ;;  %v11576_v61 = vld [vmem:[#allocation8 + $0x480] sm:$0xf0]  ;;  %v11566_v6 = vld [vmem:[#allocation8 + $0x430] sm:$0xf0] }
 0x148   :  { %2466 = vmatpush.bf16.msra.mxu1 %v8435_v4  ;;  %v11583_v4 = vld [vmem:[#allocation8 + $0x4bc] sm:$0xf] }
 0x149   :  { %2457 = vmatpush.bf16.msra.mxu0 %v8195_v22  ;;  %v8686_v22 = vld [vmem:[#allocation8 + $0x440] sm:$0xf]  ;;  %v8751_v8 = vor.u32 %v11583_v4, %v8748_v5 }
 0x14a   :  { %v8674_v5 = vld [vmem:[#allocation8 + $0x420] sm:$0xf] }
 0x14b   :  { %2428 = vmatpush.bf16.msrb.mxu2 %v8571_v11  ;;  %2389 = vmatpush.bf16.msra.mxu3 %v8727_v12  ;;  %v8728_v11 = vld [vmem:[#allocation8 + $0x4a4] sm:$0xf0]  ;;  %v8574_v12 = vld [vmem:[#allocation8 + $0x358] sm:$0xf] }
 0x14c   :  { %2467 = vmatpush.bf16.msra.mxu1 %v8415_v13  ;;  %v11541_v13 = vld [vmem:[#allocation8 + $0x368] sm:$0xf0]  ;;  %v8731_v35 = vor.u32 %v11578_v10, %v8728_v11  ;;  %v8675_v10 = vor.u32 %v11566_v6, %v8674_v5  ;;  %v8654_v11 = vld [vmem:[#allocation8 + $0x3f8] sm:$0xf] }
 0x14d   :  { %2458 = vmatpush.bf16.msra.mxu0 %v8175_v43  ;;  %v11518_v43 = vld [vmem:[#allocation8 + $0x2b4] sm:$0xf]  ;;  %v8575_v14 = vor.u32 %v11541_v13, %v8574_v12  ;;  %v11561_v12 = vld [vmem:[#allocation8 + $0x408] sm:$0xf0] }
 0x14e   :  { %v8491_v47 = vor.u32 %v11518_v43, %v8488_v44  ;;  %v8628_v44 = vld [vmem:[#allocation8 + $0x3dc] sm:$0xf0]  ;;  %v9138_v13 = vld [vmem:[#allocation11 + $0x2d0] sm:$0xf]  ;;  %v11709_v5 = vld [vmem:[#allocation11 + $0x3a4] sm:$0xf0] }
 0x14f   :  { %2429 = vmatpush.bf16.msrb.mxu2 %v8551_v19  ;;  %2390 = vmatpush.bf16.msra.mxu3 %v8707_v20  ;;  %v11536_v19 = vld [vmem:[#allocation8 + $0x340] sm:$0xf0]  ;;  %v8711_v20 = vor.u32 %v11573_v15, %v8708_v17  ;;  %v8631_v48 = vor.u32 %v11553_v42, %v8628_v44  ;;  %v11631_v17 = vld [vmem:[#allocation11 + $0x134] sm:$0xf0] }
 0x150   :  { %2468 = vmatpush.bf16.msra.mxu1 %v8395_v21  ;;  %v8555_v21 = vor.u32 %v11536_v19, %v8554_v18  ;;  %v8922_v15 = vld [vmem:[#allocation11 + $0x120] sm:$0xf]  ;;  %v9330_v18 = vld [vmem:[#allocation11 + $0x450] sm:$0xf]  ;;  %v11619_v42 = vld [vmem:[#allocation11 + $0xd4] sm:$0xf0] }
 0x151   :  { %2459 = vmatpush.bf16.msra.mxu0 %v8155_v56  ;;  %v8768_v56 = vld [vmem:[#allocation8 + $0x4f4] sm:$0xf0]  ;;  %v8923_v19 = vor.u32 %v11631_v17, %v8922_v15  ;;  %v11649_v15 = vld [vmem:[#allocation11 + $0x1c4] sm:$0xf0] }
 0x152   :  { %2343 = vmatmul.bf16.vlgmr.msrb.gmra.mxu3 %v12711_v55  ;;  %v8771_v2 = vor.u32 %v11588_v54, %v8768_v56  ;;  %v11581_v54 = vld [vmem:[#allocation8 + $0x4a8] sm:$0xf0] }
 0x153   :  { %2430 = vmatpush.bf16.msrb.mxu2 %v8531_v30  ;;  %v8735_v56 = vor.u32 %v11581_v54, %v8734_v60 }
 0x154   :  { %2460 = vmatmul.bf16.vlgmr.msra.gmra.mxu0 %v12693_v27  ;;  %v8687_v27 = vor.u32 %v11570_v25, %v8686_v22  ;;  %2469 = vmatpush.bf16.msra.mxu1 %v8375_v31  ;;  %v11568_v22 = vld [vmem:[#allocation8 + $0x444] sm:$0xf]  ;;  %v8514_v31 = vld [vmem:[#allocation8 + $0x2e0] sm:$0xf] }
 0x155   :  { %v8691_v25 = vor.u32 %v11568_v22, %v8688_v23  ;;  %v8515_v34 = vor.u32 %v11526_v32, %v8514_v31  ;;  %v11679_v22 = vld [vmem:[#allocation11 + $0x2b4] sm:$0xf0]  ;;  %v8655_v23 = vor.u32 %v11561_v12, %v8654_v11  ;;  %v11556_v31 = vld [vmem:[#allocation8 + $0x3e0] sm:$0xf0] }
 0x156   :  { %2391 = vmatpush.bf16.msra.mxu3 %v8687_v27  ;;  %v8668_v27 = vld [vmem:[#allocation8 + $0x42c] sm:$0xf0]  ;;  %v9210_v12 = vld [vmem:[#allocation11 + $0x360] sm:$0xf] }
 0x157   :  { %2431 = vmatpush.bf16.msrb.mxu2 %v8511_v39  ;;  %v8671_v33 = vor.u32 %v11563_v28, %v8668_v27  ;;  %v11521_v39 = vld [vmem:[#allocation8 + $0x2c8] sm:$0xf0]  ;;  %v9306_v28 = vld [vmem:[#allocation11 + $0x420] sm:$0xf]  ;;  %v8634_v27 = vld [vmem:[#allocation8 + $0x3d0] sm:$0xf] }
 0x158   :  { %2470 = vmatpush.bf16.msra.mxu1 %v8355_v41  ;;  %v8495_v41 = vor.u32 %v11521_v39, %v8494_v38  ;;  %v9090_v38 = vld [vmem:[#allocation11 + $0x270] sm:$0xf]  ;;  %v11673_v39 = vld [vmem:[#allocation11 + $0x284] sm:$0xf0] }
 0x15a   :  { %2392 = vmatpush.bf16.msra.mxu3 %v8667_v40  ;;  %v8651_v40 = vor.u32 %v11558_v36, %v8648_v37  ;;  %v8635_v37 = vor.u32 %v11556_v31, %v8634_v27  ;;  %v11634_v27 = vld [vmem:[#allocation11 + $0x154] sm:$0xf]  ;;  %v8948_v31 = vld [vmem:[#allocation11 + $0x168] sm:$0xf0] }
 0x15b   :  { %2432 = vmatpush.bf16.msrb.mxu2 %v8491_v47  ;;  %v11591_v47 = vld [vmem:[#allocation8 + $0x4f8] sm:$0xf0] }
 0x15c   :  { %2471 = vmatpush.bf16.msra.mxu1 %v8335_v62  ;;  %v8775_v62 = vor.u32 %v11591_v47, %v8774_v59  ;;  %v9066_v59 = vld [vmem:[#allocation11 + $0x240] sm:$0xf] }
 0x15e   :  { %2393 = vmatpush.bf16.msra.mxu3 %v8647_v49  ;;  %v8475_v49 = vor.u32 %v11516_v46, %v8474_v45  ;;  %v9282_v45 = vld [vmem:[#allocation11 + $0x3f0] sm:$0xf]  ;;  %v11721_v46 = vld [vmem:[#allocation11 + $0x404] sm:$0xf0] }
 0x15f   :  { %2433 = vmatpush.bf16.msrb.mxu2 %v8471_v63  ;;  %v9283_v47 = vor.u32 %v11721_v46, %v9282_v45 }
 0x160   :  { %2472 = vmatpush.bf16.msra.mxu1 %v8315_v1  ;;  %v12721_v16 = vpop.f32.mrf.mxu0  ;;  %v8694_v1 = vld [vmem:[#allocation8 + $0x448] sm:$0xf] }
 0x162   :  { %2394 = vmatpush.bf16.msra.mxu3 %v8627_v0  ;;  %2434 = vmatmul.bf16.vlgmr.msrb.gmra.mxu2 %v12704_v29  ;;  %v8715_v0 = vor.u32 %v11576_v61, %v8714_v57  ;;  %v11661_v57 = vld [vmem:[#allocation11 + $0x224] sm:$0xf0] }
 0x163   :  { %2478 = vmatpush.bf16.msra.mxu2 %v8615_v3  ;;  %2473 = vmatmul.bf16.vlgmr.msra.gmra.mxu1 %v12698_v58  ;;  %v11531_v58 = vld [vmem:[#allocation8 + $0x318] sm:$0xf0] }
 0x164   :  { %v8535_v26 = vor.u32 %v11531_v58, %v8534_v24 }
 0x165   :  { %2395 = vmatmul.bf16.vlgmr.msra.gmra.mxu3 %v12711_v55 }
 0x166   :  { %2439 = vmatpush.bf16.msrb.mxu3 %v8771_v2  ;;  %v11571_v2 = vld [vmem:[#allocation8 + $0x458] sm:$0xf0] }
 0x167   :  { %2479 = vmatpush.bf16.msra.mxu2 %v8595_v9  ;;  %v8695_v3 = vor.u32 %v11571_v2, %v8694_v1  ;;  %v11637_v9 = vld [vmem:[#allocation11 + $0x164] sm:$0xf0]  ;;  %v11607_v1 = vld [vmem:[#allocation11 + $0x74] sm:$0xf0] }
 0x168   :  { %v2255_v30 = vpop.f32.mrf.mxu0 }
 0x16a   :  { %2440 = vmatpush.bf16.msrb.mxu3 %v8751_v8  ;;  %v8946_v8 = vld [vmem:[#allocation11 + $0x150] sm:$0xf] }
 0x16b   :  { %2480 = vmatpush.bf16.msra.mxu2 %v8575_v14 }
 0x16e   :  { %2441 = vmatpush.bf16.msrb.mxu3 %v8731_v35  ;;  %v11685_v35 = vld [vmem:[#allocation11 + $0x2e4] sm:$0xf0] }
 0x16f   :  { %2481 = vmatpush.bf16.msra.mxu2 %v8555_v21  ;;  %v9139_v14 = vor.u32 %v11685_v35, %v9138_v13  ;;  %v9114_v21 = vld [vmem:[#allocation11 + $0x2a0] sm:$0xf]  ;;  %v11703_v13 = vld [vmem:[#allocation11 + $0x374] sm:$0xf0] }
 0x170   :  { %v9115_v58 = vor.u32 %v11679_v22, %v9114_v21  ;;  %v9211_v35 = vor.u32 %v11703_v13, %v9210_v12  ;;  %v11595_v21 = vld [vmem:[#allocation11 + $0x14] sm:$0xf0]  ;;  %v11664_v12 = vld [vmem:[#allocation11 + $0x244] sm:$0xf]  ;;  %v9068_v13 = vld [vmem:[#allocation11 + $0x258] sm:$0xf0] }
 0x171   :  { %v12723_v43 = vpop.f32.mrf.mxu0  ;;  %3981 = vmatpush.bf16.msrb.mxu1 %v9139_v14  ;;  %v8994_v14 = vld [vmem:[#allocation11 + $0x1b0] sm:$0xf] }
 0x172   :  { %2442 = vmatpush.bf16.msrb.mxu3 %v8711_v20  ;;  %v11733_v20 = vld [vmem:[#allocation11 + $0x464] sm:$0xf0] }
 0x173   :  { %2482 = vmatpush.bf16.msra.mxu2 %v8535_v26  ;;  %v9331_v24 = vor.u32 %v11733_v20, %v9330_v18  ;;  %v11625_v26 = vld [vmem:[#allocation11 + $0x104] sm:$0xf0]  ;;  %v8778_v20 = vld [vmem:[#allocation11] sm:$0xf] }
 0x174   :  { %v8779_v22 = vor.u32 %v11595_v21, %v8778_v20  ;;  %v9426_v21 = vld [vmem:[#allocation11 + $0x510] sm:$0xf] }
 0x175   :  { %3982 = vmatpush.bf16.msrb.mxu1 %v9115_v58 }
 0x176   :  { %2443 = vmatpush.bf16.msrb.mxu3 %v8691_v25  ;;  %v8898_v25 = vld [vmem:[#allocation11 + $0xf0] sm:$0xf] }
 0x177   :  { %2483 = vmatpush.bf16.msra.mxu2 %v8515_v34  ;;  %v8899_v32 = vor.u32 %v11625_v26, %v8898_v25  ;;  %v8970_v25 = vld [vmem:[#allocation11 + $0x180] sm:$0xf]  ;;  %v11643_v26 = vld [vmem:[#allocation11 + $0x194] sm:$0xf0] }
 0x179   :  { %v2307_v52 = vpop.f32.mrf.mxu0 }
 0x17a   :  { %2444 = vmatpush.bf16.msrb.mxu3 %v8671_v33  ;;  %v11727_v33 = vld [vmem:[#allocation11 + $0x434] sm:$0xf0] }
 0x17b   :  { %2484 = vmatpush.bf16.msra.mxu2 %v8495_v41  ;;  %v9307_v36 = vor.u32 %v11727_v33, %v9306_v28  ;;  %v8874_v41 = vld [vmem:[#allocation11 + $0xc0] sm:$0xf]  ;;  %v11715_v52 = vld [vmem:[#allocation11 + $0x3d4] sm:$0xf0] }
 0x17c   :  { %v8875_v44 = vor.u32 %v11619_v42, %v8874_v41  ;;  %v9162_v33 = vld [vmem:[#allocation11 + $0x300] sm:$0xf]  ;;  %v9140_v41 = vld [vmem:[#allocation11 + $0x2e8] sm:$0xf0] }
 0x17e   :  { %2445 = vmatpush.bf16.msrb.mxu3 %v8651_v40  ;;  %v9091_v40 = vor.u32 %v11673_v39, %v9090_v38  ;;  %v11781_v39 = vld [vmem:[#allocation11 + $0x5e4] sm:$0xf0] }
 0x17f   :  { %2485 = vmatpush.bf16.msra.mxu2 %v8475_v49  ;;  %v12727_v63 = vpop.f32.mrf.mxu1  ;;  %v8850_v49 = vld [vmem:[#allocation11 + $0x90] sm:$0xf] }
 0x180   :  { %3983 = vmatpush.bf16.msrb.mxu1 %v9091_v40  ;;  %v11682_v40 = vld [vmem:[#allocation11 + $0x2d4] sm:$0xf] }
 0x182   :  { %2446 = vmatpush.bf16.msrb.mxu3 %v8631_v48  ;;  %2486 = vmatmul.bf16.vlgmr.msra.gmra.mxu2 %v12704_v29  ;;  %v8947_v29 = vor.u32 %v11637_v9, %v8946_v8  ;;  %v11667_v48 = vld [vmem:[#allocation11 + $0x254] sm:$0xf0] }
 0x183   :  { %3994 = vmatpush.bf16.msrb.mxu2 %v9331_v24  ;;  %v9067_v50 = vor.u32 %v11667_v48, %v9066_v59  ;;  %v11655_v8 = vld [vmem:[#allocation11 + $0x1f4] sm:$0xf0]  ;;  %v11697_v24 = vld [vmem:[#allocation11 + $0x344] sm:$0xf0]  ;;  %v11628_v59 = vld [vmem:[#allocation11 + $0x124] sm:$0xf] }
 0x184   :  { %3968 = vmatpush.bf16.msrb.mxu0 %v8947_v29  ;;  %v8802_v29 = vld [vmem:[#allocation11 + $0x30] sm:$0xf] }
 0x185   :  { %2447 = vmatmul.bf16.vlgmr.msrb.gmra.mxu3 %v12711_v55  ;;  %3984 = vmatpush.bf16.msrb.mxu1 %v9067_v50  ;;  %v11676_v50 = vld [vmem:[#allocation11 + $0x2a4] sm:$0xf] }
 0x186   :  { %2491 = vmatpush.bf16.msra.mxu3 %v8775_v62  ;;  %v11613_v62 = vld [vmem:[#allocation11 + $0xa4] sm:$0xf0] }
 0x187   :  { %v2268_v7 = vpop.f32.mrf.mxu1  ;;  %3995 = vmatpush.bf16.msrb.mxu2 %v9307_v36  ;;  %v8851_v53 = vor.u32 %v11613_v62, %v8850_v49  ;;  %v11691_v36 = vld [vmem:[#allocation11 + $0x314] sm:$0xf0]  ;;  %v9498_v49 = vld [vmem:[#allocation11 + $0x5a0] sm:$0xf] }
 0x188   :  { %3969 = vmatpush.bf16.msrb.mxu0 %v8923_v19  ;;  %v9018_v7 = vld [vmem:[#allocation11 + $0x1e0] sm:$0xf]  ;;  %v8995_v19 = vor.u32 %v11649_v15, %v8994_v14  ;;  %v9163_v38 = vor.u32 %v11691_v36, %v9162_v33  ;;  %v11775_v62 = vld [vmem:[#allocation11 + $0x5b4] sm:$0xf0]  ;;  %v9071_v14 = vor.u32 %v11664_v12, %v9068_v13  ;;  %v11610_v15 = vld [vmem:[#allocation11 + $0x94] sm:$0xf] }
 0x189   :  { %v11751_v33 = vld [vmem:[#allocation11 + $0x4f4] sm:$0xf0]  ;;  %v11652_v36 = vld [vmem:[#allocation11 + $0x1e4] sm:$0xf] }
 0x18a   :  { %2492 = vmatpush.bf16.msra.mxu3 %v8755_v51  ;;  %v9258_v51 = vld [vmem:[#allocation11 + $0x3c0] sm:$0xf] }
 0x18b   :  { %3996 = vmatpush.bf16.msrb.mxu2 %v9283_v47  ;;  %v9259_v54 = vor.u32 %v11715_v52, %v9258_v51  ;;  %v8924_v47 = vld [vmem:[#allocation11 + $0x138] sm:$0xf0] }
 0x18c   :  { %3970 = vmatpush.bf16.msrb.mxu0 %v8899_v32  ;;  %v8951_v32 = vor.u32 %v11634_v27, %v8948_v31  ;;  %v8927_v48 = vor.u32 %v11628_v59, %v8924_v47  ;;  %v9116_v51 = vld [vmem:[#allocation11 + $0x2b8] sm:$0xf0]  ;;  %v11745_v59 = vld [vmem:[#allocation11 + $0x4c4] sm:$0xf0] }
 0x18d   :  { %v9119_v52 = vor.u32 %v11676_v50, %v9116_v51  ;;  %v8828_v27 = vld [vmem:[#allocation11 + $0x78] sm:$0xf0]  ;;  %v8996_v50 = vld [vmem:[#allocation11 + $0x1c8] sm:$0xf0]  ;;  %v11592_v51 = vld [vmem:[#allocation11 + $0x4] sm:$0xf] }
 0x18e   :  { %2493 = vmatpush.bf16.msra.mxu3 %v8735_v56  ;;  %v9042_v56 = vld [vmem:[#allocation11 + $0x210] sm:$0xf] }
 0x18f   :  { %v12731_v34 = vpop.f32.mrf.mxu1  ;;  %3997 = vmatpush.bf16.msrb.mxu2 %v9259_v54  ;;  %v9043_v61 = vor.u32 %v11661_v57, %v9042_v56  ;;  %v8900_v54 = vld [vmem:[#allocation11 + $0x108] sm:$0xf0]  ;;  %v9474_v57 = vld [vmem:[#allocation11 + $0x570] sm:$0xf] }
 0x190   :  { %3971 = vmatpush.bf16.msrb.mxu0 %v8875_v44  ;;  %v9143_v44 = vor.u32 %v11682_v40, %v9140_v41 }
 0x191   :  { %v12729_v4 = vpop.f32.mrf.mxu0  ;;  %3985 = vmatpush.bf16.msrb.mxu1 %v9043_v61  ;;  %v11769_v61 = vld [vmem:[#allocation11 + $0x584] sm:$0xf0] }
 0x192   :  { %2494 = vmatpush.bf16.msra.mxu3 %v8715_v0  ;;  %v8826_v0 = vld [vmem:[#allocation11 + $0x60] sm:$0xf] }
 0x193   :  { %v8827_v2 = vor.u32 %v11607_v1, %v8826_v0  ;;  %v9475_v0 = vor.u32 %v11769_v61, %v9474_v57  ;;  %v11670_v1 = vld [vmem:[#allocation11 + $0x274] sm:$0xf]  ;;  %v11739_v57 = vld [vmem:[#allocation11 + $0x494] sm:$0xf0] }
 0x194   :  { %3972 = vmatpush.bf16.msrb.mxu0 %v8851_v53  ;;  %v9499_v53 = vor.u32 %v11775_v62, %v9498_v49  ;;  %v11646_v62 = vld [vmem:[#allocation11 + $0x1b4] sm:$0xf] }
 0x196   :  { %2495 = vmatpush.bf16.msra.mxu3 %v8695_v3  ;;  %v9234_v3 = vld [vmem:[#allocation11 + $0x390] sm:$0xf] }
 0x197   :  { %v2320_v60 = vpop.f32.mrf.mxu1  ;;  %v9235_v6 = vor.u32 %v11709_v5, %v9234_v3  ;;  %v12740_v5 = vld [vmem:[#allocation10] sm:$0x1f] }
 0x198   :  { %3973 = vmatpush.bf16.msrb.mxu0 %v8827_v2  ;;  %v11622_v60 = vld [vmem:[#allocation11 + $0xf4] sm:$0xf]  ;;  %v9092_v2 = vld [vmem:[#allocation11 + $0x288] sm:$0xf0]  ;;  %v1403_v13 = vperm.slane %v12740_v5, 1 }
 0x199   :  { %v2359_v30 = vpop.f32.mrf.mxu0  ;;  %3998 = vmatpush.bf16.msrb.mxu2 %v9235_v6  ;;  %v8903_v56 = vor.u32 %v11622_v60, %v8900_v54  ;;  %v9095_v3 = vor.u32 %v11670_v1, %v9092_v2  ;;  %v9714_v1 = vld [vmem:[#allocation11 + $0x750] sm:$0xf]  ;;  %v11829_v2 = vld [vmem:[#allocation11 + $0x764] sm:$0xf0] }
 0x19a   :  { %2496 = vmatpush.bf16.msra.mxu3 %v8675_v10  ;;  %v11601_v10 = vld [vmem:[#allocation11 + $0x44] sm:$0xf0]  ;;  %v8971_v30 = vor.u32 %v11643_v26, %v8970_v25 }
 0x19b   :  { %v8803_v11 = vor.u32 %v11601_v10, %v8802_v29  ;;  %v9450_v29 = vld [vmem:[#allocation11 + $0x540] sm:$0xf]  ;;  %v11763_v10 = vld [vmem:[#allocation11 + $0x554] sm:$0xf0] }
 0x19d   :  { %3974 = vmatpush.bf16.msrb.mxu0 %v8803_v11  ;;  %3999 = vmatpush.bf16.msrb.mxu2 %v9211_v35  ;;  %v9451_v11 = vor.u32 %v11763_v10, %v9450_v29  ;;  %v1402_v35 = vperm.slane %v12740_v5, 0  ;;  %v11730_v29 = vld [vmem:[#allocation11 + $0x454] sm:$0xf]  ;;  %v9332_v10 = vld [vmem:[#allocation11 + $0x468] sm:$0xf0] }
 0x19e   :  { %2497 = vmatpush.bf16.msra.mxu3 %v8655_v23  ;;  %v9186_v23 = vld [vmem:[#allocation11 + $0x330] sm:$0xf]  ;;  %v9335_v12 = vor.u32 %v11730_v29, %v9332_v10 }
 0x19f   :  { %v12734_v9 = vpop.f32.mrf.mxu1  ;;  %v9187_v58 = vor.u32 %v11697_v24, %v9186_v23  ;;  %v11658_v24 = vld [vmem:[#allocation11 + $0x214] sm:$0xf]  ;;  %v2254_v25 = vadd.f32 %v12721_v16, %v1402_v35 }
 0x1a0   :  { %v11598_v16 = vld [vmem:[#allocation11 + $0x34] sm:$0xf] }
 0x1a1   :  { %3975 = vmatpush.bf16.msrb.mxu0 %v8779_v22  ;;  %4000 = vmatpush.bf16.msrb.mxu2 %v9187_v58  ;;  %v11757_v22 = vld [vmem:[#allocation11 + $0x524] sm:$0xf0]  ;;  %v9044_v58 = vld [vmem:[#allocation11 + $0x228] sm:$0xf0]  ;;  %v2267_v40 = vadd.f32 %v12727_v63, %v2254_v25  ;;  %v8999_v63 = vor.u32 %v11646_v62, %v8996_v50  ;;  %v9666_v25 = vld [vmem:[#allocation11 + $0x6f0] sm:$0xf] }
 0x1a2   :  { %2498 = vmatpush.bf16.msra.mxu3 %v8635_v37  ;;  %v9522_v37 = vld [vmem:[#allocation11 + $0x5d0] sm:$0xf]  ;;  %v9427_v23 = vor.u32 %v11757_v22, %v9426_v21  ;;  %v9047_v26 = vor.u32 %v11658_v24, %v9044_v58  ;;  %v9308_v22 = vld [vmem:[#allocation11 + $0x438] sm:$0xf0]  ;;  %v2306_v24 = vadd.f32 %v12723_v43, %v1403_v13  ;;  %v11826_v43 = vld [vmem:[#allocation11 + $0x754] sm:$0xf] }
 0x1a3   :  { %v9523_v42 = vor.u32 %v11781_v39, %v9522_v37  ;;  %v9020_v39 = vld [vmem:[#allocation11 + $0x1f8] sm:$0xf0]  ;;  %v11694_v13 = vld [vmem:[#allocation11 + $0x334] sm:$0xf] }
 0x1a4   :  { %v9023_v41 = vor.u32 %v11652_v36, %v9020_v39  ;;  %v11811_v39 = vld [vmem:[#allocation11 + $0x6d4] sm:$0xf0]  ;;  %v9692_v50 = vld [vmem:[#allocation11 + $0x738] sm:$0xf0] }
 0x1a5   :  { %2499 = vmatmul.bf16.vlgmr.msra.gmra.mxu3 %v12711_v55  ;;  %v9019_v55 = vor.u32 %v11655_v8, %v9018_v7  ;;  %v12738_v18 = vpop.f32.mrf.mxu2  ;;  %4001 = vmatpush.bf16.msrb.mxu2 %v9163_v38  ;;  %v11616_v7 = vld [vmem:[#allocation11 + $0xc4] sm:$0xf]  ;;  %v8876_v8 = vld [vmem:[#allocation11 + $0xd8] sm:$0xf0] }
 0x1a6   :  { %4007 = vmatpush.bf16.msrb.mxu3 %v9523_v42  ;;  %v8804_v42 = vld [vmem:[#allocation11 + $0x48] sm:$0xf0] }
 0x1a7   :  { %3986 = vmatpush.bf16.msrb.mxu1 %v9019_v55  ;;  %v2372_v28 = vpop.f32.mrf.mxu1  ;;  %v8879_v55 = vor.u32 %v11616_v7, %v8876_v8  ;;  %v9715_v8 = vor.u32 %v11829_v2, %v9714_v1  ;;  %v9668_v1 = vld [vmem:[#allocation11 + $0x708] sm:$0xf0] }
 0x1a9   :  { %4046 = vmatpush.bf16.msra.mxu2 %v9143_v44  ;;  %v2280_v44 = vadd.f32 %v12738_v18, %v2267_v40  ;;  %4020 = vmatpush.bf16.msra.mxu0 %v9715_v8  ;;  %v11712_v40 = vld [vmem:[#allocation11 + $0x3c4] sm:$0xf] }
 0x1aa   :  { %4008 = vmatpush.bf16.msrb.mxu3 %v9499_v53 }
 0x1ab   :  { %3987 = vmatpush.bf16.msrb.mxu1 %v8995_v19  ;;  %v8852_v19 = vld [vmem:[#allocation11 + $0xa8] sm:$0xf0] }
 0x1ac   :  { %v8855_v20 = vor.u32 %v11610_v15, %v8852_v19  ;;  %v9690_v15 = vld [vmem:[#allocation11 + $0x720] sm:$0xf]  ;;  %v11823_v19 = vld [vmem:[#allocation11 + $0x734] sm:$0xf0] }
 0x1ad   :  { %v2281_v46 = vpop.f32.mrf.mxu2  ;;  %4047 = vmatpush.bf16.msra.mxu2 %v9119_v52  ;;  %v8780_v52 = vld [vmem:[#allocation11 + $0x18] sm:$0xf0]  ;;  %v9691_v21 = vor.u32 %v11823_v19, %v9690_v15 }
 0x1ae   :  { %4009 = vmatpush.bf16.msrb.mxu3 %v9475_v0  ;;  %v9378_v46 = vld [vmem:[#allocation11 + $0x4b0] sm:$0xf]  ;;  %v8783_v18 = vor.u32 %v11592_v51, %v8780_v52  ;;  %v1404_v52 = vperm.slane %v12740_v5, 2  ;;  %v9644_v15 = vld [vmem:[#allocation11 + $0x6d8] sm:$0xf0] }
 0x1af   :  { %3988 = vmatpush.bf16.msrb.mxu1 %v8971_v30  ;;  %v11604_v30 = vld [vmem:[#allocation11 + $0x64] sm:$0xf]  ;;  %v9379_v49 = vor.u32 %v11745_v59, %v9378_v46  ;;  %4021 = vmatpush.bf16.msra.mxu0 %v9691_v21  ;;  %v9618_v59 = vld [vmem:[#allocation11 + $0x690] sm:$0xf] }
 0x1b0   :  { %v8831_v31 = vor.u32 %v11604_v30, %v8828_v27  ;;  %v2319_v30 = vadd.f32 %v12731_v34, %v2306_v24  ;;  %v2358_v29 = vadd.f32 %v12729_v4, %v1404_v52  ;;  %v8954_v24 = vld [vmem:[#allocation11 + $0x158] sm:$0xf]  ;;  %v11638_v4 = vld [vmem:[#allocation11 + $0x16c] sm:$0xf0] }
 0x1b1   :  { %v12736_v17 = vpop.f32.mrf.mxu0  ;;  %4048 = vmatpush.bf16.msra.mxu2 %v9095_v3  ;;  %v11640_v3 = vld [vmem:[#allocation11 + $0x184] sm:$0xf] }
 0x1b2   :  { %4010 = vmatpush.bf16.msrb.mxu3 %v9451_v11 }
 0x1b3   :  { %4033 = vmatpush.bf16.msra.mxu1 %v8951_v32  ;;  %v9402_v32 = vld [vmem:[#allocation11 + $0x4e0] sm:$0xf] }
 0x1b4   :  { %v9403_v38 = vor.u32 %v11751_v33, %v9402_v32 }
 0x1b5   :  { %v12742_v6 = vpop.f32.mrf.mxu2  ;;  %4049 = vmatpush.bf16.msra.mxu2 %v9071_v14 }
 0x1b6   :  { %4011 = vmatpush.bf16.msrb.mxu3 %v9427_v23  ;;  %v2332_v33 = vadd.f32 %v12742_v6, %v2319_v30  ;;  %v11820_v6 = vld [vmem:[#allocation11 + $0x724] sm:$0xf] }
 0x1b7   :  { %4034 = vmatpush.bf16.msra.mxu1 %v8927_v48  ;;  %v11688_v30 = vld [vmem:[#allocation11 + $0x304] sm:$0xf] }
 0x1b9   :  { %v2411_v45 = vpop.f32.mrf.mxu0  ;;  %4050 = vmatpush.bf16.msra.mxu2 %v9047_v26  ;;  %v11817_v26 = vld [vmem:[#allocation11 + $0x704] sm:$0xf0] }
 0x1ba   :  { %4012 = vmatpush.bf16.msrb.mxu3 %v9403_v38  ;;  %v8807_v45 = vor.u32 %v11598_v16, %v8804_v42  ;;  %v9667_v27 = vor.u32 %v11817_v26, %v9666_v25  ;;  %v9642_v38 = vld [vmem:[#allocation11 + $0x6c0] sm:$0xf]  ;;  %v9716_v16 = vld [vmem:[#allocation11 + $0x768] sm:$0xf0] }
 0x1bb   :  { %4035 = vmatpush.bf16.msra.mxu1 %v8903_v56  ;;  %v9354_v56 = vld [vmem:[#allocation11 + $0x480] sm:$0xf]  ;;  %v9643_v42 = vor.u32 %v11811_v39, %v9642_v38  ;;  %v9719_v34 = vor.u32 %v11826_v43, %v9716_v16  ;;  %v9524_v39 = vld [vmem:[#allocation11 + $0x5e8] sm:$0xf0]  ;;  %v8955_v43 = vor.u32 %v11638_v4, %v8954_v24  ;;  %v8930_v16 = vld [vmem:[#allocation11 + $0x128] sm:$0xf] }
 0x1bc   :  { %v9355_v0 = vor.u32 %v11739_v57, %v9354_v56  ;;  %4022 = vmatpush.bf16.msra.mxu0 %v9667_v27  ;;  %v9594_v56 = vld [vmem:[#allocation11 + $0x660] sm:$0xf]  ;;  %v11799_v57 = vld [vmem:[#allocation11 + $0x674] sm:$0xf0]  ;;  %v11802_v27 = vld [vmem:[#allocation11 + $0x694] sm:$0xf] }
 0x1bd   :  { %v2333_v28 = vpop.f32.mrf.mxu2  ;;  %4051 = vmatpush.bf16.msra.mxu2 %v9023_v41  ;;  %v9595_v2 = vor.u32 %v11799_v57, %v9594_v56  ;;  %v9546_v26 = vld [vmem:[#allocation11 + $0x600] sm:$0xf]  ;;  %v11766_v56 = vld [vmem:[#allocation11 + $0x574] sm:$0xf]  ;;  %v9476_v57 = vld [vmem:[#allocation11 + $0x588] sm:$0xf0] }
 0x1be   :  { %4013 = vmatpush.bf16.msrb.mxu3 %v9379_v49  ;;  %v11718_v28 = vld [vmem:[#allocation11 + $0x3f4] sm:$0xf]  ;;  %v11776_v24 = vld [vmem:[#allocation11 + $0x5bc] sm:$0xf0] }
 0x1bf   :  { %4036 = vmatpush.bf16.msra.mxu1 %v8879_v55  ;;  %v12746_v37 = vpop.f32.mrf.mxu1  ;;  %v8972_v55 = vld [vmem:[#allocation11 + $0x198] sm:$0xf0]  ;;  %v11706_v49 = vld [vmem:[#allocation11 + $0x394] sm:$0xf] }
 0x1c0   :  { %v8975_v11 = vor.u32 %v11640_v3, %v8972_v55  ;;  %4023 = vmatpush.bf16.msra.mxu0 %v9643_v42  ;;  %v9212_v3 = vld [vmem:[#allocation11 + $0x378] sm:$0xf0]  ;;  %v11632_v42 = vld [vmem:[#allocation11 + $0x13c] sm:$0xf0]  ;;  %v11754_v4 = vld [vmem:[#allocation11 + $0x514] sm:$0xf] }
 0x1c1   :  { %4052 = vmatpush.bf16.msra.mxu2 %v8999_v63  ;;  %v9236_v63 = vld [vmem:[#allocation11 + $0x3a8] sm:$0xf0] }
 0x1c2   :  { %4014 = vmatpush.bf16.msrb.mxu3 %v9355_v0  ;;  %v9239_v51 = vor.u32 %v11706_v49, %v9236_v63  ;;  %v11814_v0 = vld [vmem:[#allocation11 + $0x6f4] sm:$0xf]  ;;  %v8906_v63 = vld [vmem:[#allocation11 + $0xf8] sm:$0xf] }
 0x1c3   :  { %4037 = vmatpush.bf16.msra.mxu1 %v8855_v20  ;;  %v11724_v20 = vld [vmem:[#allocation11 + $0x424] sm:$0xf]  ;;  %v9671_v10 = vor.u32 %v11814_v0, %v9668_v1  ;;  %v8882_v1 = vld [vmem:[#allocation11 + $0xc8] sm:$0xf] }
 0x1c4   :  { %v9311_v23 = vor.u32 %v11724_v20, %v9308_v22  ;;  %v9188_v20 = vld [vmem:[#allocation11 + $0x348] sm:$0xf0] }
 0x1c5   :  { %v2292_v48 = vpop.f32.mrf.mxu3  ;;  %4053 = vmatpush.bf16.msra.mxu2 %v8975_v11  ;;  %v9570_v11 = vld [vmem:[#allocation11 + $0x630] sm:$0xf]  ;;  %v9191_v21 = vor.u32 %v11694_v13, %v9188_v20 }
 0x1c6   :  { %v2293_v53 = vadd.f32 %v2292_v48, %v2280_v44  ;;  %4059 = vmatpush.bf16.msra.mxu3 %v9335_v12  ;;  %v9260_v44 = vld [vmem:[#allocation11 + $0x3d8] sm:$0xf0]  ;;  %v11805_v48 = vld [vmem:[#allocation11 + $0x6a4] sm:$0xf0]  ;;  %v11782_v13 = vld [vmem:[#allocation11 + $0x5ec] sm:$0xf0] }
 0x1c7   :  { %4038 = vmatpush.bf16.msra.mxu1 %v8831_v31  ;;  %v12752_v54 = vpop.f32.mrf.mxu2  ;;  %v2424_v61 = vpop.f32.mrf.mxu1  ;;  %v9284_v31 = vld [vmem:[#allocation11 + $0x408] sm:$0xf0]  ;;  %v11793_v12 = vld [vmem:[#allocation11 + $0x644] sm:$0xf0]  ;;  %v11614_v20 = vld [vmem:[#allocation11 + $0xac] sm:$0xf0] }
 0x1c8   :  { %v2504_v60 = vmax.f32 %v2293_v53, 0.0  ;;  %v9287_v32 = vor.u32 %v11718_v28, %v9284_v31  ;;  %v9619_v53 = vor.u32 %v11805_v48, %v9618_v59  ;;  %v11700_v61 = vld [vmem:[#allocation11 + $0x364] sm:$0xf]  ;;  %v9571_v19 = vor.u32 %v11793_v12, %v9570_v11  ;;  %v11787_v28 = vld [vmem:[#allocation11 + $0x614] sm:$0xf0] }
 0x1c9   :  { %v9215_v55 = vor.u32 %v11700_v61, %v9212_v3  ;;  %v9620_v31 = vld [vmem:[#allocation11 + $0x6a8] sm:$0xf0]  ;;  %v11772_v59 = vld [vmem:[#allocation11 + $0x5a4] sm:$0xf]  ;;  %v9500_v48 = vld [vmem:[#allocation11 + $0x5b8] sm:$0xf0]  ;;  %v9479_v61 = vor.u32 %v11766_v56, %v9476_v57 }
 0x1ca   :  { %v12754_v7 = vpack.c.bf16 %v2504_v60, %v2504_v60  ;;  %4060 = vmatpush.bf16.msra.mxu3 %v9311_v23  ;;  %4024 = vmatpush.bf16.msra.mxu0 %v9619_v53  ;;  %v8931_v53 = vor.u32 %v11632_v42, %v8930_v16  ;;  %v9452_v11 = vld [vmem:[#allocation11 + $0x558] sm:$0xf0]  ;;  %v9530_v12 = vld [vmem:[#allocation11 + $0x5d8] sm:$0xf]  ;;  %v9458_v16 = vld [vmem:[#allocation11 + $0x548] sm:$0xf] }
 0x1cb   :  { %4039 = vmatpush.bf16.msra.mxu1 %v8807_v45  ;;  %v9263_v45 = vor.u32 %v11712_v40, %v9260_v44  ;;  %v9623_v44 = vor.u32 %v11802_v27, %v9620_v31  ;;  %v11748_v31 = vld [vmem:[#allocation11 + $0x4e4] sm:$0xf]  ;;  %v9356_v57 = vld [vmem:[#allocation11 + $0x498] sm:$0xf0] }
 0x1cc   :  { %3976 = vmatmul.bf16.vlgmr.msrb.gmra.mxu0 %v12754_v7  ;;  %v11736_v56 = vld [vmem:[#allocation11 + $0x484] sm:$0xf] }
 0x1cd   :  { %v2294_v14 = vpop.f32.mrf.mxu3 }
 0x1ce   :  { %4061 = vmatpush.bf16.msra.mxu3 %v9287_v32  ;;  %4025 = vmatpush.bf16.msra.mxu0 %v9595_v2  ;;  %v11808_v14 = vld [vmem:[#allocation11 + $0x6c4] sm:$0xf]  ;;  %v9547_v32 = vor.u32 %v11787_v28, %v9546_v26  ;;  %v11620_v2 = vld [vmem:[#allocation11 + $0xdc] sm:$0xf0]  ;;  %v1405_v26 = vperm.slane %v12740_v5, 3 }
 0x1cf   :  { %4040 = vmatpush.bf16.msra.mxu1 %v8783_v18  ;;  %v2385_v58 = vpop.f32.mrf.mxu2  ;;  %v9695_v18 = vor.u32 %v11820_v6, %v9692_v50  ;;  %v9647_v25 = vor.u32 %v11808_v14, %v9644_v15  ;;  %v9503_v6 = vor.u32 %v11772_v59, %v9500_v48  ;;  %v8883_v14 = vor.u32 %v11620_v2, %v8882_v1 }
 0x1d1   :  { %v12750_v47 = vpop.f32.mrf.mxu0 }
 0x1d2   :  { %4062 = vmatpush.bf16.msra.mxu3 %v9263_v45  ;;  %4026 = vmatpush.bf16.msra.mxu0 %v9571_v19  ;;  %v8858_v19 = vld [vmem:[#allocation11 + $0x98] sm:$0xf] }
 0x1d3   :  { %v8859_v28 = vor.u32 %v11614_v20, %v8858_v19 }
 0x1d5   :  { %v2344_v36 = vpop.f32.mrf.mxu3 }
 0x1d6   :  { %v2345_v41 = vadd.f32 %v2344_v36, %v2332_v33  ;;  %4063 = vmatpush.bf16.msra.mxu3 %v9239_v51  ;;  %v9164_v33 = vld [vmem:[#allocation11 + $0x318] sm:$0xf0]  ;;  %4027 = vmatpush.bf16.msra.mxu0 %v9547_v32  ;;  %v11626_v51 = vld [vmem:[#allocation11 + $0x10c] sm:$0xf0] }
 0x1d7   :  { %v9167_v38 = vor.u32 %v11688_v30, %v9164_v33  ;;  %v8907_v0 = vor.u32 %v11626_v51, %v8906_v63  ;;  %v8834_v30 = vld [vmem:[#allocation11 + $0x68] sm:$0xf]  ;;  %v9404_v32 = vld [vmem:[#allocation11 + $0x4f8] sm:$0xf0]  ;;  %v9482_v33 = vld [vmem:[#allocation11 + $0x578] sm:$0xf] }
 0x1d8   :  { %v2505_v46 = vmax.f32 %v2345_v41, 0.0  ;;  %v9146_v63 = vld [vmem:[#allocation11 + $0x2d8] sm:$0xf]  ;;  %v11686_v51 = vld [vmem:[#allocation11 + $0x2ec] sm:$0xf0] }
 0x1d9   :  { %v2463_v35 = vpop.f32.mrf.mxu0 }
 0x1da   :  { %v12761_v62 = vpack.c.bf16 %v2505_v46, %v2505_v46  ;;  %v2371_v35 = vadd.f32 %v12734_v9, %v2358_v29  ;;  %4064 = vmatpush.bf16.msra.mxu3 %v9215_v55  ;;  %v11796_v46 = vld [vmem:[#allocation11 + $0x664] sm:$0xf]  ;;  %v9548_v29 = vld [vmem:[#allocation11 + $0x618] sm:$0xf0] }
 0x1db   :  { %v11784_v55 = vld [vmem:[#allocation11 + $0x604] sm:$0xf] }
 0x1dc   :  { %3989 = vmatmul.bf16.vlgmr.msrb.gmra.mxu1 %v12761_v62  ;;  %v2384_v22 = vadd.f32 %v12752_v54, %v2371_v35  ;;  %v11778_v54 = vld [vmem:[#allocation11 + $0x5d4] sm:$0xf]  ;;  %v9551_v15 = vor.u32 %v11784_v55, %v9548_v29  ;;  %v9122_v29 = vld [vmem:[#allocation11 + $0x2a8] sm:$0xf] }
 0x1dd   :  { %v2346_v60 = vpop.f32.mrf.mxu3  ;;  %4085 = vmatpush.bf16.msrb.mxu1 %v9719_v34  ;;  %v9527_v41 = vor.u32 %v11778_v54, %v9524_v39  ;;  %v9596_v34 = vld [vmem:[#allocation11 + $0x678] sm:$0xf0]  ;;  %v2410_v54 = vadd.f32 %v12736_v17, %v1405_v26  ;;  %v11596_v17 = vld [vmem:[#allocation11 + $0x1c] sm:$0xf0] }
 0x1de   :  { %4065 = vmatpush.bf16.msra.mxu3 %v9191_v21  ;;  %v9599_v52 = vor.u32 %v11796_v46, %v9596_v34  ;;  %v11790_v60 = vld [vmem:[#allocation11 + $0x634] sm:$0xf]  ;;  %v9531_v21 = vor.u32 %v11782_v13, %v9530_v12  ;;  %v9380_v34 = vld [vmem:[#allocation11 + $0x4c8] sm:$0xf0]  ;;  %v9698_v12 = vld [vmem:[#allocation11 + $0x728] sm:$0xf] }
 0x1df   :  { %4072 = vmatpush.bf16.msrb.mxu0 %v9527_v41  ;;  %v11602_v41 = vld [vmem:[#allocation11 + $0x4c] sm:$0xf0]  ;;  %v2423_v42 = vadd.f32 %v12746_v37, %v2410_v54  ;;  %v11742_v46 = vld [vmem:[#allocation11 + $0x4b4] sm:$0xf]  ;;  %v11824_v13 = vld [vmem:[#allocation11 + $0x73c] sm:$0xf0] }
 0x1e0   :  { %v12765_v8 = vpop.f32.mrf.mxu1  ;;  %v9383_v59 = vor.u32 %v11742_v46, %v9380_v34  ;;  %v9362_v54 = vld [vmem:[#allocation11 + $0x488] sm:$0xf]  ;;  %v1406_v34 = vperm.slane %v12740_v5, 4  ;;  %v9578_v5 = vld [vmem:[#allocation11 + $0x638] sm:$0xf] }
 0x1e1   :  { %4086 = vmatpush.bf16.msrb.mxu1 %v9695_v18  ;;  %v9572_v18 = vld [vmem:[#allocation11 + $0x648] sm:$0xf0] }
 0x1e2   :  { %4066 = vmatpush.bf16.msra.mxu3 %v9167_v38  ;;  %v9575_v3 = vor.u32 %v11790_v60, %v9572_v18  ;;  %v9407_v38 = vor.u32 %v11748_v31, %v9404_v32  ;;  %v11830_v18 = vld [vmem:[#allocation11 + $0x76c] sm:$0xf0]  ;;  %v9074_v31 = vld [vmem:[#allocation11 + $0x248] sm:$0xf]  ;;  %v11668_v32 = vld [vmem:[#allocation11 + $0x25c] sm:$0xf0] }
 0x1e3   :  { %4073 = vmatpush.bf16.msrb.mxu0 %v9503_v6  ;;  %v8786_v6 = vld [vmem:[#allocation11 + $0x8] sm:$0xf] }
 0x1e4   :  { %v8787_v2 = vor.u32 %v11596_v17, %v8786_v6  ;;  %v11656_v6 = vld [vmem:[#allocation11 + $0x1fc] sm:$0xf0]  ;;  %v9602_v17 = vld [vmem:[#allocation11 + $0x668] sm:$0xf] }
 0x1e5   :  { %v12770_v23 = vpop.f32.mrf.mxu2  ;;  %4087 = vmatpush.bf16.msrb.mxu1 %v9671_v10  ;;  %v11760_v10 = vld [vmem:[#allocation11 + $0x544] sm:$0xf] }
 0x1e6   :  { %v9455_v35 = vor.u32 %v11760_v10, %v9452_v11  ;;  %v2436_v48 = vadd.f32 %v12770_v23, %v2423_v42  ;;  %v9359_v23 = vor.u32 %v11736_v56, %v9356_v57  ;;  %v11680_v11 = vld [vmem:[#allocation11 + $0x2bc] sm:$0xf0]  ;;  %v9626_v42 = vld [vmem:[#allocation11 + $0x698] sm:$0xf] }
 0x1e7   :  { %4074 = vmatpush.bf16.msrb.mxu0 %v9479_v61  ;;  %v9434_v61 = vld [vmem:[#allocation11 + $0x518] sm:$0xf] }
 0x1e8   :  { %v2396_v58 = vpop.f32.mrf.mxu3  ;;  %v2476_v36 = vpop.f32.mrf.mxu1 }
 0x1e9   :  { %v2397_v9 = vadd.f32 %v2396_v58, %v2384_v22  ;;  %4088 = vmatpush.bf16.msrb.mxu1 %v9647_v25  ;;  %v9506_v22 = vld [vmem:[#allocation11 + $0x5a8] sm:$0xf]  ;;  %v9428_v58 = vld [vmem:[#allocation11 + $0x528] sm:$0xf0]  ;;  %v11770_v36 = vld [vmem:[#allocation11 + $0x58c] sm:$0xf0] }
 0x1ea   :  { %v9431_v25 = vor.u32 %v11754_v4, %v9428_v58  ;;  %v9507_v27 = vor.u32 %v11776_v24, %v9506_v22  ;;  %v9699_v22 = vor.u32 %v11824_v13, %v9698_v12  ;;  %v9098_v24 = vld [vmem:[#allocation11 + $0x278] sm:$0xf]  ;;  %v11674_v4 = vld [vmem:[#allocation11 + $0x28c] sm:$0xf0]  ;;  %v11635_v12 = vld [vmem:[#allocation11 + $0x15c] sm:$0xf] }
 0x1eb   :  { %v2506_v40 = vmax.f32 %v2397_v9, 0.0  ;;  %4075 = vmatpush.bf16.msrb.mxu0 %v9455_v35  ;;  %v11608_v9 = vld [vmem:[#allocation11 + $0x7c] sm:$0xf0]  ;;  %v9674_v58 = vld [vmem:[#allocation11 + $0x6f8] sm:$0xf] }
 0x1ec   :  { %4041 = vmatmul.bf16.vlgmr.msra.gmra.mxu1 %v12754_v7  ;;  %v8835_v39 = vor.u32 %v11608_v9, %v8834_v30  ;;  %v11746_v30 = vld [vmem:[#allocation11 + $0x4cc] sm:$0xf0]  ;;  %v9099_v9 = vor.u32 %v11674_v4, %v9098_v24  ;;  %v8956_v13 = vld [vmem:[#allocation11 + $0x170] sm:$0xf0]  ;;  %v9314_v4 = vld [vmem:[#allocation11 + $0x428] sm:$0xf] }
 0x1ed   :  { %v12772_v45 = vpack.c.bf16 %v2506_v40, %v2506_v40  ;;  %v2437_v49 = vpop.f32.mrf.mxu2  ;;  %4089 = vmatpush.bf16.msrb.mxu1 %v9623_v44  ;;  %v8810_v40 = vld [vmem:[#allocation11 + $0x38] sm:$0xf]  ;;  %v11764_v44 = vld [vmem:[#allocation11 + $0x55c] sm:$0xf0]  ;;  %v8959_v24 = vor.u32 %v11635_v12, %v8956_v13  ;;  %v9218_v13 = vld [vmem:[#allocation11 + $0x368] sm:$0xf] }
 0x1ee   :  { %v8811_v49 = vor.u32 %v11602_v41, %v8810_v40  ;;  %v9459_v60 = vor.u32 %v11764_v44, %v9458_v16  ;;  %v9075_v40 = vor.u32 %v11668_v32, %v9074_v31  ;;  %v11662_v16 = vld [vmem:[#allocation11 + $0x22c] sm:$0xf0]  ;;  %v11773_v31 = vld [vmem:[#allocation11 + $0x5ac] sm:$0xf]  ;;  %v9508_v32 = vld [vmem:[#allocation11 + $0x5c0] sm:$0xf0] }
 0x1ef   :  { %4002 = vmatmul.bf16.vlgmr.msrb.gmra.mxu2 %v12772_v45  ;;  %4076 = vmatpush.bf16.msrb.mxu0 %v9431_v25  ;;  %v11818_v25 = vld [vmem:[#allocation11 + $0x70c] sm:$0xf0] }
 0x1f0   :  { %4098 = vmatpush.bf16.msrb.mxu2 %v8955_v43  ;;  %v2398_v50 = vpop.f32.mrf.mxu3  ;;  %v9483_v43 = vor.u32 %v11770_v36, %v9482_v33  ;;  %v9650_v33 = vld [vmem:[#allocation11 + $0x6c8] sm:$0xf]  ;;  %v11812_v36 = vld [vmem:[#allocation11 + $0x6dc] sm:$0xf0]  ;;  %v11806_v44 = vld [vmem:[#allocation11 + $0x6ac] sm:$0xf0] }
 0x1f1   :  { %4090 = vmatpush.bf16.msrb.mxu1 %v9599_v52  ;;  %v9722_v52 = vld [vmem:[#allocation11 + $0x758] sm:$0xf]  ;;  %v9651_v41 = vor.u32 %v11812_v36, %v9650_v33 }
 0x1f2   :  { %v9723_v55 = vor.u32 %v11830_v18, %v9722_v52  ;;  %v11794_v18 = vld [vmem:[#allocation11 + $0x64c] sm:$0xf0] }
 0x1f3   :  { %4077 = vmatpush.bf16.msrb.mxu0 %v9407_v38 }
 0x1f4   :  { %4099 = vmatpush.bf16.msrb.mxu2 %v8931_v53 }
 0x1f5   :  { %4091 = vmatpush.bf16.msrb.mxu1 %v9575_v3  ;;  %v9147_v3 = vor.u32 %v11686_v51, %v9146_v63  ;;  %v2462_v63 = vadd.f32 %v12750_v47, %v1406_v34  ;;  %v9338_v47 = vld [vmem:[#allocation11 + $0x458] sm:$0xf]  ;;  %v9484_v34 = vld [vmem:[#allocation11 + $0x590] sm:$0xf0] }
 0x1f7   :  { %4078 = vmatpush.bf16.msrb.mxu0 %v9383_v59  ;;  %v2475_v56 = vadd.f32 %v12765_v8, %v2462_v63  ;;  %v11617_v63 = vld [vmem:[#allocation11 + $0xcc] sm:$0xf] }
 0x1f8   :  { %4100 = vmatpush.bf16.msrb.mxu2 %v8907_v0  ;;  %v11758_v0 = vld [vmem:[#allocation11 + $0x52c] sm:$0xf0] }
 0x1f9   :  { %4092 = vmatpush.bf16.msrb.mxu1 %v9551_v15  ;;  %v9435_v35 = vor.u32 %v11758_v0, %v9434_v61  ;;  %v11752_v15 = vld [vmem:[#allocation11 + $0x4fc] sm:$0xf0]  ;;  %v9579_v0 = vor.u32 %v11794_v18, %v9578_v5  ;;  %v9460_v5 = vld [vmem:[#allocation11 + $0x560] sm:$0xf0] }
 0x1fb   :  { %4079 = vmatpush.bf16.msrb.mxu0 %v9359_v23  ;;  %v8978_v23 = vld [vmem:[#allocation11 + $0x188] sm:$0xf] }
 0x1fc   :  { %4101 = vmatpush.bf16.msrb.mxu2 %v8883_v14  ;;  %v9410_v14 = vld [vmem:[#allocation11 + $0x4e8] sm:$0xf] }
 0x1fd   :  { %4137 = vmatpush.bf16.msra.mxu1 %v9531_v21  ;;  %v9123_v21 = vor.u32 %v11680_v11, %v9122_v29  ;;  %v9411_v26 = vor.u32 %v11752_v15, %v9410_v14  ;;  %v9554_v29 = vld [vmem:[#allocation11 + $0x608] sm:$0xf]  ;;  %v11788_v11 = vld [vmem:[#allocation11 + $0x61c] sm:$0xf0]  ;;  %v9340_v14 = vld [vmem:[#allocation11 + $0x470] sm:$0xf0] }
 0x1ff   :  { %4054 = vmatmul.bf16.vlgmr.msra.gmra.mxu2 %v12761_v62 }
 0x200   :  { %4102 = vmatpush.bf16.msrb.mxu2 %v8859_v28  ;;  %v9386_v28 = vld [vmem:[#allocation11 + $0x4b8] sm:$0xf] }
 0x201   :  { %4138 = vmatpush.bf16.msra.mxu1 %v9507_v27  ;;  %v9675_v27 = vor.u32 %v11818_v25, %v9674_v58  ;;  %v9387_v38 = vor.u32 %v11746_v30, %v9386_v28  ;;  %v11728_v58 = vld [vmem:[#allocation11 + $0x43c] sm:$0xf0]  ;;  %v11629_v28 = vld [vmem:[#allocation11 + $0x12c] sm:$0xf]  ;;  %v8932_v30 = vld [vmem:[#allocation11 + $0x140] sm:$0xf0] }
 0x202   :  { %v9315_v36 = vor.u32 %v11728_v58, %v9314_v4 }
 0x204   :  { %4103 = vmatpush.bf16.msrb.mxu2 %v8835_v39  ;;  %v11740_v39 = vld [vmem:[#allocation11 + $0x49c] sm:$0xf0] }
 0x205   :  { %v12781_v53 = vpop.f32.mrf.mxu2  ;;  %4139 = vmatpush.bf16.msra.mxu1 %v9483_v43  ;;  %v9050_v43 = vld [vmem:[#allocation11 + $0x218] sm:$0xf]  ;;  %v9363_v46 = vor.u32 %v11740_v39, %v9362_v54  ;;  %v11722_v39 = vld [vmem:[#allocation11 + $0x40c] sm:$0xf0] }
 0x206   :  { %v9051_v59 = vor.u32 %v11662_v16, %v9050_v43  ;;  %v2488_v57 = vadd.f32 %v12781_v53, %v2475_v56  ;;  %v11779_v53 = vld [vmem:[#allocation11 + $0x5dc] sm:$0xf]  ;;  %v9290_v54 = vld [vmem:[#allocation11 + $0x3f8] sm:$0xf]  ;;  %v8908_v16 = vld [vmem:[#allocation11 + $0x110] sm:$0xf0] }
 0x207   :  { %v11623_v43 = vld [vmem:[#allocation11 + $0xfc] sm:$0xf] }
 0x208   :  { %v2448_v50 = vpop.f32.mrf.mxu3  ;;  %4104 = vmatpush.bf16.msrb.mxu2 %v8811_v49  ;;  %v9026_v49 = vld [vmem:[#allocation11 + $0x1e8] sm:$0xf] }
 0x209   :  { %v2449_v37 = vadd.f32 %v2448_v50, %v2436_v48  ;;  %4140 = vmatpush.bf16.msra.mxu1 %v9459_v60  ;;  %v9627_v48 = vor.u32 %v11806_v44, %v9626_v42  ;;  %v11800_v50 = vld [vmem:[#allocation11 + $0x67c] sm:$0xf0]  ;;  %v9027_v51 = vor.u32 %v11656_v6, %v9026_v49  ;;  %v9002_v60 = vld [vmem:[#allocation11 + $0x1b8] sm:$0xf]  ;;  %v11719_v42 = vld [vmem:[#allocation11 + $0x3fc] sm:$0xf] }
 0x20a   :  { %v9603_v52 = vor.u32 %v11800_v50, %v9602_v17  ;;  %v9292_v44 = vld [vmem:[#allocation11 + $0x410] sm:$0xf0]  ;;  %v9266_v49 = vld [vmem:[#allocation11 + $0x3c8] sm:$0xf]  ;;  %v11716_v6 = vld [vmem:[#allocation11 + $0x3dc] sm:$0xf0] }
 0x20b   :  { %v2507_v1 = vmax.f32 %v2449_v37, 0.0  ;;  %v11650_v37 = vld [vmem:[#allocation11 + $0x1cc] sm:$0xf0]  ;;  %v9295_v17 = vor.u32 %v11719_v42, %v9292_v44  ;;  %v9267_v18 = vor.u32 %v11716_v6, %v9266_v49  ;;  %v9364_v49 = vld [vmem:[#allocation11 + $0x4a0] sm:$0xf0] }
 0x20c   :  { %4105 = vmatpush.bf16.msrb.mxu2 %v8787_v2  ;;  %v9003_v61 = vor.u32 %v11650_v37, %v9002_v60  ;;  %v11644_v2 = vld [vmem:[#allocation11 + $0x19c] sm:$0xf0]  ;;  %v9268_v60 = vld [vmem:[#allocation11 + $0x3e0] sm:$0xf0]  ;;  %v11761_v37 = vld [vmem:[#allocation11 + $0x54c] sm:$0xf] }
 0x20d   :  { %v12783_v10 = vpack.c.bf16 %v2507_v1, %v2507_v1  ;;  %v2489_v20 = vpop.f32.mrf.mxu2  ;;  %4141 = vmatpush.bf16.msra.mxu1 %v9435_v35  ;;  %v11731_v35 = vld [vmem:[#allocation11 + $0x45c] sm:$0xf]  ;;  %v8979_v8 = vor.u32 %v11644_v2, %v8978_v23  ;;  %v9463_v23 = vor.u32 %v11761_v37, %v9460_v5  ;;  %v8860_v2 = vld [vmem:[#allocation11 + $0xb0] sm:$0xf0]  ;;  %v9346_v37 = vld [vmem:[#allocation11 + $0x460] sm:$0xf] }
 0x20e   :  { %v9343_v25 = vor.u32 %v11731_v35, %v9340_v14  ;;  %v11704_v35 = vld [vmem:[#allocation11 + $0x37c] sm:$0xf0]  ;;  %v11827_v6 = vld [vmem:[#allocation11 + $0x75c] sm:$0xf]  ;;  %v11735_v5 = vld [vmem:[#allocation11 + $0x474] sm:$0xf0] }
 0x20f   :  { %4015 = vmatmul.bf16.vlgmr.msrb.gmra.mxu3 %v12783_v10  ;;  %4106 = vmatmul.bf16.vlgmr.msrb.gmra.mxu2 %v12754_v7  ;;  %v9219_v4 = vor.u32 %v11704_v35, %v9218_v13 }
 0x210   :  { %4111 = vmatpush.bf16.msrb.mxu3 %v9147_v3  ;;  %v2450_v19 = vpop.f32.mrf.mxu3  ;;  %4150 = vmatpush.bf16.msra.mxu2 %v9723_v55  ;;  %v11734_v3 = vld [vmem:[#allocation11 + $0x46c] sm:$0xf0] }
 0x211   :  { %4142 = vmatpush.bf16.msra.mxu1 %v9411_v26  ;;  %v9532_v19 = vld [vmem:[#allocation11 + $0x5f0] sm:$0xf0]  ;;  %v9339_v20 = vor.u32 %v11734_v3, %v9338_v47  ;;  %v11707_v47 = vld [vmem:[#allocation11 + $0x39c] sm:$0xf] }
 0x212   :  { %v9535_v26 = vor.u32 %v11779_v53, %v9532_v19  ;;  %v9244_v3 = vld [vmem:[#allocation11 + $0x3b0] sm:$0xf0]  ;;  %v8836_v53 = vld [vmem:[#allocation11 + $0x80] sm:$0xf0]  ;;  %v11701_v19 = vld [vmem:[#allocation11 + $0x36c] sm:$0xf] }
 0x213   :  { %v9247_v14 = vor.u32 %v11707_v47, %v9244_v3  ;;  %v9700_v47 = vld [vmem:[#allocation11 + $0x740] sm:$0xf0]  ;;  %v9130_v3 = vld [vmem:[#allocation11 + $0x2b0] sm:$0xf] }
 0x214   :  { %4112 = vmatpush.bf16.msrb.mxu3 %v9123_v21  ;;  %4151 = vmatpush.bf16.msra.mxu2 %v9699_v22  ;;  %v9555_v22 = vor.u32 %v11788_v11, %v9554_v29  ;;  %v9436_v29 = vld [vmem:[#allocation11 + $0x530] sm:$0xf0] }
 0x215   :  { %4143 = vmatpush.bf16.msra.mxu1 %v9387_v38  ;;  %v8935_v38 = vor.u32 %v11629_v28, %v8932_v30 }
 0x218   :  { %4113 = vmatpush.bf16.msrb.mxu3 %v9099_v9  ;;  %4152 = vmatpush.bf16.msra.mxu2 %v9675_v27  ;;  %v11725_v9 = vld [vmem:[#allocation11 + $0x42c] sm:$0xf]  ;;  %v9316_v27 = vld [vmem:[#allocation11 + $0x440] sm:$0xf0] }
 0x219   :  { %4144 = vmatpush.bf16.msra.mxu1 %v9363_v46  ;;  %v11767_v46 = vld [vmem:[#allocation11 + $0x57c] sm:$0xf] }
 0x21a   :  { %v9487_v50 = vor.u32 %v11767_v46, %v9484_v34  ;;  %v9172_v46 = vld [vmem:[#allocation11 + $0x320] sm:$0xf0]  ;;  %v11683_v34 = vld [vmem:[#allocation11 + $0x2dc] sm:$0xf] }
 0x21c   :  { %4114 = vmatpush.bf16.msrb.mxu3 %v9075_v40  ;;  %4153 = vmatpush.bf16.msra.mxu2 %v9651_v41  ;;  %v9319_v40 = vor.u32 %v11725_v9, %v9316_v27  ;;  %v9511_v41 = vor.u32 %v11773_v31, %v9508_v32  ;;  %v11599_v9 = vld [vmem:[#allocation11 + $0x3c] sm:$0xf]  ;;  %v8812_v27 = vld [vmem:[#allocation11 + $0x50] sm:$0xf0] }
 0x21d   :  { %v11695_v31 = vld [vmem:[#allocation11 + $0x33c] sm:$0xf]  ;;  %v9196_v32 = vld [vmem:[#allocation11 + $0x350] sm:$0xf0] }
 0x21e   :  { %v9199_v42 = vor.u32 %v11695_v31, %v9196_v32  ;;  %v9652_v32 = vld [vmem:[#allocation11 + $0x6e0] sm:$0xf0] }
 0x21f   :  { %4067 = vmatmul.bf16.vlgmr.msra.gmra.mxu3 %v12772_v45 }
 0x220   :  { %4115 = vmatpush.bf16.msrb.mxu3 %v9051_v59  ;;  %4154 = vmatpush.bf16.msra.mxu2 %v9627_v48  ;;  %v9291_v59 = vor.u32 %v11722_v39, %v9290_v54  ;;  %v8911_v48 = vor.u32 %v11623_v43, %v8908_v16  ;;  %v9170_v54 = vld [vmem:[#allocation11 + $0x308] sm:$0xf]  ;;  %v11692_v39 = vld [vmem:[#allocation11 + $0x31c] sm:$0xf0]  ;;  %v8788_v43 = vld [vmem:[#allocation11 + $0x20] sm:$0xf0] }
 0x221   :  { %v11689_v16 = vld [vmem:[#allocation11 + $0x30c] sm:$0xf] }
 0x224   :  { %4116 = vmatpush.bf16.msrb.mxu3 %v9027_v51  ;;  %4155 = vmatpush.bf16.msra.mxu2 %v9603_v52  ;;  %v8884_v51 = vld [vmem:[#allocation11 + $0xe0] sm:$0xf0]  ;;  %v11713_v52 = vld [vmem:[#allocation11 + $0x3cc] sm:$0xf] }
 0x225   :  { %v8887_v56 = vor.u32 %v11617_v63, %v8884_v51  ;;  %v9154_v63 = vld [vmem:[#allocation11 + $0x2e0] sm:$0xf]  ;;  %v11687_v51 = vld [vmem:[#allocation11 + $0x2f4] sm:$0xf0] }
 0x228   :  { %v2500_v1 = vpop.f32.mrf.mxu3  ;;  %4117 = vmatpush.bf16.msrb.mxu3 %v9003_v61  ;;  %4156 = vmatpush.bf16.msra.mxu2 %v9579_v0  ;;  %v11710_v61 = vld [vmem:[#allocation11 + $0x3ac] sm:$0xf0]  ;;  %v9271_v0 = vor.u32 %v11713_v52, %v9268_v60 }
 0x229   :  { %v2501_v55 = vadd.f32 %v2500_v1, %v2488_v57  ;;  %v9242_v57 = vld [vmem:[#allocation11 + $0x398] sm:$0xf]  ;;  %v11611_v1 = vld [vmem:[#allocation11 + $0x9c] sm:$0xf] }
 0x22a   :  { %v9243_v11 = vor.u32 %v11710_v61, %v9242_v57  ;;  %v8863_v12 = vor.u32 %v11611_v1, %v8860_v2  ;;  %v9155_v61 = vor.u32 %v11687_v51, %v9154_v63  ;;  %v11821_v1 = vld [vmem:[#allocation11 + $0x72c] sm:$0xf]  ;;  %v9347_v2 = vor.u32 %v11735_v5, %v9346_v37 }
 0x22b   :  { %v2508_v15 = vmax.f32 %v2501_v55, 0.0  ;;  %v11755_v55 = vld [vmem:[#allocation11 + $0x51c] sm:$0xf]  ;;  %v9703_v13 = vor.u32 %v11821_v1, %v9700_v47  ;;  %v11797_v37 = vld [vmem:[#allocation11 + $0x66c] sm:$0xf] }
 0x22c   :  { %4118 = vmatpush.bf16.msrb.mxu3 %v8979_v8  ;;  %4157 = vmatpush.bf16.msra.mxu2 %v9555_v22  ;;  %v11605_v8 = vld [vmem:[#allocation11 + $0x6c] sm:$0xf] }
 0x22d   :  { %v12792_v21 = vpack.c.bf16 %v2508_v15, %v2508_v15  ;;  %v9439_v15 = vor.u32 %v11755_v55, %v9436_v29  ;;  %v11749_v22 = vld [vmem:[#allocation11 + $0x4ec] sm:$0xf]  ;;  %v8839_v58 = vor.u32 %v11605_v8, %v8836_v53  ;;  %v11681_v55 = vld [vmem:[#allocation11 + $0x2c4] sm:$0xf0]  ;;  %v9322_v29 = vld [vmem:[#allocation11 + $0x430] sm:$0xf] }
 0x22e   :  { %v9131_v35 = vor.u32 %v11681_v55, %v9130_v3  ;;  %v11815_v8 = vld [vmem:[#allocation11 + $0x6fc] sm:$0xf]  ;;  %v9004_v55 = vld [vmem:[#allocation11 + $0x1d0] sm:$0xf0] }
 0x22f   :  { %4028 = vmatmul.bf16.vlgmr.msra.gmra.mxu0 %v12792_v21  ;;  %4093 = vmatmul.bf16.vlgmr.msrb.gmra.mxu1 %v12792_v21  ;;  %v11647_v3 = vld [vmem:[#allocation11 + $0x1bc] sm:$0xf] }
 0x230   :  { %4124 = vmatpush.bf16.msra.mxu0 %v9339_v20  ;;  %v2502_v33 = vpop.f32.mrf.mxu3  ;;  %4163 = vmatpush.bf16.msra.mxu3 %v8959_v24  ;;  %v9220_v20 = vld [vmem:[#allocation11 + $0x380] sm:$0xf0] }
 0x231   :  { %4189 = vmatpush.bf16.msrb.mxu1 %v9343_v25  ;;  %4202 = vmatpush.bf16.msrb.mxu2 %v9535_v26  ;;  %v9412_v24 = vld [vmem:[#allocation11 + $0x500] sm:$0xf0]  ;;  %v9194_v25 = vld [vmem:[#allocation11 + $0x338] sm:$0xf]  ;;  %v11698_v26 = vld [vmem:[#allocation11 + $0x34c] sm:$0xf0]  ;;  %v9223_v28 = vor.u32 %v11701_v19, %v9220_v20 }
 0x232   :  { %4119 = vmatmul.bf16.vlgmr.msrb.gmra.mxu3 %v12761_v62  ;;  %4158 = vmatmul.bf16.vlgmr.msra.gmra.mxu2 %v12792_v21  ;;  %v9415_v30 = vor.u32 %v11749_v22, %v9412_v24  ;;  %v11743_v33 = vld [vmem:[#allocation11 + $0x4bc] sm:$0xf]  ;;  %v9676_v19 = vld [vmem:[#allocation11 + $0x710] sm:$0xf0]  ;;  %v9106_v20 = vld [vmem:[#allocation11 + $0x280] sm:$0xf] }
 0x233   :  { %v11675_v22 = vld [vmem:[#allocation11 + $0x294] sm:$0xf0]  ;;  %v9298_v24 = vld [vmem:[#allocation11 + $0x400] sm:$0xf] }
 0x234   :  { %4125 = vmatpush.bf16.msra.mxu0 %v9315_v36  ;;  %4164 = vmatpush.bf16.msra.mxu3 %v8935_v38  ;;  %v9388_v36 = vld [vmem:[#allocation11 + $0x4d0] sm:$0xf0]  ;;  %v9195_v38 = vor.u32 %v11698_v26, %v9194_v25  ;;  %v9679_v26 = vor.u32 %v11815_v8, %v9676_v19  ;;  %v11699_v8 = vld [vmem:[#allocation11 + $0x354] sm:$0xf0]  ;;  %v9007_v19 = vor.u32 %v11647_v3, %v9004_v55  ;;  %v8916_v3 = vld [vmem:[#allocation11 + $0x118] sm:$0xf0] }
 0x235   :  { %4190 = vmatpush.bf16.msrb.mxu1 %v9319_v40  ;;  %4203 = vmatpush.bf16.msrb.mxu2 %v9511_v41  ;;  %v8815_v40 = vor.u32 %v11599_v9, %v8812_v27  ;;  %v11593_v41 = vld [vmem:[#allocation11 + $0xc] sm:$0xf]  ;;  %v9391_v44 = vor.u32 %v11743_v33, %v9388_v36  ;;  %v9076_v9 = vld [vmem:[#allocation11 + $0x260] sm:$0xf0]  ;;  %v9082_v33 = vld [vmem:[#allocation11 + $0x250] sm:$0xf] }
 0x236   :  { %v8791_v52 = vor.u32 %v11593_v41, %v8788_v43  ;;  %v11809_v27 = vld [vmem:[#allocation11 + $0x6cc] sm:$0xf]  ;;  %v11669_v36 = vld [vmem:[#allocation11 + $0x264] sm:$0xf0]  ;;  %v11659_v43 = vld [vmem:[#allocation11 + $0x21c] sm:$0xf] }
 0x237   :  { %v9083_v41 = vor.u32 %v11669_v36, %v9082_v33  ;;  %v11693_v33 = vld [vmem:[#allocation11 + $0x324] sm:$0xf0]  ;;  %v9538_v36 = vld [vmem:[#allocation11 + $0x5e0] sm:$0xf]  ;;  %v11672_v55 = vld [vmem:[#allocation11 + $0x284] sm:$0xf] }
 0x238   :  { %4126 = vmatpush.bf16.msra.mxu0 %v9291_v59  ;;  %4165 = vmatpush.bf16.msra.mxu3 %v8911_v48  ;;  %v9148_v59 = vld [vmem:[#allocation11 + $0x2f0] sm:$0xf0]  ;;  %v11737_v48 = vld [vmem:[#allocation11 + $0x48c] sm:$0xf] }
 0x239   :  { %4191 = vmatpush.bf16.msrb.mxu1 %v9295_v17  ;;  %4204 = vmatpush.bf16.msrb.mxu2 %v9487_v50  ;;  %v9171_v17 = vor.u32 %v11692_v39, %v9170_v54  ;;  %v9724_v50 = vld [vmem:[#allocation11 + $0x770] sm:$0xf0]  ;;  %v9151_v60 = vor.u32 %v11683_v34, %v9148_v59  ;;  %v11717_v54 = vld [vmem:[#allocation11 + $0x3e4] sm:$0xf0]  ;;  %v9058_v34 = vld [vmem:[#allocation11 + $0x220] sm:$0xf] }
 0x23a   :  { %v9727_v57 = vor.u32 %v11827_v6, %v9724_v50  ;;  %v11663_v59 = vld [vmem:[#allocation11 + $0x234] sm:$0xf0]  ;;  %v12806_v6 = vld [vmem:[#allocation13] sm:$0x3f] }
 0x23b   :  { %v9059_v51 = vor.u32 %v11663_v59, %v9058_v34 }
 0x23c   :  { %4127 = vmatpush.bf16.msra.mxu0 %v9267_v18  ;;  %4166 = vmatpush.bf16.msra.mxu3 %v8887_v56  ;;  %v9175_v18 = vor.u32 %v11689_v16, %v9172_v46  ;;  %v9367_v56 = vor.u32 %v11737_v48, %v9364_v49  ;;  %v9052_v16 = vld [vmem:[#allocation11 + $0x230] sm:$0xf0]  ;;  %v9250_v48 = vld [vmem:[#allocation11 + $0x3a0] sm:$0xf]  ;;  %v11711_v49 = vld [vmem:[#allocation11 + $0x3b4] sm:$0xf0] }
 0x23d   :  { %4192 = vmatpush.bf16.msrb.mxu1 %v9271_v0  ;;  %4205 = vmatpush.bf16.msrb.mxu2 %v9463_v23  ;;  %v11677_v0 = vld [vmem:[#allocation11 + $0x2ac] sm:$0xf]  ;;  %v9124_v23 = vld [vmem:[#allocation11 + $0x2c0] sm:$0xf0]  ;;  %v9628_v46 = vld [vmem:[#allocation11 + $0x6b0] sm:$0xf0]  ;;  %v9055_v50 = vor.u32 %v11659_v43, %v9052_v16  ;;  %v9251_v5 = vor.u32 %v11711_v49, %v9250_v48 }
 0x23e   :  { %v11684_v16 = vld [vmem:[#allocation11 + $0x2e4] sm:$0xf]  ;;  %v8938_v48 = vld [vmem:[#allocation11 + $0x130] sm:$0xf]  ;;  %v11633_v49 = vld [vmem:[#allocation11 + $0x144] sm:$0xf0] }
 0x23f   :  { %4080 = vmatmul.bf16.vlgmr.msrb.gmra.mxu0 %v12783_v10  ;;  %4145 = vmatmul.bf16.vlgmr.msra.gmra.mxu1 %v12783_v10 }
 0x240   :  { %4128 = vmatpush.bf16.msra.mxu0 %v9243_v11  ;;  %4167 = vmatpush.bf16.msra.mxu3 %v8863_v12  ;;  %v11729_v11 = vld [vmem:[#allocation11 + $0x444] sm:$0xf0]  ;;  %v9127_v12 = vor.u32 %v11677_v0, %v9124_v23  ;;  %v9226_v0 = vld [vmem:[#allocation11 + $0x370] sm:$0xf] }
 0x241   :  { %4193 = vmatpush.bf16.msrb.mxu1 %v9247_v14  ;;  %4206 = vmatpush.bf16.msrb.mxu2 %v9439_v15  ;;  %v11671_v14 = vld [vmem:[#allocation11 + $0x27c] sm:$0xf]  ;;  %v9100_v15 = vld [vmem:[#allocation11 + $0x290] sm:$0xf0]  ;;  %v9323_v53 = vor.u32 %v11729_v11, %v9322_v29  ;;  %v11705_v23 = vld [vmem:[#allocation11 + $0x384] sm:$0xf0] }
 0x242   :  { %v9103_v25 = vor.u32 %v11671_v14, %v9100_v15  ;;  %v11791_v29 = vld [vmem:[#allocation11 + $0x63c] sm:$0xf]  ;;  %v9227_v11 = vor.u32 %v11705_v23, %v9226_v0  ;;  %v9202_v15 = vld [vmem:[#allocation11 + $0x340] sm:$0xf]  ;;  %v11627_v0 = vld [vmem:[#allocation11 + $0x114] sm:$0xf0] }
 0x243   :  { %v9490_v23 = vld [vmem:[#allocation11 + $0x580] sm:$0xf] }
 0x244   :  { %4129 = vmatpush.bf16.msra.mxu0 %v9219_v4  ;;  %4168 = vmatpush.bf16.msra.mxu3 %v8839_v58  ;;  %v11723_v4 = vld [vmem:[#allocation11 + $0x414] sm:$0xf0] }
 0x245   :  { %4194 = vmatpush.bf16.msrb.mxu1 %v9223_v28  ;;  %4207 = vmatpush.bf16.msrb.mxu2 %v9415_v30  ;;  %v9107_v28 = vor.u32 %v11675_v22, %v9106_v20  ;;  %v11665_v30 = vld [vmem:[#allocation11 + $0x24c] sm:$0xf]  ;;  %v9299_v31 = vor.u32 %v11723_v4, %v9298_v24  ;;  %v8980_v22 = vld [vmem:[#allocation11 + $0x1a0] sm:$0xf0] }
 0x246   :  { %v9079_v39 = vor.u32 %v11665_v30, %v9076_v9  ;;  %v11641_v20 = vld [vmem:[#allocation11 + $0x18c] sm:$0xf]  ;;  %v8986_v30 = vld [vmem:[#allocation11 + $0x190] sm:$0xf]  ;;  %v9203_v9 = vor.u32 %v11699_v8, %v9202_v15 }
 0x247   :  { %v9466_v15 = vld [vmem:[#allocation11 + $0x550] sm:$0xf] }
 0x248   :  { %4130 = vmatpush.bf16.msra.mxu0 %v9195_v38  ;;  %4169 = vmatpush.bf16.msra.mxu3 %v8815_v40  ;;  %v9274_v38 = vld [vmem:[#allocation11 + $0x3d0] sm:$0xf]  ;;  %v9655_v40 = vor.u32 %v11809_v27, %v9652_v32  ;;  %v11645_v27 = vld [vmem:[#allocation11 + $0x1a4] sm:$0xf0] }
 0x249   :  { %4195 = vmatpush.bf16.msrb.mxu1 %v9199_v42  ;;  %4208 = vmatpush.bf16.msrb.mxu2 %v9391_v44  ;;  %v12804_v58 = vpop.f32.mrf.mxu0  ;;  %v11803_v42 = vld [vmem:[#allocation11 + $0x69c] sm:$0xf]  ;;  %v9275_v44 = vor.u32 %v11717_v54, %v9274_v38  ;;  %v9178_v32 = vld [vmem:[#allocation11 + $0x310] sm:$0xf]  ;;  %v8983_v38 = vor.u32 %v11641_v20, %v8980_v22  ;;  %v11783_v54 = vld [vmem:[#allocation11 + $0x5f4] sm:$0xf0]  ;;  %v8987_v43 = vor.u32 %v11645_v27, %v8986_v30 }
 0x24a   :  { %v9631_v63 = vor.u32 %v11803_v42, %v9628_v46  ;;  %v9156_v42 = vld [vmem:[#allocation11 + $0x2f8] sm:$0xf0]  ;;  %v9179_v46 = vor.u32 %v11693_v33, %v9178_v32  ;;  %v9539_v34 = vor.u32 %v11783_v54, %v9538_v36  ;;  %v11618_v20 = vld [vmem:[#allocation11 + $0xd4] sm:$0xf]  ;;  %v8892_v22 = vld [vmem:[#allocation11 + $0xe8] sm:$0xf0] }
 0x24b   :  { %v8895_v30 = vor.u32 %v11618_v20, %v8892_v22  ;;  %v11615_v27 = vld [vmem:[#allocation11 + $0xb4] sm:$0xf0]  ;;  %v11612_v33 = vld [vmem:[#allocation11 + $0xa4] sm:$0xf]  ;;  %v8868_v36 = vld [vmem:[#allocation11 + $0xb8] sm:$0xf0] }
 0x24c   :  { %4131 = vmatpush.bf16.msra.mxu0 %v9171_v17  ;;  %4170 = vmatpush.bf16.msra.mxu3 %v8791_v52  ;;  %v11653_v52 = vld [vmem:[#allocation11 + $0x1ec] sm:$0xf]  ;;  %v11759_v32 = vld [vmem:[#allocation11 + $0x534] sm:$0xf0]  ;;  %v9060_v54 = vld [vmem:[#allocation11 + $0x238] sm:$0xf0] }
 0x24d   :  { %4196 = vmatpush.bf16.msrb.mxu1 %v9175_v18  ;;  %4209 = vmatpush.bf16.msrb.mxu2 %v9367_v56  ;;  %v9604_v18 = vld [vmem:[#allocation11 + $0x680] sm:$0xf0]  ;;  %v9034_v56 = vld [vmem:[#allocation11 + $0x1f0] sm:$0xf]  ;;  %v8988_v20 = vld [vmem:[#allocation11 + $0x1a8] sm:$0xf0] }
 0x24e   :  { %v11732_v22 = vld [vmem:[#allocation11 + $0x464] sm:$0xf] }
 0x24f   :  { %4171 = vmatmul.bf16.vlgmr.msra.gmra.mxu3 %v12754_v7  ;;  %4132 = vmatmul.bf16.vlgmr.msra.gmra.mxu0 %v12772_v45 }
 0x250   :  { %4176 = vmatpush.bf16.msrb.mxu0 %v9151_v60  ;;  %4215 = vmatpush.bf16.msrb.mxu3 %v9727_v57  ;;  %v9028_v60 = vld [vmem:[#allocation11 + $0x200] sm:$0xf0]  ;;  %v11657_v57 = vld [vmem:[#allocation11 + $0x204] sm:$0xf0] }
 0x251   :  { %4241 = vmatpush.bf16.msra.mxu1 %v9155_v61  ;;  %4254 = vmatpush.bf16.msra.mxu2 %v9347_v2  ;;  %v3979_v17 = vpop.f32.mrf.mxu0  ;;  %v2756_v61 = vperm.slane %v12806_v6, 0  ;;  %v9031_v1 = vor.u32 %v11653_v52, %v9028_v60  ;;  %v9607_v2 = vor.u32 %v11797_v37, %v9604_v18  ;;  %v9035_v47 = vor.u32 %v11657_v57, %v9034_v56  ;;  %v11630_v52 = vld [vmem:[#allocation11 + $0x134] sm:$0xf]  ;;  %v8940_v60 = vld [vmem:[#allocation11 + $0x148] sm:$0xf0] }
 0x252   :  { %4197 = vmatmul.bf16.vlgmr.msrb.gmra.mxu1 %v12772_v45  ;;  %4210 = vmatmul.bf16.vlgmr.msrb.gmra.mxu2 %v12783_v10  ;;  %v9514_v17 = vld [vmem:[#allocation11 + $0x5b0] sm:$0xf]  ;;  %v11678_v37 = vld [vmem:[#allocation11 + $0x2b4] sm:$0xf]  ;;  %v8939_v18 = vor.u32 %v11633_v49, %v8938_v48  ;;  %v8943_v57 = vor.u32 %v11630_v52, %v8940_v60  ;;  %v8844_v49 = vld [vmem:[#allocation11 + $0x88] sm:$0xf0] }
 0x253   :  { %v3978_v14 = vadd.f32 %v12804_v58, %v2756_v61  ;;  %v8962_v58 = vld [vmem:[#allocation11 + $0x160] sm:$0xf]  ;;  %v11606_v48 = vld [vmem:[#allocation11 + $0x74] sm:$0xf] }
 0x254   :  { %4177 = vmatpush.bf16.msrb.mxu0 %v9127_v12  ;;  %4216 = vmatpush.bf16.msrb.mxu3 %v9703_v13  ;;  %v9580_v12 = vld [vmem:[#allocation11 + $0x650] sm:$0xf0]  ;;  %v9010_v13 = vld [vmem:[#allocation11 + $0x1c0] sm:$0xf]  ;;  %v8847_v52 = vor.u32 %v11606_v48, %v8844_v49 }
 0x255   :  { %4242 = vmatpush.bf16.msra.mxu1 %v9131_v35  ;;  %4255 = vmatpush.bf16.msra.mxu2 %v9323_v53  ;;  %v11651_v35 = vld [vmem:[#allocation11 + $0x1d4] sm:$0xf0]  ;;  %v9583_v4 = vor.u32 %v11791_v29, %v9580_v12  ;;  %v8914_v61 = vld [vmem:[#allocation11 + $0x100] sm:$0xf]  ;;  %v9108_v29 = vld [vmem:[#allocation11 + $0x298] sm:$0xf0] }
 0x256   :  { %v9111_v8 = vor.u32 %v11672_v55, %v9108_v29  ;;  %v8818_v60 = vld [vmem:[#allocation11 + $0x40] sm:$0xf] }
 0x258   :  { %4178 = vmatpush.bf16.msrb.mxu0 %v9103_v25  ;;  %4217 = vmatpush.bf16.msrb.mxu3 %v9679_v26  ;;  %v9011_v25 = vor.u32 %v11651_v35, %v9010_v13  ;;  %v11785_v26 = vld [vmem:[#allocation11 + $0x60c] sm:$0xf]  ;;  %v8890_v35 = vld [vmem:[#allocation11 + $0xd0] sm:$0xf] }
 0x259   :  { %4243 = vmatpush.bf16.msra.mxu1 %v9107_v28  ;;  %4256 = vmatpush.bf16.msra.mxu2 %v9299_v31  ;;  %v3990_v53 = vpop.f32.mrf.mxu1  ;;  %v9556_v28 = vld [vmem:[#allocation11 + $0x620] sm:$0xf0]  ;;  %v11639_v31 = vld [vmem:[#allocation11 + $0x174] sm:$0xf0] }
 0x25a   :  { %v12810_v24 = vadd.f32 %v3990_v53, %v3978_v14  ;;  %v11621_v14 = vld [vmem:[#allocation11 + $0xe4] sm:$0xf0] }
 0x25c   :  { %4179 = vmatpush.bf16.msrb.mxu0 %v9079_v39  ;;  %4218 = vmatpush.bf16.msrb.mxu3 %v9655_v40  ;;  %v11636_v39 = vld [vmem:[#allocation11 + $0x164] sm:$0xf]  ;;  %v8964_v40 = vld [vmem:[#allocation11 + $0x178] sm:$0xf0] }
 0x25d   :  { %4244 = vmatpush.bf16.msra.mxu1 %v9083_v41  ;;  %4257 = vmatpush.bf16.msra.mxu2 %v9275_v44  ;;  %v9559_v41 = vor.u32 %v11785_v26, %v9556_v28  ;;  %v8963_v44 = vor.u32 %v11639_v31, %v8962_v58  ;;  %v8967_v59 = vor.u32 %v11636_v39, %v8964_v40  ;;  %v9442_v58 = vld [vmem:[#allocation11 + $0x520] sm:$0xf] }
 0x25e   :  { %v8891_v26 = vor.u32 %v11621_v14, %v8890_v35  ;;  %v8796_v14 = vld [vmem:[#allocation11 + $0x28] sm:$0xf0] }
 0x260   :  { %4180 = vmatpush.bf16.msrb.mxu0 %v9055_v50  ;;  %4219 = vmatpush.bf16.msrb.mxu3 %v9631_v63  ;;  %v9159_v50 = vor.u32 %v11684_v16, %v9156_v42  ;;  %v8842_v16 = vld [vmem:[#allocation11 + $0x70] sm:$0xf]  ;;  %v11609_v42 = vld [vmem:[#allocation11 + $0x84] sm:$0xf0] }
 0x261   :  { %4245 = vmatpush.bf16.msra.mxu1 %v9059_v51  ;;  %4258 = vmatpush.bf16.msra.mxu2 %v9251_v5  ;;  %v3992_v63 = vpop.f32.mrf.mxu1  ;;  %v11777_v51 = vld [vmem:[#allocation11 + $0x5c4] sm:$0xf0]  ;;  %v9132_v5 = vld [vmem:[#allocation11 + $0x2c8] sm:$0xf0] }
 0x262   :  { %v9515_v56 = vor.u32 %v11777_v51, %v9514_v17  ;;  %v11654_v17 = vld [vmem:[#allocation11 + $0x1f4] sm:$0xf]  ;;  %v8843_v63 = vor.u32 %v11609_v42, %v8842_v16  ;;  %v9708_v42 = vld [vmem:[#allocation11 + $0x748] sm:$0xf0] }
 0x263   :  { %v11822_v16 = vld [vmem:[#allocation11 + $0x734] sm:$0xf] }
 0x264   :  { %4181 = vmatpush.bf16.msrb.mxu0 %v9031_v1  ;;  %4220 = vmatpush.bf16.msrb.mxu3 %v9607_v2  ;;  %v9135_v1 = vor.u32 %v11678_v37, %v9132_v5  ;;  %v11771_v2 = vld [vmem:[#allocation11 + $0x594] sm:$0xf0]  ;;  %v9394_v5 = vld [vmem:[#allocation11 + $0x4c0] sm:$0xf]  ;;  %v9711_v49 = vor.u32 %v11822_v16, %v9708_v42 }
 0x265   :  { %4246 = vmatpush.bf16.msra.mxu1 %v9035_v47  ;;  %4259 = vmatpush.bf16.msra.mxu2 %v9227_v11  ;;  %v11624_v47 = vld [vmem:[#allocation11 + $0x104] sm:$0xf]  ;;  %v8915_v11 = vor.u32 %v11627_v0, %v8914_v61  ;;  %v9491_v12 = vor.u32 %v11771_v2, %v9490_v23  ;;  %v11603_v37 = vld [vmem:[#allocation11 + $0x54] sm:$0xf0]  ;;  %v8820_v61 = vld [vmem:[#allocation11 + $0x58] sm:$0xf0] }
 0x266   :  { %v8919_v13 = vor.u32 %v11624_v47, %v8916_v3  ;;  %v11648_v0 = vld [vmem:[#allocation11 + $0x1c4] sm:$0xf]  ;;  %v9012_v23 = vld [vmem:[#allocation11 + $0x1d8] sm:$0xf0]  ;;  %v8819_v2 = vor.u32 %v11603_v37, %v8818_v60  ;;  %v8794_v47 = vld [vmem:[#allocation11 + $0x10] sm:$0xf] }
 0x267   :  { %v11597_v3 = vld [vmem:[#allocation11 + $0x24] sm:$0xf0]  ;;  %v9015_v35 = vor.u32 %v11648_v0, %v9012_v23  ;;  %v9684_v60 = vld [vmem:[#allocation11 + $0x718] sm:$0xf0]  ;;  %v11714_v0 = vld [vmem:[#allocation11 + $0x3d4] sm:$0xf] }
 0x268   :  { %4182 = vmatpush.bf16.msrb.mxu0 %v9007_v19  ;;  %4221 = vmatpush.bf16.msrb.mxu3 %v9583_v4  ;;  %v11765_v19 = vld [vmem:[#allocation11 + $0x564] sm:$0xf0]  ;;  %v11666_v4 = vld [vmem:[#allocation11 + $0x254] sm:$0xf]  ;;  %v9878_v23 = vld [vmem:[#allocation14 + $0x118] sm:$0xf] }
 0x269   :  { %4247 = vmatpush.bf16.msra.mxu1 %v9011_v25  ;;  %4260 = vmatpush.bf16.msra.mxu2 %v9203_v9  ;;  %v12816_v53 = vpop.f32.mrf.mxu1  ;;  %v9084_v25 = vld [vmem:[#allocation11 + $0x268] sm:$0xf0]  ;;  %v9467_v28 = vor.u32 %v11765_v19, %v9466_v15  ;;  %v8866_v9 = vld [vmem:[#allocation11 + $0xa0] sm:$0xf]  ;;  %v11642_v19 = vld [vmem:[#allocation11 + $0x194] sm:$0xf] }
 0x26a   :  { %v9087_v31 = vor.u32 %v11666_v4, %v9084_v25  ;;  %v8867_v40 = vor.u32 %v11615_v27, %v8866_v9  ;;  %v9730_v15 = vld [vmem:[#allocation11 + $0x760] sm:$0xf]  ;;  %v8795_v4 = vor.u32 %v11597_v3, %v8794_v47  ;;  %v9348_v25 = vld [vmem:[#allocation11 + $0x478] sm:$0xf0]  ;;  %v9276_v47 = vld [vmem:[#allocation11 + $0x3e8] sm:$0xf0] }
 0x26b   :  { %v11810_v3 = vld [vmem:[#allocation11 + $0x6d4] sm:$0xf] }
 0x26c   :  { %4183 = vmatpush.bf16.msrb.mxu0 %v8983_v38  ;;  %4222 = vmatpush.bf16.msrb.mxu3 %v9559_v41  ;;  %v11660_v38 = vld [vmem:[#allocation11 + $0x224] sm:$0xf]  ;;  %v9443_v41 = vor.u32 %v11759_v32, %v9442_v58  ;;  %v8991_v58 = vor.u32 %v11642_v19, %v8988_v20  ;;  %v11825_v32 = vld [vmem:[#allocation11 + $0x744] sm:$0xf0]  ;;  %v9636_v20 = vld [vmem:[#allocation11 + $0x6b8] sm:$0xf0] }
 0x26d   :  { %4248 = vmatpush.bf16.msra.mxu1 %v8987_v43  ;;  %4261 = vmatpush.bf16.msra.mxu2 %v9179_v46  ;;  %v8871_v43 = vor.u32 %v11612_v33, %v8868_v36  ;;  %v9063_v46 = vor.u32 %v11660_v38, %v9060_v54  ;;  %v9351_v33 = vor.u32 %v11732_v22, %v9348_v25  ;;  %v11726_v38 = vld [vmem:[#allocation11 + $0x434] sm:$0xf]  ;;  %v9934_v54 = vld [vmem:[#allocation14 + $0x188] sm:$0xf]  ;;  %v11804_v19 = vld [vmem:[#allocation11 + $0x6a4] sm:$0xf] }
 0x26e   :  { %v9610_v25 = vld [vmem:[#allocation11 + $0x670] sm:$0xf] }
 0x26f   :  { %4184 = vmatmul.bf16.vlgmr.msrb.gmra.mxu0 %v12761_v62  ;;  %4223 = vmatmul.bf16.vlgmr.msrb.gmra.mxu3 %v12792_v21 }
 0x270   :  { %4228 = vmatpush.bf16.msra.mxu0 %v8963_v44  ;;  %4267 = vmatpush.bf16.msra.mxu3 %v9539_v34  ;;  %v9418_v44 = vld [vmem:[#allocation11 + $0x4f0] sm:$0xf] }
 0x271   :  { %4293 = vmatpush.bf16.msrb.mxu1 %v8967_v59  ;;  %4306 = vmatpush.bf16.msrb.mxu2 %v9159_v50  ;;  %v4044_v34 = vpop.f32.mrf.mxu1  ;;  %v11753_v59 = vld [vmem:[#allocation11 + $0x504] sm:$0xf0]  ;;  %v9036_v50 = vld [vmem:[#allocation11 + $0x208] sm:$0xf0] }
 0x272   :  { %4249 = vmatmul.bf16.vlgmr.msra.gmra.mxu1 %v12761_v62  ;;  %4262 = vmatmul.bf16.vlgmr.msra.gmra.mxu2 %v12772_v45  ;;  %v12818_v39 = vpop.f32.mrf.mxu2  ;;  %v9419_v51 = vor.u32 %v11753_v59, %v9418_v44  ;;  %v11819_v34 = vld [vmem:[#allocation11 + $0x714] sm:$0xf0] }
 0x274   :  { %4229 = vmatpush.bf16.msra.mxu0 %v8939_v18  ;;  %4268 = vmatpush.bf16.msra.mxu3 %v9515_v56  ;;  %v9039_v18 = vor.u32 %v11654_v17, %v9036_v50  ;;  %v11747_v56 = vld [vmem:[#allocation11 + $0x4d4] sm:$0xf0]  ;;  %v11720_v17 = vld [vmem:[#allocation11 + $0x404] sm:$0xf] }
 0x275   :  { %4294 = vmatpush.bf16.msrb.mxu1 %v8943_v57  ;;  %4307 = vmatpush.bf16.msrb.mxu2 %v9135_v1  ;;  %v11600_v57 = vld [vmem:[#allocation11 + $0x44] sm:$0xf]  ;;  %v9395_v55 = vor.u32 %v11747_v56, %v9394_v5  ;;  %v9906_v50 = vld [vmem:[#allocation14 + $0x150] sm:$0xf]  ;;  %v9658_v5 = vld [vmem:[#allocation11 + $0x6d0] sm:$0xf] }
 0x276   :  { %v8823_v29 = vor.u32 %v11600_v57, %v8820_v61 }
 0x278   :  { %4230 = vmatpush.bf16.msra.mxu0 %v8915_v11  ;;  %4269 = vmatpush.bf16.msra.mxu3 %v9491_v12  ;;  %v9370_v11 = vld [vmem:[#allocation11 + $0x490] sm:$0xf]  ;;  %v11741_v12 = vld [vmem:[#allocation11 + $0x4a4] sm:$0xf0] }
 0x279   :  { %4295 = vmatpush.bf16.msrb.mxu1 %v8919_v13  ;;  %4308 = vmatpush.bf16.msrb.mxu2 %v9111_v8  ;;  %v11594_v13 = vld [vmem:[#allocation11 + $0x14] sm:$0xf]  ;;  %v11831_v8 = vld [vmem:[#allocation11 + $0x774] sm:$0xf0] }
 0x27a   :  { %v4005_v1 = vpop.f32.mrf.mxu2  ;;  %v8799_v9 = vor.u32 %v11594_v13, %v8796_v14  ;;  %v9731_v27 = vor.u32 %v11831_v8, %v9730_v15  ;;  %v9850_v14 = vld [vmem:[#allocation14 + $0xe0] sm:$0xf]  ;;  %v11863_v15 = vld [vmem:[#allocation14 + $0xf8] sm:$0xf0]  ;;  %v9252_v8 = vld [vmem:[#allocation11 + $0x3b8] sm:$0xf0] }
 0x27b   :  { %v11870_v1 = vld [vmem:[#allocation14 + $0x130] sm:$0xf0] }
 0x27c   :  { %4231 = vmatpush.bf16.msra.mxu0 %v8891_v26  ;;  %4270 = vmatpush.bf16.msra.mxu3 %v9467_v28  ;;  %v11828_v26 = vld [vmem:[#allocation11 + $0x764] sm:$0xf]  ;;  %v9732_v28 = vld [vmem:[#allocation11 + $0x778] sm:$0xf0] }
 0x27d   :  { %4296 = vmatpush.bf16.msrb.mxu1 %v8895_v30  ;;  %4309 = vmatpush.bf16.msrb.mxu2 %v9087_v31  ;;  %v9371_v30 = vor.u32 %v11741_v12, %v9370_v11  ;;  %v9706_v31 = vld [vmem:[#allocation11 + $0x730] sm:$0xf]  ;;  %v9735_v36 = vor.u32 %v11828_v26, %v9732_v28  ;;  %v9879_v11 = vor.u32 %v11870_v1, %v9878_v23  ;;  %v11801_v26 = vld [vmem:[#allocation11 + $0x684] sm:$0xf0]  ;;  %v11786_v23 = vld [vmem:[#allocation11 + $0x614] sm:$0xf] }
 0x27e   :  { %v9707_v44 = vor.u32 %v11825_v32, %v9706_v31  ;;  %v9279_v12 = vor.u32 %v11714_v0, %v9276_v47  ;;  %v9851_v28 = vor.u32 %v11863_v15, %v9850_v14  ;;  %v11856_v31 = vld [vmem:[#allocation14 + $0xc0] sm:$0xf0]  ;;  %v9540_v47 = vld [vmem:[#allocation11 + $0x5f8] sm:$0xf0]  ;;  %v9738_v14 = vld [vmem:[#allocation14] sm:$0xf] }
 0x27f   :  { %v9564_v1 = vld [vmem:[#allocation11 + $0x628] sm:$0xf0]  ;;  %v11835_v15 = vld [vmem:[#allocation14 + $0x18] sm:$0xf0] }
 0x280   :  { %4232 = vmatpush.bf16.msra.mxu0 %v8867_v40  ;;  %4271 = vmatpush.bf16.msra.mxu3 %v9443_v41  ;;  %v11884_v40 = vld [vmem:[#allocation14 + $0x1a0] sm:$0xf0] }
 0x281   :  { %4297 = vmatpush.bf16.msrb.mxu1 %v8871_v43  ;;  %4310 = vmatpush.bf16.msrb.mxu2 %v9063_v46  ;;  %v9324_v43 = vld [vmem:[#allocation11 + $0x448] sm:$0xf0]  ;;  %v9682_v46 = vld [vmem:[#allocation11 + $0x700] sm:$0xf]  ;;  %v9935_v59 = vor.u32 %v11884_v40, %v9934_v54  ;;  %v9611_v54 = vor.u32 %v11801_v26, %v9610_v25  ;;  %v9739_v25 = vor.u32 %v11835_v15, %v9738_v14 }
 0x282   :  { %v12820_v41 = vpop.f32.mrf.mxu2  ;;  %v9327_v48 = vor.u32 %v11726_v38, %v9324_v43  ;;  %v9683_v37 = vor.u32 %v11819_v34, %v9682_v46  ;;  %v9612_v38 = vld [vmem:[#allocation11 + $0x688] sm:$0xf0]  ;;  %v9586_v40 = vld [vmem:[#allocation11 + $0x640] sm:$0xf]  ;;  %v11795_v43 = vld [vmem:[#allocation11 + $0x654] sm:$0xf0] }
 0x283   :  { %v11696_v46 = vld [vmem:[#allocation11 + $0x344] sm:$0xf]  ;;  %v9794_v34 = vld [vmem:[#allocation14 + $0x70] sm:$0xf] }
 0x284   :  { %4233 = vmatpush.bf16.msra.mxu0 %v8843_v63  ;;  %4272 = vmatpush.bf16.msra.mxu3 %v9419_v51  ;;  %v11877_v63 = vld [vmem:[#allocation14 + $0x168] sm:$0xf0]  ;;  %v9300_v51 = vld [vmem:[#allocation11 + $0x418] sm:$0xf0] }
 0x285   :  { %4298 = vmatpush.bf16.msrb.mxu1 %v8847_v52  ;;  %4311 = vmatpush.bf16.msrb.mxu2 %v9039_v18  ;;  %v11816_v52 = vld [vmem:[#allocation11 + $0x704] sm:$0xf]  ;;  %v11813_v18 = vld [vmem:[#allocation11 + $0x6e4] sm:$0xf0]  ;;  %v9907_v56 = vor.u32 %v11877_v63, %v9906_v50  ;;  %v9303_v57 = vor.u32 %v11720_v17, %v9300_v51  ;;  %v9588_v17 = vld [vmem:[#allocation11 + $0x658] sm:$0xf0]  ;;  %v9587_v63 = vor.u32 %v11795_v43, %v9586_v40 }
 0x286   :  { %v9687_v61 = vor.u32 %v11816_v52, %v9684_v60  ;;  %v9562_v51 = vld [vmem:[#allocation11 + $0x610] sm:$0xf]  ;;  %v11789_v52 = vld [vmem:[#allocation11 + $0x624] sm:$0xf0]  ;;  %v11690_v60 = vld [vmem:[#allocation11 + $0x314] sm:$0xf] }
 0x288   :  { %4234 = vmatpush.bf16.msra.mxu0 %v8819_v2  ;;  %4273 = vmatpush.bf16.msra.mxu3 %v9395_v55  ;;  %v9660_v55 = vld [vmem:[#allocation11 + $0x6e8] sm:$0xf0] }
 0x289   :  { %4299 = vmatpush.bf16.msrb.mxu1 %v8823_v29  ;;  %4312 = vmatpush.bf16.msrb.mxu2 %v9015_v35  ;;  %v11807_v29 = vld [vmem:[#allocation11 + $0x6b4] sm:$0xf0]  ;;  %v9663_v13 = vor.u32 %v11810_v3, %v9660_v55  ;;  %v11708_v35 = vld [vmem:[#allocation11 + $0x3a4] sm:$0xf]  ;;  %v10158_v3 = vld [vmem:[#allocation14 + $0x348] sm:$0xf] }
 0x28a   :  { %v4057_v2 = vpop.f32.mrf.mxu2  ;;  %v11940_v55 = vld [vmem:[#allocation14 + $0x360] sm:$0xf0] }
 0x28b   :  { %v11780_v2 = vld [vmem:[#allocation11 + $0x5e4] sm:$0xf] }
 0x28c   :  { %4235 = vmatpush.bf16.msra.mxu0 %v8795_v4  ;;  %4274 = vmatpush.bf16.msra.mxu3 %v9371_v30  ;;  %v9255_v30 = vor.u32 %v11708_v35, %v9252_v8  ;;  %v11774_v35 = vld [vmem:[#allocation11 + $0x5b4] sm:$0xf] }
 0x28d   :  { %4300 = vmatpush.bf16.msrb.mxu1 %v8799_v9  ;;  %4313 = vmatpush.bf16.msrb.mxu2 %v8991_v58  ;;  %v9639_v9 = vor.u32 %v11804_v19, %v9636_v20  ;;  %v9822_v58 = vld [vmem:[#allocation14 + $0xa8] sm:$0xf]  ;;  %v10130_v20 = vld [vmem:[#allocation14 + $0x310] sm:$0xf] }
 0x28e   :  { %v9823_v16 = vor.u32 %v11856_v31, %v9822_v58  ;;  %v9516_v19 = vld [vmem:[#allocation11 + $0x5c8] sm:$0xf0]  ;;  %v10102_v58 = vld [vmem:[#allocation14 + $0x2d8] sm:$0xf]  ;;  %v11926_v31 = vld [vmem:[#allocation14 + $0x2f0] sm:$0xf0] }
 0x28f   :  { %4236 = vmatmul.bf16.vlgmr.msra.gmra.mxu0 %v12754_v7  ;;  %4275 = vmatmul.bf16.vlgmr.msra.gmra.mxu3 %v12783_v10  ;;  %v9519_v26 = vor.u32 %v11774_v35, %v9516_v19  ;;  %v10103_v43 = vor.u32 %v11926_v31, %v10102_v58  ;;  %v11744_v35 = vld [vmem:[#allocation11 + $0x4c4] sm:$0xf]  ;;  %v9396_v19 = vld [vmem:[#allocation11 + $0x4d8] sm:$0xf0] }
 0x290   :  { %4280 = vmatpush.bf16.msrb.mxu0 %v9731_v27  ;;  %4319 = vmatpush.bf16.msrb.mxu3 %v9351_v33  ;;  %v11702_v27 = vld [vmem:[#allocation11 + $0x374] sm:$0xf]  ;;  %v9228_v33 = vld [vmem:[#allocation11 + $0x388] sm:$0xf0] }
 0x291   :  { %4345 = vmatpush.bf16.msra.mxu1 %v9735_v36  ;;  %4314 = vmatmul.bf16.vlgmr.msrb.gmra.mxu2 %v12761_v62  ;;  %v9634_v62 = vld [vmem:[#allocation11 + $0x6a0] sm:$0xf]  ;;  %v11798_v36 = vld [vmem:[#allocation11 + $0x674] sm:$0xf]  ;;  %v9231_v42 = vor.u32 %v11702_v27, %v9228_v33  ;;  %v9492_v27 = vld [vmem:[#allocation11 + $0x598] sm:$0xf0] }
 0x292   :  { %4301 = vmatmul.bf16.vlgmr.msrb.gmra.mxu1 %v12754_v7  ;;  %6498 = vmatpush.bf16.msra.mxu2 %v9935_v59  ;;  %v9659_v7 = vor.u32 %v11813_v18, %v9658_v5  ;;  %v12826_v22 = vpop.f32.mrf.mxu3  ;;  %v9635_v4 = vor.u32 %v11807_v29, %v9634_v62  ;;  %v12828_v32 = vpop.f32.mrf.mxu2  ;;  %v11849_v59 = vld [vmem:[#allocation14 + $0x88] sm:$0xf0] }
 0x294   :  { %4281 = vmatpush.bf16.msrb.mxu0 %v9707_v44  ;;  %4320 = vmatpush.bf16.msrb.mxu3 %v9327_v48  ;;  %v9615_v44 = vor.u32 %v11798_v36, %v9612_v38  ;;  %v9204_v48 = vld [vmem:[#allocation11 + $0x358] sm:$0xf0]  ;;  %v10606_v36 = vld [vmem:[#allocation14 + $0x6c8] sm:$0xf]  ;;  %v12052_v38 = vld [vmem:[#allocation14 + $0x6e0] sm:$0xf0] }
 0x295   :  { %4346 = vmatpush.bf16.msra.mxu1 %v9711_v49  ;;  %v11792_v49 = vld [vmem:[#allocation11 + $0x644] sm:$0xf]  ;;  %v9207_v5 = vor.u32 %v11696_v46, %v9204_v48  ;;  %v9468_v46 = vld [vmem:[#allocation11 + $0x568] sm:$0xf0] }
 0x296   :  { %6499 = vmatpush.bf16.msra.mxu2 %v9907_v56  ;;  %v9591_v18 = vor.u32 %v11792_v49, %v9588_v17  ;;  %v9180_v56 = vld [vmem:[#allocation11 + $0x328] sm:$0xf0]  ;;  %v11756_v17 = vld [vmem:[#allocation11 + $0x524] sm:$0xf] }
 0x297   :  { %v9183_v29 = vor.u32 %v11690_v60, %v9180_v56  ;;  %v11912_v60 = vld [vmem:[#allocation14 + $0x280] sm:$0xf0] }
 0x298   :  { %4282 = vmatpush.bf16.msrb.mxu0 %v9683_v37  ;;  %4321 = vmatpush.bf16.msrb.mxu3 %v9303_v57  ;;  %v9795_v37 = vor.u32 %v11849_v59, %v9794_v34  ;;  %v9766_v57 = vld [vmem:[#allocation14 + $0x38] sm:$0xf]  ;;  %v11919_v34 = vld [vmem:[#allocation14 + $0x2b8] sm:$0xf0]  ;;  %v12045_v59 = vld [vmem:[#allocation14 + $0x6a8] sm:$0xf0] }
 0x299   :  { %4347 = vmatpush.bf16.msra.mxu1 %v9687_v61  ;;  %v11842_v61 = vld [vmem:[#allocation14 + $0x50] sm:$0xf0] }
 0x29a   :  { %6500 = vmatpush.bf16.msra.mxu2 %v9879_v11  ;;  %v4018_v50 = vpop.f32.mrf.mxu3  ;;  %v4109_v0 = vpop.f32.mrf.mxu2  ;;  %v9767_v62 = vor.u32 %v11842_v61, %v9766_v57  ;;  %v9567_v11 = vor.u32 %v11786_v23, %v9564_v1 }
 0x29b   :  { %v11750_v0 = vld [vmem:[#allocation11 + $0x4f4] sm:$0xf] }
 0x29c   :  { %4283 = vmatpush.bf16.msrb.mxu0 %v9659_v7  ;;  %4322 = vmatpush.bf16.msrb.mxu3 %v9279_v12  ;;  %v9563_v7 = vor.u32 %v11789_v52, %v9562_v51  ;;  %v9543_v12 = vor.u32 %v11780_v2, %v9540_v47  ;;  %v9444_v51 = vld [vmem:[#allocation11 + $0x538] sm:$0xf0]  ;;  %v10046_v52 = vld [vmem:[#allocation14 + $0x268] sm:$0xf]  ;;  %v10018_v47 = vld [vmem:[#allocation14 + $0x230] sm:$0xf] }
 0x29d   :  { %4348 = vmatpush.bf16.msra.mxu1 %v9663_v13  ;;  %v10159_v13 = vor.u32 %v11940_v55, %v10158_v3  ;;  %v9447_v56 = vor.u32 %v11756_v17, %v9444_v51  ;;  %v10047_v61 = vor.u32 %v11912_v60, %v10046_v52  ;;  %v9420_v2 = vld [vmem:[#allocation11 + $0x508] sm:$0xf0]  ;;  %v11905_v3 = vld [vmem:[#allocation14 + $0x248] sm:$0xf0]  ;;  %v12010_v17 = vld [vmem:[#allocation14 + $0x590] sm:$0xf0] }
 0x29e   :  { %6501 = vmatpush.bf16.msra.mxu2 %v9851_v28  ;;  %v10326_v60 = vld [vmem:[#allocation14 + $0x498] sm:$0xf] }
 0x2a0   :  { %4284 = vmatpush.bf16.msrb.mxu0 %v9635_v4  ;;  %4323 = vmatpush.bf16.msrb.mxu3 %v9255_v30  ;;  %v11933_v4 = vld [vmem:[#allocation14 + $0x328] sm:$0xf0]  ;;  %v11768_v30 = vld [vmem:[#allocation11 + $0x584] sm:$0xf] }
 0x2a1   :  { %4349 = vmatpush.bf16.msra.mxu1 %v9639_v9  ;;  %v10131_v28 = vor.u32 %v11933_v4, %v10130_v20  ;;  %v4004_v9 = vadd.f32 %v12818_v39, %v12810_v24  ;;  %v11762_v24 = vld [vmem:[#allocation11 + $0x554] sm:$0xf]  ;;  %v10607_v39 = vor.u32 %v12052_v38, %v10606_v36  ;;  %v9990_v20 = vld [vmem:[#allocation14 + $0x1f8] sm:$0xf]  ;;  %v11898_v4 = vld [vmem:[#allocation14 + $0x210] sm:$0xf0] }
 0x2a2   :  { %6502 = vmatpush.bf16.msra.mxu2 %v9823_v16  ;;  %v12830_v8 = vpop.f32.mrf.mxu3  ;;  %v9471_v48 = vor.u32 %v11762_v24, %v9468_v46  ;;  %v9372_v36 = vld [vmem:[#allocation11 + $0x4a8] sm:$0xf0]  ;;  %v11891_v38 = vld [vmem:[#allocation14 + $0x1d8] sm:$0xf0] }
 0x2a3   :  { %v4017_v33 = vadd.f32 %v12826_v22, %v4004_v9  ;;  %v10578_v22 = vld [vmem:[#allocation14 + $0x690] sm:$0xf]  ;;  %v9991_v9 = vor.u32 %v11898_v4, %v9990_v20 }
 0x2a4   :  { %4285 = vmatpush.bf16.msrb.mxu0 %v9611_v54  ;;  %4324 = vmatpush.bf16.msrb.mxu3 %v9231_v42  ;;  %v9495_v54 = vor.u32 %v11768_v30, %v9492_v27  ;;  %v10579_v50 = vor.u32 %v12045_v59, %v10578_v22  ;;  %v11738_v27 = vld [vmem:[#allocation11 + $0x494] sm:$0xf] }
 0x2a5   :  { %4350 = vmatpush.bf16.msra.mxu1 %v9615_v44  ;;  %v10354_v22 = vld [vmem:[#allocation14 + $0x4d0] sm:$0xf]  ;;  %v11989_v59 = vld [vmem:[#allocation14 + $0x4e8] sm:$0xf0] }
 0x2a6   :  { %6503 = vmatpush.bf16.msra.mxu2 %v9795_v37  ;;  %v2757_v37 = vperm.slane %v12806_v6, 1  ;;  %v10355_v52 = vor.u32 %v11989_v59, %v10354_v22  ;;  %v10186_v59 = vld [vmem:[#allocation14 + $0x380] sm:$0xf] }
 0x2a8   :  { %4286 = vmatpush.bf16.msrb.mxu0 %v9587_v63  ;;  %4325 = vmatpush.bf16.msrb.mxu3 %v9207_v5  ;;  %v10550_v5 = vld [vmem:[#allocation14 + $0x658] sm:$0xf] }
 0x2a9   :  { %4351 = vmatpush.bf16.msra.mxu1 %v9591_v18  ;;  %v12038_v18 = vld [vmem:[#allocation14 + $0x670] sm:$0xf0] }
 0x2aa   :  { %6504 = vmatpush.bf16.msra.mxu2 %v9767_v62  ;;  %v4070_v44 = vpop.f32.mrf.mxu3  ;;  %v10551_v23 = vor.u32 %v12038_v18, %v10550_v5  ;;  %v10410_v5 = vld [vmem:[#allocation14 + $0x540] sm:$0xf]  ;;  %v12003_v18 = vld [vmem:[#allocation14 + $0x558] sm:$0xf0] }
 0x2ab   :  { %v9375_v44 = vor.u32 %v11738_v27, %v9372_v36  ;;  %v11916_v27 = vld [vmem:[#allocation14 + $0x2a4] sm:$0xf] }
 0x2ac   :  { %4287 = vmatpush.bf16.msrb.mxu0 %v9563_v7  ;;  %4326 = vmatpush.bf16.msrb.mxu3 %v9183_v29  ;;  %v4029_v40 = vpop.f32.mrf.mxu0  ;;  %v12838_v42 = vpop.f32.mrf.mxu1  ;;  %v4043_v7 = vadd.f32 %v12816_v53, %v2757_v37  ;;  %v10522_v29 = vld [vmem:[#allocation14 + $0x620] sm:$0xf]  ;;  %v12024_v53 = vld [vmem:[#allocation14 + $0x600] sm:$0xf0]  ;;  %v11982_v37 = vld [vmem:[#allocation14 + $0x4b0] sm:$0xf0] }
 0x2ad   :  { %4352 = vmatpush.bf16.msra.mxu1 %v9567_v11  ;;  %v4030_v16 = vadd.f32 %v4029_v40, %v4017_v33  ;;  %v12031_v11 = vld [vmem:[#allocation14 + $0x638] sm:$0xf0]  ;;  %v10382_v40 = vld [vmem:[#allocation14 + $0x508] sm:$0xf] }
 0x2ae   :  { %6505 = vmatpush.bf16.msra.mxu2 %v9739_v25  ;;  %v10523_v14 = vor.u32 %v12031_v11, %v10522_v29  ;;  %v4056_v15 = vadd.f32 %v12820_v41, %v4043_v7  ;;  %v9962_v41 = vld [vmem:[#allocation14 + $0x1c0] sm:$0xf]  ;;  %v10132_v7 = vld [vmem:[#allocation14 + $0x32c] sm:$0xf0] }
 0x2af   :  { %4288 = vmatmul.bf16.vlgmr.msrb.gmra.mxu0 %v12792_v21  ;;  %4327 = vmatmul.bf16.vlgmr.msrb.gmra.mxu3 %v12772_v45  ;;  %v10074_v45 = vld [vmem:[#allocation14 + $0x2a0] sm:$0xf]  ;;  %v9963_v46 = vor.u32 %v11891_v38, %v9962_v41  ;;  %v10802_v41 = vld [vmem:[#allocation14 + $0x850] sm:$0xf]  ;;  %v12101_v38 = vld [vmem:[#allocation14 + $0x868] sm:$0xf0] }
 0x2b0   :  { %4332 = vmatpush.bf16.msra.mxu0 %v9543_v12  ;;  %6511 = vmatpush.bf16.msra.mxu3 %v10159_v13  ;;  %v10075_v49 = vor.u32 %v11919_v34, %v10074_v45  ;;  %v9423_v12 = vor.u32 %v11750_v0, %v9420_v2  ;;  %v10019_v13 = vor.u32 %v11905_v3, %v10018_v47  ;;  %v10298_v2 = vld [vmem:[#allocation14 + $0x460] sm:$0xf]  ;;  %v11975_v47 = vld [vmem:[#allocation14 + $0x478] sm:$0xf0]  ;;  %v11930_v3 = vld [vmem:[#allocation14 + $0x314] sm:$0xf] }
 0x2b1   :  { %4353 = vmatmul.bf16.vlgmr.msra.gmra.mxu1 %v12792_v21  ;;  %v4358_v21 = vmax.f32 %v4030_v16, 0.0  ;;  %v4069_v25 = vadd.f32 %v12830_v8, %v4056_v15  ;;  %v12017_v16 = vld [vmem:[#allocation14 + $0x5c8] sm:$0xf0]  ;;  %v10327_v0 = vor.u32 %v11982_v37, %v10326_v60  ;;  %v10299_v29 = vor.u32 %v11975_v47, %v10298_v2  ;;  %v9992_v2 = vld [vmem:[#allocation14 + $0x214] sm:$0xf0] }
 0x2b2   :  { %6537 = vmatpush.bf16.msrb.mxu1 %v10607_v39  ;;  %v10466_v39 = vld [vmem:[#allocation14 + $0x5b0] sm:$0xf]  ;;  %v10135_v11 = vor.u32 %v11930_v3, %v10132_v7  ;;  %v10718_v3 = vld [vmem:[#allocation14 + $0x7a8] sm:$0xf]  ;;  %v12080_v7 = vld [vmem:[#allocation14 + $0x7c0] sm:$0xf0] }
 0x2b3   :  { %v12840_v63 = vpack.c.bf16 %v4358_v21, %v4358_v21  ;;  %v10467_v45 = vor.u32 %v12017_v16, %v10466_v39  ;;  %v10803_v39 = vor.u32 %v12101_v38, %v10802_v41  ;;  %v11909_v16 = vld [vmem:[#allocation14 + $0x26c] sm:$0xf] }
 0x2b4   :  { %4333 = vmatpush.bf16.msra.mxu0 %v9519_v26  ;;  %6512 = vmatpush.bf16.msra.mxu3 %v10131_v28  ;;  %v4031_v57 = vpop.f32.mrf.mxu0  ;;  %v4096_v1 = vpop.f32.mrf.mxu1  ;;  %v10494_v26 = vld [vmem:[#allocation14 + $0x5e8] sm:$0xf]  ;;  %v9399_v28 = vor.u32 %v11744_v35, %v9396_v19  ;;  %v10104_v19 = vld [vmem:[#allocation14 + $0x2f4] sm:$0xf0]  ;;  %v11853_v38 = vld [vmem:[#allocation14 + $0xac] sm:$0xf] }
 0x2b5   :  { %6506 = vmatmul.bf16.vlgmr.msra.gmra.mxu2 %v12840_v63  ;;  %v12844_v55 = vpop.f32.mrf.mxu3  ;;  %v12847_v62 = vpop.f32.mrf.mxu2  ;;  %v10495_v58 = vor.u32 %v12024_v53, %v10494_v26  ;;  %v11937_v57 = vld [vmem:[#allocation14 + $0x34c] sm:$0xf]  ;;  %v2758_v1 = vperm.slane %v12806_v6, 2  ;;  %v10270_v35 = vld [vmem:[#allocation14 + $0x428] sm:$0xf] }
 0x2b6   :  { %6538 = vmatpush.bf16.msrb.mxu1 %v10579_v50  ;;  %v11923_v6 = vld [vmem:[#allocation14 + $0x2dc] sm:$0xf]  ;;  %v12108_v26 = vld [vmem:[#allocation14 + $0x8a0] sm:$0xf0] }
 0x2b7   :  { %v10107_v4 = vor.u32 %v11923_v6, %v10104_v19  ;;  %v10690_v19 = vld [vmem:[#allocation14 + $0x770] sm:$0xf] }
 0x2b8   :  { %4334 = vmatpush.bf16.msra.mxu0 %v9495_v54  ;;  %6513 = vmatpush.bf16.msra.mxu3 %v10103_v43  ;;  %v11996_v43 = vld [vmem:[#allocation14 + $0x520] sm:$0xf0] }
 0x2b9   :  { %v10383_v21 = vor.u32 %v11996_v43, %v10382_v40 }
 0x2ba   :  { %6539 = vmatpush.bf16.msrb.mxu1 %v10551_v23 }
 0x2bc   :  { %4335 = vmatpush.bf16.msra.mxu0 %v9471_v48  ;;  %6514 = vmatpush.bf16.msra.mxu3 %v10075_v49  ;;  %v4081_v30 = vpop.f32.mrf.mxu0  ;;  %v12851_v33 = vpop.f32.mrf.mxu1  ;;  %v10438_v49 = vld [vmem:[#allocation14 + $0x578] sm:$0xf] }
 0x2bd   :  { %v4082_v31 = vadd.f32 %v4081_v30, %v4069_v25  ;;  %v4122_v54 = vpop.f32.mrf.mxu3  ;;  %v4161_v24 = vpop.f32.mrf.mxu2  ;;  %v10439_v50 = vor.u32 %v12010_v17, %v10438_v49  ;;  %v10830_v25 = vld [vmem:[#allocation14 + $0x888] sm:$0xf]  ;;  %v11961_v30 = vld [vmem:[#allocation14 + $0x408] sm:$0xf0]  ;;  %v11947_v49 = vld [vmem:[#allocation14 + $0x398] sm:$0xf0] }
 0x2be   :  { %6540 = vmatpush.bf16.msrb.mxu1 %v10523_v14  ;;  %v11968_v14 = vld [vmem:[#allocation14 + $0x440] sm:$0xf0]  ;;  %v11954_v24 = vld [vmem:[#allocation14 + $0x3d0] sm:$0xf0]  ;;  %v10187_v37 = vor.u32 %v11947_v49, %v10186_v59  ;;  %v11054_v59 = vld [vmem:[#allocation14 + $0xa48] sm:$0xf] }
 0x2bf   :  { %v4095_v8 = vadd.f32 %v12838_v42, %v4082_v31  ;;  %v10271_v20 = vor.u32 %v11968_v14, %v10270_v35  ;;  %v9880_v35 = vld [vmem:[#allocation14 + $0x134] sm:$0xf0]  ;;  %v11888_v14 = vld [vmem:[#allocation14 + $0x1c4] sm:$0xf] }
 0x2c0   :  { %4336 = vmatpush.bf16.msra.mxu0 %v9447_v56  ;;  %6515 = vmatpush.bf16.msra.mxu3 %v10047_v61  ;;  %v10411_v56 = vor.u32 %v12003_v18, %v10410_v5  ;;  %v10160_v61 = vld [vmem:[#allocation14 + $0x364] sm:$0xf0]  ;;  %v10746_v18 = vld [vmem:[#allocation14 + $0x7e0] sm:$0xf]  ;;  %v12164_v49 = vld [vmem:[#allocation14 + $0xa60] sm:$0xf0] }
 0x2c1   :  { %v4359_v34 = vmax.f32 %v4095_v8, 0.0  ;;  %v10163_v23 = vor.u32 %v11937_v57, %v10160_v61  ;;  %v10214_v8 = vld [vmem:[#allocation14 + $0x3b8] sm:$0xf] }
 0x2c2   :  { %6541 = vmatpush.bf16.msrb.mxu1 %v10495_v58  ;;  %v10076_v58 = vld [vmem:[#allocation14 + $0x2bc] sm:$0xf0] }
 0x2c3   :  { %v12854_v48 = vpack.c.bf16 %v4359_v34, %v4359_v34  ;;  %v10079_v36 = vor.u32 %v11916_v27, %v10076_v58  ;;  %v10774_v34 = vld [vmem:[#allocation14 + $0x818] sm:$0xf]  ;;  %v12066_v27 = vld [vmem:[#allocation14 + $0x750] sm:$0xf0] }
 0x2c4   :  { %4337 = vmatpush.bf16.msra.mxu0 %v9423_v12  ;;  %6516 = vmatpush.bf16.msra.mxu3 %v10019_v13  ;;  %v4083_v42 = vpop.f32.mrf.mxu0  ;;  %v4148_v51 = vpop.f32.mrf.mxu1 }
 0x2c5   :  { %v11881_v42 = vld [vmem:[#allocation14 + $0x18c] sm:$0xf]  ;;  %v11902_v51 = vld [vmem:[#allocation14 + $0x234] sm:$0xf] }
 0x2c6   :  { %6542 = vmatpush.bf16.msrb.mxu1 %v10467_v45 }
 0x2c8   :  { %4338 = vmatpush.bf16.msra.mxu0 %v9399_v28  ;;  %6517 = vmatpush.bf16.msra.mxu3 %v9991_v9  ;;  %v10242_v28 = vld [vmem:[#allocation14 + $0x3f0] sm:$0xf]  ;;  %v10831_v9 = vor.u32 %v12108_v26, %v10830_v25 }
 0x2ca   :  { %6543 = vmatpush.bf16.msrb.mxu1 %v10439_v50  ;;  %6550 = vmatpush.bf16.msrb.mxu2 %v10831_v9  ;;  %v9936_v50 = vld [vmem:[#allocation14 + $0x1a4] sm:$0xf0]  ;;  %v10662_v9 = vld [vmem:[#allocation14 + $0x738] sm:$0xf] }
 0x2cb   :  { %v9939_v61 = vor.u32 %v11881_v42, %v9936_v50  ;;  %v11055_v42 = vor.u32 %v12164_v49, %v11054_v59  ;;  %v10942_v59 = vld [vmem:[#allocation14 + $0x968] sm:$0xf]  ;;  %v12136_v49 = vld [vmem:[#allocation14 + $0x980] sm:$0xf0] }
 0x2cc   :  { %4339 = vmatpush.bf16.msra.mxu0 %v9375_v44  ;;  %6518 = vmatpush.bf16.msra.mxu3 %v9963_v46  ;;  %v4133_v12 = vpop.f32.mrf.mxu0  ;;  %v10048_v44 = vld [vmem:[#allocation14 + $0x284] sm:$0xf0]  ;;  %v10215_v46 = vor.u32 %v11954_v24, %v10214_v8  ;;  %v10634_v8 = vld [vmem:[#allocation14 + $0x700] sm:$0xf]  ;;  %v12059_v24 = vld [vmem:[#allocation14 + $0x718] sm:$0xf0] }
 0x2cd   :  { %v10051_v45 = vor.u32 %v11909_v16, %v10048_v44  ;;  %v10635_v44 = vor.u32 %v12059_v24, %v10634_v8  ;;  %v12143_v8 = vld [vmem:[#allocation14 + $0x9b8] sm:$0xf0] }
 0x2ce   :  { %6544 = vmatpush.bf16.msrb.mxu1 %v10411_v56  ;;  %6551 = vmatpush.bf16.msrb.mxu2 %v10803_v39  ;;  %v12087_v56 = vld [vmem:[#allocation14 + $0x7f8] sm:$0xf0] }
 0x2cf   :  { %4340 = vmatmul.bf16.vlgmr.msra.gmra.mxu0 %v12783_v10  ;;  %6519 = vmatmul.bf16.vlgmr.msra.gmra.mxu3 %v12854_v48  ;;  %v4108_v10 = vadd.f32 %v12828_v32, %v2758_v1  ;;  %v12860_v13 = vpop.f32.mrf.mxu1  ;;  %v11895_v1 = vld [vmem:[#allocation14 + $0x1fc] sm:$0xf] }
 0x2d0   :  { %6524 = vmatpush.bf16.msrb.mxu0 %v10383_v21  ;;  %v12094_v21 = vld [vmem:[#allocation14 + $0x830] sm:$0xf0]  ;;  %v9995_v47 = vor.u32 %v11895_v1, %v9992_v2  ;;  %6563 = vmatpush.bf16.msrb.mxu3 %v11055_v42  ;;  %v11832_v1 = vld [vmem:[#allocation14 + $0x4] sm:$0xf] }
 0x2d1   :  { %v4121_v15 = vadd.f32 %v12844_v55, %v4108_v10  ;;  %v10243_v55 = vor.u32 %v11961_v30, %v10242_v28  ;;  %v10775_v17 = vor.u32 %v12094_v21, %v10774_v34  ;;  %v11867_v10 = vld [vmem:[#allocation14 + $0x11c] sm:$0xf]  ;;  %v11860_v28 = vld [vmem:[#allocation14 + $0xe4] sm:$0xf]  ;;  %v9852_v30 = vld [vmem:[#allocation14 + $0xfc] sm:$0xf0] }
 0x2d2   :  { %6589 = vmatpush.bf16.msra.mxu1 %v10163_v23  ;;  %v12863_v32 = vpop.f32.mrf.mxu3  ;;  %v9908_v23 = vld [vmem:[#allocation14 + $0x16c] sm:$0xf0]  ;;  %v9883_v26 = vor.u32 %v11867_v10, %v9880_v35  ;;  %v12154_v35 = vld [vmem:[#allocation14 + $0xa14] sm:$0xf] }
 0x2d3   :  { %v4134_v53 = vadd.f32 %v4133_v12, %v4121_v15  ;;  %6552 = vmatpush.bf16.msrb.mxu2 %v10775_v17  ;;  %v10719_v12 = vor.u32 %v12080_v7, %v10718_v3  ;;  %v9964_v15 = vld [vmem:[#allocation14 + $0x1dc] sm:$0xf0]  ;;  %v9796_v34 = vld [vmem:[#allocation14 + $0x8c] sm:$0xf0]  ;;  %v11839_v17 = vld [vmem:[#allocation14 + $0x3c] sm:$0xf] }
 0x2d4   :  { %6525 = vmatpush.bf16.msrb.mxu0 %v10355_v52  ;;  %v4135_v40 = vpop.f32.mrf.mxu0  ;;  %v10020_v52 = vld [vmem:[#allocation14 + $0x24c] sm:$0xf0]  ;;  %v9967_v6 = vor.u32 %v11888_v14, %v9964_v15  ;;  %v11979_v7 = vld [vmem:[#allocation14 + $0x49c] sm:$0xf]  ;;  %v11958_v42 = vld [vmem:[#allocation14 + $0x3f4] sm:$0xf] }
 0x2d5   :  { %v12865_v31 = vpop.f32.mrf.mxu2  ;;  %v4147_v54 = vadd.f32 %v12851_v33, %v4134_v53  ;;  %v10023_v5 = vor.u32 %v11902_v51, %v10020_v52  ;;  %v12161_v51 = vld [vmem:[#allocation14 + $0xa4c] sm:$0xf]  ;;  %v11986_v52 = vld [vmem:[#allocation14 + $0x4d4] sm:$0xf]  ;;  %v11028_v14 = vld [vmem:[#allocation14 + $0xa2c] sm:$0xf0] }
 0x2d6   :  { %6590 = vmatpush.bf16.msra.mxu1 %v10135_v11 }
 0x2d7   :  { %v4200_v43 = vpop.f32.mrf.mxu1  ;;  %v4160_v22 = vadd.f32 %v12847_v62, %v4147_v54  ;;  %v11874_v62 = vld [vmem:[#allocation14 + $0x154] sm:$0xf]  ;;  %v9824_v54 = vld [vmem:[#allocation14 + $0xc4] sm:$0xf0] }
 0x2d8   :  { %6526 = vmatpush.bf16.msrb.mxu0 %v10327_v0  ;;  %v10747_v0 = vor.u32 %v12087_v56, %v10746_v18  ;;  %v9911_v11 = vor.u32 %v11874_v62, %v9908_v23  ;;  %v9827_v16 = vor.u32 %v11853_v38, %v9824_v54  ;;  %v11056_v56 = vld [vmem:[#allocation14 + $0xa64] sm:$0xf0]  ;;  %v10804_v38 = vld [vmem:[#allocation14 + $0x86c] sm:$0xf0] }
 0x2d9   :  { %v4360_v57 = vmax.f32 %v4160_v22, 0.0  ;;  %v11059_v3 = vor.u32 %v12161_v51, %v11056_v56  ;;  %v12084_v51 = vld [vmem:[#allocation14 + $0x7e4] sm:$0xf]  ;;  %v10914_v56 = vld [vmem:[#allocation14 + $0x930] sm:$0xf] }
 0x2da   :  { %6591 = vmatpush.bf16.msra.mxu1 %v10107_v4  ;;  %v4174_v33 = vpop.f32.mrf.mxu3  ;;  %6553 = vmatpush.bf16.msrb.mxu2 %v10747_v0  ;;  %v12872_v4 = vld [vmem:[#allocation13] sm:$0x3f] }
 0x2db   :  { %v2759_v25 = vperm.slane %v12872_v4, 3  ;;  %v9768_v33 = vld [vmem:[#allocation14 + $0x54] sm:$0xf0] }
 0x2dc   :  { %6527 = vmatpush.bf16.msrb.mxu0 %v10299_v29  ;;  %v12869_v29 = vpack.c.bf16 %v4360_v57, %v4360_v57  ;;  %v11026_v57 = vld [vmem:[#allocation14 + $0xa10] sm:$0xf]  ;;  %v9771_v2 = vor.u32 %v11839_v17, %v9768_v33  ;;  %v10943_v17 = vor.u32 %v12136_v49, %v10942_v59 }
 0x2dd   :  { %v4213_v60 = vpop.f32.mrf.mxu2  ;;  %v4173_v58 = vadd.f32 %v12863_v32, %v2759_v25  ;;  %v11846_v32 = vld [vmem:[#allocation14 + $0x74] sm:$0xf] }
 0x2de   :  { %6592 = vmatpush.bf16.msra.mxu1 %v10079_v36  ;;  %6554 = vmatpush.bf16.msrb.mxu2 %v10719_v12  ;;  %v10663_v36 = vor.u32 %v12066_v27, %v10662_v9  ;;  %v10356_v60 = vld [vmem:[#allocation14 + $0x4ec] sm:$0xf0]  ;;  %v12105_v12 = vld [vmem:[#allocation14 + $0x88c] sm:$0xf]  ;;  %v11972_v9 = vld [vmem:[#allocation14 + $0x464] sm:$0xf] }
 0x2e0   :  { %6528 = vmatpush.bf16.msrb.mxu0 %v10271_v20  ;;  %v12073_v20 = vld [vmem:[#allocation14 + $0x788] sm:$0xf0] }
 0x2e1   :  { %v10691_v53 = vor.u32 %v12073_v20, %v10690_v19  ;;  %v10998_v19 = vld [vmem:[#allocation14 + $0x9d8] sm:$0xf]  ;;  %v12150_v20 = vld [vmem:[#allocation14 + $0x9f0] sm:$0xf0] }
 0x2e2   :  { %6593 = vmatpush.bf16.msra.mxu1 %v10051_v45  ;;  %v10384_v45 = vld [vmem:[#allocation14 + $0x524] sm:$0xf0]  ;;  %v10999_v25 = vor.u32 %v12150_v20, %v10998_v19  ;;  %v11944_v19 = vld [vmem:[#allocation14 + $0x384] sm:$0xf]  ;;  %v10188_v20 = vld [vmem:[#allocation14 + $0x39c] sm:$0xf0] }
 0x2e3   :  { %6555 = vmatpush.bf16.msrb.mxu2 %v10691_v53 }
 0x2e4   :  { %6529 = vmatpush.bf16.msrb.mxu0 %v10243_v55  ;;  %v9855_v55 = vor.u32 %v11860_v28, %v9852_v30  ;;  %v12098_v28 = vld [vmem:[#allocation14 + $0x854] sm:$0xf]  ;;  %v11031_v30 = vor.u32 %v12154_v35, %v11028_v14 }
 0x2e6   :  { %6594 = vmatpush.bf16.msra.mxu1 %v10023_v5 }
 0x2e7   :  { %6556 = vmatpush.bf16.msrb.mxu2 %v10663_v36  ;;  %v11000_v36 = vld [vmem:[#allocation14 + $0x9f4] sm:$0xf0] }
 0x2e8   :  { %6530 = vmatpush.bf16.msrb.mxu0 %v10215_v46  ;;  %v11993_v46 = vld [vmem:[#allocation14 + $0x50c] sm:$0xf] }
 0x2e9   :  { %v10387_v21 = vor.u32 %v11993_v46, %v10384_v45  ;;  %v10807_v46 = vor.u32 %v12098_v28, %v10804_v38  ;;  %v12091_v45 = vld [vmem:[#allocation14 + $0x81c] sm:$0xf]  ;;  %v10888_v28 = vld [vmem:[#allocation14 + $0x914] sm:$0xf0] }
 0x2ea   :  { %6595 = vmatpush.bf16.msra.mxu1 %v9995_v47  ;;  %v9740_v47 = vld [vmem:[#allocation14 + $0x1c] sm:$0xf0] }
 0x2eb   :  { %6557 = vmatpush.bf16.msrb.mxu2 %v10635_v44  ;;  %v9743_v53 = vor.u32 %v11832_v1, %v9740_v47  ;;  %v10272_v44 = vld [vmem:[#allocation14 + $0x444] sm:$0xf0]  ;;  %v12077_v1 = vld [vmem:[#allocation14 + $0x7ac] sm:$0xf]  ;;  %v10916_v47 = vld [vmem:[#allocation14 + $0x94c] sm:$0xf0] }
 0x2ec   :  { %6531 = vmatpush.bf16.msrb.mxu0 %v10187_v37  ;;  %v4185_v41 = vpop.f32.mrf.mxu0 }
 0x2ed   :  { %v4186_v40 = vadd.f32 %v4185_v41, %v4173_v58  ;;  %v10300_v41 = vld [vmem:[#allocation14 + $0x47c] sm:$0xf0] }
 0x2ee   :  { %6596 = vmatpush.bf16.msra.mxu1 %v9967_v6  ;;  %v10832_v6 = vld [vmem:[#allocation14 + $0x8a4] sm:$0xf0]  ;;  %v10303_v54 = vor.u32 %v11972_v9, %v10300_v41  ;;  %v10692_v9 = vld [vmem:[#allocation14 + $0x78c] sm:$0xf0] }
 0x2ef   :  { %6532 = vmatmul.bf16.vlgmr.msrb.gmra.mxu0 %v12869_v29  ;;  %v12876_v43 = vpop.f32.mrf.mxu1  ;;  %v4199_v39 = vadd.f32 %v12860_v13, %v4186_v40  ;;  %6602 = vmatpush.bf16.msra.mxu2 %v10387_v21  ;;  %v9799_v13 = vor.u32 %v11846_v32, %v9796_v34  ;;  %v10835_v58 = vor.u32 %v12105_v12, %v10832_v6  ;;  %v10970_v40 = vld [vmem:[#allocation14 + $0x9a0] sm:$0xf]  ;;  %v12140_v32 = vld [vmem:[#allocation14 + $0x9a4] sm:$0xf]  ;;  %v12122_v12 = vld [vmem:[#allocation14 + $0x910] sm:$0xf0] }
 0x2f0   :  { %6576 = vmatpush.bf16.msra.mxu0 %v9939_v61  ;;  %v12157_v61 = vld [vmem:[#allocation14 + $0xa28] sm:$0xf0]  ;;  %v10971_v24 = vor.u32 %v12143_v8, %v10970_v40  ;;  %v10972_v34 = vld [vmem:[#allocation14 + $0x9bc] sm:$0xf0]  ;;  %v10608_v41 = vld [vmem:[#allocation14 + $0x6e4] sm:$0xf0] }
 0x2f1   :  { %v4212_v22 = vadd.f32 %v12865_v31, %v4199_v39  ;;  %v10359_v31 = vor.u32 %v11986_v52, %v10356_v60  ;;  %v11027_v62 = vor.u32 %v12157_v61, %v11026_v57  ;;  %v10975_v33 = vor.u32 %v12140_v32, %v10972_v34  ;;  %v12133_v52 = vld [vmem:[#allocation14 + $0x96c] sm:$0xf]  ;;  %v10944_v60 = vld [vmem:[#allocation14 + $0x984] sm:$0xf0] }
 0x2f2   :  { %v4224_v50 = vpop.f32.mrf.mxu3  ;;  %v10947_v61 = vor.u32 %v12133_v52, %v10944_v60  ;;  %v12053_v32 = vld [vmem:[#allocation14 + $0x6e8] sm:$0xf0]  ;;  %v10390_v52 = vld [vmem:[#allocation14 + $0x510] sm:$0xf]  ;;  %v10586_v60 = vld [vmem:[#allocation14 + $0x698] sm:$0xf] }
 0x2f3   :  { %v4225_v37 = vadd.f32 %v4224_v50, %v4212_v22  ;;  %6603 = vmatpush.bf16.msra.mxu2 %v10359_v31  ;;  %6564 = vmatpush.bf16.msrb.mxu3 %v11027_v62  ;;  %v10776_v22 = vld [vmem:[#allocation14 + $0x834] sm:$0xf0]  ;;  %v10244_v50 = vld [vmem:[#allocation14 + $0x40c] sm:$0xf0]  ;;  %v12129_v31 = vld [vmem:[#allocation14 + $0x948] sm:$0xf0] }
 0x2f4   :  { %6577 = vmatpush.bf16.msra.mxu0 %v9911_v11  ;;  %v4187_v18 = vpop.f32.mrf.mxu0  ;;  %v10328_v11 = vld [vmem:[#allocation14 + $0x4b4] sm:$0xf0]  ;;  %v10915_v57 = vor.u32 %v12129_v31, %v10914_v56  ;;  %v12035_v56 = vld [vmem:[#allocation14 + $0x65c] sm:$0xf] }
 0x2f5   :  { %v12880_v5 = vpop.f32.mrf.mxu2  ;;  %v4361_v23 = vmax.f32 %v4225_v37, 0.0  ;;  %v10331_v15 = vor.u32 %v11979_v7, %v10328_v11  ;;  %v10247_v37 = vor.u32 %v11958_v42, %v10244_v50  ;;  %v10748_v18 = vld [vmem:[#allocation14 + $0x7fc] sm:$0xf0]  ;;  %v10216_v62 = vld [vmem:[#allocation14 + $0x3d4] sm:$0xf0] }
 0x2f6   :  { %v10720_v7 = vld [vmem:[#allocation14 + $0x7c4] sm:$0xf0]  ;;  %v10886_v11 = vld [vmem:[#allocation14 + $0x8f8] sm:$0xf]  ;;  %v12056_v50 = vld [vmem:[#allocation14 + $0x704] sm:$0xf] }
 0x2f7   :  { %v4252_v0 = vpop.f32.mrf.mxu1  ;;  %v12882_v10 = vpack.c.bf16 %v4361_v23, %v4361_v23  ;;  %6604 = vmatpush.bf16.msra.mxu2 %v10331_v15  ;;  %6565 = vmatpush.bf16.msrb.mxu3 %v10999_v25  ;;  %v10751_v23 = vor.u32 %v12084_v51, %v10748_v18  ;;  %v10887_v14 = vor.u32 %v12122_v12, %v10886_v11  ;;  %v11997_v18 = vld [vmem:[#allocation14 + $0x528] sm:$0xf0]  ;;  %v10552_v31 = vld [vmem:[#allocation14 + $0x674] sm:$0xf0]  ;;  %v11990_v11 = vld [vmem:[#allocation14 + $0x4f0] sm:$0xf0] }
 0x2f8   :  { %6578 = vmatpush.bf16.msra.mxu0 %v9883_v26  ;;  %v11951_v0 = vld [vmem:[#allocation14 + $0x3bc] sm:$0xf]  ;;  %v10723_v25 = vor.u32 %v12077_v1, %v10720_v7  ;;  %v10391_v1 = vor.u32 %v11997_v18, %v10390_v52  ;;  %v12028_v12 = vld [vmem:[#allocation14 + $0x624] sm:$0xf]  ;;  %v10446_v18 = vld [vmem:[#allocation14 + $0x580] sm:$0xf] }
 0x2f9   :  { %6545 = vmatmul.bf16.vlgmr.msrb.gmra.mxu1 %v12882_v10 }
 0x2fa   :  { %v4226_v26 = vpop.f32.mrf.mxu3  ;;  %6641 = vmatpush.bf16.msrb.mxu1 %v11059_v3  ;;  %v10219_v3 = vor.u32 %v11951_v0, %v10216_v62 }
 0x2fb   :  { %6605 = vmatpush.bf16.msra.mxu2 %v10303_v54  ;;  %6566 = vmatpush.bf16.msrb.mxu3 %v10971_v24  ;;  %v12070_v26 = vld [vmem:[#allocation14 + $0x774] sm:$0xf]  ;;  %v12063_v24 = vld [vmem:[#allocation14 + $0x73c] sm:$0xf] }
 0x2fc   :  { %6579 = vmatpush.bf16.msra.mxu0 %v9855_v55  ;;  %v12147_v55 = vld [vmem:[#allocation14 + $0x9dc] sm:$0xf]  ;;  %v10695_v8 = vor.u32 %v12070_v26, %v10692_v9  ;;  %v10530_v26 = vld [vmem:[#allocation14 + $0x628] sm:$0xf]  ;;  %v12021_v9 = vld [vmem:[#allocation14 + $0x5ec] sm:$0xf] }
 0x2fd   :  { %v4265_v27 = vpop.f32.mrf.mxu2  ;;  %v11003_v39 = vor.u32 %v12147_v55, %v11000_v36  ;;  %v12049_v36 = vld [vmem:[#allocation14 + $0x6cc] sm:$0xf] }
 0x2fe   :  { %6642 = vmatpush.bf16.msrb.mxu1 %v11031_v30  ;;  %v10191_v30 = vor.u32 %v11944_v19, %v10188_v20  ;;  %v10858_v27 = vld [vmem:[#allocation14 + $0x8c0] sm:$0xf]  ;;  %v10611_v54 = vor.u32 %v12049_v36, %v10608_v41  ;;  %v10306_v36 = vld [vmem:[#allocation14 + $0x468] sm:$0xf]  ;;  %v10502_v41 = vld [vmem:[#allocation14 + $0x5f0] sm:$0xf] }
 0x2ff   :  { %6567 = vmatpush.bf16.msrb.mxu3 %v10943_v17 }
 0x300   :  { %6580 = vmatpush.bf16.msra.mxu0 %v9827_v16  ;;  %v11965_v16 = vld [vmem:[#allocation14 + $0x42c] sm:$0xf] }
 0x301   :  { %v10275_v21 = vor.u32 %v11965_v16, %v10272_v44  ;;  %v10860_v16 = vld [vmem:[#allocation14 + $0x8dc] sm:$0xf0] }
 0x302   :  { %6643 = vmatpush.bf16.msrb.mxu1 %v11003_v39  ;;  %v12112_v39 = vld [vmem:[#allocation14 + $0x8c4] sm:$0xf] }
 0x303   :  { %6606 = vmatpush.bf16.msra.mxu2 %v10275_v21  ;;  %6568 = vmatpush.bf16.msrb.mxu3 %v10915_v57  ;;  %v12042_v21 = vld [vmem:[#allocation14 + $0x694] sm:$0xf]  ;;  %v10863_v49 = vor.u32 %v12112_v39, %v10860_v16  ;;  %v10555_v57 = vor.u32 %v12035_v56, %v10552_v31  ;;  %v10468_v39 = vld [vmem:[#allocation14 + $0x5cc] sm:$0xf0]  ;;  %v12011_v56 = vld [vmem:[#allocation14 + $0x598] sm:$0xf0] }
 0x304   :  { %6581 = vmatpush.bf16.msra.mxu0 %v9799_v13  ;;  %v10779_v13 = vor.u32 %v12091_v45, %v10776_v22  ;;  %v10614_v45 = vld [vmem:[#allocation14 + $0x6d0] sm:$0xf]  ;;  %v12000_v31 = vld [vmem:[#allocation14 + $0x544] sm:$0xf] }
 0x305   :  { %v10580_v22 = vld [vmem:[#allocation14 + $0x6ac] sm:$0xf0]  ;;  %v10615_v51 = vor.u32 %v12053_v32, %v10614_v45  ;;  %v10474_v32 = vld [vmem:[#allocation14 + $0x5b8] sm:$0xf] }
 0x306   :  { %6644 = vmatpush.bf16.msrb.mxu1 %v10975_v33  ;;  %v10583_v17 = vor.u32 %v12042_v21, %v10580_v22  ;;  %v2760_v33 = vperm.slane %v12872_v4, 4  ;;  %v10278_v45 = vld [vmem:[#allocation14 + $0x430] sm:$0xf]  ;;  %v11969_v22 = vld [vmem:[#allocation14 + $0x448] sm:$0xf0] }
 0x307   :  { %6607 = vmatpush.bf16.msra.mxu2 %v10247_v37  ;;  %6569 = vmatpush.bf16.msrb.mxu3 %v10887_v14  ;;  %v12046_v37 = vld [vmem:[#allocation14 + $0x6b0] sm:$0xf0]  ;;  %v10524_v14 = vld [vmem:[#allocation14 + $0x63c] sm:$0xf0] }
 0x308   :  { %6582 = vmatpush.bf16.msra.mxu0 %v9771_v2  ;;  %v12126_v2 = vld [vmem:[#allocation14 + $0x934] sm:$0xf]  ;;  %v10587_v62 = vor.u32 %v12046_v37, %v10586_v60  ;;  %v10279_v60 = vor.u32 %v11969_v22, %v10278_v45  ;;  %v2761_v22 = vperm.slane %v12872_v4, 5 }
 0x309   :  { %6597 = vmatmul.bf16.vlgmr.msra.gmra.mxu1 %v12854_v48  ;;  %v10919_v6 = vor.u32 %v12126_v2, %v10916_v47  ;;  %v10362_v2 = vld [vmem:[#allocation14 + $0x4d8] sm:$0xf]  ;;  %v10558_v47 = vld [vmem:[#allocation14 + $0x660] sm:$0xf]  ;;  %v11962_v37 = vld [vmem:[#allocation14 + $0x410] sm:$0xf0] }
 0x30a   :  { %6645 = vmatpush.bf16.msrb.mxu1 %v10947_v61  ;;  %v10363_v20 = vor.u32 %v11990_v11, %v10362_v2  ;;  %v10447_v2 = vor.u32 %v12011_v56, %v10446_v18  ;;  %v12913_v18 = vld [vmem:[#allocation16] sm:$0xff] }
 0x30b   :  { %6608 = vmatpush.bf16.msra.mxu2 %v10219_v3  ;;  %v12039_v3 = vld [vmem:[#allocation14 + $0x678] sm:$0xf0] }
 0x30c   :  { %6583 = vmatpush.bf16.msra.mxu0 %v9743_v53  ;;  %v12886_v35 = vpop.f32.mrf.mxu0  ;;  %v12119_v53 = vld [vmem:[#allocation14 + $0x8fc] sm:$0xf]  ;;  %v10559_v19 = vor.u32 %v12039_v3, %v10558_v47  ;;  %v10418_v3 = vld [vmem:[#allocation14 + $0x548] sm:$0xf] }
 0x30d   :  { %v10891_v38 = vor.u32 %v12119_v53, %v10888_v28  ;;  %v4238_v7 = vadd.f32 %v12886_v35, %v2760_v33  ;;  %v12032_v53 = vld [vmem:[#allocation14 + $0x640] sm:$0xf0] }
 0x30e   :  { %6646 = vmatpush.bf16.msrb.mxu1 %v10919_v6  ;;  %v10527_v6 = vor.u32 %v12028_v12, %v10524_v14  ;;  %v10222_v12 = vld [vmem:[#allocation14 + $0x3c0] sm:$0xf]  ;;  %v11955_v14 = vld [vmem:[#allocation14 + $0x3d8] sm:$0xf0] }
 0x30f   :  { %6584 = vmatmul.bf16.vlgmr.msra.gmra.mxu0 %v12840_v63  ;;  %v12889_v15 = vpop.f32.mrf.mxu1  ;;  %6609 = vmatpush.bf16.msra.mxu2 %v10191_v30  ;;  %v4251_v28 = vadd.f32 %v12876_v43, %v4238_v7  ;;  %v11983_v30 = vld [vmem:[#allocation14 + $0x4b8] sm:$0xf0]  ;;  %v12004_v7 = vld [vmem:[#allocation14 + $0x560] sm:$0xf0] }
 0x310   :  { %6628 = vmatpush.bf16.msrb.mxu0 %v10835_v58  ;;  %v12115_v58 = vld [vmem:[#allocation14 + $0x8d8] sm:$0xf0] }
 0x311   :  { %v10859_v55 = vor.u32 %v12115_v58, %v10858_v27  ;;  %v10496_v27 = vld [vmem:[#allocation14 + $0x604] sm:$0xf0]  ;;  %v10531_v58 = vor.u32 %v12032_v53, %v10530_v26  ;;  %v11871_v26 = vld [vmem:[#allocation14 + $0x138] sm:$0xf0]  ;;  %v10419_v53 = vor.u32 %v12004_v7, %v10418_v3  ;;  %v10166_v7 = vld [vmem:[#allocation14 + $0x350] sm:$0xf] }
 0x312   :  { %v12891_v40 = vpop.f32.mrf.mxu3  ;;  %6647 = vmatpush.bf16.msrb.mxu1 %v10891_v38  ;;  %v10499_v35 = vor.u32 %v12021_v9, %v10496_v27  ;;  %v12025_v38 = vld [vmem:[#allocation14 + $0x608] sm:$0xf0]  ;;  %v11948_v9 = vld [vmem:[#allocation14 + $0x3a0] sm:$0xf0] }
 0x313   :  { %6570 = vmatpush.bf16.msrb.mxu3 %v10859_v55  ;;  %v10503_v43 = vor.u32 %v12025_v38, %v10502_v41 }
 0x314   :  { %6629 = vmatpush.bf16.msrb.mxu0 %v10807_v46  ;;  %v12893_v44 = vpop.f32.mrf.mxu2  ;;  %v10664_v46 = vld [vmem:[#allocation14 + $0x754] sm:$0xf0]  ;;  %v4239_v34 = vpop.f32.mrf.mxu0 }
 0x315   :  { %v10667_v42 = vor.u32 %v12063_v24, %v10664_v46  ;;  %v12014_v24 = vld [vmem:[#allocation14 + $0x5b4] sm:$0xf] }
 0x316   :  { %6648 = vmatpush.bf16.msrb.mxu1 %v10863_v49  ;;  %v10471_v16 = vor.u32 %v12014_v24, %v10468_v39  ;;  %v12018_v34 = vld [vmem:[#allocation14 + $0x5d0] sm:$0xf0]  ;;  %v10440_v49 = vld [vmem:[#allocation14 + $0x594] sm:$0xf0]  ;;  %v11875_v39 = vld [vmem:[#allocation14 + $0x15c] sm:$0xf] }
 0x317   :  { %6615 = vmatpush.bf16.msra.mxu3 %v10611_v54  ;;  %v4304_v59 = vpop.f32.mrf.mxu1  ;;  %v4264_v54 = vadd.f32 %v12880_v5, %v4251_v28  ;;  %v10475_v52 = vor.u32 %v12018_v34, %v10474_v32  ;;  %v10223_v28 = vor.u32 %v11955_v14, %v10222_v12  ;;  %v11868_v34 = vld [vmem:[#allocation14 + $0x124] sm:$0xf] }
 0x318   :  { %6630 = vmatpush.bf16.msrb.mxu0 %v10779_v13  ;;  %v10636_v13 = vld [vmem:[#allocation14 + $0x71c] sm:$0xf0]  ;;  %v12007_v59 = vld [vmem:[#allocation14 + $0x57c] sm:$0xf] }
 0x319   :  { %v10639_v0 = vor.u32 %v12056_v50, %v10636_v13  ;;  %v4277_v21 = vadd.f32 %v12891_v40, %v4264_v54  ;;  %v10443_v5 = vor.u32 %v12007_v59, %v10440_v49  ;;  %v9942_v50 = vld [vmem:[#allocation14 + $0x190] sm:$0xf]  ;;  %v11885_v13 = vld [vmem:[#allocation14 + $0x1a8] sm:$0xf0]  ;;  %v9802_v59 = vld [vmem:[#allocation14 + $0x78] sm:$0xf] }
 0x31a   :  { %v4278_v61 = vpop.f32.mrf.mxu3  ;;  %6693 = vmatpush.bf16.msra.mxu1 %v10615_v51  ;;  %v10250_v51 = vld [vmem:[#allocation14 + $0x3f8] sm:$0xf]  ;;  %v11850_v49 = vld [vmem:[#allocation14 + $0x90] sm:$0xf0] }
 0x31b   :  { %6616 = vmatpush.bf16.msra.mxu3 %v10583_v17  ;;  %v9943_v61 = vor.u32 %v11885_v13, %v9942_v50  ;;  %v10251_v47 = vor.u32 %v11962_v37, %v10250_v51  ;;  %v11861_v50 = vld [vmem:[#allocation14 + $0xec] sm:$0xf]  ;;  %v9860_v13 = vld [vmem:[#allocation14 + $0x104] sm:$0xf0]  ;;  %v4303_v51 = vadd.f32 %v12889_v15, %v2761_v22  ;;  %v4756_v15 = vperm.slane %v12913_v18, 0 }
 0x31c   :  { %6631 = vmatpush.bf16.msrb.mxu0 %v10751_v23  ;;  %v4317_v23 = vpop.f32.mrf.mxu2  ;;  %v9863_v4 = vor.u32 %v11861_v50, %v9860_v13  ;;  %v12106_v50 = vld [vmem:[#allocation14 + $0x894] sm:$0xf]  ;;  %v10840_v13 = vld [vmem:[#allocation14 + $0x8ac] sm:$0xf0] }
 0x31d   :  { %v9914_v23 = vld [vmem:[#allocation14 + $0x158] sm:$0xf]  ;;  %v4316_v37 = vadd.f32 %v12893_v44, %v4303_v51  ;;  %v10754_v51 = vld [vmem:[#allocation14 + $0x7e8] sm:$0xf] }
 0x31e   :  { %6694 = vmatpush.bf16.msra.mxu1 %v10587_v62 }
 0x31f   :  { %6617 = vmatpush.bf16.msra.mxu3 %v10555_v57  ;;  %v10412_v57 = vld [vmem:[#allocation14 + $0x55c] sm:$0xf0] }
 0x320   :  { %6632 = vmatpush.bf16.msrb.mxu0 %v10723_v25  ;;  %v10334_v25 = vld [vmem:[#allocation14 + $0x4a0] sm:$0xf] }
 0x321   :  { %v10335_v55 = vor.u32 %v11983_v30, %v10334_v25  ;;  %v9886_v25 = vld [vmem:[#allocation14 + $0x120] sm:$0xf]  ;;  %v10194_v30 = vld [vmem:[#allocation14 + $0x388] sm:$0xf] }
 0x322   :  { %6695 = vmatpush.bf16.msra.mxu1 %v10559_v19  ;;  %v9887_v27 = vor.u32 %v11871_v26, %v9886_v25  ;;  %v10195_v41 = vor.u32 %v11948_v9, %v10194_v30  ;;  %v10168_v25 = vld [vmem:[#allocation14 + $0x36c] sm:$0xf0]  ;;  %v12102_v30 = vld [vmem:[#allocation14 + $0x870] sm:$0xf0] }
 0x323   :  { %6618 = vmatpush.bf16.msra.mxu3 %v10527_v6 }
 0x324   :  { %6633 = vmatpush.bf16.msrb.mxu0 %v10695_v8  ;;  %v11976_v8 = vld [vmem:[#allocation14 + $0x480] sm:$0xf0] }
 0x325   :  { %v10307_v46 = vor.u32 %v11976_v8, %v10306_v36  ;;  %v11864_v36 = vld [vmem:[#allocation14 + $0x100] sm:$0xf0] }
 0x326   :  { %6696 = vmatpush.bf16.msra.mxu1 %v10531_v58  ;;  %v9944_v58 = vld [vmem:[#allocation14 + $0x1ac] sm:$0xf0] }
 0x327   :  { %6619 = vmatpush.bf16.msra.mxu3 %v10499_v35  ;;  %v11882_v35 = vld [vmem:[#allocation14 + $0x194] sm:$0xf] }
 0x328   :  { %6634 = vmatpush.bf16.msrb.mxu0 %v10667_v42  ;;  %v9947_v54 = vor.u32 %v11882_v35, %v9944_v58  ;;  %v10138_v58 = vld [vmem:[#allocation14 + $0x318] sm:$0xf] }
 0x32a   :  { %6697 = vmatpush.bf16.msra.mxu1 %v10503_v43  ;;  %v9830_v43 = vld [vmem:[#allocation14 + $0xb0] sm:$0xf] }
 0x32b   :  { %6620 = vmatpush.bf16.msra.mxu3 %v10471_v16  ;;  %v9916_v16 = vld [vmem:[#allocation14 + $0x174] sm:$0xf0] }
 0x32c   :  { %6635 = vmatpush.bf16.msrb.mxu0 %v10639_v0  ;;  %v4289_v17 = vpop.f32.mrf.mxu0  ;;  %v10415_v0 = vor.u32 %v12000_v31, %v10412_v57  ;;  %v9919_v45 = vor.u32 %v11875_v39, %v9916_v16  ;;  %v9832_v31 = vld [vmem:[#allocation14 + $0xcc] sm:$0xf0]  ;;  %v11931_v39 = vld [vmem:[#allocation14 + $0x31c] sm:$0xf]  ;;  %v10140_v16 = vld [vmem:[#allocation14 + $0x334] sm:$0xf0] }
 0x32d   :  { %v4290_v33 = vadd.f32 %v4289_v17, %v4277_v21  ;;  %v9888_v21 = vld [vmem:[#allocation14 + $0x13c] sm:$0xf0]  ;;  %v10143_v22 = vor.u32 %v11931_v39, %v10140_v16 }
 0x32e   :  { %v12900_v42 = vpop.f32.mrf.mxu1  ;;  %6698 = vmatpush.bf16.msra.mxu1 %v10475_v52  ;;  %v9891_v17 = vor.u32 %v11868_v34, %v9888_v21  ;;  %v9774_v52 = vld [vmem:[#allocation14 + $0x40] sm:$0xf]  ;;  %v11927_v21 = vld [vmem:[#allocation14 + $0x2f8] sm:$0xf0] }
 0x32f   :  { %v4362_v40 = vmax.f32 %v4290_v33, 0.0  ;;  %6621 = vmatpush.bf16.msra.mxu3 %v10443_v5  ;;  %v9803_v5 = vor.u32 %v11850_v49, %v9802_v59  ;;  %v10110_v34 = vld [vmem:[#allocation14 + $0x2e0] sm:$0xf]  ;;  %v11833_v59 = vld [vmem:[#allocation14 + $0xc] sm:$0xf] }
 0x330   :  { %6680 = vmatpush.bf16.msra.mxu0 %v10391_v1  ;;  %v11878_v1 = vld [vmem:[#allocation14 + $0x170] sm:$0xf0]  ;;  %v9748_v49 = vld [vmem:[#allocation14 + $0x24] sm:$0xf0] }
 0x331   :  { %v12902_v62 = vpack.c.bf16 %v4362_v40, %v4362_v40  ;;  %v9915_v19 = vor.u32 %v11878_v1, %v9914_v23  ;;  %v11854_v40 = vld [vmem:[#allocation14 + $0xb4] sm:$0xf]  ;;  %v10838_v1 = vld [vmem:[#allocation14 + $0x890] sm:$0xf] }
 0x332   :  { %v12904_v11 = vpop.f32.mrf.mxu3  ;;  %6699 = vmatpush.bf16.msra.mxu1 %v10447_v2  ;;  %v12109_v2 = vld [vmem:[#allocation14 + $0x8a8] sm:$0xf0]  ;;  %v9835_v44 = vor.u32 %v11854_v40, %v9832_v31  ;;  %v10843_v40 = vor.u32 %v12106_v50, %v10840_v13  ;;  %v10082_v31 = vld [vmem:[#allocation14 + $0x2a8] sm:$0xf]  ;;  %v11994_v13 = vld [vmem:[#allocation14 + $0x514] sm:$0xf] }
 0x333   :  { %6558 = vmatmul.bf16.vlgmr.msrb.gmra.mxu2 %v12902_v62  ;;  %6636 = vmatmul.bf16.vlgmr.msrb.gmra.mxu0 %v12902_v62  ;;  %v4329_v57 = vadd.f32 %v12904_v11, %v4316_v37  ;;  %v10839_v14 = vor.u32 %v12109_v2, %v10838_v1  ;;  %v11938_v11 = vld [vmem:[#allocation14 + $0x354] sm:$0xf]  ;;  %v10111_v37 = vor.u32 %v11927_v21, %v10110_v34  ;;  %v12099_v1 = vld [vmem:[#allocation14 + $0x85c] sm:$0xf]  ;;  %v10812_v2 = vld [vmem:[#allocation14 + $0x874] sm:$0xf0] }
 0x334   :  { %6681 = vmatpush.bf16.msra.mxu0 %v10363_v20  ;;  %6654 = vmatpush.bf16.msrb.mxu2 %v9943_v61  ;;  %v4291_v6 = vpop.f32.mrf.mxu0  ;;  %v9746_v61 = vld [vmem:[#allocation14 + $0x8] sm:$0xf]  ;;  %v10000_v21 = vld [vmem:[#allocation14 + $0x21c] sm:$0xf0] }
 0x335   :  { %6622 = vmatpush.bf16.msra.mxu3 %v10415_v0  ;;  %v11836_v0 = vld [vmem:[#allocation14 + $0x20] sm:$0xf0]  ;;  %v11941_v6 = vld [vmem:[#allocation14 + $0x368] sm:$0xf0] }
 0x336   :  { %v4356_v20 = vpop.f32.mrf.mxu1  ;;  %6700 = vmatpush.bf16.msra.mxu1 %v10419_v53  ;;  %v9747_v3 = vor.u32 %v11836_v0, %v9746_v61  ;;  %v11917_v61 = vld [vmem:[#allocation14 + $0x2ac] sm:$0xf] }
 0x337   :  { %v9804_v20 = vld [vmem:[#allocation14 + $0x94] sm:$0xf0] }
 0x338   :  { %6682 = vmatpush.bf16.msra.mxu0 %v10335_v55  ;;  %6655 = vmatpush.bf16.msrb.mxu2 %v9915_v19  ;;  %v9858_v55 = vld [vmem:[#allocation14 + $0xe8] sm:$0xf]  ;;  %v6507_v24 = vpop.f32.mrf.mxu2  ;;  %v11847_v19 = vld [vmem:[#allocation14 + $0x7c] sm:$0xf] }
 0x339   :  { %v9859_v8 = vor.u32 %v11864_v36, %v9858_v55  ;;  %v6508_v26 = vadd.f32 %v6507_v24, %v4756_v15  ;;  %v9807_v35 = vor.u32 %v11847_v19, %v9804_v20  ;;  %v10171_v36 = vor.u32 %v11938_v11, %v10168_v25  ;;  %v10726_v15 = vld [vmem:[#allocation14 + $0x7b0] sm:$0xf]  ;;  %v12092_v11 = vld [vmem:[#allocation14 + $0x824] sm:$0xf]  ;;  %v10784_v25 = vld [vmem:[#allocation14 + $0x83c] sm:$0xf0] }
 0x33a   :  { %v4330_v38 = vpop.f32.mrf.mxu3  ;;  %v10056_v20 = vld [vmem:[#allocation14 + $0x28c] sm:$0xf0] }
 0x33b   :  { %v11840_v38 = vld [vmem:[#allocation14 + $0x44] sm:$0xf] }
 0x33c   :  { %6683 = vmatpush.bf16.msra.mxu0 %v10307_v46  ;;  %6656 = vmatpush.bf16.msrb.mxu2 %v9887_v27  ;;  %v11857_v46 = vld [vmem:[#allocation14 + $0xc8] sm:$0xf0]  ;;  %v10167_v27 = vor.u32 %v11941_v6, %v10166_v7  ;;  %v10815_v7 = vor.u32 %v12099_v1, %v10812_v2  ;;  %v11910_v6 = vld [vmem:[#allocation14 + $0x274] sm:$0xf] }
 0x33d   :  { %v9831_v32 = vor.u32 %v11857_v46, %v9830_v43  ;;  %v10782_v43 = vld [vmem:[#allocation14 + $0x820] sm:$0xf]  ;;  %v12095_v46 = vld [vmem:[#allocation14 + $0x838] sm:$0xf0]  ;;  %v12162_v1 = vld [vmem:[#allocation14 + $0xa54] sm:$0xf] }
 0x340   :  { %6684 = vmatpush.bf16.msra.mxu0 %v10279_v60  ;;  %6657 = vmatpush.bf16.msrb.mxu2 %v9859_v8  ;;  %v6509_v33 = vpop.f32.mrf.mxu2  ;;  %v11843_v60 = vld [vmem:[#allocation14 + $0x58] sm:$0xf0] }
 0x341   :  { %v9775_v56 = vor.u32 %v11843_v60, %v9774_v52  ;;  %v10112_v33 = vld [vmem:[#allocation14 + $0x2fc] sm:$0xf0]  ;;  %v12088_v52 = vld [vmem:[#allocation14 + $0x800] sm:$0xf0] }
 0x342   :  { %v10755_v0 = vor.u32 %v12088_v52, %v10754_v51  ;;  %v10392_v51 = vld [vmem:[#allocation14 + $0x52c] sm:$0xf0] }
 0x343   :  { %6610 = vmatmul.bf16.vlgmr.msra.gmra.mxu2 %v12869_v29 }
 0x344   :  { %6685 = vmatpush.bf16.msra.mxu0 %v10251_v47  ;;  %6658 = vmatpush.bf16.msrb.mxu2 %v9831_v32 }
 0x348   :  { %6686 = vmatpush.bf16.msra.mxu0 %v10223_v28  ;;  %6659 = vmatpush.bf16.msrb.mxu2 %v9803_v5  ;;  %v10810_v28 = vld [vmem:[#allocation14 + $0x858] sm:$0xf]  ;;  %v10783_v5 = vor.u32 %v12095_v46, %v10782_v43  ;;  %v9998_v46 = vld [vmem:[#allocation14 + $0x200] sm:$0xf] }
 0x349   :  { %v10811_v24 = vor.u32 %v12102_v30, %v10810_v28  ;;  %v10059_v30 = vor.u32 %v11910_v6, %v10056_v20  ;;  %v12158_v6 = vld [vmem:[#allocation14 + $0xa30] sm:$0xf0] }
 0x34c   :  { %6687 = vmatpush.bf16.msra.mxu0 %v10195_v41  ;;  %v4341_v23 = vpop.f32.mrf.mxu0  ;;  %6660 = vmatpush.bf16.msrb.mxu2 %v9775_v56  ;;  %v11934_v41 = vld [vmem:[#allocation14 + $0x330] sm:$0xf0] }
 0x34d   :  { %v4342_v47 = vadd.f32 %v4341_v23, %v4329_v57  ;;  %v11920_v57 = vld [vmem:[#allocation14 + $0x2c0] sm:$0xf0]  ;;  %v10084_v23 = vld [vmem:[#allocation14 + $0x2c4] sm:$0xf0] }
 0x34f   :  { %6688 = vmatmul.bf16.vlgmr.msra.gmra.mxu0 %v12869_v29  ;;  %v4355_v12 = vadd.f32 %v12900_v42, %v4342_v47  ;;  %v12081_v47 = vld [vmem:[#allocation14 + $0x7c8] sm:$0xf0] }
 0x350   :  { %6732 = vmatpush.bf16.msrb.mxu0 %v9947_v54  ;;  %6661 = vmatpush.bf16.msrb.mxu2 %v9747_v3  ;;  %v9776_v54 = vld [vmem:[#allocation14 + $0x5c] sm:$0xf0]  ;;  %v10087_v3 = vor.u32 %v11917_v61, %v10084_v23  ;;  %v10727_v19 = vor.u32 %v12081_v47, %v10726_v15  ;;  %v12165_v61 = vld [vmem:[#allocation14 + $0xa68] sm:$0xf0]  ;;  %v12071_v23 = vld [vmem:[#allocation14 + $0x77c] sm:$0xf] }
 0x351   :  { %v4363_v53 = vmax.f32 %v4355_v12, 0.0  ;;  %v9779_v32 = vor.u32 %v11840_v38, %v9776_v54  ;;  %v10054_v12 = vld [vmem:[#allocation14 + $0x270] sm:$0xf]  ;;  %v12085_v38 = vld [vmem:[#allocation14 + $0x7ec] sm:$0xf] }
 0x352   :  { %v6520_v9 = vpop.f32.mrf.mxu3  ;;  %v10756_v54 = vld [vmem:[#allocation14 + $0x804] sm:$0xf0]  ;;  %v11064_v15 = vld [vmem:[#allocation14 + $0xa6c] sm:$0xf0]  ;;  %v11987_v47 = vld [vmem:[#allocation14 + $0x4dc] sm:$0xf] }
 0x353   :  { %v12918_v55 = vpack.c.bf16 %v4363_v53, %v4363_v53  ;;  %v12920_v42 = vadd.f32 %v6520_v9, %v6508_v26  ;;  %6662 = vmatmul.bf16.vlgmr.msrb.gmra.mxu2 %v12840_v63  ;;  %v10698_v26 = vld [vmem:[#allocation14 + $0x778] sm:$0xf]  ;;  %v12074_v53 = vld [vmem:[#allocation14 + $0x790] sm:$0xf0]  ;;  %v10787_v9 = vor.u32 %v12092_v11, %v10784_v25  ;;  %v10759_v43 = vor.u32 %v12085_v38, %v10756_v54  ;;  %v12064_v25 = vld [vmem:[#allocation14 + $0x744] sm:$0xf] }
 0x354   :  { %6733 = vmatpush.bf16.msrb.mxu0 %v9919_v45  ;;  %6706 = vmatpush.bf16.msra.mxu2 %v10839_v14  ;;  %v4343_v8 = vpop.f32.mrf.mxu0  ;;  %v10139_v45 = vor.u32 %v11934_v41, %v10138_v58  ;;  %v11913_v14 = vld [vmem:[#allocation14 + $0x288] sm:$0xf0]  ;;  %v11903_v58 = vld [vmem:[#allocation14 + $0x23c] sm:$0xf]  ;;  %v10028_v41 = vld [vmem:[#allocation14 + $0x254] sm:$0xf0]  ;;  %v11067_v20 = vor.u32 %v12162_v1, %v11064_v15 }
 0x355   :  { %6571 = vmatmul.bf16.vlgmr.msrb.gmra.mxu3 %v12918_v55  ;;  %6649 = vmatmul.bf16.vlgmr.msrb.gmra.mxu1 %v12918_v55  ;;  %v10055_v28 = vor.u32 %v11913_v14, %v10054_v12  ;;  %v10670_v8 = vld [vmem:[#allocation14 + $0x740] sm:$0xf]  ;;  %v10031_v16 = vor.u32 %v11903_v58, %v10028_v41  ;;  %v11034_v14 = vld [vmem:[#allocation14 + $0xa18] sm:$0xf]  ;;  %v12057_v54 = vld [vmem:[#allocation14 + $0x70c] sm:$0xf] }
 0x356   :  { %6667 = vmatpush.bf16.msrb.mxu3 %v10167_v27  ;;  %6745 = vmatpush.bf16.msrb.mxu1 %v10171_v36  ;;  %v10026_v27 = vld [vmem:[#allocation14 + $0x238] sm:$0xf]  ;;  %v10699_v36 = vor.u32 %v12074_v53, %v10698_v26  ;;  %v10672_v26 = vld [vmem:[#allocation14 + $0x75c] sm:$0xf0]  ;;  %v12155_v53 = vld [vmem:[#allocation14 + $0xa1c] sm:$0xf] }
 0x357   :  { %v11006_v58 = vld [vmem:[#allocation14 + $0x9e0] sm:$0xf]  ;;  %v11984_v1 = vld [vmem:[#allocation14 + $0x4c0] sm:$0xf0]  ;;  %v11959_v15 = vld [vmem:[#allocation14 + $0x3fc] sm:$0xf] }
 0x358   :  { %6734 = vmatpush.bf16.msrb.mxu0 %v9891_v17  ;;  %v11924_v17 = vld [vmem:[#allocation14 + $0x2e4] sm:$0xf]  ;;  %6707 = vmatpush.bf16.msra.mxu2 %v10811_v24  ;;  %v12067_v24 = vld [vmem:[#allocation14 + $0x758] sm:$0xf0] }
 0x359   :  { %v10115_v56 = vor.u32 %v11924_v17, %v10112_v33  ;;  %v10671_v34 = vor.u32 %v12067_v24, %v10670_v8  ;;  %v10642_v17 = vld [vmem:[#allocation14 + $0x708] sm:$0xf]  ;;  %v12148_v24 = vld [vmem:[#allocation14 + $0x9e4] sm:$0xf] }
 0x35a   :  { %6668 = vmatpush.bf16.msrb.mxu3 %v10139_v45  ;;  %v6522_v60 = vpop.f32.mrf.mxu3  ;;  %6746 = vmatpush.bf16.msrb.mxu1 %v10143_v22  ;;  %v11899_v45 = vld [vmem:[#allocation14 + $0x218] sm:$0xf0]  ;;  %v12078_v22 = vld [vmem:[#allocation14 + $0x7b4] sm:$0xf]  ;;  %v10644_v8 = vld [vmem:[#allocation14 + $0x724] sm:$0xf0] }
 0x35b   :  { %v9999_v50 = vor.u32 %v11899_v45, %v9998_v46  ;;  %v11973_v46 = vld [vmem:[#allocation14 + $0x46c] sm:$0xf]  ;;  %v10308_v45 = vld [vmem:[#allocation14 + $0x484] sm:$0xf0] }
 0x35c   :  { %6735 = vmatpush.bf16.msrb.mxu0 %v9863_v4  ;;  %v9751_v4 = vor.u32 %v11833_v59, %v9748_v49  ;;  %6708 = vmatpush.bf16.msra.mxu2 %v10783_v5  ;;  %v10728_v59 = vld [vmem:[#allocation14 + $0x7cc] sm:$0xf0]  ;;  %v12060_v5 = vld [vmem:[#allocation14 + $0x720] sm:$0xf0] }
 0x35d   :  { %v10731_v60 = vor.u32 %v12078_v22, %v10728_v59  ;;  %v10978_v59 = vld [vmem:[#allocation14 + $0x9a8] sm:$0xf] }
 0x35e   :  { %6669 = vmatpush.bf16.msrb.mxu3 %v10111_v37  ;;  %6747 = vmatpush.bf16.msrb.mxu1 %v10115_v56  ;;  %v9970_v37 = vld [vmem:[#allocation14 + $0x1c8] sm:$0xf]  ;;  %v11889_v56 = vld [vmem:[#allocation14 + $0x1cc] sm:$0xf] }
 0x360   :  { %6736 = vmatpush.bf16.msrb.mxu0 %v9835_v44  ;;  %v10083_v44 = vor.u32 %v11920_v57, %v10082_v31  ;;  %6709 = vmatpush.bf16.msra.mxu2 %v10755_v0  ;;  %v9972_v31 = vld [vmem:[#allocation14 + $0x1e4] sm:$0xf0]  ;;  %v11062_v57 = vld [vmem:[#allocation14 + $0xa50] sm:$0xf]  ;;  %v10395_v0 = vor.u32 %v11994_v13, %v10392_v51  ;;  %v10370_v13 = vld [vmem:[#allocation14 + $0x4e0] sm:$0xf] }
 0x361   :  { %v11991_v51 = vld [vmem:[#allocation14 + $0x4f8] sm:$0xf0] }
 0x362   :  { %6670 = vmatpush.bf16.msrb.mxu3 %v10083_v44  ;;  %6748 = vmatpush.bf16.msrb.mxu1 %v10087_v3  ;;  %v10364_v44 = vld [vmem:[#allocation14 + $0x4f4] sm:$0xf0]  ;;  %v9975_v3 = vor.u32 %v11889_v56, %v9972_v31  ;;  %v10371_v56 = vor.u32 %v11991_v51, %v10370_v13  ;;  %v12137_v31 = vld [vmem:[#allocation14 + $0x988] sm:$0xf0]  ;;  %v10616_v13 = vld [vmem:[#allocation14 + $0x6ec] sm:$0xf0] }
 0x363   :  { %v10367_v11 = vor.u32 %v11987_v47, %v10364_v44  ;;  %v10252_v47 = vld [vmem:[#allocation14 + $0x414] sm:$0xf0]  ;;  %v10258_v51 = vld [vmem:[#allocation14 + $0x400] sm:$0xf] }
 0x364   :  { %6737 = vmatpush.bf16.msrb.mxu0 %v9807_v35  ;;  %v11906_v35 = vld [vmem:[#allocation14 + $0x250] sm:$0xf0]  ;;  %6710 = vmatpush.bf16.msra.mxu2 %v10727_v19 }
 0x365   :  { %6623 = vmatmul.bf16.vlgmr.msra.gmra.mxu3 %v12882_v10  ;;  %6701 = vmatmul.bf16.vlgmr.msra.gmra.mxu1 %v12882_v10  ;;  %v10027_v39 = vor.u32 %v11906_v35, %v10026_v27  ;;  %v11035_v27 = vor.u32 %v12158_v6, %v11034_v14  ;;  %v10675_v35 = vor.u32 %v12064_v25, %v10672_v26  ;;  %v12130_v14 = vld [vmem:[#allocation14 + $0x950] sm:$0xf0]  ;;  %v12127_v6 = vld [vmem:[#allocation14 + $0x93c] sm:$0xf]  ;;  %v11977_v25 = vld [vmem:[#allocation14 + $0x488] sm:$0xf0] }
 0x366   :  { %6671 = vmatpush.bf16.msrb.mxu3 %v10055_v28  ;;  %6749 = vmatpush.bf16.msrb.mxu1 %v10059_v30  ;;  %v11036_v28 = vld [vmem:[#allocation14 + $0xa34] sm:$0xf0]  ;;  %v11980_v30 = vld [vmem:[#allocation14 + $0x4a4] sm:$0xf] }
 0x367   :  { %v11039_v41 = vor.u32 %v12155_v53, %v11036_v28  ;;  %v11952_v26 = vld [vmem:[#allocation14 + $0x3c4] sm:$0xf]  ;;  %v10224_v53 = vld [vmem:[#allocation14 + $0x3dc] sm:$0xf0] }
 0x368   :  { %6738 = vmatpush.bf16.msrb.mxu0 %v9779_v32  ;;  %v11896_v32 = vld [vmem:[#allocation14 + $0x204] sm:$0xf]  ;;  %6711 = vmatpush.bf16.msra.mxu2 %v10699_v36  ;;  %v12151_v36 = vld [vmem:[#allocation14 + $0x9f8] sm:$0xf0] }
 0x369   :  { %v10003_v52 = vor.u32 %v11896_v32, %v10000_v21  ;;  %v11007_v32 = vor.u32 %v12151_v36, %v11006_v58 }
 0x36a   :  { %6672 = vmatpush.bf16.msrb.mxu3 %v10027_v39  ;;  %6750 = vmatpush.bf16.msrb.mxu1 %v10031_v16  ;;  %v11008_v39 = vld [vmem:[#allocation14 + $0x9fc] sm:$0xf0]  ;;  %v10398_v16 = vld [vmem:[#allocation14 + $0x518] sm:$0xf] }
 0x36b   :  { %v11011_v21 = vor.u32 %v12148_v24, %v11008_v39  ;;  %v11945_v24 = vld [vmem:[#allocation14 + $0x38c] sm:$0xf]  ;;  %v10196_v39 = vld [vmem:[#allocation14 + $0x3a4] sm:$0xf0] }
 0x36c   :  { %6739 = vmatpush.bf16.msrb.mxu0 %v9751_v4  ;;  %v6533_v49 = vpop.f32.mrf.mxu0  ;;  %v11892_v4 = vld [vmem:[#allocation14 + $0x1e0] sm:$0xf0]  ;;  %6712 = vmatpush.bf16.msra.mxu2 %v10671_v34  ;;  %v10647_v34 = vor.u32 %v12057_v54, %v10644_v8  ;;  %v10286_v54 = vld [vmem:[#allocation14 + $0x438] sm:$0xf]  ;;  %v11970_v8 = vld [vmem:[#allocation14 + $0x450] sm:$0xf0] }
 0x36d   :  { %v12929_v33 = vadd.f32 %v6533_v49, %v12920_v42  ;;  %v10700_v42 = vld [vmem:[#allocation14 + $0x794] sm:$0xf0]  ;;  %v9971_v2 = vor.u32 %v11892_v4, %v9970_v37  ;;  %v12144_v49 = vld [vmem:[#allocation14 + $0x9c0] sm:$0xf0] }
 0x36e   :  { %6673 = vmatpush.bf16.msrb.mxu3 %v9999_v50  ;;  %6751 = vmatpush.bf16.msrb.mxu1 %v10003_v52  ;;  %v10703_v12 = vor.u32 %v12071_v23, %v10700_v42  ;;  %v10980_v50 = vld [vmem:[#allocation14 + $0x9c4] sm:$0xf0]  ;;  %v11966_v52 = vld [vmem:[#allocation14 + $0x434] sm:$0xf]  ;;  %v10979_v37 = vor.u32 %v12144_v49, %v10978_v59  ;;  %v10952_v23 = vld [vmem:[#allocation14 + $0x98c] sm:$0xf0]  ;;  %v10199_v59 = vor.u32 %v11945_v24, %v10196_v39 }
 0x36f   :  { %6740 = vmatmul.bf16.vlgmr.msrb.gmra.mxu0 %v12840_v63  ;;  %v10342_v42 = vld [vmem:[#allocation14 + $0x4a8] sm:$0xf]  ;;  %v12113_v49 = vld [vmem:[#allocation14 + $0x8cc] sm:$0xf] }
 0x370   :  { %6784 = vmatpush.bf16.msra.mxu0 %v10843_v40  ;;  %v10643_v40 = vor.u32 %v12060_v5, %v10642_v17  ;;  %v12141_v17 = vld [vmem:[#allocation14 + $0x9ac] sm:$0xf]  ;;  %v10311_v5 = vor.u32 %v11973_v46, %v10308_v45  ;;  %v11886_v46 = vld [vmem:[#allocation14 + $0x1b0] sm:$0xf0]  ;;  %v4757_v45 = vperm.slane %v12913_v18, 1 }
 0x371   :  { %v10983_v4 = vor.u32 %v12141_v17, %v10980_v50  ;;  %v10868_v17 = vld [vmem:[#allocation14 + $0x8e4] sm:$0xf0] }
 0x372   :  { %6713 = vmatpush.bf16.msra.mxu2 %v10643_v40  ;;  %6674 = vmatpush.bf16.msrb.mxu3 %v9971_v2  ;;  %v10950_v40 = vld [vmem:[#allocation14 + $0x970] sm:$0xf] }
 0x373   :  { %6752 = vmatpush.bf16.msrb.mxu1 %v9975_v3  ;;  %v10951_v44 = vor.u32 %v12137_v31, %v10950_v40  ;;  %v9922_v40 = vld [vmem:[#allocation14 + $0x160] sm:$0xf]  ;;  %v11879_v31 = vld [vmem:[#allocation14 + $0x178] sm:$0xf0] }
 0x374   :  { %6785 = vmatpush.bf16.msra.mxu0 %v10815_v7  ;;  %v11063_v7 = vor.u32 %v12165_v61, %v11062_v57  ;;  %v6535_v19 = vpop.f32.mrf.mxu0  ;;  %v12134_v57 = vld [vmem:[#allocation14 + $0x974] sm:$0xf] }
 0x375   :  { %6714 = vmatmul.bf16.vlgmr.msra.gmra.mxu2 %v12902_v62  ;;  %6675 = vmatmul.bf16.vlgmr.msrb.gmra.mxu3 %v12854_v48  ;;  %v10955_v3 = vor.u32 %v12134_v57, %v10952_v23  ;;  %v10255_v19 = vor.u32 %v11959_v15, %v10252_v47  ;;  %v10588_v47 = vld [vmem:[#allocation14 + $0x6b4] sm:$0xf0] }
 0x376   :  { %6758 = vmatpush.bf16.msrb.mxu2 %v10395_v0  ;;  %6719 = vmatpush.bf16.msra.mxu3 %v11063_v7  ;;  %v6546_v61 = vpop.f32.mrf.mxu1  ;;  %v10343_v7 = vor.u32 %v11984_v1, %v10342_v42  ;;  %v12043_v42 = vld [vmem:[#allocation14 + $0x69c] sm:$0xf] }
 0x377   :  { %6797 = vmatpush.bf16.msra.mxu1 %v11067_v20  ;;  %v12936_v2 = vadd.f32 %v6546_v61, %v12929_v33  ;;  %v10924_v20 = vld [vmem:[#allocation14 + $0x954] sm:$0xf0] }
 0x378   :  { %6786 = vmatpush.bf16.msra.mxu0 %v10787_v9  ;;  %v10336_v9 = vld [vmem:[#allocation14 + $0x4bc] sm:$0xf0]  ;;  %6753 = vmatmul.bf16.vlgmr.msrb.gmra.mxu1 %v12854_v48  ;;  %v10927_v28 = vor.u32 %v12127_v6, %v10924_v20  ;;  %v9894_v6 = vld [vmem:[#allocation14 + $0x128] sm:$0xf]  ;;  %v10591_v20 = vor.u32 %v12043_v42, %v10588_v47  ;;  %v11862_v47 = vld [vmem:[#allocation14 + $0xf4] sm:$0xf] }
 0x379   :  { %v10339_v38 = vor.u32 %v11980_v30, %v10336_v9  ;;  %v10894_v9 = vld [vmem:[#allocation14 + $0x900] sm:$0xf] }
 0x37a   :  { %6759 = vmatpush.bf16.msrb.mxu2 %v10367_v11  ;;  %6720 = vmatpush.bf16.msra.mxu3 %v11035_v27  ;;  %v10314_v11 = vld [vmem:[#allocation14 + $0x470] sm:$0xf]  ;;  %v12123_v27 = vld [vmem:[#allocation14 + $0x918] sm:$0xf0] }
 0x37b   :  { %6798 = vmatpush.bf16.msra.mxu1 %v11039_v41  ;;  %v10315_v30 = vor.u32 %v11977_v25, %v10314_v11  ;;  %v10227_v41 = vor.u32 %v11952_v26, %v10224_v53  ;;  %v12036_v25 = vld [vmem:[#allocation14 + $0x664] sm:$0xf]  ;;  %v10560_v26 = vld [vmem:[#allocation14 + $0x67c] sm:$0xf0] }
 0x37c   :  { %6787 = vmatpush.bf16.msra.mxu0 %v10759_v43  ;;  %v11998_v43 = vld [vmem:[#allocation14 + $0x530] sm:$0xf0] }
 0x37d   :  { %v10399_v22 = vor.u32 %v11998_v43, %v10398_v16  ;;  %v10895_v16 = vor.u32 %v12123_v27, %v10894_v9  ;;  %v9950_v43 = vld [vmem:[#allocation14 + $0x198] sm:$0xf]  ;;  %v12040_v27 = vld [vmem:[#allocation14 + $0x680] sm:$0xf0] }
 0x37e   :  { %6760 = vmatpush.bf16.msrb.mxu2 %v10339_v38  ;;  %6721 = vmatpush.bf16.msra.mxu3 %v11007_v32  ;;  %v6548_v36 = vpop.f32.mrf.mxu1  ;;  %v10896_v38 = vld [vmem:[#allocation14 + $0x91c] sm:$0xf0]  ;;  %v9951_v50 = vor.u32 %v11886_v46, %v9950_v43  ;;  %v10532_v43 = vld [vmem:[#allocation14 + $0x644] sm:$0xf0]  ;;  %v10538_v46 = vld [vmem:[#allocation14 + $0x630] sm:$0xf] }
 0x37f   :  { %6799 = vmatpush.bf16.msra.mxu1 %v11011_v21  ;;  %v10866_v21 = vld [vmem:[#allocation14 + $0x8c8] sm:$0xf]  ;;  %v9866_v36 = vld [vmem:[#allocation14 + $0xf0] sm:$0xf] }
 0x380   :  { %6788 = vmatpush.bf16.msra.mxu0 %v10731_v60  ;;  %v10280_v60 = vld [vmem:[#allocation14 + $0x44c] sm:$0xf0] }
 0x381   :  { %v10283_v0 = vor.u32 %v11966_v52, %v10280_v60  ;;  %v11963_v52 = vld [vmem:[#allocation14 + $0x418] sm:$0xf0] }
 0x382   :  { %6761 = vmatpush.bf16.msrb.mxu2 %v10311_v5  ;;  %6722 = vmatpush.bf16.msra.mxu3 %v10979_v37  ;;  %v12050_v5 = vld [vmem:[#allocation14 + $0x6d4] sm:$0xf]  ;;  %v10622_v37 = vld [vmem:[#allocation14 + $0x6d8] sm:$0xf]  ;;  %v10259_v23 = vor.u32 %v11963_v52, %v10258_v51 }
 0x383   :  { %6800 = vmatpush.bf16.msra.mxu1 %v10983_v4  ;;  %v12054_v4 = vld [vmem:[#allocation14 + $0x6f0] sm:$0xf0]  ;;  %v10510_v51 = vld [vmem:[#allocation14 + $0x5f8] sm:$0xf] }
 0x384   :  { %6789 = vmatpush.bf16.msra.mxu0 %v10703_v12  ;;  %v10922_v12 = vld [vmem:[#allocation14 + $0x938] sm:$0xf]  ;;  %v10623_v15 = vor.u32 %v12054_v4, %v10622_v37  ;;  %v11869_v37 = vld [vmem:[#allocation14 + $0x12c] sm:$0xf]  ;;  %v9896_v4 = vld [vmem:[#allocation14 + $0x144] sm:$0xf0] }
 0x385   :  { %v10923_v33 = vor.u32 %v12130_v14, %v10922_v12  ;;  %v10594_v12 = vld [vmem:[#allocation14 + $0x6a0] sm:$0xf]  ;;  %v12047_v14 = vld [vmem:[#allocation14 + $0x6b8] sm:$0xf0] }
 0x386   :  { %6762 = vmatpush.bf16.msrb.mxu2 %v10283_v0  ;;  %6723 = vmatpush.bf16.msra.mxu3 %v10951_v44  ;;  %v6598_v61 = vpop.f32.mrf.mxu1  ;;  %v10619_v0 = vor.u32 %v12050_v5, %v10616_v13  ;;  %v10230_v44 = vld [vmem:[#allocation14 + $0x3c8] sm:$0xf]  ;;  %v10595_v53 = vor.u32 %v12047_v14, %v10594_v12  ;;  %v10504_v13 = vld [vmem:[#allocation14 + $0x60c] sm:$0xf0] }
 0x387   :  { %6801 = vmatpush.bf16.msra.mxu1 %v10955_v3  ;;  %v11956_v3 = vld [vmem:[#allocation14 + $0x3e0] sm:$0xf0] }
 0x388   :  { %6790 = vmatpush.bf16.msra.mxu0 %v10675_v35  ;;  %v12120_v35 = vld [vmem:[#allocation14 + $0x904] sm:$0xf]  ;;  %v10231_v11 = vor.u32 %v11956_v3, %v10230_v44  ;;  %v9868_v44 = vld [vmem:[#allocation14 + $0x10c] sm:$0xf0]  ;;  %v9782_v3 = vld [vmem:[#allocation14 + $0x48] sm:$0xf] }
 0x389   :  { %v10899_v32 = vor.u32 %v12120_v35, %v10896_v38  ;;  %v11883_v35 = vld [vmem:[#allocation14 + $0x19c] sm:$0xf] }
 0x38a   :  { %6763 = vmatpush.bf16.msrb.mxu2 %v10255_v19  ;;  %6724 = vmatpush.bf16.msra.mxu3 %v10923_v33  ;;  %v11872_v19 = vld [vmem:[#allocation14 + $0x140] sm:$0xf0]  ;;  %v10202_v33 = vld [vmem:[#allocation14 + $0x390] sm:$0xf] }
 0x38b   :  { %6802 = vmatpush.bf16.msra.mxu1 %v10927_v28  ;;  %v11949_v28 = vld [vmem:[#allocation14 + $0x3a8] sm:$0xf0]  ;;  %v9895_v9 = vor.u32 %v11872_v19, %v9894_v6  ;;  %v9871_v6 = vor.u32 %v11862_v47, %v9868_v44  ;;  %v12008_v19 = vld [vmem:[#allocation14 + $0x584] sm:$0xf] }
 0x38c   :  { %6791 = vmatpush.bf16.msra.mxu0 %v10647_v34  ;;  %v6585_v58 = vpop.f32.mrf.mxu0  ;;  %v10287_v34 = vor.u32 %v11970_v8, %v10286_v54  ;;  %v10563_v54 = vor.u32 %v12036_v25, %v10560_v26  ;;  %v10203_v8 = vor.u32 %v11949_v28, %v10202_v33  ;;  %v12012_v26 = vld [vmem:[#allocation14 + $0x5a0] sm:$0xf0]  ;;  %v9840_v33 = vld [vmem:[#allocation14 + $0xd4] sm:$0xf0]  ;;  %v9754_v28 = vld [vmem:[#allocation14 + $0x10] sm:$0xf] }
 0x38d   :  { %v6586_v18 = vadd.f32 %v6585_v58, %v4757_v45  ;;  %v9952_v58 = vld [vmem:[#allocation14 + $0x1b4] sm:$0xf0]  ;;  %v11925_v47 = vld [vmem:[#allocation14 + $0x2ec] sm:$0xf] }
 0x38e   :  { %6764 = vmatpush.bf16.msrb.mxu2 %v10227_v41  ;;  %6725 = vmatpush.bf16.msra.mxu3 %v10895_v16  ;;  %v11865_v41 = vld [vmem:[#allocation14 + $0x108] sm:$0xf0]  ;;  %v6600_v38 = vpop.f32.mrf.mxu1  ;;  %v9955_v39 = vor.u32 %v11883_v35, %v9952_v58  ;;  %v12110_v35 = vld [vmem:[#allocation14 + $0x8b0] sm:$0xf0] }
 0x38f   :  { %6792 = vmatmul.bf16.vlgmr.msra.gmra.mxu0 %v12902_v62  ;;  %6803 = vmatpush.bf16.msra.mxu1 %v10899_v32  ;;  %v12939_v1 = vadd.f32 %v6598_v61, %v6586_v18  ;;  %v12029_v16 = vld [vmem:[#allocation14 + $0x62c] sm:$0xf]  ;;  %v9867_v45 = vor.u32 %v11865_v41, %v9866_v36  ;;  %v9810_v18 = vld [vmem:[#allocation14 + $0x80] sm:$0xf]  ;;  %v12015_v61 = vld [vmem:[#allocation14 + $0x5bc] sm:$0xf] }
 0x390   :  { %6836 = vmatpush.bf16.msrb.mxu0 %v10399_v22  ;;  %v12116_v22 = vld [vmem:[#allocation14 + $0x8e0] sm:$0xf0]  ;;  %v12033_v32 = vld [vmem:[#allocation14 + $0x648] sm:$0xf0]  ;;  %v10420_v38 = vld [vmem:[#allocation14 + $0x564] sm:$0xf0] }
 0x391   :  { %v10867_v60 = vor.u32 %v12116_v22, %v10866_v21  ;;  %v9924_v21 = vld [vmem:[#allocation14 + $0x17c] sm:$0xf0]  ;;  %v9838_v22 = vld [vmem:[#allocation14 + $0xb8] sm:$0xf]  ;;  %v12001_v41 = vld [vmem:[#allocation14 + $0x54c] sm:$0xf] }
 0x392   :  { %6765 = vmatpush.bf16.msrb.mxu2 %v10199_v59  ;;  %v11858_v59 = vld [vmem:[#allocation14 + $0xd0] sm:$0xf0] }
 0x393   :  { %6726 = vmatpush.bf16.msra.mxu3 %v10867_v60  ;;  %v9839_v52 = vor.u32 %v11858_v59, %v9838_v22  ;;  %v12026_v60 = vld [vmem:[#allocation14 + $0x610] sm:$0xf0]  ;;  %v10818_v59 = vld [vmem:[#allocation14 + $0x860] sm:$0xf] }
 0x394   :  { %6837 = vmatpush.bf16.msrb.mxu0 %v10371_v56  ;;  %v10871_v56 = vor.u32 %v12113_v49, %v10868_v17  ;;  %v6587_v57 = vpop.f32.mrf.mxu0  ;;  %v10535_v49 = vor.u32 %v12029_v16, %v10532_v43  ;;  %v10539_v17 = vor.u32 %v12033_v32, %v10538_v46  ;;  %v11942_v43 = vld [vmem:[#allocation14 + $0x370] sm:$0xf0]  ;;  %v11848_v46 = vld [vmem:[#allocation14 + $0x84] sm:$0xf]  ;;  %v10423_v32 = vor.u32 %v12001_v41, %v10420_v38 }
 0x395   :  { %6766 = vmatmul.bf16.vlgmr.msrb.gmra.mxu2 %v12869_v29  ;;  %v9899_v57 = vor.u32 %v11869_v37, %v9896_v4  ;;  %v11932_v4 = vld [vmem:[#allocation14 + $0x324] sm:$0xf] }
 0x396   :  { %6810 = vmatpush.bf16.msra.mxu2 %v9951_v50  ;;  %6804 = vmatpush.bf16.msra.mxu1 %v10871_v56  ;;  %v12022_v50 = vld [vmem:[#allocation14 + $0x5f4] sm:$0xf]  ;;  %v11851_v56 = vld [vmem:[#allocation14 + $0x98] sm:$0xf0] }
 0x397   :  { %6771 = vmatpush.bf16.msrb.mxu3 %v10619_v0  ;;  %v10476_v0 = vld [vmem:[#allocation14 + $0x5d4] sm:$0xf0]  ;;  %v9811_v42 = vor.u32 %v11851_v56, %v9810_v18  ;;  %v10148_v18 = vld [vmem:[#allocation14 + $0x33c] sm:$0xf0]  ;;  %v10790_v56 = vld [vmem:[#allocation14 + $0x828] sm:$0xf] }
 0x398   :  { %6838 = vmatpush.bf16.msrb.mxu0 %v10343_v7  ;;  %v9923_v7 = vor.u32 %v11879_v31, %v9922_v40  ;;  %6727 = vmatmul.bf16.vlgmr.msra.gmra.mxu3 %v12918_v55  ;;  %v10507_v40 = vor.u32 %v12022_v50, %v10504_v13  ;;  %v10511_v31 = vor.u32 %v12026_v60, %v10510_v51  ;;  %v10146_v50 = vld [vmem:[#allocation14 + $0x320] sm:$0xf]  ;;  %v11935_v51 = vld [vmem:[#allocation14 + $0x338] sm:$0xf0]  ;;  %v9784_v60 = vld [vmem:[#allocation14 + $0x64] sm:$0xf0] }
 0x399   :  { %6805 = vmatmul.bf16.vlgmr.msra.gmra.mxu1 %v12918_v55  ;;  %v10479_v12 = vor.u32 %v12015_v61, %v10476_v0  ;;  %v10118_v61 = vld [vmem:[#allocation14 + $0x2e8] sm:$0xf]  ;;  %v11928_v0 = vld [vmem:[#allocation14 + $0x300] sm:$0xf0] }
 0x39a   :  { %6849 = vmatpush.bf16.msrb.mxu1 %v10623_v15  ;;  %6811 = vmatpush.bf16.msra.mxu2 %v9923_v7  ;;  %v12019_v15 = vld [vmem:[#allocation14 + $0x5d8] sm:$0xf0]  ;;  %v11844_v7 = vld [vmem:[#allocation14 + $0x60] sm:$0xf0] }
 0x39b   :  { %6772 = vmatpush.bf16.msrb.mxu3 %v10591_v20  ;;  %v10448_v20 = vld [vmem:[#allocation14 + $0x59c] sm:$0xf0]  ;;  %v9783_v25 = vor.u32 %v11844_v7, %v9782_v3  ;;  %v10120_v7 = vld [vmem:[#allocation14 + $0x304] sm:$0xf0] }
 0x39c   :  { %6839 = vmatpush.bf16.msrb.mxu0 %v10315_v30  ;;  %v10566_v30 = vld [vmem:[#allocation14 + $0x668] sm:$0xf] }
 0x39d   :  { %v10567_v24 = vor.u32 %v12040_v27, %v10566_v30  ;;  %v11837_v30 = vld [vmem:[#allocation14 + $0x28] sm:$0xf0]  ;;  %v10846_v27 = vld [vmem:[#allocation14 + $0x898] sm:$0xf] }
 0x39e   :  { %6850 = vmatpush.bf16.msrb.mxu1 %v10595_v53  ;;  %6812 = vmatpush.bf16.msra.mxu2 %v9895_v9  ;;  %v11855_v53 = vld [vmem:[#allocation14 + $0xbc] sm:$0xf]  ;;  %v10451_v9 = vor.u32 %v12008_v19, %v10448_v20  ;;  %v10847_v16 = vor.u32 %v12110_v35, %v10846_v27  ;;  %v12089_v19 = vld [vmem:[#allocation14 + $0x808] sm:$0xf0]  ;;  %v10119_v20 = vor.u32 %v11928_v0, %v10118_v61  ;;  %v12100_v27 = vld [vmem:[#allocation14 + $0x864] sm:$0xf] }
 0x39f   :  { %6773 = vmatpush.bf16.msrb.mxu3 %v10563_v54  ;;  %v9843_v36 = vor.u32 %v11855_v53, %v9840_v33  ;;  %v9755_v54 = vor.u32 %v11837_v30, %v9754_v28  ;;  %v10090_v53 = vld [vmem:[#allocation14 + $0x2b0] sm:$0xf]  ;;  %v11921_v33 = vld [vmem:[#allocation14 + $0x2c8] sm:$0xf0]  ;;  %v11918_v28 = vld [vmem:[#allocation14 + $0x2b4] sm:$0xf] }
 0x3a0   :  { %6840 = vmatpush.bf16.msrb.mxu0 %v10287_v34  ;;  %v11876_v34 = vld [vmem:[#allocation14 + $0x164] sm:$0xf]  ;;  %v10820_v35 = vld [vmem:[#allocation14 + $0x87c] sm:$0xf0]  ;;  %v10091_v41 = vor.u32 %v11921_v33, %v10090_v53  ;;  %v10006_v61 = vld [vmem:[#allocation14 + $0x208] sm:$0xf] }
 0x3a1   :  { %v9927_v5 = vor.u32 %v11876_v34, %v9924_v21  ;;  %v11939_v34 = vld [vmem:[#allocation14 + $0x35c] sm:$0xf]  ;;  %v10176_v21 = vld [vmem:[#allocation14 + $0x374] sm:$0xf0]  ;;  %v11900_v0 = vld [vmem:[#allocation14 + $0x220] sm:$0xf0] }
 0x3a2   :  { %6851 = vmatpush.bf16.msrb.mxu1 %v10567_v24  ;;  %6813 = vmatpush.bf16.msra.mxu2 %v9867_v45  ;;  %v12005_v24 = vld [vmem:[#allocation14 + $0x568] sm:$0xf0]  ;;  %v9812_v45 = vld [vmem:[#allocation14 + $0x9c] sm:$0xf0]  ;;  %v10179_v13 = vor.u32 %v11939_v34, %v10176_v21  ;;  %v10792_v21 = vld [vmem:[#allocation14 + $0x844] sm:$0xf0] }
 0x3a3   :  { %6774 = vmatpush.bf16.msrb.mxu3 %v10535_v49  ;;  %v12103_v49 = vld [vmem:[#allocation14 + $0x878] sm:$0xf0]  ;;  %v12093_v34 = vld [vmem:[#allocation14 + $0x82c] sm:$0xf] }
 0x3a4   :  { %6841 = vmatpush.bf16.msrb.mxu0 %v10259_v23  ;;  %v10482_v23 = vld [vmem:[#allocation14 + $0x5c0] sm:$0xf]  ;;  %v10819_v37 = vor.u32 %v12103_v49, %v10818_v59  ;;  %v12075_v59 = vld [vmem:[#allocation14 + $0x798] sm:$0xf0]  ;;  %v11893_v53 = vld [vmem:[#allocation14 + $0x1e8] sm:$0xf0] }
 0x3a5   :  { %v10483_v14 = vor.u32 %v12019_v15, %v10482_v23  ;;  %v10151_v23 = vor.u32 %v11932_v4, %v10148_v18  ;;  %v9756_v15 = vld [vmem:[#allocation14 + $0x2c] sm:$0xf0]  ;;  %v10678_v4 = vld [vmem:[#allocation14 + $0x748] sm:$0xf]  ;;  %v12068_v18 = vld [vmem:[#allocation14 + $0x760] sm:$0xf0] }
 0x3a6   :  { %6852 = vmatpush.bf16.msrb.mxu1 %v10539_v17  ;;  %6814 = vmatpush.bf16.msra.mxu2 %v9839_v52  ;;  %v11841_v52 = vld [vmem:[#allocation14 + $0x4c] sm:$0xf] }
 0x3a7   :  { %6775 = vmatpush.bf16.msrb.mxu3 %v10507_v40  ;;  %v12096_v40 = vld [vmem:[#allocation14 + $0x840] sm:$0xf0] }
 0x3a8   :  { %6842 = vmatpush.bf16.msrb.mxu0 %v10231_v11  ;;  %v10454_v11 = vld [vmem:[#allocation14 + $0x588] sm:$0xf]  ;;  %v10791_v44 = vor.u32 %v12096_v40, %v10790_v56 }
 0x3a9   :  { %v10455_v58 = vor.u32 %v12012_v26, %v10454_v11 }
 0x3aa   :  { %6853 = vmatpush.bf16.msrb.mxu1 %v10511_v31  ;;  %6815 = vmatpush.bf16.msra.mxu2 %v9811_v42  ;;  %v10147_v31 = vor.u32 %v11935_v51, %v10146_v50  ;;  %v11834_v42 = vld [vmem:[#allocation14 + $0x14] sm:$0xf]  ;;  %v11907_v50 = vld [vmem:[#allocation14 + $0x258] sm:$0xf0] }
 0x3ab   :  { %6776 = vmatpush.bf16.msrb.mxu3 %v10479_v12  ;;  %v12107_v12 = vld [vmem:[#allocation14 + $0x89c] sm:$0xf]  ;;  %v9759_v11 = vor.u32 %v11834_v42, %v9756_v15  ;;  %v10679_v42 = vor.u32 %v12068_v18, %v10678_v4  ;;  %v10008_v15 = vld [vmem:[#allocation14 + $0x224] sm:$0xf0]  ;;  %v12058_v18 = vld [vmem:[#allocation14 + $0x714] sm:$0xf] }
 0x3ac   :  { %6843 = vmatpush.bf16.msrb.mxu0 %v10203_v8  ;;  %v10426_v8 = vld [vmem:[#allocation14 + $0x550] sm:$0xf] }
 0x3ad   :  { %v10427_v22 = vor.u32 %v12005_v24, %v10426_v8  ;;  %v10823_v24 = vor.u32 %v12100_v27, %v10820_v35  ;;  %v12166_v35 = vld [vmem:[#allocation14 + $0xa70] sm:$0xf0] }
 0x3ae   :  { %6854 = vmatpush.bf16.msrb.mxu1 %v10483_v14  ;;  %6816 = vmatpush.bf16.msra.mxu2 %v9783_v25  ;;  %v10848_v14 = vld [vmem:[#allocation14 + $0x8b4] sm:$0xf0]  ;;  %v10123_v25 = vor.u32 %v11925_v47, %v10120_v7  ;;  %v12079_v47 = vld [vmem:[#allocation14 + $0x7bc] sm:$0xf] }
 0x3af   :  { %6844 = vmatmul.bf16.vlgmr.msrb.gmra.mxu0 %v12869_v29  ;;  %6777 = vmatpush.bf16.msrb.mxu3 %v10451_v9  ;;  %v10851_v26 = vor.u32 %v12107_v12, %v10848_v14  ;;  %v10092_v9 = vld [vmem:[#allocation14 + $0x2cc] sm:$0xf0]  ;;  %v12061_v14 = vld [vmem:[#allocation14 + $0x728] sm:$0xf0] }
 0x3b0   :  { %6888 = vmatpush.bf16.msra.mxu0 %v9955_v39  ;;  %v10174_v39 = vld [vmem:[#allocation14 + $0x358] sm:$0xf]  ;;  %v12948_v3 = vpop.f32.mrf.mxu0  ;;  %v10650_v12 = vld [vmem:[#allocation14 + $0x710] sm:$0xf] }
 0x3b1   :  { %v10175_v17 = vor.u32 %v11942_v43, %v10174_v39  ;;  %v10062_v39 = vld [vmem:[#allocation14 + $0x278] sm:$0xf]  ;;  %v11911_v43 = vld [vmem:[#allocation14 + $0x27c] sm:$0xf]  ;;  %v10651_v33 = vor.u32 %v12061_v14, %v10650_v12 }
 0x3b2   :  { %6855 = vmatpush.bf16.msrb.mxu1 %v10455_v58  ;;  %6817 = vmatpush.bf16.msra.mxu2 %v9755_v54  ;;  %v10734_v58 = vld [vmem:[#allocation14 + $0x7b8] sm:$0xf]  ;;  %v10095_v54 = vor.u32 %v11918_v28, %v10092_v9  ;;  %v11890_v28 = vld [vmem:[#allocation14 + $0x1d4] sm:$0xf] }
 0x3b3   :  { %6778 = vmatpush.bf16.msrb.mxu3 %v10423_v32  ;;  %v10064_v32 = vld [vmem:[#allocation14 + $0x294] sm:$0xf0] }
 0x3b4   :  { %6889 = vmatpush.bf16.msra.mxu0 %v9927_v5  ;;  %v9815_v5 = vor.u32 %v11848_v46, %v9812_v45  ;;  %v11070_v9 = vld [vmem:[#allocation14 + $0xa58] sm:$0xf] }
 0x3b5   :  { %6818 = vmatmul.bf16.vlgmr.msra.gmra.mxu2 %v12840_v63 }
 0x3b6   :  { %6862 = vmatpush.bf16.msrb.mxu2 %v10847_v16  ;;  %6856 = vmatpush.bf16.msrb.mxu1 %v10427_v22  ;;  %v6559_v38 = vpop.f32.mrf.mxu2  ;;  %v11914_v16 = vld [vmem:[#allocation14 + $0x290] sm:$0xf0]  ;;  %v10706_v22 = vld [vmem:[#allocation14 + $0x780] sm:$0xf] }
 0x3b7   :  { %6823 = vmatpush.bf16.msra.mxu3 %v10175_v17  ;;  %v12951_v8 = vadd.f32 %v6559_v38, %v12936_v2  ;;  %v10063_v49 = vor.u32 %v11914_v16, %v10062_v39  ;;  %v10067_v2 = vor.u32 %v11911_v43, %v10064_v32  ;;  %v10795_v17 = vor.u32 %v12093_v34, %v10792_v21  ;;  %v11988_v43 = vld [vmem:[#allocation14 + $0x4e4] sm:$0xf]  ;;  %v11042_v34 = vld [vmem:[#allocation14 + $0xa20] sm:$0xf] }
 0x3b8   :  { %6890 = vmatpush.bf16.msra.mxu0 %v9899_v57  ;;  %v9787_v57 = vor.u32 %v11841_v52, %v9784_v60  ;;  %6779 = vmatmul.bf16.vlgmr.msrb.gmra.mxu3 %v12882_v10  ;;  %v6639_v45 = vpop.f32.mrf.mxu0  ;;  %v10707_v51 = vor.u32 %v12075_v59, %v10706_v22  ;;  %v10036_v52 = vld [vmem:[#allocation14 + $0x25c] sm:$0xf0]  ;;  %v12086_v60 = vld [vmem:[#allocation14 + $0x7f4] sm:$0xf]  ;;  %v12159_v59 = vld [vmem:[#allocation14 + $0xa38] sm:$0xf0] }
 0x3b9   :  { %6857 = vmatmul.bf16.vlgmr.msrb.gmra.mxu1 %v12882_v10  ;;  %v11071_v45 = vor.u32 %v12166_v35, %v11070_v9 }
 0x3ba   :  { %6901 = vmatpush.bf16.msra.mxu1 %v10179_v13  ;;  %6863 = vmatpush.bf16.msrb.mxu2 %v10819_v37  ;;  %v11904_v13 = vld [vmem:[#allocation14 + $0x244] sm:$0xf]  ;;  %v10764_v37 = vld [vmem:[#allocation14 + $0x80c] sm:$0xf0] }
 0x3bb   :  { %6824 = vmatpush.bf16.msra.mxu3 %v10147_v31  ;;  %v10039_v31 = vor.u32 %v11904_v13, %v10036_v52  ;;  %v10344_v13 = vld [vmem:[#allocation14 + $0x4c4] sm:$0xf0] }
 0x3bc   :  { %6891 = vmatpush.bf16.msra.mxu0 %v9871_v6  ;;  %v10762_v6 = vld [vmem:[#allocation14 + $0x7f0] sm:$0xf] }
 0x3bd   :  { %v10763_v30 = vor.u32 %v12089_v19, %v10762_v6  ;;  %v10007_v6 = vor.u32 %v11900_v0, %v10006_v61  ;;  %v11995_v19 = vld [vmem:[#allocation14 + $0x51c] sm:$0xf]  ;;  %v11016_v61 = vld [vmem:[#allocation14 + $0xa04] sm:$0xf0]  ;;  %v10406_v0 = vld [vmem:[#allocation14 + $0x520] sm:$0xf] }
 0x3be   :  { %6902 = vmatpush.bf16.msra.mxu1 %v10151_v23  ;;  %6864 = vmatpush.bf16.msrb.mxu2 %v10791_v44  ;;  %v6561_v40 = vpop.f32.mrf.mxu2  ;;  %v11897_v23 = vld [vmem:[#allocation14 + $0x20c] sm:$0xf]  ;;  %v10736_v44 = vld [vmem:[#allocation14 + $0x7d4] sm:$0xf0] }
 0x3bf   :  { %6825 = vmatpush.bf16.msra.mxu3 %v10119_v20  ;;  %v10400_v20 = vld [vmem:[#allocation14 + $0x534] sm:$0xf0]  ;;  %v12149_v40 = vld [vmem:[#allocation14 + $0x9ec] sm:$0xf] }
 0x3c0   :  { %6892 = vmatpush.bf16.msra.mxu0 %v9843_v36  ;;  %v12082_v36 = vld [vmem:[#allocation14 + $0x7d0] sm:$0xf0]  ;;  %v10403_v27 = vor.u32 %v11995_v19, %v10400_v20  ;;  %v11019_v14 = vor.u32 %v12149_v40, %v11016_v61  ;;  %v10986_v19 = vld [vmem:[#allocation14 + $0x9b0] sm:$0xf]  ;;  %v12145_v20 = vld [vmem:[#allocation14 + $0x9c8] sm:$0xf0] }
 0x3c1   :  { %v10735_v46 = vor.u32 %v12082_v36, %v10734_v58  ;;  %v12072_v58 = vld [vmem:[#allocation14 + $0x784] sm:$0xf]  ;;  %v10708_v36 = vld [vmem:[#allocation14 + $0x79c] sm:$0xf0]  ;;  %v10987_v9 = vor.u32 %v12145_v20, %v10986_v19  ;;  %v11887_v20 = vld [vmem:[#allocation14 + $0x1b8] sm:$0xf0] }
 0x3c2   :  { %6903 = vmatpush.bf16.msra.mxu1 %v10123_v25  ;;  %6865 = vmatpush.bf16.msrb.mxu2 %v10763_v30  ;;  %v10739_v25 = vor.u32 %v12079_v47, %v10736_v44  ;;  %v9980_v30 = vld [vmem:[#allocation14 + $0x1ec] sm:$0xf0]  ;;  %v10711_v32 = vor.u32 %v12072_v58, %v10708_v36  ;;  %v10958_v58 = vld [vmem:[#allocation14 + $0x978] sm:$0xf]  ;;  %v12138_v36 = vld [vmem:[#allocation14 + $0x990] sm:$0xf0] }
 0x3c3   :  { %6826 = vmatpush.bf16.msra.mxu3 %v10091_v41  ;;  %v9983_v39 = vor.u32 %v11890_v28, %v9980_v30  ;;  %v11967_v28 = vld [vmem:[#allocation14 + $0x43c] sm:$0xf]  ;;  %v10288_v30 = vld [vmem:[#allocation14 + $0x454] sm:$0xf0]  ;;  %v12124_v40 = vld [vmem:[#allocation14 + $0x920] sm:$0xf0] }
 0x3c4   :  { %6893 = vmatpush.bf16.msra.mxu0 %v9815_v5  ;;  %v10034_v5 = vld [vmem:[#allocation14 + $0x240] sm:$0xf] }
 0x3c5   :  { %v10035_v56 = vor.u32 %v11907_v50, %v10034_v5  ;;  %v12156_v5 = vld [vmem:[#allocation14 + $0xa24] sm:$0xf]  ;;  %v11044_v50 = vld [vmem:[#allocation14 + $0xa3c] sm:$0xf0] }
 0x3c6   :  { %6904 = vmatpush.bf16.msra.mxu1 %v10095_v54  ;;  %6866 = vmatpush.bf16.msrb.mxu2 %v10735_v46  ;;  %v6611_v38 = vpop.f32.mrf.mxu2  ;;  %v12163_v54 = vld [vmem:[#allocation14 + $0xa5c] sm:$0xf]  ;;  %v10372_v46 = vld [vmem:[#allocation14 + $0x4fc] sm:$0xf0]  ;;  %v11047_v4 = vor.u32 %v12156_v5, %v11044_v50 }
 0x3c7   :  { %6827 = vmatpush.bf16.msra.mxu3 %v10063_v49  ;;  %v12957_v16 = vadd.f32 %v6611_v38, %v12939_v1  ;;  %v12065_v49 = vld [vmem:[#allocation14 + $0x74c] sm:$0xf]  ;;  %v10291_v38 = vor.u32 %v11967_v28, %v10288_v30  ;;  %v10932_v50 = vld [vmem:[#allocation14 + $0x95c] sm:$0xf0]  ;;  %v12114_v28 = vld [vmem:[#allocation14 + $0x8d4] sm:$0xf] }
 0x3c8   :  { %6894 = vmatpush.bf16.msra.mxu0 %v9787_v57  ;;  %v10767_v57 = vor.u32 %v12086_v60, %v10764_v37  ;;  %v11981_v1 = vld [vmem:[#allocation14 + $0x4ac] sm:$0xf]  ;;  %v11014_v60 = vld [vmem:[#allocation14 + $0x9e8] sm:$0xf]  ;;  %v12152_v37 = vld [vmem:[#allocation14 + $0xa00] sm:$0xf0] }
 0x3c9   :  { %v11015_v47 = vor.u32 %v12152_v37, %v11014_v60  ;;  %v9958_v19 = vld [vmem:[#allocation14 + $0x1a0] sm:$0xf]  ;;  %v10876_v30 = vld [vmem:[#allocation14 + $0x8ec] sm:$0xf0] }
 0x3ca   :  { %6905 = vmatpush.bf16.msra.mxu1 %v10067_v2  ;;  %6867 = vmatpush.bf16.msrb.mxu2 %v10707_v51  ;;  %v10680_v2 = vld [vmem:[#allocation14 + $0x764] sm:$0xf0]  ;;  %v11043_v51 = vor.u32 %v12159_v59, %v11042_v34  ;;  %v10959_v34 = vor.u32 %v12138_v36, %v10958_v58  ;;  %v11964_v36 = vld [vmem:[#allocation14 + $0x420] sm:$0xf0] }
 0x3cb   :  { %6828 = vmatpush.bf16.msra.mxu3 %v10035_v56  ;;  %v10683_v52 = vor.u32 %v12065_v49, %v10680_v2  ;;  %v10652_v56 = vld [vmem:[#allocation14 + $0x72c] sm:$0xf0]  ;;  %v10930_v49 = vld [vmem:[#allocation14 + $0x940] sm:$0xf]  ;;  %v12131_v2 = vld [vmem:[#allocation14 + $0x958] sm:$0xf0] }
 0x3cc   :  { %6895 = vmatpush.bf16.msra.mxu0 %v9759_v11  ;;  %v12954_v7 = vpop.f32.mrf.mxu0  ;;  %v10011_v11 = vor.u32 %v11897_v23, %v10008_v15  ;;  %v11999_v23 = vld [vmem:[#allocation14 + $0x538] sm:$0xf0]  ;;  %v10316_v15 = vld [vmem:[#allocation14 + $0x48c] sm:$0xf0]  ;;  %v10655_v44 = vor.u32 %v12058_v18, %v10652_v56  ;;  %v10931_v37 = vor.u32 %v12131_v2, %v10930_v49  ;;  %v10902_v56 = vld [vmem:[#allocation14 + $0x908] sm:$0xf] }
 0x3cd   :  { %v10266_v58 = vld [vmem:[#allocation14 + $0x408] sm:$0xf] }
 0x3ce   :  { %6906 = vmatpush.bf16.msra.mxu1 %v10039_v31  ;;  %6868 = vmatpush.bf16.msrb.mxu2 %v10679_v42  ;;  %v10347_v31 = vor.u32 %v11981_v1, %v10344_v13  ;;  %v11974_v42 = vld [vmem:[#allocation14 + $0x474] sm:$0xf]  ;;  %v10322_v1 = vld [vmem:[#allocation14 + $0x478] sm:$0xf] }
 0x3cf   :  { %6896 = vmatmul.bf16.vlgmr.msra.gmra.mxu0 %v12840_v63  ;;  %6829 = vmatpush.bf16.msra.mxu3 %v10007_v6  ;;  %v10407_v6 = vor.u32 %v11999_v23, %v10406_v0  ;;  %v11978_v13 = vld [vmem:[#allocation14 + $0x490] sm:$0xf0]  ;;  %v10904_v0 = vld [vmem:[#allocation14 + $0x924] sm:$0xf0]  ;;  %v10294_v23 = vld [vmem:[#allocation14 + $0x440] sm:$0xf] }
 0x3d0   :  { %6940 = vmatpush.bf16.msrb.mxu0 %v10851_v26  ;;  %v9978_v26 = vld [vmem:[#allocation14 + $0x1d0] sm:$0xf]  ;;  %v10323_v18 = vor.u32 %v11978_v13, %v10322_v1 }
 0x3d1   :  { %v9979_v41 = vor.u32 %v11893_v53, %v9978_v26  ;;  %v10988_v26 = vld [vmem:[#allocation14 + $0x9cc] sm:$0xf0]  ;;  %v10378_v53 = vld [vmem:[#allocation14 + $0x4e8] sm:$0xf] }
 0x3d2   :  { %6907 = vmatpush.bf16.msra.mxu1 %v10011_v11  ;;  %6869 = vmatpush.bf16.msrb.mxu2 %v10651_v33  ;;  %v12962_v12 = vpop.f32.mrf.mxu1  ;;  %v12142_v11 = vld [vmem:[#allocation14 + $0x9b4] sm:$0xf]  ;;  %v11992_v33 = vld [vmem:[#allocation14 + $0x500] sm:$0xf0] }
 0x3d3   :  { %6830 = vmatpush.bf16.msra.mxu3 %v9979_v41  ;;  %v10379_v35 = vor.u32 %v11992_v33, %v10378_v53  ;;  %v12135_v41 = vld [vmem:[#allocation14 + $0x97c] sm:$0xf]  ;;  %v12117_v53 = vld [vmem:[#allocation14 + $0x8e8] sm:$0xf0] }
 0x3d4   :  { %6941 = vmatpush.bf16.msrb.mxu0 %v10823_v24  ;;  %v11072_v24 = vld [vmem:[#allocation14 + $0xa74] sm:$0xf0]  ;;  %v6691_v22 = vpop.f32.mrf.mxu0 }
 0x3d5   :  { %v11075_v21 = vor.u32 %v12163_v54, %v11072_v24  ;;  %6870 = vmatmul.bf16.vlgmr.msrb.gmra.mxu2 %v12902_v62  ;;  %v10960_v24 = vld [vmem:[#allocation14 + $0x994] sm:$0xf0] }
 0x3d6   :  { %6914 = vmatpush.bf16.msra.mxu2 %v10403_v27  ;;  %6908 = vmatpush.bf16.msra.mxu1 %v9983_v39  ;;  %v10991_v27 = vor.u32 %v12142_v11, %v10988_v26  ;;  %v10350_v39 = vld [vmem:[#allocation14 + $0x4b0] sm:$0xf]  ;;  %v10963_v22 = vor.u32 %v12135_v41, %v10960_v24  ;;  %v10630_v24 = vld [vmem:[#allocation14 + $0x6e0] sm:$0xf] }
 0x3d7   :  { %6875 = vmatpush.bf16.msrb.mxu3 %v11071_v45  ;;  %v10260_v45 = vld [vmem:[#allocation14 + $0x41c] sm:$0xf0]  ;;  %v10874_v26 = vld [vmem:[#allocation14 + $0x8d0] sm:$0xf] }
 0x3d8   :  { %6942 = vmatpush.bf16.msrb.mxu0 %v10795_v17  ;;  %v10375_v17 = vor.u32 %v11988_v43, %v10372_v46  ;;  %6831 = vmatmul.bf16.vlgmr.msra.gmra.mxu3 %v12854_v48  ;;  %v12964_v54 = vpop.f32.mrf.mxu3  ;;  %v11985_v43 = vld [vmem:[#allocation14 + $0x4c8] sm:$0xf0]  ;;  %v11960_v46 = vld [vmem:[#allocation14 + $0x404] sm:$0xf] }
 0x3d9   :  { %6909 = vmatmul.bf16.vlgmr.msra.gmra.mxu1 %v12854_v48  ;;  %v10351_v59 = vor.u32 %v11985_v43, %v10350_v39  ;;  %v10263_v5 = vor.u32 %v11960_v46, %v10260_v45  ;;  %v12055_v39 = vld [vmem:[#allocation14 + $0x6f8] sm:$0xf0]  ;;  %v10879_v43 = vor.u32 %v12114_v28, %v10876_v30  ;;  %v9930_v46 = vld [vmem:[#allocation14 + $0x168] sm:$0xf]  ;;  %v11880_v45 = vld [vmem:[#allocation14 + $0x180] sm:$0xf0] }
 0x3da   :  { %6953 = vmatpush.bf16.msrb.mxu1 %v11075_v21  ;;  %6915 = vmatpush.bf16.msra.mxu2 %v10375_v17  ;;  %v6652_v21 = vpop.f32.mrf.mxu1  ;;  %v12128_v17 = vld [vmem:[#allocation14 + $0x944] sm:$0xf]  ;;  %v10631_v49 = vor.u32 %v12055_v39, %v10630_v24  ;;  %v9931_v1 = vor.u32 %v11880_v45, %v9930_v46  ;;  %v12023_v46 = vld [vmem:[#allocation14 + $0x5fc] sm:$0xf] }
 0x3db   :  { %6876 = vmatpush.bf16.msrb.mxu3 %v11043_v51  ;;  %v11953_v51 = vld [vmem:[#allocation14 + $0x3cc] sm:$0xf]  ;;  %v10267_v21 = vor.u32 %v11964_v36, %v10266_v58  ;;  %v9846_v58 = vld [vmem:[#allocation14 + $0xc0] sm:$0xf]  ;;  %v11859_v36 = vld [vmem:[#allocation14 + $0xd8] sm:$0xf0] }
 0x3dc   :  { %6943 = vmatpush.bf16.msrb.mxu0 %v10767_v57  ;;  %v6613_v57 = vpop.f32.mrf.mxu2  ;;  %v9847_v45 = vor.u32 %v11859_v36, %v9846_v58  ;;  %v12006_v58 = vld [vmem:[#allocation14 + $0x570] sm:$0xf0]  ;;  %v10182_v36 = vld [vmem:[#allocation14 + $0x360] sm:$0xf] }
 0x3de   :  { %6954 = vmatpush.bf16.msrb.mxu1 %v11047_v4  ;;  %6916 = vmatpush.bf16.msra.mxu2 %v10347_v31  ;;  %v10935_v4 = vor.u32 %v12128_v17, %v10932_v50  ;;  %v12121_v31 = vld [vmem:[#allocation14 + $0x90c] sm:$0xf]  ;;  %v10596_v17 = vld [vmem:[#allocation14 + $0x6bc] sm:$0xf0] }
 0x3df   :  { %6877 = vmatpush.bf16.msrb.mxu3 %v11015_v47  ;;  %v10204_v47 = vld [vmem:[#allocation14 + $0x3ac] sm:$0xf0]  ;;  %v10907_v11 = vor.u32 %v12121_v31, %v10904_v0  ;;  %v11957_v50 = vld [vmem:[#allocation14 + $0x3e8] sm:$0xf0]  ;;  %v10210_v0 = vld [vmem:[#allocation14 + $0x398] sm:$0xf] }
 0x3e0   :  { %6944 = vmatpush.bf16.msrb.mxu0 %v10739_v25  ;;  %v10319_v25 = vor.u32 %v11974_v42, %v10316_v15  ;;  %v6574_v61 = vpop.f32.mrf.mxu3  ;;  %v11971_v42 = vld [vmem:[#allocation14 + $0x458] sm:$0xf0]  ;;  %v11946_v15 = vld [vmem:[#allocation14 + $0x394] sm:$0xf] }
 0x3e1   :  { %v10207_v33 = vor.u32 %v11946_v15, %v10204_v47  ;;  %v10568_v61 = vld [vmem:[#allocation14 + $0x684] sm:$0xf0]  ;;  %v10574_v47 = vld [vmem:[#allocation14 + $0x670] sm:$0xf] }
 0x3e2   :  { %6955 = vmatpush.bf16.msrb.mxu1 %v11019_v14  ;;  %6917 = vmatpush.bf16.msra.mxu2 %v10319_v25  ;;  %v10903_v14 = vor.u32 %v12124_v40, %v10902_v56  ;;  %v10295_v25 = vor.u32 %v11971_v42, %v10294_v23  ;;  %v11950_v23 = vld [vmem:[#allocation14 + $0x3b0] sm:$0xf0]  ;;  %v12980_v42 = vld [vmem:[#allocation16] sm:$0xff] }
 0x3e3   :  { %6878 = vmatpush.bf16.msrb.mxu3 %v10987_v9  ;;  %v12051_v9 = vld [vmem:[#allocation14 + $0x6dc] sm:$0xf] }
 0x3e4   :  { %6945 = vmatpush.bf16.msrb.mxu0 %v10711_v32  ;;  %v12967_v32 = vpop.f32.mrf.mxu2 }
 0x3e6   :  { %6956 = vmatpush.bf16.msrb.mxu1 %v10991_v27  ;;  %6918 = vmatpush.bf16.msra.mxu2 %v10291_v38  ;;  %v9959_v27 = vor.u32 %v11887_v20, %v9958_v19  ;;  %v10875_v38 = vor.u32 %v12117_v53, %v10874_v26  ;;  %v11866_v19 = vld [vmem:[#allocation14 + $0x110] sm:$0xf0]  ;;  %v10211_v20 = vor.u32 %v11950_v23, %v10210_v0  ;;  %v12175_v26 = vld [vmem:[#allocation17 + $0x38] sm:$0xff]  ;;  %v12172_v0 = vld [vmem:[#allocation17 + $0x20] sm:$0xff] }
 0x3e7   :  { %6879 = vmatpush.bf16.msrb.mxu3 %v10959_v34  ;;  %v12030_v53 = vld [vmem:[#allocation14 + $0x634] sm:$0xf]  ;;  %v12009_v23 = vld [vmem:[#allocation14 + $0x58c] sm:$0xf] }
 0x3e8   :  { %6946 = vmatpush.bf16.msrb.mxu0 %v10683_v52  ;;  %v10232_v52 = vld [vmem:[#allocation14 + $0x3e4] sm:$0xf0] }
 0x3e9   :  { %v10235_v57 = vor.u32 %v11953_v51, %v10232_v52  ;;  %v10602_v51 = vld [vmem:[#allocation14 + $0x6a8] sm:$0xf]  ;;  %v12048_v52 = vld [vmem:[#allocation14 + $0x6c0] sm:$0xf0] }
 0x3ea   :  { %6957 = vmatpush.bf16.msrb.mxu1 %v10963_v22  ;;  %6919 = vmatpush.bf16.msra.mxu2 %v10263_v5  ;;  %v6624_v22 = vpop.f32.mrf.mxu3  ;;  %v10238_v5 = vld [vmem:[#allocation14 + $0x3d0] sm:$0xf] }
 0x3eb   :  { %6880 = vmatpush.bf16.msrb.mxu3 %v10931_v37  ;;  %v6625_v2 = vadd.f32 %v6624_v22, %v12957_v16  ;;  %v10239_v40 = vor.u32 %v11957_v50, %v10238_v5  ;;  %v12037_v16 = vld [vmem:[#allocation14 + $0x66c] sm:$0xf]  ;;  %v12027_v22 = vld [vmem:[#allocation14 + $0x618] sm:$0xf0]  ;;  %v12173_v50 = vld [vmem:[#allocation17 + $0x28] sm:$0xff] }
 0x3ec   :  { %6947 = vmatpush.bf16.msrb.mxu0 %v10655_v44  ;;  %v12969_v60 = vpop.f32.mrf.mxu0  ;;  %v6665_v44 = vpop.f32.mrf.mxu2 }
 0x3ed   :  { %v6638_v37 = vadd.f32 %v12948_v3, %v6625_v2  ;;  %v4759_v3 = vperm.slane %v12980_v42, 3  ;;  %v12041_v44 = vld [vmem:[#allocation14 + $0x688] sm:$0xf0] }
 0x3ee   :  { %6958 = vmatpush.bf16.msrb.mxu1 %v10935_v4  ;;  %6920 = vmatpush.bf16.msra.mxu2 %v10235_v57  ;;  %v9902_v4 = vld [vmem:[#allocation14 + $0x130] sm:$0xf]  ;;  %v10603_v57 = vor.u32 %v12048_v52, %v10602_v51  ;;  %v10484_v51 = vld [vmem:[#allocation14 + $0x5dc] sm:$0xf0] }
 0x3ef   :  { %6948 = vmatmul.bf16.vlgmr.msrb.gmra.mxu0 %v12902_v62  ;;  %6881 = vmatpush.bf16.msrb.mxu3 %v10903_v14  ;;  %v12977_v31 = vadd.f32 %v12962_v12, %v6638_v37  ;;  %v9874_v14 = vld [vmem:[#allocation14 + $0xf8] sm:$0xf]  ;;  %v10571_v12 = vor.u32 %v12037_v16, %v10568_v61  ;;  %v6742_v28 = vadd.f32 %v12969_v60, %v4759_v3  ;;  %v10456_v3 = vld [vmem:[#allocation14 + $0x5a4] sm:$0xf0] }
 0x3f0   :  { %6992 = vmatpush.bf16.msra.mxu0 %v10407_v6  ;;  %v12971_v6 = vpop.f32.mrf.mxu1  ;;  %v9875_v30 = vor.u32 %v11866_v19, %v9874_v14  ;;  %v10512_v60 = vld [vmem:[#allocation14 + $0x614] sm:$0xf0]  ;;  %v12013_v14 = vld [vmem:[#allocation14 + $0x5a8] sm:$0xf0] }
 0x3f2   :  { %6959 = vmatpush.bf16.msrb.mxu1 %v10907_v11  ;;  %6921 = vmatpush.bf16.msra.mxu2 %v10207_v33  ;;  %v6626_v11 = vpop.f32.mrf.mxu3  ;;  %v10540_v33 = vld [vmem:[#allocation14 + $0x64c] sm:$0xf0] }
 0x3f3   :  { %6882 = vmatpush.bf16.msrb.mxu3 %v10875_v38  ;;  %v10543_v24 = vor.u32 %v12030_v53, %v10540_v33  ;;  %v10854_v11 = vld [vmem:[#allocation14 + $0x8a0] sm:$0xf] }
 0x3f4   :  { %6993 = vmatpush.bf16.msra.mxu0 %v10379_v35  ;;  %v10624_v35 = vld [vmem:[#allocation14 + $0x6f4] sm:$0xf0]  ;;  %v6743_v41 = vpop.f32.mrf.mxu0  ;;  %v12171_v33 = vld [vmem:[#allocation17 + $0x18] sm:$0xff] }
 0x3f5   :  { %v10627_v34 = vor.u32 %v12051_v9, %v10624_v35  ;;  %6922 = vmatmul.bf16.vlgmr.msra.gmra.mxu2 %v12869_v29  ;;  %v10546_v9 = vld [vmem:[#allocation14 + $0x638] sm:$0xf]  ;;  %v4758_v41 = vperm.slane %v12980_v42, 2 }
 0x3f6   :  { %6966 = vmatpush.bf16.msrb.mxu2 %v9959_v27  ;;  %6960 = vmatpush.bf16.msrb.mxu1 %v10879_v43  ;;  %v12034_v27 = vld [vmem:[#allocation14 + $0x650] sm:$0xf0]  ;;  %v12174_v43 = vld [vmem:[#allocation17 + $0x30] sm:$0xff] }
 0x3f7   :  { %6927 = vmatpush.bf16.msra.mxu3 %v10627_v34  ;;  %v10547_v39 = vor.u32 %v12034_v27, %v10546_v9  ;;  %v6664_v2 = vadd.f32 %v12967_v32, %v4758_v41  ;;  %v10428_v9 = vld [vmem:[#allocation14 + $0x56c] sm:$0xf0]  ;;  %v11943_v41 = vld [vmem:[#allocation14 + $0x378] sm:$0xf0] }
 0x3f8   :  { %6994 = vmatpush.bf16.msra.mxu0 %v10351_v59  ;;  %v12044_v59 = vld [vmem:[#allocation14 + $0x6a4] sm:$0xf]  ;;  %v6704_v13 = vpop.f32.mrf.mxu1  ;;  %6883 = vmatmul.bf16.vlgmr.msrb.gmra.mxu3 %v12918_v55  ;;  %v6715_v34 = vpop.f32.mrf.mxu2 }
 0x3f9   :  { %v10599_v56 = vor.u32 %v12044_v59, %v10596_v17  ;;  %6961 = vmatmul.bf16.vlgmr.msrb.gmra.mxu1 %v12918_v55  ;;  %v9818_v59 = vld [vmem:[#allocation14 + $0x88] sm:$0xf]  ;;  %v10515_v17 = vor.u32 %v12023_v46, %v10512_v60  ;;  %v12016_v13 = vld [vmem:[#allocation14 + $0x5c4] sm:$0xf] }
 0x3fa   :  { %7005 = vmatpush.bf16.msra.mxu1 %v10631_v49  ;;  %6967 = vmatpush.bf16.msrb.mxu2 %v9931_v1  ;;  %v11852_v49 = vld [vmem:[#allocation14 + $0xa0] sm:$0xf0]  ;;  %v6676_v1 = vpop.f32.mrf.mxu3  ;;  %v10826_v46 = vld [vmem:[#allocation14 + $0x868] sm:$0xf] }
 0x3fb   :  { %6928 = vmatpush.bf16.msra.mxu3 %v10599_v56  ;;  %v6677_v52 = vadd.f32 %v6676_v1, %v6664_v2  ;;  %v9819_v37 = vor.u32 %v11852_v49, %v9818_v59  ;;  %v12104_v60 = vld [vmem:[#allocation14 + $0x880] sm:$0xf0]  ;;  %v10798_v2 = vld [vmem:[#allocation14 + $0x830] sm:$0xf]  ;;  %v6573_v1 = vadd.f32 %v12964_v54, %v12951_v8  ;;  %v10098_v8 = vld [vmem:[#allocation14 + $0x2b8] sm:$0xf] }
 0x3fc   :  { %6995 = vmatpush.bf16.msra.mxu0 %v10323_v18  ;;  %v11873_v18 = vld [vmem:[#allocation14 + $0x148] sm:$0xf0]  ;;  %v11936_v59 = vld [vmem:[#allocation14 + $0x340] sm:$0xf0]  ;;  %v10827_v49 = vor.u32 %v12104_v60, %v10826_v46  ;;  %v11922_v54 = vld [vmem:[#allocation14 + $0x2d0] sm:$0xf0] }
 0x3fd   :  { %v9903_v15 = vor.u32 %v11873_v18, %v9902_v4  ;;  %v10490_v4 = vld [vmem:[#allocation14 + $0x5c8] sm:$0xf]  ;;  %v12020_v18 = vld [vmem:[#allocation14 + $0x5e0] sm:$0xf0]  ;;  %v6690_v32 = vadd.f32 %v12954_v7, %v6677_v52  ;;  %v10459_v7 = vor.u32 %v12009_v23, %v10456_v3  ;;  %v11929_v52 = vld [vmem:[#allocation14 + $0x308] sm:$0xf0] }
 0x3fe   :  { %7006 = vmatpush.bf16.msra.mxu1 %v10603_v57  ;;  %v10487_v57 = vor.u32 %v12016_v13, %v10484_v51  ;;  %v10491_v61 = vor.u32 %v12020_v18, %v10490_v4  ;;  %v12182_v13 = vld [vmem:[#allocation17 + $0x70] sm:$0xff]  ;;  %v10126_v51 = vld [vmem:[#allocation14 + $0x2f0] sm:$0xf]  ;;  %v12090_v4 = vld [vmem:[#allocation14 + $0x810] sm:$0xf0] }
 0x3ff   :  { %6968 = vmatpush.bf16.msrb.mxu2 %v9903_v15  ;;  %6929 = vmatpush.bf16.msra.mxu3 %v10571_v12  ;;  %v6703_v19 = vadd.f32 %v12971_v6, %v6690_v32  ;;  %v9762_v12 = vld [vmem:[#allocation14 + $0x18] sm:$0xf]  ;;  %v10127_v18 = vor.u32 %v11929_v52, %v10126_v51  ;;  %v12180_v3 = vld [vmem:[#allocation17 + $0x60] sm:$0xff] }
 0x400   :  { %6996 = vmatpush.bf16.msra.mxu0 %v10295_v25  ;;  %v10575_v25 = vor.u32 %v12041_v44, %v10574_v47  ;;  %v6754_v35 = vpop.f32.mrf.mxu1  ;;  %v6717_v47 = vpop.f32.mrf.mxu2  ;;  %v10462_v44 = vld [vmem:[#allocation14 + $0x590] sm:$0xf]  ;;  %v12190_v51 = vld [vmem:[#allocation17 + $0xb0] sm:$0xff]  ;;  %v11050_v52 = vld [vmem:[#allocation14 + $0xa28] sm:$0xf] }
 0x401   :  { %v12986_v38 = vadd.f32 %v6754_v35, %v6742_v28  ;;  %v10463_v53 = vor.u32 %v12013_v14, %v10462_v44  ;;  %v10434_v35 = vld [vmem:[#allocation14 + $0x558] sm:$0xf]  ;;  %v11915_v47 = vld [vmem:[#allocation14 + $0x298] sm:$0xf0] }
 0x402   :  { %7007 = vmatpush.bf16.msra.mxu1 %v10575_v25  ;;  %v12111_v25 = vld [vmem:[#allocation14 + $0x8b8] sm:$0xf0]  ;;  %v6678_v28 = vpop.f32.mrf.mxu3 }
 0x403   :  { %6969 = vmatpush.bf16.msrb.mxu2 %v9875_v30  ;;  %6930 = vmatpush.bf16.msra.mxu3 %v10543_v24  ;;  %v12002_v30 = vld [vmem:[#allocation14 + $0x554] sm:$0xf]  ;;  %v10855_v6 = vor.u32 %v12111_v25, %v10854_v11  ;;  %v12179_v25 = vld [vmem:[#allocation17 + $0x58] sm:$0xff] }
 0x404   :  { %6997 = vmatpush.bf16.msra.mxu0 %v10267_v21  ;;  %v10518_v21 = vld [vmem:[#allocation14 + $0x600] sm:$0xf] }
 0x405   :  { %v10519_v5 = vor.u32 %v12027_v22, %v10518_v21  ;;  %v12183_v21 = vld [vmem:[#allocation17 + $0x78] sm:$0xff]  ;;  %v10154_v22 = vld [vmem:[#allocation14 + $0x328] sm:$0xf] }
 0x406   :  { %7008 = vmatpush.bf16.msra.mxu1 %v10547_v39  ;;  %v10431_v39 = vor.u32 %v12002_v30, %v10428_v9  ;;  %v10686_v9 = vld [vmem:[#allocation14 + $0x750] sm:$0xf] }
 0x407   :  { %6970 = vmatpush.bf16.msrb.mxu2 %v9847_v45  ;;  %6931 = vmatpush.bf16.msra.mxu3 %v10515_v17  ;;  %v10183_v45 = vor.u32 %v11943_v41, %v10182_v36  ;;  %v12097_v17 = vld [vmem:[#allocation14 + $0x848] sm:$0xf0] }
 0x408   :  { %6998 = vmatpush.bf16.msra.mxu0 %v10239_v40  ;;  %v6756_v56 = vpop.f32.mrf.mxu1  ;;  %v11845_v40 = vld [vmem:[#allocation14 + $0x68] sm:$0xf0] }
 0x409   :  { %v12168_v56 = vld [vmem:[#allocation17] sm:$0xff] }
 0x40a   :  { %7009 = vmatpush.bf16.msra.mxu1 %v10519_v5  ;;  %v10155_v5 = vor.u32 %v11936_v59, %v10154_v22  ;;  %v11901_v36 = vld [vmem:[#allocation14 + $0x228] sm:$0xf0]  ;;  %v12191_v59 = vld [vmem:[#allocation17 + $0xb8] sm:$0xff] }
 0x40b   :  { %6971 = vmatpush.bf16.msrb.mxu2 %v9819_v37  ;;  %6932 = vmatpush.bf16.msra.mxu3 %v10487_v57  ;;  %v10799_v37 = vor.u32 %v12097_v17, %v10798_v2  ;;  %v12167_v2 = vld [vmem:[#allocation14 + $0xa78] sm:$0xf0] }
 0x40c   :  { %6999 = vmatpush.bf16.msra.mxu0 %v10211_v20  ;;  %v12991_v16 = vpop.f32.mrf.mxu0  ;;  %v11838_v20 = vld [vmem:[#allocation14 + $0x30] sm:$0xf0] }
 0x40d   :  { %v9763_v27 = vor.u32 %v11838_v20, %v9762_v12  ;;  %v10714_v12 = vld [vmem:[#allocation14 + $0x788] sm:$0xf]  ;;  %v12076_v20 = vld [vmem:[#allocation14 + $0x7a0] sm:$0xf0] }
 0x40e   :  { %7010 = vmatpush.bf16.msra.mxu1 %v10491_v61  ;;  %v10742_v61 = vld [vmem:[#allocation14 + $0x7c0] sm:$0xf]  ;;  %v10715_v28 = vor.u32 %v12076_v20, %v10714_v12 }
 0x40f   :  { %7000 = vmatmul.bf16.vlgmr.msra.gmra.mxu0 %v12869_v29  ;;  %v9790_v29 = vld [vmem:[#allocation14 + $0x50] sm:$0xf]  ;;  %6933 = vmatpush.bf16.msra.mxu3 %v10459_v7 }
 0x410   :  { %7510 = vmatpush.bf16.msrb.mxu0 %v12175_v26  ;;  %v9791_v15 = vor.u32 %v11845_v40, %v9790_v29  ;;  %v12994_v26 = vadd.f32 %v6715_v34, %v6703_v19  ;;  %v12170_v34 = vld [vmem:[#allocation17 + $0x10] sm:$0xff]  ;;  %v7044_v29 = vmax.f32 %v6573_v1, 0.0  ;;  %v12181_v40 = vld [vmem:[#allocation17 + $0x68] sm:$0xff]  ;;  %v7045_v1 = vmax.f32 %v12977_v31, 0.0 }
 0x412   :  { %6972 = vmatpush.bf16.msrb.mxu2 %v9791_v15  ;;  %7011 = vmatpush.bf16.msra.mxu1 %v10463_v53  ;;  %v7051_v23 = vpack.c.bf16 %v7044_v29, %v7044_v29  ;;  %v10070_v15 = vld [vmem:[#allocation14 + $0x280] sm:$0xf]  ;;  %v10042_v53 = vld [vmem:[#allocation14 + $0x248] sm:$0xf]  ;;  %v12153_v29 = vld [vmem:[#allocation14 + $0xa08] sm:$0xf0] }
 0x413   :  { %6934 = vmatpush.bf16.msra.mxu3 %v10431_v39  ;;  %v10071_v7 = vor.u32 %v11915_v47, %v10070_v15  ;;  %v10658_v39 = vld [vmem:[#allocation14 + $0x718] sm:$0xf] }
 0x414   :  { %7511 = vmatpush.bf16.msrb.mxu0 %v12174_v43  ;;  %v6795_v24 = vpop.f32.mrf.mxu0  ;;  %v10435_v43 = vor.u32 %v12006_v58, %v10434_v35  ;;  %v12178_v58 = vld [vmem:[#allocation17 + $0x50] sm:$0xff] }
 0x415   :  { %v12186_v47 = vld [vmem:[#allocation17 + $0x90] sm:$0xff] }
 0x416   :  { %6973 = vmatpush.bf16.msrb.mxu2 %v9763_v27  ;;  %7012 = vmatpush.bf16.msra.mxu1 %v10435_v43  ;;  %v13001_v57 = vpop.f32.mrf.mxu1  ;;  %v12069_v27 = vld [vmem:[#allocation14 + $0x768] sm:$0xf0]  ;;  %v12062_v43 = vld [vmem:[#allocation14 + $0x730] sm:$0xf0] }
 0x417   :  { %6979 = vmatpush.bf16.msrb.mxu3 %v10183_v45  ;;  %v10687_v41 = vor.u32 %v12069_v27, %v10686_v9  ;;  %v12177_v45 = vld [vmem:[#allocation17 + $0x48] sm:$0xff]  ;;  %v10659_v22 = vor.u32 %v12062_v43, %v10658_v39  ;;  %v12207_v9 = vld [vmem:[#allocation17 + $0x138] sm:$0xff] }
 0x418   :  { %7512 = vmatpush.bf16.msrb.mxu0 %v12173_v50  ;;  %v12169_v50 = vld [vmem:[#allocation17 + $0x8] sm:$0xff]  ;;  %6935 = vmatmul.bf16.vlgmr.msra.gmra.mxu3 %v12882_v10  ;;  %v6767_v14 = vpop.f32.mrf.mxu2  ;;  %v12199_v43 = vld [vmem:[#allocation17 + $0xf8] sm:$0xff] }
 0x419   :  { %6974 = vmatmul.bf16.vlgmr.msrb.gmra.mxu2 %v12840_v63  ;;  %7013 = vmatmul.bf16.vlgmr.msra.gmra.mxu1 %v12882_v10  ;;  %v10770_v63 = vld [vmem:[#allocation14 + $0x7f8] sm:$0xf]  ;;  %v10099_v10 = vor.u32 %v11922_v54, %v10098_v8  ;;  %v13004_v19 = vadd.f32 %v6767_v14, %v12986_v38  ;;  %v12146_v54 = vld [vmem:[#allocation14 + $0x9d0] sm:$0xf0]  ;;  %v12132_v14 = vld [vmem:[#allocation14 + $0x960] sm:$0xf0] }
 0x41a   :  { %7018 = vmatpush.bf16.msra.mxu2 %v10855_v6  ;;  %7523 = vmatpush.bf16.msrb.mxu1 %v12183_v21  ;;  %v10771_v32 = vor.u32 %v12090_v4, %v10770_v63  ;;  %v10014_v6 = vld [vmem:[#allocation14 + $0x210] sm:$0xf]  ;;  %v11894_v21 = vld [vmem:[#allocation14 + $0x1f0] sm:$0xf0]  ;;  %v7052_v63 = vpack.c.bf16 %v7045_v1, %v7045_v1  ;;  %v10994_v8 = vld [vmem:[#allocation14 + $0x9b8] sm:$0xf] }
 0x41b   :  { %6980 = vmatpush.bf16.msrb.mxu3 %v10155_v5  ;;  %v13006_v11 = vpop.f32.mrf.mxu3  ;;  %v10015_v46 = vor.u32 %v11901_v36, %v10014_v6  ;;  %v10882_v6 = vld [vmem:[#allocation14 + $0x8d8] sm:$0xf]  ;;  %v12118_v36 = vld [vmem:[#allocation14 + $0x8f0] sm:$0xf0]  ;;  %v12200_v1 = vld [vmem:[#allocation17 + $0x100] sm:$0xff] }
 0x41c   :  { %7513 = vmatpush.bf16.msrb.mxu0 %v12172_v0  ;;  %v12083_v0 = vld [vmem:[#allocation14 + $0x7d8] sm:$0xf0]  ;;  %v10883_v39 = vor.u32 %v12118_v36, %v10882_v6 }
 0x41d   :  { %v10743_v44 = vor.u32 %v12083_v0, %v10742_v61  ;;  %v12187_v61 = vld [vmem:[#allocation17 + $0x98] sm:$0xff] }
 0x41e   :  { %7019 = vmatpush.bf16.msra.mxu2 %v10827_v49  ;;  %7524 = vmatpush.bf16.msrb.mxu1 %v12182_v13  ;;  %v6808_v30 = vpop.f32.mrf.mxu1  ;;  %v11078_v49 = vld [vmem:[#allocation14 + $0xa60] sm:$0xf] }
 0x41f   :  { %6981 = vmatpush.bf16.msrb.mxu3 %v10127_v18  ;;  %v11079_v13 = vor.u32 %v12167_v2, %v11078_v49  ;;  %v12189_v18 = vld [vmem:[#allocation17 + $0xa8] sm:$0xff]  ;;  %v10966_v0 = vld [vmem:[#allocation14 + $0x980] sm:$0xf]  ;;  %v12125_v30 = vld [vmem:[#allocation14 + $0x928] sm:$0xf0] }
 0x420   :  { %7514 = vmatpush.bf16.msrb.mxu0 %v12171_v33  ;;  %v11908_v33 = vld [vmem:[#allocation14 + $0x260] sm:$0xf0]  ;;  %v6769_v24 = vpop.f32.mrf.mxu2 }
 0x421   :  { %v10043_v38 = vor.u32 %v11908_v33, %v10042_v53  ;;  %v12185_v53 = vld [vmem:[#allocation17 + $0x88] sm:$0xff]  ;;  %v12195_v2 = vld [vmem:[#allocation17 + $0xd8] sm:$0xff] }
 0x422   :  { %7020 = vmatpush.bf16.msra.mxu2 %v10799_v37  ;;  %7525 = vmatpush.bf16.msrb.mxu1 %v12181_v40  ;;  %v12160_v37 = vld [vmem:[#allocation14 + $0xa40] sm:$0xf0]  ;;  %v12188_v40 = vld [vmem:[#allocation17 + $0xa0] sm:$0xff] }
 0x423   :  { %6982 = vmatpush.bf16.msrb.mxu3 %v10099_v10  ;;  %v6730_v60 = vpop.f32.mrf.mxu3  ;;  %v11051_v4 = vor.u32 %v12160_v37, %v11050_v52  ;;  %v12139_v10 = vld [vmem:[#allocation14 + $0x998] sm:$0xf0]  ;;  %v12215_v52 = vld [vmem:[#allocation17 + $0x178] sm:$0xff]  ;;  %v12193_v37 = vld [vmem:[#allocation17 + $0xc8] sm:$0xff] }
 0x424   :  { %7515 = vmatpush.bf16.msrb.mxu0 %v12170_v34  ;;  %v9986_v34 = vld [vmem:[#allocation14 + $0x1d8] sm:$0xf] }
 0x425   :  { %v9987_v5 = vor.u32 %v11894_v21, %v9986_v34  ;;  %v12197_v34 = vld [vmem:[#allocation17 + $0xe8] sm:$0xff]  ;;  %v12202_v21 = vld [vmem:[#allocation17 + $0x110] sm:$0xff] }
 0x426   :  { %7021 = vmatpush.bf16.msra.mxu2 %v10771_v32  ;;  %7526 = vmatpush.bf16.msrb.mxu1 %v12180_v3 }
 0x427   :  { %6983 = vmatpush.bf16.msrb.mxu3 %v10071_v7 }
 0x428   :  { %7516 = vmatpush.bf16.msrb.mxu0 %v12169_v50  ;;  %v12176_v50 = vld [vmem:[#allocation17 + $0x40] sm:$0xff] }
 0x42a   :  { %7022 = vmatpush.bf16.msra.mxu2 %v10743_v44  ;;  %7527 = vmatpush.bf16.msrb.mxu1 %v12179_v25  ;;  %v10938_v44 = vld [vmem:[#allocation14 + $0x948] sm:$0xf] }
 0x42b   :  { %6984 = vmatpush.bf16.msrb.mxu3 %v10043_v38  ;;  %v10939_v25 = vor.u32 %v12132_v14, %v10938_v44 }
 0x42c   :  { %7517 = vmatpush.bf16.msrb.mxu0 %v12168_v56  ;;  %v13008_v35 = vpop.f32.mrf.mxu0  ;;  %v11022_v56 = vld [vmem:[#allocation14 + $0x9f0] sm:$0xf] }
 0x42d   :  { %v11023_v31 = vor.u32 %v12153_v29, %v11022_v56  ;;  %v12192_v56 = vld [vmem:[#allocation17 + $0xc0] sm:$0xff] }
 0x42e   :  { %7023 = vmatpush.bf16.msra.mxu2 %v10715_v28  ;;  %7528 = vmatpush.bf16.msrb.mxu1 %v12178_v58  ;;  %v10910_v28 = vld [vmem:[#allocation14 + $0x910] sm:$0xf]  ;;  %v12184_v58 = vld [vmem:[#allocation17 + $0x80] sm:$0xff] }
 0x42f   :  { %7518 = vmatmul.bf16.vlgmr.msrb.gmra.mxu0 %v7051_v23  ;;  %6985 = vmatpush.bf16.msrb.mxu3 %v10015_v46  ;;  %v10967_v23 = vor.u32 %v12139_v10, %v10966_v0  ;;  %v12205_v46 = vld [vmem:[#allocation17 + $0x128] sm:$0xff]  ;;  %v12211_v10 = vld [vmem:[#allocation17 + $0x158] sm:$0xff] }
 0x430   :  { %7562 = vmatpush.bf16.msra.mxu0 %v12207_v9 }
 0x432   :  { %7024 = vmatpush.bf16.msra.mxu2 %v10687_v41  ;;  %7529 = vmatpush.bf16.msrb.mxu1 %v12177_v45  ;;  %v12206_v41 = vld [vmem:[#allocation17 + $0x130] sm:$0xff]  ;;  %v12203_v45 = vld [vmem:[#allocation17 + $0x118] sm:$0xff] }
 0x433   :  { %6986 = vmatpush.bf16.msrb.mxu3 %v9987_v5 }
 0x434   :  { %v6847_v17 = vpop.f32.mrf.mxu0  ;;  %7563 = vmatpush.bf16.msra.mxu0 %v12206_v41  ;;  %v12223_v41 = vld [vmem:[#allocation17 + $0x1b8] sm:$0xff] }
 0x435   :  { %v12201_v17 = vld [vmem:[#allocation17 + $0x108] sm:$0xff] }
 0x436   :  { %7025 = vmatpush.bf16.msra.mxu2 %v10659_v22  ;;  %7530 = vmatpush.bf16.msrb.mxu1 %v12176_v50  ;;  %v13013_v32 = vpop.f32.mrf.mxu1 }
 0x437   :  { %7031 = vmatpush.bf16.msra.mxu3 %v11079_v13 }
 0x438   :  { %6987 = vmatmul.bf16.vlgmr.msrb.gmra.mxu3 %v12854_v48  ;;  %v13015_v48 = vpop.f32.mrf.mxu2  ;;  %7564 = vmatpush.bf16.msra.mxu0 %v12205_v46 }
 0x439   :  { %7026 = vmatmul.bf16.vlgmr.msra.gmra.mxu2 %v12902_v62  ;;  %7531 = vmatmul.bf16.vlgmr.msrb.gmra.mxu1 %v7052_v63  ;;  %v10995_v62 = vor.u32 %v12146_v54, %v10994_v8 }
 0x43a   :  { %7536 = vmatpush.bf16.msrb.mxu2 %v12191_v59  ;;  %v12196_v59 = vld [vmem:[#allocation17 + $0xe0] sm:$0xff]  ;;  %7575 = vmatpush.bf16.msra.mxu1 %v12215_v52 }
 0x43b   :  { %7032 = vmatpush.bf16.msra.mxu3 %v11051_v4  ;;  %v6780_v3 = vpop.f32.mrf.mxu3  ;;  %v12214_v4 = vld [vmem:[#allocation17 + $0x170] sm:$0xff] }
 0x43c   :  { %v6781_v15 = vadd.f32 %v6780_v3, %v13004_v19  ;;  %v6729_v19 = vadd.f32 %v13006_v11, %v12994_v26  ;;  %v12204_v26 = vld [vmem:[#allocation17 + $0x120] sm:$0xff]  ;;  %v12198_v11 = vld [vmem:[#allocation17 + $0xf0] sm:$0xff] }
 0x43d   :  { %7565 = vmatpush.bf16.msra.mxu0 %v12204_v26 }
 0x43e   :  { %7537 = vmatpush.bf16.msrb.mxu2 %v12190_v51  ;;  %v6794_v12 = vadd.f32 %v12991_v16, %v6781_v15  ;;  %v6860_v20 = vpop.f32.mrf.mxu1  ;;  %v10911_v16 = vor.u32 %v12125_v30, %v10910_v28  ;;  %v7046_v24 = vmax.f32 %v6729_v19, 0.0  ;;  %7576 = vmatpush.bf16.msra.mxu1 %v12214_v4  ;;  %v12208_v30 = vld [vmem:[#allocation17 + $0x140] sm:$0xff] }
 0x43f   :  { %7033 = vmatpush.bf16.msra.mxu3 %v11023_v31 }
 0x440   :  { %v13022_v33 = vadd.f32 %v13001_v57, %v6794_v12  ;;  %v6821_v27 = vpop.f32.mrf.mxu2  ;;  %v7053_v60 = vpack.c.bf16 %v7046_v24, %v7046_v24  ;;  %v12209_v12 = vld [vmem:[#allocation17 + $0x148] sm:$0xff] }
 0x441   :  { %7566 = vmatpush.bf16.msra.mxu0 %v12203_v45  ;;  %v12221_v45 = vld [vmem:[#allocation17 + $0x1a8] sm:$0xff] }
 0x442   :  { %7538 = vmatpush.bf16.msrb.mxu2 %v12189_v18  ;;  %v4760_v18 = vperm.slane %v12980_v42, 4  ;;  %v7047_v29 = vmax.f32 %v13022_v33, 0.0 }
 0x443   :  { %7034 = vmatpush.bf16.msra.mxu3 %v10995_v62  ;;  %v6782_v38 = vpop.f32.mrf.mxu3  ;;  %v12212_v62 = vld [vmem:[#allocation17 + $0x160] sm:$0xff] }
 0x444   :  { %v6820_v8 = vadd.f32 %v13015_v48, %v4760_v18  ;;  %v7054_v54 = vpack.c.bf16 %v7047_v29, %v7047_v29 }
 0x445   :  { %7567 = vmatpush.bf16.msra.mxu0 %v12202_v21  ;;  %v12220_v21 = vld [vmem:[#allocation17 + $0x1a0] sm:$0xff] }
 0x446   :  { %7539 = vmatpush.bf16.msrb.mxu2 %v12188_v40  ;;  %v12213_v40 = vld [vmem:[#allocation17 + $0x168] sm:$0xff] }
 0x447   :  { %7035 = vmatpush.bf16.msra.mxu3 %v10967_v23  ;;  %7577 = vmatpush.bf16.msra.mxu1 %v12213_v40 }
 0x449   :  { %7568 = vmatpush.bf16.msra.mxu0 %v12201_v17 }
 0x44a   :  { %7540 = vmatpush.bf16.msrb.mxu2 %v12187_v61 }
 0x44b   :  { %7036 = vmatpush.bf16.msra.mxu3 %v10939_v25  ;;  %7578 = vmatpush.bf16.msra.mxu1 %v12212_v62 }
 0x44c   :  { %v13019_v7 = vpop.f32.mrf.mxu0 }
 0x44d   :  { %7569 = vmatpush.bf16.msra.mxu0 %v12200_v1 }
 0x44e   :  { %7541 = vmatpush.bf16.msrb.mxu2 %v12186_v47  ;;  %v12210_v47 = vld [vmem:[#allocation17 + $0x150] sm:$0xff] }
 0x44f   :  { %7037 = vmatpush.bf16.msra.mxu3 %v10911_v16  ;;  %7579 = vmatpush.bf16.msra.mxu1 %v12211_v10 }
 0x452   :  { %7542 = vmatpush.bf16.msrb.mxu2 %v12185_v53 }
 0x453   :  { %7038 = vmatpush.bf16.msra.mxu3 %v10883_v39  ;;  %7580 = vmatpush.bf16.msra.mxu1 %v12210_v47 }
 0x454   :  { %v6899_v57 = vpop.f32.mrf.mxu0 }
 0x456   :  { %7543 = vmatpush.bf16.msrb.mxu2 %v12184_v58  ;;  %7039 = vmatmul.bf16.vlgmr.msra.gmra.mxu3 %v12918_v55  ;;  %v13027_v22 = vpop.f32.mrf.mxu1  ;;  %v12194_v55 = vld [vmem:[#allocation17 + $0xd0] sm:$0xff] }
 0x457   :  { %7549 = vmatpush.bf16.msrb.mxu3 %v12199_v43  ;;  %7581 = vmatpush.bf16.msra.mxu1 %v12209_v12 }
 0x458   :  { %v6871_v49 = vpop.f32.mrf.mxu2 }
 0x459   :  { %7544 = vmatmul.bf16.vlgmr.msrb.gmra.mxu2 %v7053_v60  ;;  %v12222_v60 = vld [vmem:[#allocation17 + $0x1b0] sm:$0xff] }
 0x45a   :  { %7588 = vmatpush.bf16.msra.mxu2 %v12223_v41 }
 0x45b   :  { %7550 = vmatpush.bf16.msrb.mxu3 %v12198_v11  ;;  %v6832_v5 = vpop.f32.mrf.mxu3  ;;  %7582 = vmatpush.bf16.msra.mxu1 %v12208_v30 }
 0x45c   :  { %v6833_v61 = vadd.f32 %v6832_v5, %v6820_v8 }
 0x45e   :  { %v6912_v50 = vpop.f32.mrf.mxu1  ;;  %v6846_v0 = vadd.f32 %v13008_v35, %v6833_v61  ;;  %7589 = vmatpush.bf16.msra.mxu2 %v12222_v60 }
 0x45f   :  { %7551 = vmatpush.bf16.msrb.mxu3 %v12197_v34  ;;  %v12217_v50 = vld [vmem:[#allocation17 + $0x188] sm:$0xff] }
 0x460   :  { %v6873_v51 = vpop.f32.mrf.mxu2  ;;  %v6859_v3 = vadd.f32 %v13013_v32, %v6846_v0  ;;  %v4761_v32 = vperm.slane %v12980_v42, 5 }
 0x462   :  { %v6872_v44 = vadd.f32 %v6871_v49, %v6859_v3  ;;  %v6898_v19 = vadd.f32 %v13019_v7, %v4761_v32  ;;  %7590 = vmatpush.bf16.msra.mxu2 %v12221_v45  ;;  %v12218_v49 = vld [vmem:[#allocation17 + $0x190] sm:$0xff] }
 0x463   :  { %7552 = vmatpush.bf16.msrb.mxu3 %v12196_v59  ;;  %v6834_v63 = vpop.f32.mrf.mxu3  ;;  %v12246_v59 = vld [vmem:[#allocation19] ss:$0 sm:$0xff] }
 0x464   :  { %v6911_v16 = vadd.f32 %v13027_v22, %v6898_v19  ;;  %v12219_v22 = vld [vmem:[#allocation17 + $0x198] sm:$0xff]  ;;  %v4762_v63 = vperm.slane %v12980_v42, 6 }
 0x466   :  { %7591 = vmatpush.bf16.msra.mxu2 %v12220_v21 }
 0x467   :  { %7553 = vmatpush.bf16.msrb.mxu3 %v12195_v2 }
 0x46a   :  { %7592 = vmatpush.bf16.msra.mxu2 %v12219_v22 }
 0x46b   :  { %7554 = vmatpush.bf16.msrb.mxu3 %v12194_v55 }
 0x46c   :  { %v6949_v13 = vpop.f32.mrf.mxu0 }
 0x46e   :  { %7593 = vmatpush.bf16.msra.mxu2 %v12218_v49 }
 0x46f   :  { %7555 = vmatpush.bf16.msrb.mxu3 %v12193_v37 }
 0x472   :  { %7594 = vmatpush.bf16.msra.mxu2 %v12217_v50 }
 0x473   :  { %7556 = vmatpush.bf16.msrb.mxu3 %v12192_v56 }
 0x474   :  { %v6951_v31 = vpop.f32.mrf.mxu0 }
 0x476   :  { %7557 = vmatmul.bf16.vlgmr.msrb.gmra.mxu3 %v7054_v54  ;;  %v6962_v23 = vpop.f32.mrf.mxu1 }
 0x478   :  { %v6923_v15 = vpop.f32.mrf.mxu2 }
 0x479   :  { %v6924_v58 = vadd.f32 %v6923_v15, %v6911_v16 }
 0x47b   :  { %v6884_v14 = vpop.f32.mrf.mxu3 }
 0x47c   :  { %v6885_v48 = vadd.f32 %v6884_v14, %v6872_v44 }
 0x47e   :  { %v7048_v20 = vmax.f32 %v6885_v48, 0.0  ;;  %v6964_v25 = vpop.f32.mrf.mxu1 }
 0x480   :  { %v7055_v33 = vpack.c.bf16 %v7048_v20, %v7048_v20  ;;  %v6925_v28 = vpop.f32.mrf.mxu2 }
 0x482   :  { %7570 = vmatmul.bf16.vlgmr.msra.gmra.mxu0 %v7055_v33 }
 0x483   :  { %v6886_v35 = vpop.f32.mrf.mxu3 }
 0x48c   :  { %v7001_v53 = vpop.f32.mrf.mxu0 }
 0x494   :  { %v7003_v9 = vpop.f32.mrf.mxu0 }
 0x496   :  { %v7014_v27 = vpop.f32.mrf.mxu1 }
 0x49b   :  { %v6936_v6 = vpop.f32.mrf.mxu3 }
 0x49c   :  { %v6975_v38 = vpop.f32.mrf.mxu2  ;;  %v6937_v36 = vadd.f32 %v6936_v6, %v6924_v58 }
 0x49d   :  { %v6976_v4 = vadd.f32 %v6975_v38, %v4762_v63 }
 0x49e   :  { %v6950_v24 = vadd.f32 %v6949_v13, %v6937_v36  ;;  %v7016_v57 = vpop.f32.mrf.mxu1  ;;  %v12216_v13 = vld [vmem:[#allocation17 + $0x180] sm:$0xff] }
 0x49f   :  { %7595 = vmatpush.bf16.msra.mxu2 %v12216_v13 }
 0x4a0   :  { %v6963_v43 = vadd.f32 %v6962_v23, %v6950_v24 }
 0x4a2   :  { %v7049_v26 = vmax.f32 %v6963_v43, 0.0 }
 0x4a3   :  { %v6938_v11 = vpop.f32.mrf.mxu3 }
 0x4a4   :  { %v6977_v46 = vpop.f32.mrf.mxu2  ;;  %v7056_v7 = vpack.c.bf16 %v7049_v26, %v7049_v26 }
 0x4a6   :  { %7583 = vmatmul.bf16.vlgmr.msra.gmra.mxu1 %v7056_v7 }
 0x4ac   :  { %v7519_v39 = vpop.f32.mrf.mxu0 }
 0x4ad   :  { %v7520_v2 = vadd.f32 %v12246_v59, %v7519_v39 }
 0x4b4   :  { %v7521_v34 = vpop.f32.mrf.mxu0 }
 0x4b6   :  { %v7532_v17 = vpop.f32.mrf.mxu1 }
 0x4b7   :  { %v7533_v5 = vadd.f32 %v7532_v17, %v7520_v2 }
 0x4bb   :  { %v6988_v1 = vpop.f32.mrf.mxu3 }
 0x4bc   :  { %v7027_v55 = vpop.f32.mrf.mxu2  ;;  %v6989_v18 = vadd.f32 %v6988_v1, %v6976_v4 }
 0x4be   :  { %v7534_v51 = vpop.f32.mrf.mxu1  ;;  %v7002_v56 = vadd.f32 %v7001_v53, %v6989_v18 }
 0x4c0   :  { %v7015_v29 = vadd.f32 %v7014_v27, %v7002_v56 }
 0x4c2   :  { %v7028_v8 = vadd.f32 %v7027_v55, %v7015_v29 }
 0x4c3   :  { %v6990_v37 = vpop.f32.mrf.mxu3 }
 0x4c4   :  { %v7029_v52 = vpop.f32.mrf.mxu2 }
 0x4d9   :  { %v7040_v54 = vpop.f32.mrf.mxu3 }
 0x4da   :  { %v7041_v62 = vadd.f32 %v7040_v54, %v7028_v8 }
 0x4dc   :  { %v7545_v31 = vpop.f32.mrf.mxu2  ;;  %v7050_v61 = vmax.f32 %v7041_v62, 0.0 }
 0x4dd   :  { %v7546_v40 = vadd.f32 %v7545_v31, %v7533_v5 }
 0x4de   :  { %v7057_v0 = vpack.c.bf16 %v7050_v61, %v7050_v61 }
 0x4e0   :  { %7596 = vmatmul.bf16.vlgmr.msra.gmra.mxu2 %v7057_v0 }
 0x4e1   :  { %v7042_v23 = vpop.f32.mrf.mxu3 }
 0x4e4   :  { %v7547_v10 = vpop.f32.mrf.mxu2 }
 0x4f9   :  { %v7558_v3 = vpop.f32.mrf.mxu3 }
 0x4fa   :  { %v7559_v15 = vadd.f32 %v7558_v3, %v7546_v40 }
 0x4ff   :  { %v7571_v44 = vpop.f32.mrf.mxu0 }
 0x500   :  { %v7572_v14 = vadd.f32 %v7571_v44, %v7559_v15 }
 0x501   :  { %v7560_v47 = vpop.f32.mrf.mxu3 }
 0x507   :  { %v7573_v42 = vpop.f32.mrf.mxu0 }
 0x523   :  { %v7584_v48 = vpop.f32.mrf.mxu1 }
 0x524   :  { %v7585_v20 = vadd.f32 %v7584_v48, %v7572_v14 }
 0x52b   :  { %v7586_v12 = vpop.f32.mrf.mxu1 }
 0x563   :  { %v7597_v25 = vpop.f32.mrf.mxu2 }
 0x564   :  { %v7598_v53 = vadd.f32 %v7597_v25, %v7585_v20 }
 0x566   :  { %7601 = vst [vmem:[#allocation20] sm:$0xff] %v7598_v53 }
 0x567   :  { %7612 = dma.vmem_to_hbm [thread:$0]  %s7608_s10, 128, %s7610_s13, [#allocation4]  }
 0x56b   :  { %v7599_v33 = vpop.f32.mrf.mxu2 }
 0x56c   :  { %12549 = dma.done.wait [#allocation4], 128  }
 0x56d   :  { %12550 = vsyncadd [#allocation4], 4294967168 }
 0x56e   :  { %7617 = vsyncpa [#allocation3], 1 }
 0x56f   :  { %7618 = vsyncpa [#allocation6], 1 }
 0x570   :  { %7619 = vsyncpa [#allocation9], 1 }
 0x571   :  { %7620 = vsyncpa [#allocation12], 1 }
 0x572   :  { %7621 = vsyncpa [#allocation15], 1 }
 0x573   :  { %7622 = vsyncpa [#allocation18], 1 }
 0x574   :  { %7623 = vsyncpa [#allocation4], 1 }

</bundles_post_ra>
